<compile_context>
chip_gen: v7x
topology: tpu7x:2x2x1
jax: 0.10.0
libtpu: 0.0.40
codegen_flags: <defaults>
</compile_context>

<pallas_src>
import functools

import jax
import jax.numpy as jnp
from jax.experimental import pallas as pl
from jax.experimental.pallas import tpu as pltpu


def _round_up(v, m):
    return (v + m - 1) // m * m


def _conv_block_kernel(xf_ref, w1_ref, w2_ref, out_ref, pad_ref, *,
                       H, W, Wp, lead, eps):
    """Fused ConvBlock forward for one batch element.

    xf_ref : ((H+2)*(W+2) + 2, Cp)  bf16 reflection-padded input, row-major
                                    flattened (+2 zero rows for tap overrun)
    w1_ref : (3, 3*Cp, Cp)          bf16 stage-1 weights (kh major, kw packed
                                    along the contraction axis)
    w2_ref : (3, 3*Cp, Cop)         bf16 stage-2 weights
    out_ref: (H*(W+2), Cop)         f32 output, flat rows j = h*(W+2)+w; the
                                    last 2 columns of each row are layout
                                    padding dropped by the wrapper
    pad_ref: (lead + (H+2)*(W+2) + 2, Cp) f32 scratch: stage-1 accumulator,
                                    then the reflection-padded stage-1 output
    """
    n = H * Wp
    Hp = H + 2
    Cp = pad_ref.shape[-1]
    i0 = lead + Wp + 1  # interior start in pad_ref; multiple of 8 by construction

    # Mask for InstanceNorm statistics: flat row j = h*Wp + w; the columns
    # w >= W of each row are layout padding and must not contribute.
    col = jax.lax.broadcasted_iota(jnp.int32, (n, 1), 0) % Wp
    valid = col < W
    inv_nhw = 1.0 / float(H * W)

    def conv3x3(load_tap, w_ref, acc):
        # 3x3 conv = 3 MXU matmuls with K = 3*Cp: the three kw-taps of each kh
        # are packed along the lane axis.  bf16 operands, f32 accumulation
        # into a VMEM-resident accumulator ref.
        for kh in range(3):
            lhs = jnp.concatenate(
                [load_tap(kh * Wp + kw) for kw in range(3)], axis=-1)
            part = jnp.dot(lhs, w_ref[kh], preferred_element_type=jnp.float32)
            if kh == 0:
                acc[...] = part
            else:
                acc[...] += part

    def instance_norm(acc, relu):
        # Masked, biased statistics in f32, single masked traversal.
        a = jnp.where(valid, acc[...], 0.0)
        mean = jnp.sum(a, axis=0, keepdims=True) * inv_nhw
        ex2 = jnp.sum(a * a, axis=0, keepdims=True) * inv_nhw
        scale = jax.lax.rsqrt(jnp.maximum(ex2 - mean * mean, 0.0) + eps)
        y = (acc[...] - mean) * scale
        if relu:
            y = jnp.maximum(y, 0.0)
        acc[...] = y

    # ---- Stage 1: Conv3x3 on the padded input -> InstanceNorm -> ReLU ------
    # Written directly into the interior of the stage-2 padded buffer (shifted
    # by one padded row + one padded column).
    interior = pad_ref.at[pl.ds(i0, n), :]
    conv3x3(lambda off: xf_ref[pl.ds(off, n), :], w1_ref, interior)
    instance_norm(interior, relu=True)

    # ---- In-kernel ReflectionPad2d(1) of the stage-1 activation ------------
    # The shifted interior store deposited the two layout-garbage columns of
    # each flat row onto pad positions; every pad position is rewritten with
    # the correct reflected value below (columns first, then rows, so the
    # corner values copied with the top/bottom rows are already correct).
    pad_ref[pl.ds(lead + Hp * Wp, 2), :] = jnp.zeros((2, Cp), pad_ref.dtype)
    # TODO(synk): for large H replace this unrolled per-row edge fix-up with a
    # strided copy (pl.ds(..., stride=Wp)) or a roll-based construction.
    for hp in range(1, H + 1):
        base = lead + hp * Wp
        pad_ref[pl.ds(base, 1), :] = pad_ref[pl.ds(base + 2, 1), :]
        pad_ref[pl.ds(base + W + 1, 1), :] = pad_ref[pl.ds(base + W - 1, 1), :]
    pad_ref[pl.ds(lead, Wp), :] = pad_ref[pl.ds(lead + 2 * Wp, Wp), :]
    pad_ref[pl.ds(lead + (H + 1) * Wp, Wp), :] = (
        pad_ref[pl.ds(lead + (H - 1) * Wp, Wp), :])

    # ---- Stage 2: Conv3x3 on the padded activation -> InstanceNorm ---------
    conv3x3(
        lambda off: pad_ref[pl.ds(lead + off, n), :].astype(jnp.bfloat16),
        w2_ref, out_ref)
    instance_norm(out_ref, relu=False)


def conv_block(x, w1, b1, w2, b2, *, eps=1e-5):
    """ConvBlock forward.  x: (B, Cin, H, W) NCHW f32 -> (B, Cout, H, W) f32.

    b1 / b2 are accepted for parity with the PyTorch module's parameters but
    are unused: InstanceNorm2d(affine=False) cancels the conv bias exactly.
    Matmuls use the native TPU MXU path (bf16 operands, f32 accumulation).
    """
    del b1, b2
    B, Cin, H, W = x.shape
    Cout = w2.shape[0]
    Hp, Wp = H + 2, W + 2
    n = H * Wp
    Cp = _round_up(Cin, 128)    # lane-dense input / intermediate channels
    Cop = _round_up(Cout, 128)  # lane-dense output channels
    lead = (-(Wp + 1)) % 8      # aligns the pad-scratch interior to 8 sublanes

    # ---- wrapper-side layout glue (bf16; runs once, before the fused kernel)
    x_nhwc = jnp.transpose(x, (0, 2, 3, 1)).astype(jnp.bfloat16)
    xp = jnp.pad(x_nhwc, ((0, 0), (1, 1), (1, 1), (0, 0)), mode="reflect")
    xp = jnp.pad(xp, ((0, 0), (0, 0), (0, 0), (0, Cp - Cin)))
    xf = xp.reshape(B, Hp * Wp, Cp)
    # two trailing zero rows keep every in-kernel tap slice in bounds
    xf = jnp.concatenate([xf, jnp.zeros((B, 2, Cp), xf.dtype)], axis=1)

    # Weights: (O, I, kh, kw) -> tap-major (9, I, O), zero-pad channels to the
    # lane width, then pack the 3 kw-taps of each kh along the K axis.
    w1r = jnp.transpose(w1, (2, 3, 1, 0)).reshape(9, Cin, Cin)
    w1r = jnp.pad(w1r, ((0, 0), (0, Cp - Cin), (0, Cp - Cin)))
    w1r = w1r.reshape(3, 3 * Cp, Cp).astype(jnp.bfloat16)
    w2r = jnp.transpose(w2, (2, 3, 1, 0)).reshape(9, Cin, Cout)
    w2r = jnp.pad(w2r, ((0, 0), (0, Cp - Cin), (0, Cop - Cout)))
    w2r = w2r.reshape(3, 3 * Cp, Cop).astype(jnp.bfloat16)

    kernel = functools.partial(
        _conv_block_kernel, H=H, W=W, Wp=Wp, lead=lead, eps=eps)

    flops = 2 * 9 * B * n * Cp * (Cp + Cop)
    bytes_accessed = (xf.size * 2 + w1r.size * 2 + w2r.size * 2
                      + B * n * Cop * 4)

    out_flat = pl.pallas_call(
        kernel,
        out_shape=jax.ShapeDtypeStruct((B, n, Cop), jnp.float32),
        grid_spec=pltpu.PrefetchScalarGridSpec(
            num_scalar_prefetch=0,
            grid=(B,),
            in_specs=[
                pl.BlockSpec((None, Hp * Wp + 2, Cp), lambda b: (b, 0, 0)),
                pl.BlockSpec((3, 3 * Cp, Cp), lambda b: (0, 0, 0)),
                pl.BlockSpec((3, 3 * Cp, Cop), lambda b: (0, 0, 0)),
            ],
            out_specs=pl.BlockSpec((None, n, Cop), lambda b: (b, 0, 0)),
            scratch_shapes=[
                pltpu.VMEM((lead + Hp * Wp + 2, Cp), jnp.float32),
            ],
        ),
        compiler_params=pltpu.CompilerParams(
            dimension_semantics=("parallel",),
            vmem_limit_bytes=32 * 1024 * 1024,
        ),
        cost_estimate=pl.CostEstimate(
            flops=flops,
            transcendentals=2 * B * (Cp + Cop),
            bytes_accessed=bytes_accessed,
        ),
    )(xf, w1r, w2r)

    # Drop layout-padding columns / channels, back to NCHW.
    out = out_flat.reshape(B, H, Wp, Cop)[:, :, :W, :Cout]
    return jnp.transpose(out, (0, 3, 1, 2))


def _reference(x, w1, b1, w2, b2, eps=1e-5):
    """Pure-JAX reference with the PyTorch module's semantics, using the same
    bf16-operand / f32-accumulation matmul precision as the kernel (the
    deviation from a pure f32 pipeline is the usual ~1e-2-level bf16 operand
    rounding, which the review accepts as the native MXU path)."""
    def stage(a, w, b, relu):
        ap = jnp.pad(a, ((0, 0), (0, 0), (1, 1), (1, 1)), mode="reflect")
        y = jax.lax.conv_general_dilated(
            ap.astype(jnp.bfloat16), w.astype(jnp.bfloat16),
            window_strides=(1, 1), padding="VALID",
            dimension_numbers=("NCHW", "OIHW", "NCHW"),
            preferred_element_type=jnp.float32,
        ) + b[None, :, None, None]
        m = jnp.mean(y, axis=(2, 3), keepdims=True)
        v = jnp.mean((y - m) ** 2, axis=(2, 3), keepdims=True)
        y = (y - m) * jax.lax.rsqrt(v + eps)
        return jnp.maximum(y, 0.0) if relu else y

    return stage(stage(x, w1, b1, True), w2, b2, False)


if __name__ == "__main__":
    B, Cin, Cout, H, W = 2, 4, 8, 16, 16

    key = jax.random.PRNGKey(0)
    kx, kw1, kb1, kw2, kb2 = jax.random.split(key, 5)

    x = jax.random.normal(kx, (B, Cin, H, W), dtype=jnp.float32)
    w1 = 0.2 * jax.random.normal(kw1, (Cin, Cin, 3, 3), dtype=jnp.float32)
    b1 = 0.1 * jax.random.normal(kb1, (Cin,), dtype=jnp.float32)
    w2 = 0.2 * jax.random.normal(kw2, (Cout, Cin, 3, 3), dtype=jnp.float32)
    b2 = 0.1 * jax.random.normal(kb2, (Cout,), dtype=jnp.float32)

    out = jax.block_until_ready(jax.jit(conv_block)(x, w1, b1, w2, b2))
    ref = _reference(x, w1, b1, w2, b2)

    assert out.shape == (B, Cout, H, W), out.shape
    abs_err = jnp.abs(out - ref)
    max_err = float(jnp.max(abs_err))
    mean_err = float(jnp.mean(abs_err))
    # Outputs are instance-normalized (unit scale); differences vs. the
    # matched-precision reference come only from f32 accumulation order and
    # rare bf16 re-rounding of the intermediate activation.
    assert max_err < 2e-2 and mean_err < 1e-3, (max_err, mean_err)

    print("KERNEL_OK")
</pallas_src>

<mosaic_0001>
module attributes {stable_mosaic.version = 11 : i64} {
  func.func @_conv_block_kernel(%arg0: i32, %arg1: memref<1x326x128xbf16, #tpu.memory_space<vmem>>, %arg2: memref<3x384x128xbf16, #tpu.memory_space<vmem>>, %arg3: memref<3x384x128xbf16, #tpu.memory_space<vmem>>, %arg4: memref<1x288x128xf32, #tpu.memory_space<vmem>>, %arg5: memref<331x128xf32, #tpu.memory_space<vmem>>) attributes {dimension_semantics = [#tpu.dimension_semantics<parallel>], iteration_bounds = array<i64: 2>, scalar_prefetch = 0 : i64, scratch_operands = 1 : i64, tpu.core_type = #tpu.core_type<tc>, window_params = [{transform_indices = @transform_0, window_bounds = array<i64: 1, 326, 128>}, {pipeline_mode = #tpu.pipeline_mode<synchronous>, transform_indices = @transform_1, window_bounds = array<i64: 3, 384, 128>}, {pipeline_mode = #tpu.pipeline_mode<synchronous>, transform_indices = @transform_2, window_bounds = array<i64: 3, 384, 128>}, {transform_indices = @transform_3, window_bounds = array<i64: 1, 288, 128>}]} {
    %0 = tpu.iota {dimensions = array<i32: 0>} : vector<288x1xi32>
    %c18_i32 = arith.constant 18 : i32
    %c0_i32 = arith.constant 0 : i32
    %1 = arith.cmpi eq, %c18_i32, %c0_i32 : i32
    %c1_i32 = arith.constant 1 : i32
    %2 = arith.select %1, %c1_i32, %c18_i32 : i32
    %3 = vector.broadcast %2 : i32 to vector<288x1xi32>
    %4 = arith.remsi %0, %3 : vector<288x1xi32>
    %c0_i32_0 = arith.constant 0 : i32
    %5 = vector.broadcast %c0_i32_0 : i32 to vector<288x1xi32>
    %6 = arith.cmpi ne, %4, %5 : vector<288x1xi32>
    %c0_i32_1 = arith.constant 0 : i32
    %7 = vector.broadcast %c0_i32_1 : i32 to vector<288x1xi32>
    %8 = arith.cmpi slt, %4, %7 : vector<288x1xi32>
    %c0_i32_2 = arith.constant 0 : i32
    %9 = arith.cmpi slt, %2, %c0_i32_2 : i32
    %10 = vector.broadcast %9 : i1 to vector<288x1xi1>
    %11 = vector.broadcast %10 : vector<288x1xi1> to vector<288x1xi1>
    %12 = arith.xori %8, %11 : vector<288x1xi1>
    %13 = arith.andi %12, %6 : vector<288x1xi1>
    %14 = vector.broadcast %2 : i32 to vector<288x1xi32>
    %15 = arith.addi %4, %14 : vector<288x1xi32>
    %16 = arith.select %13, %15, %4 : vector<288x1xi1>, vector<288x1xi32>
    %c16_i32 = arith.constant 16 : i32
    %17 = vector.broadcast %c16_i32 : i32 to vector<288x1xi32>
    %18 = arith.cmpi slt, %16, %17 : vector<288x1xi32>
    %c0 = arith.constant 0 : index
    %c0_3 = arith.constant 0 : index
    %c0_4 = arith.constant 0 : index
    %19 = vector.load %arg1[%c0, %c0_3, %c0_4] : memref<1x326x128xbf16, #tpu.memory_space<vmem>>, vector<1x288x128xbf16>
    %20 = vector.shape_cast %19 : vector<1x288x128xbf16> to vector<288x128xbf16>
    %c0_5 = arith.constant 0 : index
    %c1 = arith.constant 1 : index
    %c0_6 = arith.constant 0 : index
    %21 = vector.load %arg1[%c0_5, %c1, %c0_6] : memref<1x326x128xbf16, #tpu.memory_space<vmem>>, vector<1x288x128xbf16>
    %22 = vector.shape_cast %21 : vector<1x288x128xbf16> to vector<288x128xbf16>
    %c0_7 = arith.constant 0 : index
    %c2 = arith.constant 2 : index
    %c0_8 = arith.constant 0 : index
    %23 = vector.load %arg1[%c0_7, %c2, %c0_8] : memref<1x326x128xbf16, #tpu.memory_space<vmem>>, vector<1x288x128xbf16>
    %24 = vector.shape_cast %23 : vector<1x288x128xbf16> to vector<288x128xbf16>
    %25 = tpu.concatenate %20, %22, %24 in 1 : vector<288x128xbf16>, vector<288x128xbf16>, vector<288x128xbf16> -> vector<288x384xbf16>
    %c0_9 = arith.constant 0 : index
    %c0_10 = arith.constant 0 : index
    %c0_11 = arith.constant 0 : index
    %26 = vector.load %arg2[%c0_9, %c0_10, %c0_11] : memref<3x384x128xbf16, #tpu.memory_space<vmem>>, vector<1x384x128xbf16>
    %27 = vector.shape_cast %26 : vector<1x384x128xbf16> to vector<384x128xbf16>
    %cst = arith.constant dense<0.000000e+00> : vector<288x128xf32>
    %28 = tpu.matmul %25, %27, %cst {dimension_numbers = #tpu.dot_dimension_numbers<[1], [0], [0], [1], [0, 0, 1, 1], [], []>} : vector<288x384xbf16>, vector<384x128xbf16>, vector<288x128xf32> -> vector<288x128xf32>
    %c24 = arith.constant 24 : index
    %c0_12 = arith.constant 0 : index
    %29 = vector.load %arg5[%c24, %c0_12] : memref<331x128xf32, #tpu.memory_space<vmem>>, vector<288x128xf32>
    tpu.vector_store %arg5[%c24, %c0_12], %28 {strides = array<i32>} : memref<331x128xf32, #tpu.memory_space<vmem>>, vector<288x128xf32>,
    %c0_13 = arith.constant 0 : index
    %c18 = arith.constant 18 : index
    %c0_14 = arith.constant 0 : index
    %30 = vector.load %arg1[%c0_13, %c18, %c0_14] : memref<1x326x128xbf16, #tpu.memory_space<vmem>>, vector<1x288x128xbf16>
    %31 = vector.shape_cast %30 : vector<1x288x128xbf16> to vector<288x128xbf16>
    %c0_15 = arith.constant 0 : index
    %c19 = arith.constant 19 : index
    %c0_16 = arith.constant 0 : index
    %32 = vector.load %arg1[%c0_15, %c19, %c0_16] : memref<1x326x128xbf16, #tpu.memory_space<vmem>>, vector<1x288x128xbf16>
    %33 = vector.shape_cast %32 : vector<1x288x128xbf16> to vector<288x128xbf16>
    %c0_17 = arith.constant 0 : index
    %c20 = arith.constant 20 : index
    %c0_18 = arith.constant 0 : index
    %34 = vector.load %arg1[%c0_17, %c20, %c0_18] : memref<1x326x128xbf16, #tpu.memory_space<vmem>>, vector<1x288x128xbf16>
    %35 = vector.shape_cast %34 : vector<1x288x128xbf16> to vector<288x128xbf16>
    %36 = tpu.concatenate %31, %33, %35 in 1 : vector<288x128xbf16>, vector<288x128xbf16>, vector<288x128xbf16> -> vector<288x384xbf16>
    %c1_19 = arith.constant 1 : index
    %c0_20 = arith.constant 0 : index
    %c0_21 = arith.constant 0 : index
    %37 = vector.load %arg2[%c1_19, %c0_20, %c0_21] : memref<3x384x128xbf16, #tpu.memory_space<vmem>>, vector<1x384x128xbf16>
    %38 = vector.shape_cast %37 : vector<1x384x128xbf16> to vector<384x128xbf16>
    %cst_22 = arith.constant dense<0.000000e+00> : vector<288x128xf32>
    %39 = tpu.matmul %36, %38, %cst_22 {dimension_numbers = #tpu.dot_dimension_numbers<[1], [0], [0], [1], [0, 0, 1, 1], [], []>} : vector<288x384xbf16>, vector<384x128xbf16>, vector<288x128xf32> -> vector<288x128xf32>
    %c24_23 = arith.constant 24 : index
    %c0_24 = arith.constant 0 : index
    %40 = vector.load %arg5[%c24_23, %c0_24] : memref<331x128xf32, #tpu.memory_space<vmem>>, vector<288x128xf32>
    %41 = arith.addf %40, %39 : vector<288x128xf32>
    %c24_25 = arith.constant 24 : index
    %c0_26 = arith.constant 0 : index
    %42 = vector.load %arg5[%c24_25, %c0_26] : memref<331x128xf32, #tpu.memory_space<vmem>>, vector<288x128xf32>
    tpu.vector_store %arg5[%c24_25, %c0_26], %41 {strides = array<i32>} : memref<331x128xf32, #tpu.memory_space<vmem>>, vector<288x128xf32>,
    %c0_27 = arith.constant 0 : index
    %c36 = arith.constant 36 : index
    %c0_28 = arith.constant 0 : index
    %43 = vector.load %arg1[%c0_27, %c36, %c0_28] : memref<1x326x128xbf16, #tpu.memory_space<vmem>>, vector<1x288x128xbf16>
    %44 = vector.shape_cast %43 : vector<1x288x128xbf16> to vector<288x128xbf16>
    %c0_29 = arith.constant 0 : index
    %c37 = arith.constant 37 : index
    %c0_30 = arith.constant 0 : index
    %45 = vector.load %arg1[%c0_29, %c37, %c0_30] : memref<1x326x128xbf16, #tpu.memory_space<vmem>>, vector<1x288x128xbf16>
    %46 = vector.shape_cast %45 : vector<1x288x128xbf16> to vector<288x128xbf16>
    %c0_31 = arith.constant 0 : index
    %c38 = arith.constant 38 : index
    %c0_32 = arith.constant 0 : index
    %47 = vector.load %arg1[%c0_31, %c38, %c0_32] : memref<1x326x128xbf16, #tpu.memory_space<vmem>>, vector<1x288x128xbf16>
    %48 = vector.shape_cast %47 : vector<1x288x128xbf16> to vector<288x128xbf16>
    %49 = tpu.concatenate %44, %46, %48 in 1 : vector<288x128xbf16>, vector<288x128xbf16>, vector<288x128xbf16> -> vector<288x384xbf16>
    %c2_33 = arith.constant 2 : index
    %c0_34 = arith.constant 0 : index
    %c0_35 = arith.constant 0 : index
    %50 = vector.load %arg2[%c2_33, %c0_34, %c0_35] : memref<3x384x128xbf16, #tpu.memory_space<vmem>>, vector<1x384x128xbf16>
    %51 = vector.shape_cast %50 : vector<1x384x128xbf16> to vector<384x128xbf16>
    %cst_36 = arith.constant dense<0.000000e+00> : vector<288x128xf32>
    %52 = tpu.matmul %49, %51, %cst_36 {dimension_numbers = #tpu.dot_dimension_numbers<[1], [0], [0], [1], [0, 0, 1, 1], [], []>} : vector<288x384xbf16>, vector<384x128xbf16>, vector<288x128xf32> -> vector<288x128xf32>
    %c24_37 = arith.constant 24 : index
    %c0_38 = arith.constant 0 : index
    %53 = vector.load %arg5[%c24_37, %c0_38] : memref<331x128xf32, #tpu.memory_space<vmem>>, vector<288x128xf32>
    %54 = arith.addf %53, %52 : vector<288x128xf32>
    %c24_39 = arith.constant 24 : index
    %c0_40 = arith.constant 0 : index
    %55 = vector.load %arg5[%c24_39, %c0_40] : memref<331x128xf32, #tpu.memory_space<vmem>>, vector<288x128xf32>
    tpu.vector_store %arg5[%c24_39, %c0_40], %54 {strides = array<i32>} : memref<331x128xf32, #tpu.memory_space<vmem>>, vector<288x128xf32>,
    %c24_41 = arith.constant 24 : index
    %c0_42 = arith.constant 0 : index
    %56 = vector.load %arg5[%c24_41, %c0_42] : memref<331x128xf32, #tpu.memory_space<vmem>>, vector<288x128xf32>
    %cst_43 = arith.constant 0.000000e+00 : f32
    %57 = vector.shape_cast %18 : vector<288x1xi1> to vector<288x1xi1>
    %58 = vector.broadcast %57 : vector<288x1xi1> to vector<288x128xi1>
    %59 = vector.broadcast %cst_43 : f32 to vector<288x128xf32>
    %60 = arith.select %58, %56, %59 : vector<288x128xi1>, vector<288x128xf32>
    %cst_44 = arith.constant dense<0.000000e+00> : vector<128xf32>
    %61 = vector.multi_reduction <add>, %60, %cst_44 [0] : vector<288x128xf32> to vector<128xf32>
    %62 = vector.shape_cast %61 : vector<128xf32> to vector<1x128xf32>
    %cst_45 = arith.constant 3.906250e-03 : f32
    %63 = vector.broadcast %cst_45 : f32 to vector<1x128xf32>
    %64 = arith.mulf %62, %63 : vector<1x128xf32>
    %65 = arith.mulf %60, %60 : vector<288x128xf32>
    %cst_46 = arith.constant dense<0.000000e+00> : vector<128xf32>
    %66 = vector.multi_reduction <add>, %65, %cst_46 [0] : vector<288x128xf32> to vector<128xf32>
    %67 = vector.shape_cast %66 : vector<128xf32> to vector<1x128xf32>
    %cst_47 = arith.constant 3.906250e-03 : f32
    %68 = vector.broadcast %cst_47 : f32 to vector<1x128xf32>
    %69 = arith.mulf %67, %68 : vector<1x128xf32>
    %70 = arith.mulf %64, %64 : vector<1x128xf32>
    %71 = arith.subf %69, %70 : vector<1x128xf32>
    %cst_48 = arith.constant 0.000000e+00 : f32
    %72 = vector.broadcast %cst_48 : f32 to vector<1x128xf32>
    %73 = arith.maximumf %71, %72 : vector<1x128xf32>
    %cst_49 = arith.constant 9.99999974E-6 : f32
    %74 = vector.broadcast %cst_49 : f32 to vector<1x128xf32>
    %75 = arith.addf %73, %74 : vector<1x128xf32>
    %76 = math.rsqrt %75 : vector<1x128xf32>
    %c24_50 = arith.constant 24 : index
    %c0_51 = arith.constant 0 : index
    %77 = vector.load %arg5[%c24_50, %c0_51] : memref<331x128xf32, #tpu.memory_space<vmem>>, vector<288x128xf32>
    %78 = vector.broadcast %64 : vector<1x128xf32> to vector<288x128xf32>
    %79 = arith.subf %77, %78 : vector<288x128xf32>
    %80 = vector.broadcast %76 : vector<1x128xf32> to vector<288x128xf32>
    %81 = arith.mulf %79, %80 : vector<288x128xf32>
    %cst_52 = arith.constant 0.000000e+00 : f32
    %82 = vector.broadcast %cst_52 : f32 to vector<288x128xf32>
    %83 = arith.maximumf %81, %82 : vector<288x128xf32>
    %c24_53 = arith.constant 24 : index
    %c0_54 = arith.constant 0 : index
    %84 = vector.load %arg5[%c24_53, %c0_54] : memref<331x128xf32, #tpu.memory_space<vmem>>, vector<288x128xf32>
    tpu.vector_store %arg5[%c24_53, %c0_54], %83 {strides = array<i32>} : memref<331x128xf32, #tpu.memory_space<vmem>>, vector<288x128xf32>,
    %cst_55 = arith.constant 0.000000e+00 : f32
    %85 = vector.broadcast %cst_55 : f32 to vector<2x128xf32>
    %c329 = arith.constant 329 : index
    %c0_56 = arith.constant 0 : index
    %86 = vector.load %arg5[%c329, %c0_56] : memref<331x128xf32, #tpu.memory_space<vmem>>, vector<2x128xf32>
    tpu.vector_store %arg5[%c329, %c0_56], %85 {strides = array<i32>} : memref<331x128xf32, #tpu.memory_space<vmem>>, vector<2x128xf32>,
    %c25 = arith.constant 25 : index
    %c0_57 = arith.constant 0 : index
    %87 = vector.load %arg5[%c25, %c0_57] : memref<331x128xf32, #tpu.memory_space<vmem>>, vector<1x128xf32>
    %c23 = arith.constant 23 : index
    %c0_58 = arith.constant 0 : index
    %88 = vector.load %arg5[%c23, %c0_58] : memref<331x128xf32, #tpu.memory_space<vmem>>, vector<1x128xf32>
    tpu.vector_store %arg5[%c23, %c0_58], %87 {strides = array<i32>} : memref<331x128xf32, #tpu.memory_space<vmem>>, vector<1x128xf32>,
    %c38_59 = arith.constant 38 : index
    %c0_60 = arith.constant 0 : index
    %89 = vector.load %arg5[%c38_59, %c0_60] : memref<331x128xf32, #tpu.memory_space<vmem>>, vector<1x128xf32>
    %c40 = arith.constant 40 : index
    %c0_61 = arith.constant 0 : index
    %90 = vector.load %arg5[%c40, %c0_61] : memref<331x128xf32, #tpu.memory_space<vmem>>, vector<1x128xf32>
    tpu.vector_store %arg5[%c40, %c0_61], %89 {strides = array<i32>} : memref<331x128xf32, #tpu.memory_space<vmem>>, vector<1x128xf32>,
    %c43 = arith.constant 43 : index
    %c0_62 = arith.constant 0 : index
    %91 = vector.load %arg5[%c43, %c0_62] : memref<331x128xf32, #tpu.memory_space<vmem>>, vector<1x128xf32>
    %c41 = arith.constant 41 : index
    %c0_63 = arith.constant 0 : index
    %92 = vector.load %arg5[%c41, %c0_63] : memref<331x128xf32, #tpu.memory_space<vmem>>, vector<1x128xf32>
    tpu.vector_store %arg5[%c41, %c0_63], %91 {strides = array<i32>} : memref<331x128xf32, #tpu.memory_space<vmem>>, vector<1x128xf32>,
    %c56 = arith.constant 56 : index
    %c0_64 = arith.constant 0 : index
    %93 = vector.load %arg5[%c56, %c0_64] : memref<331x128xf32, #tpu.memory_space<vmem>>, vector<1x128xf32>
    %c58 = arith.constant 58 : index
    %c0_65 = arith.constant 0 : index
    %94 = vector.load %arg5[%c58, %c0_65] : memref<331x128xf32, #tpu.memory_space<vmem>>, vector<1x128xf32>
    tpu.vector_store %arg5[%c58, %c0_65], %93 {strides = array<i32>} : memref<331x128xf32, #tpu.memory_space<vmem>>, vector<1x128xf32>,
    %c61 = arith.constant 61 : index
    %c0_66 = arith.constant 0 : index
    %95 = vector.load %arg5[%c61, %c0_66] : memref<331x128xf32, #tpu.memory_space<vmem>>, vector<1x128xf32>
    %c59 = arith.constant 59 : index
    %c0_67 = arith.constant 0 : index
    %96 = vector.load %arg5[%c59, %c0_67] : memref<331x128xf32, #tpu.memory_space<vmem>>, vector<1x128xf32>
    tpu.vector_store %arg5[%c59, %c0_67], %95 {strides = array<i32>} : memref<331x128xf32, #tpu.memory_space<vmem>>, vector<1x128xf32>,
    %c74 = arith.constant 74 : index
    %c0_68 = arith.constant 0 : index
    %97 = vector.load %arg5[%c74, %c0_68] : memref<331x128xf32, #tpu.memory_space<vmem>>, vector<1x128xf32>
    %c76 = arith.constant 76 : index
    %c0_69 = arith.constant 0 : index
    %98 = vector.load %arg5[%c76, %c0_69] : memref<331x128xf32, #tpu.memory_space<vmem>>, vector<1x128xf32>
    tpu.vector_store %arg5[%c76, %c0_69], %97 {strides = array<i32>} : memref<331x128xf32, #tpu.memory_space<vmem>>, vector<1x128xf32>,
    %c79 = arith.constant 79 : index
    %c0_70 = arith.constant 0 : index
    %99 = vector.load %arg5[%c79, %c0_70] : memref<331x128xf32, #tpu.memory_space<vmem>>, vector<1x128xf32>
    %c77 = arith.constant 77 : index
    %c0_71 = arith.constant 0 : index
    %100 = vector.load %arg5[%c77, %c0_71] : memref<331x128xf32, #tpu.memory_space<vmem>>, vector<1x128xf32>
    tpu.vector_store %arg5[%c77, %c0_71], %99 {strides = array<i32>} : memref<331x128xf32, #tpu.memory_space<vmem>>, vector<1x128xf32>,
    %c92 = arith.constant 92 : index
    %c0_72 = arith.constant 0 : index
    %101 = vector.load %arg5[%c92, %c0_72] : memref<331x128xf32, #tpu.memory_space<vmem>>, vector<1x128xf32>
    %c94 = arith.constant 94 : index
    %c0_73 = arith.constant 0 : index
    %102 = vector.load %arg5[%c94, %c0_73] : memref<331x128xf32, #tpu.memory_space<vmem>>, vector<1x128xf32>
    tpu.vector_store %arg5[%c94, %c0_73], %101 {strides = array<i32>} : memref<331x128xf32, #tpu.memory_space<vmem>>, vector<1x128xf32>,
    %c97 = arith.constant 97 : index
    %c0_74 = arith.constant 0 : index
    %103 = vector.load %arg5[%c97, %c0_74] : memref<331x128xf32, #tpu.memory_space<vmem>>, vector<1x128xf32>
    %c95 = arith.constant 95 : index
    %c0_75 = arith.constant 0 : index
    %104 = vector.load %arg5[%c95, %c0_75] : memref<331x128xf32, #tpu.memory_space<vmem>>, vector<1x128xf32>
    tpu.vector_store %arg5[%c95, %c0_75], %103 {strides = array<i32>} : memref<331x128xf32, #tpu.memory_space<vmem>>, vector<1x128xf32>,
    %c110 = arith.constant 110 : index
    %c0_76 = arith.constant 0 : index
    %105 = vector.load %arg5[%c110, %c0_76] : memref<331x128xf32, #tpu.memory_space<vmem>>, vector<1x128xf32>
    %c112 = arith.constant 112 : index
    %c0_77 = arith.constant 0 : index
    %106 = vector.load %arg5[%c112, %c0_77] : memref<331x128xf32, #tpu.memory_space<vmem>>, vector<1x128xf32>
    tpu.vector_store %arg5[%c112, %c0_77], %105 {strides = array<i32>} : memref<331x128xf32, #tpu.memory_space<vmem>>, vector<1x128xf32>,
    %c115 = arith.constant 115 : index
    %c0_78 = arith.constant 0 : index
    %107 = vector.load %arg5[%c115, %c0_78] : memref<331x128xf32, #tpu.memory_space<vmem>>, vector<1x128xf32>
    %c113 = arith.constant 113 : index
    %c0_79 = arith.constant 0 : index
    %108 = vector.load %arg5[%c113, %c0_79] : memref<331x128xf32, #tpu.memory_space<vmem>>, vector<1x128xf32>
    tpu.vector_store %arg5[%c113, %c0_79], %107 {strides = array<i32>} : memref<331x128xf32, #tpu.memory_space<vmem>>, vector<1x128xf32>,
    %c128 = arith.constant 128 : index
    %c0_80 = arith.constant 0 : index
    %109 = vector.load %arg5[%c128, %c0_80] : memref<331x128xf32, #tpu.memory_space<vmem>>, vector<1x128xf32>
    %c130 = arith.constant 130 : index
    %c0_81 = arith.constant 0 : index
    %110 = vector.load %arg5[%c130, %c0_81] : memref<331x128xf32, #tpu.memory_space<vmem>>, vector<1x128xf32>
    tpu.vector_store %arg5[%c130, %c0_81], %109 {strides = array<i32>} : memref<331x128xf32, #tpu.memory_space<vmem>>, vector<1x128xf32>,
    %c133 = arith.constant 133 : index
    %c0_82 = arith.constant 0 : index
    %111 = vector.load %arg5[%c133, %c0_82] : memref<331x128xf32, #tpu.memory_space<vmem>>, vector<1x128xf32>
    %c131 = arith.constant 131 : index
    %c0_83 = arith.constant 0 : index
    %112 = vector.load %arg5[%c131, %c0_83] : memref<331x128xf32, #tpu.memory_space<vmem>>, vector<1x128xf32>
    tpu.vector_store %arg5[%c131, %c0_83], %111 {strides = array<i32>} : memref<331x128xf32, #tpu.memory_space<vmem>>, vector<1x128xf32>,
    %c146 = arith.constant 146 : index
    %c0_84 = arith.constant 0 : index
    %113 = vector.load %arg5[%c146, %c0_84] : memref<331x128xf32, #tpu.memory_space<vmem>>, vector<1x128xf32>
    %c148 = arith.constant 148 : index
    %c0_85 = arith.constant 0 : index
    %114 = vector.load %arg5[%c148, %c0_85] : memref<331x128xf32, #tpu.memory_space<vmem>>, vector<1x128xf32>
    tpu.vector_store %arg5[%c148, %c0_85], %113 {strides = array<i32>} : memref<331x128xf32, #tpu.memory_space<vmem>>, vector<1x128xf32>,
    %c151 = arith.constant 151 : index
    %c0_86 = arith.constant 0 : index
    %115 = vector.load %arg5[%c151, %c0_86] : memref<331x128xf32, #tpu.memory_space<vmem>>, vector<1x128xf32>
    %c149 = arith.constant 149 : index
    %c0_87 = arith.constant 0 : index
    %116 = vector.load %arg5[%c149, %c0_87] : memref<331x128xf32, #tpu.memory_space<vmem>>, vector<1x128xf32>
    tpu.vector_store %arg5[%c149, %c0_87], %115 {strides = array<i32>} : memref<331x128xf32, #tpu.memory_space<vmem>>, vector<1x128xf32>,
    %c164 = arith.constant 164 : index
    %c0_88 = arith.constant 0 : index
    %117 = vector.load %arg5[%c164, %c0_88] : memref<331x128xf32, #tpu.memory_space<vmem>>, vector<1x128xf32>
    %c166 = arith.constant 166 : index
    %c0_89 = arith.constant 0 : index
    %118 = vector.load %arg5[%c166, %c0_89] : memref<331x128xf32, #tpu.memory_space<vmem>>, vector<1x128xf32>
    tpu.vector_store %arg5[%c166, %c0_89], %117 {strides = array<i32>} : memref<331x128xf32, #tpu.memory_space<vmem>>, vector<1x128xf32>,
    %c169 = arith.constant 169 : index
    %c0_90 = arith.constant 0 : index
    %119 = vector.load %arg5[%c169, %c0_90] : memref<331x128xf32, #tpu.memory_space<vmem>>, vector<1x128xf32>
    %c167 = arith.constant 167 : index
    %c0_91 = arith.constant 0 : index
    %120 = vector.load %arg5[%c167, %c0_91] : memref<331x128xf32, #tpu.memory_space<vmem>>, vector<1x128xf32>
    tpu.vector_store %arg5[%c167, %c0_91], %119 {strides = array<i32>} : memref<331x128xf32, #tpu.memory_space<vmem>>, vector<1x128xf32>,
    %c182 = arith.constant 182 : index
    %c0_92 = arith.constant 0 : index
    %121 = vector.load %arg5[%c182, %c0_92] : memref<331x128xf32, #tpu.memory_space<vmem>>, vector<1x128xf32>
    %c184 = arith.constant 184 : index
    %c0_93 = arith.constant 0 : index
    %122 = vector.load %arg5[%c184, %c0_93] : memref<331x128xf32, #tpu.memory_space<vmem>>, vector<1x128xf32>
    tpu.vector_store %arg5[%c184, %c0_93], %121 {strides = array<i32>} : memref<331x128xf32, #tpu.memory_space<vmem>>, vector<1x128xf32>,
    %c187 = arith.constant 187 : index
    %c0_94 = arith.constant 0 : index
    %123 = vector.load %arg5[%c187, %c0_94] : memref<331x128xf32, #tpu.memory_space<vmem>>, vector<1x128xf32>
    %c185 = arith.constant 185 : index
    %c0_95 = arith.constant 0 : index
    %124 = vector.load %arg5[%c185, %c0_95] : memref<331x128xf32, #tpu.memory_space<vmem>>, vector<1x128xf32>
    tpu.vector_store %arg5[%c185, %c0_95], %123 {strides = array<i32>} : memref<331x128xf32, #tpu.memory_space<vmem>>, vector<1x128xf32>,
    %c200 = arith.constant 200 : index
    %c0_96 = arith.constant 0 : index
    %125 = vector.load %arg5[%c200, %c0_96] : memref<331x128xf32, #tpu.memory_space<vmem>>, vector<1x128xf32>
    %c202 = arith.constant 202 : index
    %c0_97 = arith.constant 0 : index
    %126 = vector.load %arg5[%c202, %c0_97] : memref<331x128xf32, #tpu.memory_space<vmem>>, vector<1x128xf32>
    tpu.vector_store %arg5[%c202, %c0_97], %125 {strides = array<i32>} : memref<331x128xf32, #tpu.memory_space<vmem>>, vector<1x128xf32>,
    %c205 = arith.constant 205 : index
    %c0_98 = arith.constant 0 : index
    %127 = vector.load %arg5[%c205, %c0_98] : memref<331x128xf32, #tpu.memory_space<vmem>>, vector<1x128xf32>
    %c203 = arith.constant 203 : index
    %c0_99 = arith.constant 0 : index
    %128 = vector.load %arg5[%c203, %c0_99] : memref<331x128xf32, #tpu.memory_space<vmem>>, vector<1x128xf32>
    tpu.vector_store %arg5[%c203, %c0_99], %127 {strides = array<i32>} : memref<331x128xf32, #tpu.memory_space<vmem>>, vector<1x128xf32>,
    %c218 = arith.constant 218 : index
    %c0_100 = arith.constant 0 : index
    %129 = vector.load %arg5[%c218, %c0_100] : memref<331x128xf32, #tpu.memory_space<vmem>>, vector<1x128xf32>
    %c220 = arith.constant 220 : index
    %c0_101 = arith.constant 0 : index
    %130 = vector.load %arg5[%c220, %c0_101] : memref<331x128xf32, #tpu.memory_space<vmem>>, vector<1x128xf32>
    tpu.vector_store %arg5[%c220, %c0_101], %129 {strides = array<i32>} : memref<331x128xf32, #tpu.memory_space<vmem>>, vector<1x128xf32>,
    %c223 = arith.constant 223 : index
    %c0_102 = arith.constant 0 : index
    %131 = vector.load %arg5[%c223, %c0_102] : memref<331x128xf32, #tpu.memory_space<vmem>>, vector<1x128xf32>
    %c221 = arith.constant 221 : index
    %c0_103 = arith.constant 0 : index
    %132 = vector.load %arg5[%c221, %c0_103] : memref<331x128xf32, #tpu.memory_space<vmem>>, vector<1x128xf32>
    tpu.vector_store %arg5[%c221, %c0_103], %131 {strides = array<i32>} : memref<331x128xf32, #tpu.memory_space<vmem>>, vector<1x128xf32>,
    %c236 = arith.constant 236 : index
    %c0_104 = arith.constant 0 : index
    %133 = vector.load %arg5[%c236, %c0_104] : memref<331x128xf32, #tpu.memory_space<vmem>>, vector<1x128xf32>
    %c238 = arith.constant 238 : index
    %c0_105 = arith.constant 0 : index
    %134 = vector.load %arg5[%c238, %c0_105] : memref<331x128xf32, #tpu.memory_space<vmem>>, vector<1x128xf32>
    tpu.vector_store %arg5[%c238, %c0_105], %133 {strides = array<i32>} : memref<331x128xf32, #tpu.memory_space<vmem>>, vector<1x128xf32>,
    %c241 = arith.constant 241 : index
    %c0_106 = arith.constant 0 : index
    %135 = vector.load %arg5[%c241, %c0_106] : memref<331x128xf32, #tpu.memory_space<vmem>>, vector<1x128xf32>
    %c239 = arith.constant 239 : index
    %c0_107 = arith.constant 0 : index
    %136 = vector.load %arg5[%c239, %c0_107] : memref<331x128xf32, #tpu.memory_space<vmem>>, vector<1x128xf32>
    tpu.vector_store %arg5[%c239, %c0_107], %135 {strides = array<i32>} : memref<331x128xf32, #tpu.memory_space<vmem>>, vector<1x128xf32>,
    %c254 = arith.constant 254 : index
    %c0_108 = arith.constant 0 : index
    %137 = vector.load %arg5[%c254, %c0_108] : memref<331x128xf32, #tpu.memory_space<vmem>>, vector<1x128xf32>
    %c256 = arith.constant 256 : index
    %c0_109 = arith.constant 0 : index
    %138 = vector.load %arg5[%c256, %c0_109] : memref<331x128xf32, #tpu.memory_space<vmem>>, vector<1x128xf32>
    tpu.vector_store %arg5[%c256, %c0_109], %137 {strides = array<i32>} : memref<331x128xf32, #tpu.memory_space<vmem>>, vector<1x128xf32>,
    %c259 = arith.constant 259 : index
    %c0_110 = arith.constant 0 : index
    %139 = vector.load %arg5[%c259, %c0_110] : memref<331x128xf32, #tpu.memory_space<vmem>>, vector<1x128xf32>
    %c257 = arith.constant 257 : index
    %c0_111 = arith.constant 0 : index
    %140 = vector.load %arg5[%c257, %c0_111] : memref<331x128xf32, #tpu.memory_space<vmem>>, vector<1x128xf32>
    tpu.vector_store %arg5[%c257, %c0_111], %139 {strides = array<i32>} : memref<331x128xf32, #tpu.memory_space<vmem>>, vector<1x128xf32>,
    %c272 = arith.constant 272 : index
    %c0_112 = arith.constant 0 : index
    %141 = vector.load %arg5[%c272, %c0_112] : memref<331x128xf32, #tpu.memory_space<vmem>>, vector<1x128xf32>
    %c274 = arith.constant 274 : index
    %c0_113 = arith.constant 0 : index
    %142 = vector.load %arg5[%c274, %c0_113] : memref<331x128xf32, #tpu.memory_space<vmem>>, vector<1x128xf32>
    tpu.vector_store %arg5[%c274, %c0_113], %141 {strides = array<i32>} : memref<331x128xf32, #tpu.memory_space<vmem>>, vector<1x128xf32>,
    %c277 = arith.constant 277 : index
    %c0_114 = arith.constant 0 : index
    %143 = vector.load %arg5[%c277, %c0_114] : memref<331x128xf32, #tpu.memory_space<vmem>>, vector<1x128xf32>
    %c275 = arith.constant 275 : index
    %c0_115 = arith.constant 0 : index
    %144 = vector.load %arg5[%c275, %c0_115] : memref<331x128xf32, #tpu.memory_space<vmem>>, vector<1x128xf32>
    tpu.vector_store %arg5[%c275, %c0_115], %143 {strides = array<i32>} : memref<331x128xf32, #tpu.memory_space<vmem>>, vector<1x128xf32>,
    %c290 = arith.constant 290 : index
    %c0_116 = arith.constant 0 : index
    %145 = vector.load %arg5[%c290, %c0_116] : memref<331x128xf32, #tpu.memory_space<vmem>>, vector<1x128xf32>
    %c292 = arith.constant 292 : index
    %c0_117 = arith.constant 0 : index
    %146 = vector.load %arg5[%c292, %c0_117] : memref<331x128xf32, #tpu.memory_space<vmem>>, vector<1x128xf32>
    tpu.vector_store %arg5[%c292, %c0_117], %145 {strides = array<i32>} : memref<331x128xf32, #tpu.memory_space<vmem>>, vector<1x128xf32>,
    %c295 = arith.constant 295 : index
    %c0_118 = arith.constant 0 : index
    %147 = vector.load %arg5[%c295, %c0_118] : memref<331x128xf32, #tpu.memory_space<vmem>>, vector<1x128xf32>
    %c293 = arith.constant 293 : index
    %c0_119 = arith.constant 0 : index
    %148 = vector.load %arg5[%c293, %c0_119] : memref<331x128xf32, #tpu.memory_space<vmem>>, vector<1x128xf32>
    tpu.vector_store %arg5[%c293, %c0_119], %147 {strides = array<i32>} : memref<331x128xf32, #tpu.memory_space<vmem>>, vector<1x128xf32>,
    %c308 = arith.constant 308 : index
    %c0_120 = arith.constant 0 : index
    %149 = vector.load %arg5[%c308, %c0_120] : memref<331x128xf32, #tpu.memory_space<vmem>>, vector<1x128xf32>
    %c310 = arith.constant 310 : index
    %c0_121 = arith.constant 0 : index
    %150 = vector.load %arg5[%c310, %c0_121] : memref<331x128xf32, #tpu.memory_space<vmem>>, vector<1x128xf32>
    tpu.vector_store %arg5[%c310, %c0_121], %149 {strides = array<i32>} : memref<331x128xf32, #tpu.memory_space<vmem>>, vector<1x128xf32>,
    %c41_122 = arith.constant 41 : index
    %c0_123 = arith.constant 0 : index
    %151 = vector.load %arg5[%c41_122, %c0_123] : memref<331x128xf32, #tpu.memory_space<vmem>>, vector<18x128xf32>
    %c5 = arith.constant 5 : index
    %c0_124 = arith.constant 0 : index
    %152 = vector.load %arg5[%c5, %c0_124] : memref<331x128xf32, #tpu.memory_space<vmem>>, vector<18x128xf32>
    tpu.vector_store %arg5[%c5, %c0_124], %151 {strides = array<i32>} : memref<331x128xf32, #tpu.memory_space<vmem>>, vector<18x128xf32>,
    %c275_125 = arith.constant 275 : index
    %c0_126 = arith.constant 0 : index
    %153 = vector.load %arg5[%c275_125, %c0_126] : memref<331x128xf32, #tpu.memory_space<vmem>>, vector<18x128xf32>
    %c311 = arith.constant 311 : index
    %c0_127 = arith.constant 0 : index
    %154 = vector.load %arg5[%c311, %c0_127] : memref<331x128xf32, #tpu.memory_space<vmem>>, vector<18x128xf32>
    tpu.vector_store %arg5[%c311, %c0_127], %153 {strides = array<i32>} : memref<331x128xf32, #tpu.memory_space<vmem>>, vector<18x128xf32>,
    %c5_128 = arith.constant 5 : index
    %c0_129 = arith.constant 0 : index
    %155 = vector.load %arg5[%c5_128, %c0_129] : memref<331x128xf32, #tpu.memory_space<vmem>>, vector<288x128xf32>
    %156 = arith.truncf %155 : vector<288x128xf32> to vector<288x128xbf16>
    %c6 = arith.constant 6 : index
    %c0_130 = arith.constant 0 : index
    %157 = vector.load %arg5[%c6, %c0_130] : memref<331x128xf32, #tpu.memory_space<vmem>>, vector<288x128xf32>
    %158 = arith.truncf %157 : vector<288x128xf32> to vector<288x128xbf16>
    %c7 = arith.constant 7 : index
    %c0_131 = arith.constant 0 : index
    %159 = vector.load %arg5[%c7, %c0_131] : memref<331x128xf32, #tpu.memory_space<vmem>>, vector<288x128xf32>
    %160 = arith.truncf %159 : vector<288x128xf32> to vector<288x128xbf16>
    %161 = tpu.concatenate %156, %158, %160 in 1 : vector<288x128xbf16>, vector<288x128xbf16>, vector<288x128xbf16> -> vector<288x384xbf16>
    %c0_132 = arith.constant 0 : index
    %c0_133 = arith.constant 0 : index
    %c0_134 = arith.constant 0 : index
    %162 = vector.load %arg3[%c0_132, %c0_133, %c0_134] : memref<3x384x128xbf16, #tpu.memory_space<vmem>>, vector<1x384x128xbf16>
    %163 = vector.shape_cast %162 : vector<1x384x128xbf16> to vector<384x128xbf16>
    %cst_135 = arith.constant dense<0.000000e+00> : vector<288x128xf32>
    %164 = tpu.matmul %161, %163, %cst_135 {dimension_numbers = #tpu.dot_dimension_numbers<[1], [0], [0], [1], [0, 0, 1, 1], [], []>} : vector<288x384xbf16>, vector<384x128xbf16>, vector<288x128xf32> -> vector<288x128xf32>
    %c0_136 = arith.constant 0 : index
    %c0_137 = arith.constant 0 : index
    %c0_138 = arith.constant 0 : index
    %165 = vector.load %arg4[%c0_136, %c0_137, %c0_138] : memref<1x288x128xf32, #tpu.memory_space<vmem>>, vector<1x288x128xf32>
    %166 = vector.shape_cast %165 : vector<1x288x128xf32> to vector<288x128xf32>
    %167 = vector.shape_cast %164 : vector<288x128xf32> to vector<1x288x128xf32>
    tpu.vector_store %arg4[%c0_136, %c0_137, %c0_138], %167 {strides = array<i32>} : memref<1x288x128xf32, #tpu.memory_space<vmem>>, vector<1x288x128xf32>,
    %c23_139 = arith.constant 23 : index
    %c0_140 = arith.constant 0 : index
    %168 = vector.load %arg5[%c23_139, %c0_140] : memref<331x128xf32, #tpu.memory_space<vmem>>, vector<288x128xf32>
    %169 = arith.truncf %168 : vector<288x128xf32> to vector<288x128xbf16>
    %c24_141 = arith.constant 24 : index
    %c0_142 = arith.constant 0 : index
    %170 = vector.load %arg5[%c24_141, %c0_142] : memref<331x128xf32, #tpu.memory_space<vmem>>, vector<288x128xf32>
    %171 = arith.truncf %170 : vector<288x128xf32> to vector<288x128xbf16>
    %c25_143 = arith.constant 25 : index
    %c0_144 = arith.constant 0 : index
    %172 = vector.load %arg5[%c25_143, %c0_144] : memref<331x128xf32, #tpu.memory_space<vmem>>, vector<288x128xf32>
    %173 = arith.truncf %172 : vector<288x128xf32> to vector<288x128xbf16>
    %174 = tpu.concatenate %169, %171, %173 in 1 : vector<288x128xbf16>, vector<288x128xbf16>, vector<288x128xbf16> -> vector<288x384xbf16>
    %c1_145 = arith.constant 1 : index
    %c0_146 = arith.constant 0 : index
    %c0_147 = arith.constant 0 : index
    %175 = vector.load %arg3[%c1_145, %c0_146, %c0_147] : memref<3x384x128xbf16, #tpu.memory_space<vmem>>, vector<1x384x128xbf16>
    %176 = vector.shape_cast %175 : vector<1x384x128xbf16> to vector<384x128xbf16>
    %cst_148 = arith.constant dense<0.000000e+00> : vector<288x128xf32>
    %177 = tpu.matmul %174, %176, %cst_148 {dimension_numbers = #tpu.dot_dimension_numbers<[1], [0], [0], [1], [0, 0, 1, 1], [], []>} : vector<288x384xbf16>, vector<384x128xbf16>, vector<288x128xf32> -> vector<288x128xf32>
    %c0_149 = arith.constant 0 : index
    %c0_150 = arith.constant 0 : index
    %c0_151 = arith.constant 0 : index
    %178 = vector.load %arg4[%c0_149, %c0_150, %c0_151] : memref<1x288x128xf32, #tpu.memory_space<vmem>>, vector<1x288x128xf32>
    %179 = vector.shape_cast %178 : vector<1x288x128xf32> to vector<288x128xf32>
    %180 = arith.addf %179, %177 : vector<288x128xf32>
    %c0_152 = arith.constant 0 : index
    %c0_153 = arith.constant 0 : index
    %c0_154 = arith.constant 0 : index
    %181 = vector.load %arg4[%c0_152, %c0_153, %c0_154] : memref<1x288x128xf32, #tpu.memory_space<vmem>>, vector<1x288x128xf32>
    %182 = vector.shape_cast %181 : vector<1x288x128xf32> to vector<288x128xf32>
    %183 = vector.shape_cast %180 : vector<288x128xf32> to vector<1x288x128xf32>
    tpu.vector_store %arg4[%c0_152, %c0_153, %c0_154], %183 {strides = array<i32>} : memref<1x288x128xf32, #tpu.memory_space<vmem>>, vector<1x288x128xf32>,
    %c41_155 = arith.constant 41 : index
    %c0_156 = arith.constant 0 : index
    %184 = vector.load %arg5[%c41_155, %c0_156] : memref<331x128xf32, #tpu.memory_space<vmem>>, vector<288x128xf32>
    %185 = arith.truncf %184 : vector<288x128xf32> to vector<288x128xbf16>
    %c42 = arith.constant 42 : index
    %c0_157 = arith.constant 0 : index
    %186 = vector.load %arg5[%c42, %c0_157] : memref<331x128xf32, #tpu.memory_space<vmem>>, vector<288x128xf32>
    %187 = arith.truncf %186 : vector<288x128xf32> to vector<288x128xbf16>
    %c43_158 = arith.constant 43 : index
    %c0_159 = arith.constant 0 : index
    %188 = vector.load %arg5[%c43_158, %c0_159] : memref<331x128xf32, #tpu.memory_space<vmem>>, vector<288x128xf32>
    %189 = arith.truncf %188 : vector<288x128xf32> to vector<288x128xbf16>
    %190 = tpu.concatenate %185, %187, %189 in 1 : vector<288x128xbf16>, vector<288x128xbf16>, vector<288x128xbf16> -> vector<288x384xbf16>
    %c2_160 = arith.constant 2 : index
    %c0_161 = arith.constant 0 : index
    %c0_162 = arith.constant 0 : index
    %191 = vector.load %arg3[%c2_160, %c0_161, %c0_162] : memref<3x384x128xbf16, #tpu.memory_space<vmem>>, vector<1x384x128xbf16>
    %192 = vector.shape_cast %191 : vector<1x384x128xbf16> to vector<384x128xbf16>
    %cst_163 = arith.constant dense<0.000000e+00> : vector<288x128xf32>
    %193 = tpu.matmul %190, %192, %cst_163 {dimension_numbers = #tpu.dot_dimension_numbers<[1], [0], [0], [1], [0, 0, 1, 1], [], []>} : vector<288x384xbf16>, vector<384x128xbf16>, vector<288x128xf32> -> vector<288x128xf32>
    %c0_164 = arith.constant 0 : index
    %c0_165 = arith.constant 0 : index
    %c0_166 = arith.constant 0 : index
    %194 = vector.load %arg4[%c0_164, %c0_165, %c0_166] : memref<1x288x128xf32, #tpu.memory_space<vmem>>, vector<1x288x128xf32>
    %195 = vector.shape_cast %194 : vector<1x288x128xf32> to vector<288x128xf32>
    %196 = arith.addf %195, %193 : vector<288x128xf32>
    %c0_167 = arith.constant 0 : index
    %c0_168 = arith.constant 0 : index
    %c0_169 = arith.constant 0 : index
    %197 = vector.load %arg4[%c0_167, %c0_168, %c0_169] : memref<1x288x128xf32, #tpu.memory_space<vmem>>, vector<1x288x128xf32>
    %198 = vector.shape_cast %197 : vector<1x288x128xf32> to vector<288x128xf32>
    %199 = vector.shape_cast %196 : vector<288x128xf32> to vector<1x288x128xf32>
    tpu.vector_store %arg4[%c0_167, %c0_168, %c0_169], %199 {strides = array<i32>} : memref<1x288x128xf32, #tpu.memory_space<vmem>>, vector<1x288x128xf32>,
    %c0_170 = arith.constant 0 : index
    %c0_171 = arith.constant 0 : index
    %c0_172 = arith.constant 0 : index
    %200 = vector.load %arg4[%c0_170, %c0_171, %c0_172] : memref<1x288x128xf32, #tpu.memory_space<vmem>>, vector<1x288x128xf32>
    %201 = vector.shape_cast %200 : vector<1x288x128xf32> to vector<288x128xf32>
    %cst_173 = arith.constant 0.000000e+00 : f32
    %202 = vector.shape_cast %18 : vector<288x1xi1> to vector<288x1xi1>
    %203 = vector.broadcast %202 : vector<288x1xi1> to vector<288x128xi1>
    %204 = vector.broadcast %cst_173 : f32 to vector<288x128xf32>
    %205 = arith.select %203, %201, %204 : vector<288x128xi1>, vector<288x128xf32>
    %cst_174 = arith.constant dense<0.000000e+00> : vector<128xf32>
    %206 = vector.multi_reduction <add>, %205, %cst_174 [0] : vector<288x128xf32> to vector<128xf32>
    %207 = vector.shape_cast %206 : vector<128xf32> to vector<1x128xf32>
    %cst_175 = arith.constant 3.906250e-03 : f32
    %208 = vector.broadcast %cst_175 : f32 to vector<1x128xf32>
    %209 = arith.mulf %207, %208 : vector<1x128xf32>
    %210 = arith.mulf %205, %205 : vector<288x128xf32>
    %cst_176 = arith.constant dense<0.000000e+00> : vector<128xf32>
    %211 = vector.multi_reduction <add>, %210, %cst_176 [0] : vector<288x128xf32> to vector<128xf32>
    %212 = vector.shape_cast %211 : vector<128xf32> to vector<1x128xf32>
    %cst_177 = arith.constant 3.906250e-03 : f32
    %213 = vector.broadcast %cst_177 : f32 to vector<1x128xf32>
    %214 = arith.mulf %212, %213 : vector<1x128xf32>
    %215 = arith.mulf %209, %209 : vector<1x128xf32>
    %216 = arith.subf %214, %215 : vector<1x128xf32>
    %cst_178 = arith.constant 0.000000e+00 : f32
    %217 = vector.broadcast %cst_178 : f32 to vector<1x128xf32>
    %218 = arith.maximumf %216, %217 : vector<1x128xf32>
    %cst_179 = arith.constant 9.99999974E-6 : f32
    %219 = vector.broadcast %cst_179 : f32 to vector<1x128xf32>
    %220 = arith.addf %218, %219 : vector<1x128xf32>
    %221 = math.rsqrt %220 : vector<1x128xf32>
    %c0_180 = arith.constant 0 : index
    %c0_181 = arith.constant 0 : index
    %c0_182 = arith.constant 0 : index
    %222 = vector.load %arg4[%c0_180, %c0_181, %c0_182] : memref<1x288x128xf32, #tpu.memory_space<vmem>>, vector<1x288x128xf32>
    %223 = vector.shape_cast %222 : vector<1x288x128xf32> to vector<288x128xf32>
    %224 = vector.broadcast %209 : vector<1x128xf32> to vector<288x128xf32>
    %225 = arith.subf %223, %224 : vector<288x128xf32>
    %226 = vector.broadcast %221 : vector<1x128xf32> to vector<288x128xf32>
    %227 = arith.mulf %225, %226 : vector<288x128xf32>
    %c0_183 = arith.constant 0 : index
    %c0_184 = arith.constant 0 : index
    %c0_185 = arith.constant 0 : index
    %228 = vector.load %arg4[%c0_183, %c0_184, %c0_185] : memref<1x288x128xf32, #tpu.memory_space<vmem>>, vector<1x288x128xf32>
    %229 = vector.shape_cast %228 : vector<1x288x128xf32> to vector<288x128xf32>
    %230 = vector.shape_cast %227 : vector<288x128xf32> to vector<1x288x128xf32>
    tpu.vector_store %arg4[%c0_183, %c0_184, %c0_185], %230 {strides = array<i32>} : memref<1x288x128xf32, #tpu.memory_space<vmem>>, vector<1x288x128xf32>,
    return
  }
  func.func @transform_0(%arg0: i32) -> (i32, i32, i32) {
    %c0_i32 = arith.constant 0 : i32
    %c0_i32_0 = arith.constant 0 : i32
    %c0_i32_1 = arith.constant 0 : i32
    return %arg0, %c0_i32, %c0_i32_0 : i32, i32, i32
  }
  func.func @transform_1(%arg0: i32) -> (i32, i32, i32) {
    %c0_i32 = arith.constant 0 : i32
    %c0_i32_0 = arith.constant 0 : i32
    %c0_i32_1 = arith.constant 0 : i32
    %c0_i32_2 = arith.constant 0 : i32
    return %c0_i32, %c0_i32_0, %c0_i32_1 : i32, i32, i32
  }
  func.func @transform_2(%arg0: i32) -> (i32, i32, i32) {
    %c0_i32 = arith.constant 0 : i32
    %c0_i32_0 = arith.constant 0 : i32
    %c0_i32_1 = arith.constant 0 : i32
    %c0_i32_2 = arith.constant 0 : i32
    return %c0_i32, %c0_i32_0, %c0_i32_1 : i32, i32, i32
  }
  func.func @transform_3(%arg0: i32) -> (i32, i32, i32) {
    %c0_i32 = arith.constant 0 : i32
    %c0_i32_0 = arith.constant 0 : i32
    %c0_i32_1 = arith.constant 0 : i32
    return %arg0, %c0_i32, %c0_i32_0 : i32, i32, i32
  }
}

</mosaic_0001>

<bundles_post_ra>
// kernel: conv_block.1
= control target key start
LH: loop header
LB: loop body
LE: loop exit
PB: predicated region body
PF: predicated region fallthrough
CT: control target
= control target key end

     0   :  { %s8470_s12 = smov 0   ;;  %s12670_s0 = inlined_call_operand.vmem [shape: bf16[2,326,128], index: 0, kind: input, shape index: {}]   ;;  %s12671_s1 = inlined_call_operand.vmem [shape: bf16[3,384,128], index: 1, kind: input, shape index: {}]   ;;  %s12672_s2 = inlined_call_operand.vmem [shape: bf16[3,384,128], index: 2, kind: input, shape index: {}]   ;;  %s12673_s3 = inlined_call_operand.vmem [shape: f32[2,288,128], index: 3, kind: output, shape index: {}]  }
   0x1 LB: > { %s7266_s13 = sadd.s32 4294967295, %s8446_s12   ;;  %p7270_p0 = scmp.ge.s32.totalorder %s8446_s12, 1  ;;  %s8446_s12 = sphi %s8470_s12, %s13_s12  }
   0x2   : > { %p137_p1 = scmp.lt.s32.totalorder %s8446_s12, 3 }
   0x4   : > { %p138_p2 = pnand %p7270_p0, %p137_p1 }
   0x6   : > { %141 = sbr.rel (%p138_p2) target bundleno = 1351 (0x547), region = 32 }
   0xd   : > { %v8225_v0 = vld [vmem:[%s12671_s1] sm:$0xff]   ;;  %v12674_v1 = vmov 0   ;;  %p161_p3 = scmp.lt.s32.totalorder %s7266_s13, 1  ;;  %v8227_v3 = vld [vmem:[%s12671_s1 + $0x8] sm:$0xff]   ;;  %v8230_v5 = vld [vmem:[%s12671_s1 + $0x90] sm:$0xff]   ;;  %vm1140_vm0 = vcmask 1046528  }
   0xe   : > { %1388 = vmatprep.subr.bf16.mxu0 %v12674_v1  ;;  %v8226_v2 = vld [vmem:[%s12671_s1 + $0x80] sm:$0xff]   ;;  %v8228_v4 = vld [vmem:[%s12671_s1 + $0x88] sm:$0xff]   ;;  %v8229_v6 = vld [vmem:[%s12671_s1 + $0x10] sm:$0xff]   ;;  %vm970_vm1 = vsmask.f32 7424  ;;  %vm3266_vm2 = vcmask 1045504  }
   0xf   : > { %1389 = vmatpush1.bf16.msra.mxu0 %v8225_v0  ;;  %7829 = vmatprep.subr.bf16.mxu1 %v8226_v2  ;;  %s13185_s13 = smov (!%p161_p3, %s7266_s13), 1  ;;  %v8232_v7 = vld [vmem:[%s12671_s1 + $0x98] sm:$0xff]   ;;  %v8234_v9 = vld [vmem:[%s12671_s1 + $0xa0] sm:$0xff]   ;;  %v8236_v11 = vld [vmem:[%s12671_s1 + $0xa8] sm:$0xff]  }
  0x10   : > { %1390 = vmatprep.subr.bf16.mxu0 %v12674_v1  ;;  %7830 = vmatpush3.bf16.msra.mxu1 %v8226_v2  ;;  %s8141_s28 = smul.u32 164, %s13185_s13  ;;  %v8231_v8 = vld [vmem:[%s12671_s1 + $0x18] sm:$0xff]   ;;  %v8233_v10 = vld [vmem:[%s12671_s1 + $0x20] sm:$0xff]   ;;  %v8235_v15 = vld [vmem:[%s12671_s1 + $0x28] sm:$0xff]  }
  0x11   : > { %7831 = vmatprep.subr.bf16.mxu1 %v8228_v4  ;;  %v8237_v18 = vld [vmem:[%s12671_s1 + $0x30] sm:$0xff]   ;;  %v8240_v23 = vld [vmem:[%s12671_s1 + $0xb8] sm:$0xff]   ;;  %v8244_v31 = vld [vmem:[%s12671_s1 + $0x40] sm:$0xff]   ;;  %s8142_s9 = smul.u32 288, %s13185_s13 }
  0x12   : > { %s8515_s8 = scalar_lea.vmem %s12670_s0, %s8141_s28  ;;  %v8238_v20 = vld [vmem:[%s12671_s1 + $0xb0] sm:$0xff]   ;;  %v8239_v27 = vld [vmem:[%s12671_s1 + $0x38] sm:$0xff]   ;;  %v8246_v32 = vld [vmem:[%s12671_s1 + $0xc0] sm:$0xff]  }
  0x13   : > { %1391 = vmatpush1.bf16.msra.mxu0 %v8227_v3  ;;  %v822_v12 = vld [vmem:[%s8515_s8 + $0x4] sm:$0xf]  ;;  %v858_v13 = vld [vmem:[%s8515_s8] sm:$0xe]  ;;  %v8527_v14 = vld [vmem:[%s8515_s8 + $0x8] sm:$0xff]   ;;  %s12546_s11 = scalar_lea.vmem %s12673_s3, %s8142_s9 }
  0x14   : > { %1392 = vmatprep.subr.bf16.mxu0 %v12674_v1  ;;  %7832 = vmatpush3.bf16.msra.mxu1 %v8228_v4  ;;  %v7292_v16 = vcombine.low %v858_v13, %v822_v12  ;;  %v1142_v17 = vrot.slane %v8527_v14, 1  ;;  %v821_v21 = vld [vmem:[%s8515_s8] sm:$0xf]  ;;  %v8547_v24 = vld [vmem:[%s8515_s8 + $0x10] sm:$0xff]   ;;  %v8552_v26 = vld [vmem:[%s8515_s8 + $0x18] sm:$0xff]   ;;  %v979_v36 = vshll.u32 %v8527_v14, 16 }
  0x15   : > { %7833 = vmatprep.subr.bf16.mxu1 %v8230_v5  ;;  %v8549_v25 = vcombine.low %v821_v21, %v822_v12  ;;  %v1144_v28 = vrot.slane %v8547_v24, 1  ;;  %v1146_v29 = vrot.slane %v8552_v26, 1  ;;  %v8571_v35 = vld [vmem:[%s8515_s8 + $0x20] sm:$0xff]   ;;  %v8577_v38 = vld [vmem:[%s8515_s8 + $0x28] sm:$0xff]   ;;  %v8250_v42 = vld [vmem:[%s12671_s1 + $0x50] sm:$0xff]   ;;  %v991_v21 = vshrl.u32 %v8547_v24, 16 }
  0x16   : > { %v1141_v19 = vrot.slane %v7292_v16, 1  ;;  %v8247_v40 = vld [vmem:[%s12671_s1 + $0x48] sm:$0xff]   ;;  %v1148_v43 = vrot.slane %v8571_v35, 1  ;;  %v1150_v44 = vrot.slane %v8577_v38, 1  ;;  %v981_v46 = vrot.slane %v979_v36, 1  ;;  %v8252_v47 = vld [vmem:[%s12671_s1 + $0xd0] sm:$0xff]  }
  0x17   : > { %1393 = vmatpush1.bf16.msra.mxu0 %v8229_v6  ;;  %v974_v30 = vshll.u32 %v8549_v25, 16  ;;  %v972_v33 = vshrl.u32 %v8549_v25, 16  ;;  %v1145_v34 = vsel %vm1140_vm0, %v1142_v17, %v1144_v28  ;;  %v1147_v37 = vsel %vm1140_vm0, %v1144_v28, %v1146_v29  ;;  %v8248_v41 = vld [vmem:[%s12671_s1 + $0xc8] sm:$0xff]   ;;  %v8597_v48 = vld [vmem:[%s8515_s8 + $0x30] sm:$0xff]   ;;  %v8603_v51 = vld [vmem:[%s8515_s8 + $0x38] sm:$0xff]  }
  0x18   : > { %1394 = vmatprep.subr.bf16.mxu0 %v12674_v1  ;;  %7834 = vmatpush3.bf16.msra.mxu1 %v8230_v5  ;;  %v1143_v22 = vsel %vm1140_vm0, %v1141_v19, %v1142_v17  ;;  %v1149_v49 = vsel %vm1140_vm0, %v1146_v29, %v1148_v43  ;;  %v1151_v50 = vsel %vm1140_vm0, %v1148_v43, %v1150_v44  ;;  %v8253_v53 = vld [vmem:[%s12671_s1 + $0x58] sm:$0xff]   ;;  %v1152_v55 = vrot.slane %v8597_v48, 1  ;;  %v8256_v57 = vld [vmem:[%s12671_s1 + $0x60] sm:$0xff]   ;;  %v8630_v62 = vld [vmem:[%s8515_s8 + $0x48] sm:$0xff]  }
  0x19   : > { %7835 = vmatprep.subr.bf16.mxu1 %v8232_v7  ;;  %7845 = vmatprep.mubr.bf16.mxu1 %v1143_v22  ;;  %v976_v39 = vrot.slane %v974_v30, 1  ;;  %v8255_v54 = vld [vmem:[%s12671_s1 + $0xd8] sm:$0xff]   ;;  %v1154_v56 = vrot.slane %v8603_v51, 1  ;;  %v8258_v58 = vld [vmem:[%s12671_s1 + $0xe0] sm:$0xff]   ;;  %v8259_v63 = vld [vmem:[%s12671_s1 + $0x68] sm:$0xff]   ;;  %v1158_v4 = vrot.slane %v8630_v62, 1 }
  0x1a   : > { %v1153_v59 = vsel %vm1140_vm0, %v1150_v44, %v1152_v55  ;;  %v8625_v60 = vld [vmem:[%s8515_s8 + $0x40] sm:$0xff]   ;;  %v8263_v2 = vld [vmem:[%s12671_s1 + $0xe8] sm:$0xff]   ;;  %v8261_v3 = vld [vmem:[%s12671_s1 + $0x70] sm:$0xff]   ;;  %v983_v6 = vshrl.u32 %v8527_v14, 16  ;;  %v995_v22 = vshll.u32 %v8552_v26, 16 }
  0x1b   : > { %1395 = vmatpush1.bf16.msra.mxu0 %v8231_v8  ;;  %v977_v45 = vor.u32 %v976_v39, %v972_v33  ;;  %v1155_v61 = vsel %vm1140_vm0, %v1152_v55, %v1154_v56  ;;  %v1156_v0 = vrot.slane %v8625_v60, 1  ;;  %v8265_v5 = vld [vmem:[%s12671_s1 + $0xf0] sm:$0xff]   ;;  %v987_v8 = vshll.u32 %v8547_v24, 16  ;;  %v8264_v12 = vld [vmem:[%s12671_s1 + $0x78] sm:$0xff]   ;;  %v8284_v16 = vld [vmem:[%s12671_s1 + $0x140] sm:$0xff]  }
  0x1c   : > { %1396 = vmatprep.subr.bf16.mxu0 %v12674_v1  ;;  %7836 = vmatpush3.bf16.msra.mxu1 %v8232_v7  ;;  %v8651_v7 = vld [vmem:[%s8515_s8 + $0x50] sm:$0xff]   ;;  %v985_v13 = vor.u32 %v983_v6, %v981_v46  ;;  %v8681_v28 = vld [vmem:[%s8515_s8 + $0x60] sm:$0xff]   ;;  %v8687_v30 = vld [vmem:[%s8515_s8 + $0x68] sm:$0xff]   ;;  %v1003_v39 = vshll.u32 %v8571_v35, 16 }
  0x1d   : > { %7837 = vmatprep.subr.bf16.mxu1 %v8234_v9  ;;  %v982_v52 = vsel %vm970_vm1, %v977_v45, %v981_v46  ;;  %v1160_v17 = vrot.slane %v8651_v7, 1  ;;  %v1164_v33 = vrot.slane %v8681_v28, 1  ;;  %v1166_v36 = vrot.slane %v8687_v30, 1  ;;  %v8273_v44 = vld [vmem:[%s12671_s1 + $0x110] sm:$0xff]  }
  0x1e   : > { %1420 = vmatprep.mubr.bf16.mxu0 %v982_v52  ;;  %v8710_v45 = vld [vmem:[%s8515_s8 + $0x70] sm:$0xff]  }
  0x1f   : > { %1397 = vmatpush1.bf16.msra.mxu0 %v8233_v10  ;;  %v8656_v10 = vld [vmem:[%s8515_s8 + $0x58] sm:$0xff]   ;;  %v1167_v46 = vsel %vm1140_vm0, %v1164_v33, %v1166_v36  ;;  %v8298_v55 = vld [vmem:[%s12671_s1 + $0x150] sm:$0xff]  }
  0x20   : > { %1398 = vmatprep.subr.bf16.mxu0 %v12674_v1  ;;  %7838 = vmatpush3.bf16.msra.mxu1 %v8234_v9  ;;  %v1157_v9 = vsel %vm1140_vm0, %v1154_v56, %v1156_v0  ;;  %v1162_v19 = vrot.slane %v8656_v10, 1 }
  0x21   : > { %7839 = vmatprep.subr.bf16.mxu1 %v8236_v11 }
  0x22   : > { %v1163_v29 = vsel %vm1140_vm0, %v1160_v17, %v1162_v19  ;;  %v1165_v43 = vsel %vm1140_vm0, %v1162_v19, %v1164_v33 }
  0x23   : > { %1399 = vmatpush1.bf16.msra.mxu0 %v8235_v15  ;;  %v989_v15 = vrot.slane %v987_v8, 1 }
  0x24   : > { %1400 = vmatprep.subr.bf16.mxu0 %v12674_v1  ;;  %7840 = vmatpush3.bf16.msra.mxu1 %v8236_v11  ;;  %v1159_v11 = vsel %vm1140_vm0, %v1156_v0, %v1158_v4  ;;  %v1007_v0 = vshrl.u32 %v8571_v35, 16 }
  0x25   : > { %7841 = vmatprep.subr.bf16.mxu1 %v8238_v20 }
  0x27   : > { %1401 = vmatpush1.bf16.msra.mxu0 %v8237_v18  ;;  %v8268_v18 = vld [vmem:[%s12671_s1 + $0xf8] sm:$0xff]  }
  0x28   : > { %1402 = vmatprep.subr.bf16.mxu0 %v12674_v1  ;;  %7842 = vmatpush3.bf16.msra.mxu1 %v8238_v20  ;;  %v990_v20 = vsel %vm970_vm1, %v985_v13, %v989_v15 }
  0x29   : > { %7843 = vmatprep.subr.bf16.mxu1 %v8240_v23 }
  0x2b   : > { %1403 = vmatpush1.bf16.msra.mxu0 %v8239_v27  ;;  %v8269_v27 = vld [vmem:[%s12671_s1 + $0x100] sm:$0xff]  }
  0x2c   : > { %1404 = vmatprep.subr.bf16.mxu0 %v12674_v1  ;;  %7844 = vmatpush3.bf16.msra.mxu1 %v8240_v23  ;;  %v1161_v23 = vsel %vm1140_vm0, %v1158_v4, %v1160_v17  ;;  %v8746_v4 = vld [vmem:[%s8515_s8 + $0x80] sm:$0xff]  }
  0x2d   : > { %2429 = vmatprep.subr.bf16.mxu1 %v12674_v1 }
  0x2f   : > { %1405 = vmatpush1.bf16.msra.mxu0 %v8244_v31  ;;  %7846 = vmatmul.mubr.bf16.vlgmr.msra.gmra.mrb[0].mxu1 %v1145_v34  ;;  %v993_v31 = vor.u32 %v991_v21, %v989_v15  ;;  %v8292_v34 = vld [vmem:[%s12671_s1 + $0x148] sm:$0xff]   ;;  %v8303_v15 = vld [vmem:[%s12671_s1 + $0x158] sm:$0xff]  }
  0x30   : > { %1406 = vmatprep.subr.bf16.mxu0 %v12674_v1  ;;  %2430 = vmatpush1.bf16.msra.mxu1 %v8246_v32  ;;  %v997_v32 = vrot.slane %v995_v22, 1  ;;  %v8767_v22 = vld [vmem:[%s8515_s8 + $0x20] sm:$0xff]  }
  0x31   : > { %7849 = vmatprep.mubr.bf16.mxu1 %v1147_v37  ;;  %2431 = vmatprep.subr.bf16.mxu1 %v12674_v1  ;;  %v999_v37 = vshrl.u32 %v8552_v26, 16 }
  0x33   : > { %1407 = vmatpush1.bf16.msra.mxu0 %v8247_v40  ;;  %v998_v40 = vsel %vm970_vm1, %v993_v31, %v997_v32  ;;  %v1001_v52 = vor.u32 %v999_v37, %v997_v32  ;;  %v8772_v31 = vld [vmem:[%s8515_s8 + $0x90] ss:$0 sps:$4 sm:$0x11]   ;;  %v1019_v32 = vshll.u32 %v8597_v48, 16 }
  0x34   : > { %1408 = vmatprep.subr.bf16.mxu0 %v12674_v1  ;;  %2432 = vmatpush1.bf16.msra.mxu1 %v8248_v41  ;;  %v1778_v41 = vld [vmem:[%s8515_s8 + $0x8] sm:$0xe] }
  0x35   : > { %2433 = vmatprep.subr.bf16.mxu1 %v12674_v1 }
  0x37   : > { %1409 = vmatpush1.bf16.msra.mxu0 %v8250_v42  ;;  %7850 = vmatmul.mubr.bf16.gmra.mrb[4].mxu1 %v1149_v49  ;;  %v8703_v42 = vld [vmem:[%s8515_s8 + $0xc] sm:$0xf]  ;;  %v8719_v49 = vld [vmem:[%s8515_s8 + $0x10] sm:$0xff]  }
  0x38   : > { %1410 = vmatprep.subr.bf16.mxu0 %v12674_v1  ;;  %2434 = vmatpush1.bf16.msra.mxu1 %v8252_v47  ;;  %v8716_v47 = vld [vmem:[%s8515_s8 + $0x78] sm:$0xff]   ;;  %v1925_v8 = vshrl.u32 %v8719_v49, 16 }
  0x39   : > { %7853 = vmatprep.mubr.bf16.mxu1 %v1151_v50  ;;  %2435 = vmatprep.subr.bf16.mxu1 %v12674_v1  ;;  %v8722_v50 = vcombine.low %v1778_v41, %v8703_v42  ;;  %v1170_v56 = vrot.slane %v8716_v47, 1  ;;  %v8308_v41 = vld [vmem:[%s12671_s1 + $0x160] sm:$0xff]  }
  0x3b   : > { %1411 = vmatpush1.bf16.msra.mxu0 %v8253_v53  ;;  %v1005_v53 = vrot.slane %v1003_v39, 1  ;;  %v1914_v6 = vshrl.u32 %v8722_v50, 16  ;;  %v1937_v39 = vshll.u32 %v8767_v22, 16 }
  0x3c   : > { %1412 = vmatprep.subr.bf16.mxu0 %v12674_v1  ;;  %2436 = vmatpush1.bf16.msra.mxu1 %v8255_v54  ;;  %v8276_v54 = vld [vmem:[%s12671_s1 + $0x118] sm:$0xff]  }
  0x3d   : > { %2437 = vmatprep.subr.bf16.mxu1 %v12674_v1 }
  0x3f   : > { %1413 = vmatpush1.bf16.msra.mxu0 %v8256_v57  ;;  %7854 = vmatmul.mubr.bf16.gmra.mrb[8].mxu1 %v1153_v59  ;;  %v8734_v57 = vld [vmem:[%s8515_s8 + $0x18] sm:$0xff]   ;;  %v1916_v59 = vshll.u32 %v8722_v50, 16 }
  0x40   : > { %1414 = vmatprep.subr.bf16.mxu0 %v12674_v1  ;;  %2438 = vmatpush1.bf16.msra.mxu1 %v8258_v58  ;;  %v1921_v58 = vshll.u32 %v8719_v49, 16  ;;  %v1933_v37 = vshrl.u32 %v8734_v57, 16 }
  0x41   : > { %7857 = vmatprep.mubr.bf16.mxu1 %v1155_v61  ;;  %2439 = vmatprep.subr.bf16.mxu1 %v12674_v1  ;;  %v1006_v61 = vsel %vm970_vm1, %v1001_v52, %v1005_v53  ;;  %v1918_v13 = vrot.slane %v1916_v59, 1  ;;  %v1027_v59 = vshll.u32 %v8603_v51, 16 }
  0x43   : > { %1415 = vmatpush1.bf16.msra.mxu0 %v8259_v63  ;;  %v8278_v63 = vld [vmem:[%s12671_s1 + $0x120] sm:$0xff]  }
  0x44   : > { %1416 = vmatprep.subr.bf16.mxu0 %v12674_v1  ;;  %2440 = vmatpush1.bf16.msra.mxu1 %v8263_v2  ;;  %v1011_v2 = vshll.u32 %v8577_v38, 16 }
  0x45   : > { %2441 = vmatprep.subr.bf16.mxu1 %v12674_v1 }
  0x46   : > { %v1013_v17 = vrot.slane %v1011_v2, 1 }
  0x47   : > { %1417 = vmatpush1.bf16.msra.mxu0 %v8261_v3  ;;  %7858 = vmatmul.mubr.bf16.gmra.mrb[12].mxu1 %v1157_v9 }
  0x48   : > { %1418 = vmatprep.subr.bf16.mxu0 %v12674_v1  ;;  %2442 = vmatpush1.bf16.msra.mxu1 %v8265_v5  ;;  %v8749_v5 = vld [vmem:[%s8515_s8 + $0x88] sm:$0xff]  }
  0x49   : > { %7861 = vmatprep.mubr.bf16.mxu1 %v1159_v11  ;;  %2443 = vmatprep.subr.bf16.mxu1 %v12674_v1  ;;  %v1923_v11 = vrot.slane %v1921_v58, 1  ;;  %v1174_v19 = vrot.slane %v8749_v5, 1  ;;  %v1023_v58 = vshrl.u32 %v8597_v48, 16 }
  0x4b   : > { %1419 = vmatpush1.bf16.msra.mxu0 %v8264_v12  ;;  %v1929_v12 = vshll.u32 %v8734_v57, 16 }
  0x4c   : > { %7881 = vmatprep.subr.bf16.mxu0 %v8284_v16  ;;  %2444 = vmatpush1.bf16.msra.mxu1 %v8268_v18  ;;  %v8280_v18 = vld [vmem:[%s12671_s1 + $0x128] sm:$0xff]  }
  0x4d   : > { %2445 = vmatprep.subr.bf16.mxu1 %v12674_v1  ;;  %v1931_v21 = vrot.slane %v1929_v12, 1  ;;  %v2070_v12 = vrot.slane %v8734_v57, 1  ;;  %v8318_v57 = vld [vmem:[%s12671_s1 + $0x178] sm:$0xff]  }
  0x4e   : > { %1421 = vmatmul.mubr.bf16.vlgmr.msra.gmra.mrb[0].mxu0 %v8549_v25  ;;  %v8272_v25 = vld [vmem:[%s12671_s1 + $0x108] sm:$0xff]  }
  0x4f   : > { %1428 = vmatprep.mubr.bf16.mxu0 %v990_v20  ;;  %7882 = vmatpush3.bf16.msra.mxu0 %v8284_v16  ;;  %v1009_v16 = vor.u32 %v1007_v0, %v1005_v53  ;;  %v1927_v20 = vor.u32 %v1925_v8, %v1923_v11  ;;  %v8794_v53 = vld [vmem:[%s8515_s8 + $0x28] sm:$0xff]   ;;  %v8813_v8 = vrot.slane %v8719_v49, 1 }
  0x50   : > { %7862 = vmatmul.mubr.bf16.gmra.mrb[16].mxu1 %v1161_v23  ;;  %7883 = vmatprep.subr.bf16.mxu0 %v8292_v34  ;;  %v1015_v23 = vshrl.u32 %v8577_v38, 16 }
  0x51   : > { %2446 = vmatpush1.bf16.msra.mxu1 %v8269_v27  ;;  %7865 = vmatprep.mubr.bf16.mxu1 %v1163_v29  ;;  %v1919_v27 = vor.u32 %v1918_v13, %v1914_v6  ;;  %v1014_v29 = vsel %vm970_vm1, %v1009_v16, %v1013_v17  ;;  %v8313_v6 = vld [vmem:[%s12671_s1 + $0x168] sm:$0xff]   ;;  %v2072_v16 = vrot.slane %v8767_v22, 1 }
  0x52   : > { %2447 = vmatprep.subr.bf16.mxu1 %v12674_v1 }
  0x53   : > { %7884 = vmatpush3.bf16.msra.mxu0 %v8292_v34 }
  0x54   : > { %7885 = vmatprep.subr.bf16.mxu0 %v8298_v55 }
  0x55   : > { %2448 = vmatpush1.bf16.msra.mxu1 %v8272_v25  ;;  %v8283_v25 = vld [vmem:[%s12671_s1 + $0x130] sm:$0xff]  }
  0x56   : > { %1429 = vmatmul.mubr.bf16.gmra.mrb[4].mxu0 %v8527_v14  ;;  %2449 = vmatprep.subr.bf16.mxu1 %v12674_v1  ;;  %v1168_v14 = vrot.slane %v8710_v45, 1 }
  0x57   : > { %1436 = vmatprep.mubr.bf16.mxu0 %v998_v40  ;;  %7886 = vmatpush3.bf16.msra.mxu0 %v8298_v55  ;;  %v1924_v40 = vsel %vm970_vm1, %v1919_v27, %v1923_v11  ;;  %v1939_v55 = vrot.slane %v1937_v39, 1  ;;  %v1029_v11 = vrot.slane %v1027_v59, 1  ;;  %v1043_v39 = vshll.u32 %v8630_v62, 16 }
  0x58   : > { %7866 = vmatmul.mubr.bf16.gmra.mrb[20].mxu1 %v1165_v43  ;;  %v1169_v3 = vsel %vm1140_vm0, %v1166_v36, %v1168_v14  ;;  %v1171_v9 = vsel %vm1140_vm0, %v1168_v14, %v1170_v56  ;;  %7887 = vmatprep.subr.bf16.mxu0 %v8303_v15  ;;  %v1932_v36 = vsel %vm970_vm1, %v1927_v20, %v1931_v21  ;;  %v8285_v43 = vld [vmem:[%s12671_s1 + $0x138] sm:$0xff]   ;;  %v2155_v14 = vrot.slane %v1924_v40, 1 }
  0x59   : > { %2450 = vmatpush1.bf16.msra.mxu1 %v8273_v44  ;;  %7869 = vmatprep.mubr.bf16.mxu1 %v1167_v46  ;;  %v1017_v44 = vor.u32 %v1015_v23, %v1013_v17  ;;  %v1021_v46 = vrot.slane %v1019_v32, 1  ;;  %v2156_v52 = vrot.slane %v1932_v36, 1  ;;  %v8821_v17 = vld [vmem:[%s8515_s8 + $0x30] sm:$0xff]   ;;  %v8839_v23 = vsel %vm1140_vm0, %v8813_v8, %v2070_v12  ;;  %v8858_v40 = vld [vmem:[%s8515_s8 + $0x38] sm:$0xff]  }
  0x5a   : > { %2451 = vmatprep.subr.bf16.mxu1 %v12674_v1  ;;  %v2159_v36 = vrot.slane %v8839_v23, 1 }
  0x5b   : > { %7888 = vmatpush3.bf16.msra.mxu0 %v8303_v15  ;;  %v2157_v0 = vsel %vm1140_vm0, %v2155_v14, %v2156_v52  ;;  %v1035_v15 = vshll.u32 %v8625_v60, 16 }
  0x5c   : > { %7889 = vmatprep.subr.bf16.mxu0 %v8308_v41 }
  0x5d   : > { %2452 = vmatpush1.bf16.msra.mxu1 %v8276_v54  ;;  %v1935_v54 = vor.u32 %v1933_v37, %v1931_v21  ;;  %v1031_v21 = vshrl.u32 %v8603_v51, 16  ;;  %v1037_v27 = vrot.slane %v1035_v15, 1  ;;  %v8291_v37 = vld [vmem:[%s12671_s1 + $0x188] sm:$0xff]  }
  0x5e   : > { %1437 = vmatmul.mubr.bf16.gmra.mrb[8].mxu0 %v8547_v24  ;;  %2453 = vmatprep.subr.bf16.mxu1 %v12674_v1  ;;  %v1172_v24 = vrot.slane %v8746_v4, 1 }
  0x5f   : > { %1444 = vmatprep.mubr.bf16.mxu0 %v1006_v61  ;;  %7890 = vmatpush3.bf16.msra.mxu0 %v8308_v41  ;;  %v8806_v2 = vsel %vm970_vm1, %v1935_v54, %v1939_v55  ;;  %v2076_v41 = vrot.slane %v8821_v17, 1  ;;  %v2078_v54 = vrot.slane %v8858_v40, 1 }
  0x60   : > { %7870 = vmatmul.mubr.bf16.gmra.mrb[24].mxu1 %v1169_v3  ;;  %v1173_v33 = vsel %vm1140_vm0, %v1170_v56, %v1172_v24  ;;  %v1175_v34 = vsel %vm1140_vm0, %v1172_v24, %v1174_v19  ;;  %v1022_v56 = vsel %vm970_vm1, %v1017_v44, %v1021_v46  ;;  %v1945_v3 = vshll.u32 %v8794_v53, 16  ;;  %7891 = vmatprep.subr.bf16.mxu0 %v8313_v6 }
  0x61   : > { %7873 = vmatprep.mubr.bf16.mxu1 %v1171_v9  ;;  %2454 = vmatpush1.bf16.msra.mxu1 %v8278_v63  ;;  %v1941_v63 = vshrl.u32 %v8767_v22, 16  ;;  %v1025_v9 = vor.u32 %v1023_v58, %v1021_v46  ;;  %v2161_v13 = vrot.slane %v8806_v2, 1  ;;  %v8864_v46 = vld [vmem:[%s8515_s8 + $0x40] sm:$0xff]   ;;  %v1957_v2 = vshrl.u32 %v8821_v17, 16 }
  0x62   : > { %2455 = vmatprep.subr.bf16.mxu1 %v12674_v1  ;;  %v1947_v24 = vrot.slane %v1945_v3, 1  ;;  %v2080_v59 = vrot.slane %v8864_v46, 1  ;;  %v8893_v15 = vsel %vm1140_vm0, %v2076_v41, %v2078_v54 }
  0x63   : > { %7892 = vmatpush3.bf16.msra.mxu0 %v8313_v6  ;;  %v1943_v49 = vor.u32 %v1941_v63, %v1939_v55  ;;  %v1030_v20 = vsel %vm970_vm1, %v1025_v9, %v1029_v11  ;;  %v2162_v22 = vsel %vm1140_vm0, %v2156_v52, %v2161_v13  ;;  %v8294_v55 = vld [vmem:[%s12671_s1 + $0x190] sm:$0xff]  }
  0x65   : > { %2456 = vmatpush1.bf16.msra.mxu1 %v8280_v18  ;;  %v8844_v32 = vsel %vm970_vm1, %v1943_v49, %v1947_v24 }
  0x66   : > { %1445 = vmatmul.mubr.bf16.gmra.mrb[12].mxu0 %v8552_v26  ;;  %2457 = vmatprep.subr.bf16.mxu1 %v12674_v1  ;;  %v1176_v26 = vrot.slane %v8772_v31, 1  ;;  %v2165_v44 = vrot.slane %v8844_v32, 1 }
  0x67   : > { %1452 = vmatprep.mubr.bf16.mxu0 %v1014_v29  ;;  %v1949_v29 = vshrl.u32 %v8794_v53, 16 }
  0x68   : > { %7874 = vmatmul.mubr.bf16.gmra.mrb[28].mxu1 %v1173_v33  ;;  %v1177_v61 = vsel %vm1140_vm0, %v1174_v19, %v1176_v26  ;;  %v8289_v19 = vld [vmem:[%s12671_s1 + $0x180] sm:$0xff]   ;;  %v8847_v33 = vsel %vm1140_vm0, %v2070_v12, %v2072_v16  ;;  %v1033_v26 = vor.u32 %v1031_v21, %v1029_v11  ;;  %v2166_v11 = vsel %vm1140_vm0, %v2161_v13, %v2165_v44 }
  0x69   : > { %7877 = vmatprep.mubr.bf16.mxu1 %v1175_v34  ;;  %2458 = vmatpush1.bf16.msra.mxu1 %v8283_v25  ;;  %v1953_v25 = vshll.u32 %v8821_v17, 16  ;;  %v2074_v34 = vrot.slane %v8794_v53, 1  ;;  %v1951_v52 = vor.u32 %v1949_v29, %v1947_v24  ;;  %v1961_v12 = vshll.u32 %v8858_v40, 16 }
  0x6a   : > { %2459 = vmatprep.subr.bf16.mxu1 %v12674_v1  ;;  %v1038_v63 = vsel %vm970_vm1, %v1033_v26, %v1037_v27  ;;  %v8899_v17 = vsel %vm1140_vm0, %v2078_v54, %v2080_v59  ;;  %v1051_v29 = vshll.u32 %v8651_v7, 16  ;;  %v1055_v54 = vshrl.u32 %v8651_v7, 16 }
  0x6b   : > { %v1955_v53 = vrot.slane %v1953_v25, 1  ;;  %v8868_v14 = vsel %vm1140_vm0, %v2072_v16, %v2074_v34  ;;  %v8881_v3 = vsel %vm1140_vm0, %v2074_v34, %v2076_v41  ;;  %v2175_v16 = vrot.slane %v8893_v15, 1  ;;  %v8932_v25 = vld [vmem:[%s12671_s1 + $0x200] sm:$0xff]  }
  0x6c   : > { %v2167_v58 = vrot.slane %v8868_v14, 1  ;;  %v2171_v6 = vrot.slane %v8881_v3, 1  ;;  %v2179_v24 = vrot.slane %v8899_v17, 1  ;;  %v8299_v34 = vld [vmem:[%s12671_s1 + $0x1a0] sm:$0xff]   ;;  %v1053_v26 = vrot.slane %v1051_v29, 1 }
  0x6d   : > { %2460 = vmatpush1.bf16.msra.mxu1 %v8285_v43  ;;  %v1816_v43 = vld [vmem:[%s8515_s8 + $0x8] sm:$0xc] }
  0x6e   : > { %1453 = vmatmul.mubr.bf16.gmra.mrb[16].mxu0 %v8571_v35  ;;  %3576 = vmatprep.subr.bf16.mxu1 %v12674_v1  ;;  %v2153_v35 = vrot.slane %v8722_v50, 1  ;;  %v8317_v50 = vld [vmem:[%s12671_s1 + $0x170] sm:$0xff]   ;;  %v8927_v32 = vsel %vm1140_vm0, %v2175_v16, %v2179_v24 }
  0x6f   : > { %1460 = vmatprep.mubr.bf16.mxu0 %v1022_v56  ;;  %7893 = vmatprep.subr.bf16.mxu0 %v8317_v50  ;;  %v1039_v56 = vshrl.u32 %v8625_v60, 16 }
  0x70   : > { %7878 = vmatmul.mubr.bf16.gmra.mrb[32].mxu1 %v1177_v61  ;;  %v2154_v18 = vsel %vm1140_vm0, %v2153_v35, %v8813_v8  ;;  %7894 = vmatpush3.bf16.msra.mxu0 %v8317_v50  ;;  %v7337_v61 = vcombine.low %v1816_v43, %v8703_v42  ;;  %v1956_v42 = vsel %vm970_vm1, %v1951_v52, %v1955_v53 }
  0x71   : > { %2461 = vmatprep.mubr.bf16.mxu1 %v2157_v0  ;;  %7895 = vmatprep.subr.bf16.mxu0 %v8318_v57  ;;  %v1045_v0 = vrot.slane %v1043_v39, 1  ;;  %v1041_v49 = vor.u32 %v1039_v56, %v1037_v27  ;;  %v1047_v27 = vshrl.u32 %v8630_v62, 16  ;;  %v1969_v39 = vshll.u32 %v8864_v46, 16 }
  0x72   : > { %v2067_v35 = vrot.slane %v7337_v61, 1 }
  0x73   : > { %v1049_v41 = vor.u32 %v1047_v27, %v1045_v0  ;;  %v1971_v52 = vrot.slane %v1969_v39, 1  ;;  %v8986_v27 = vld [vmem:[%s8515_s8 + $0x58] sm:$0xff]  }
  0x74   : > { %7896 = vmatpush3.bf16.msra.mxu0 %v8318_v57  ;;  %v8296_v57 = vld [vmem:[%s12671_s1 + $0x198] sm:$0xff]   ;;  %v1993_v39 = vshll.u32 %v8986_v27, 16 }
  0x75   : > { %7933 = vmatprep.subr.bf16.mxu0 %v8932_v25 }
  0x76   : > { %1461 = vmatmul.mubr.bf16.gmra.mrb[20].mxu0 %v8577_v38  ;;  %v2163_v38 = vrot.slane %v8847_v33, 1 }
  0x77   : > { %1468 = vmatprep.mubr.bf16.mxu0 %v1030_v20  ;;  %v1963_v20 = vrot.slane %v1961_v12, 1  ;;  %v1067_v12 = vshll.u32 %v8681_v28, 16 }
  0x78   : > { %2462 = vmatmul.mubr.bf16.vlgmr.msra.gmra.mrb[36].mxu1 %v2154_v18  ;;  %v8885_v9 = vsel %vm1140_vm0, %v2159_v36, %v2163_v38  ;;  %v8904_v13 = vsel %vm1140_vm0, %v2163_v38, %v2167_v58  ;;  %v8912_v18 = vsel %vm1140_vm0, %v2167_v58, %v2171_v6  ;;  %v1965_v38 = vshrl.u32 %v8858_v40, 16  ;;  %v8305_v58 = vld [vmem:[%s12671_s1 + $0x1b0] sm:$0xff]  }
  0x79   : > { %3577 = vmatpush1.bf16.msra.mxu1 %v8289_v19  ;;  %2469 = vmatprep.mubr.bf16.mxu1 %v2162_v22  ;;  %v2169_v19 = vrot.slane %v1956_v42, 1  ;;  %v8919_v22 = vsel %vm1140_vm0, %v2171_v6, %v2175_v16  ;;  %v1063_v16 = vshrl.u32 %v8656_v10, 16 }
  0x7a   : > { %3578 = vmatprep.subr.bf16.mxu1 %v12674_v1  ;;  %v1967_v40 = vor.u32 %v1965_v38, %v1963_v20 }
  0x7d   : > { %3579 = vmatpush1.bf16.msra.mxu1 %v8291_v37 }
  0x7e   : > { %1469 = vmatmul.mubr.bf16.gmra.mrb[24].mxu0 %v8597_v48  ;;  %3580 = vmatprep.subr.bf16.mxu1 %v12674_v1  ;;  %v2069_v48 = vsel %vm1140_vm0, %v2067_v35, %v8813_v8  ;;  %v1959_v8 = vor.u32 %v1957_v2, %v1955_v53  ;;  %v1054_v53 = vsel %vm970_vm1, %v1049_v41, %v1053_v26  ;;  %v8315_v41 = vld [vmem:[%s12671_s1 + $0x1d0] sm:$0xff]  }
  0x7f   : > { %1476 = vmatprep.mubr.bf16.mxu0 %v1038_v63  ;;  %v2158_v50 = vrot.slane %v2069_v48, 1  ;;  %v1972_v63 = vsel %vm970_vm1, %v1967_v40, %v1971_v52 }
  0x80   : > { %2470 = vmatmul.mubr.bf16.gmra.mrb[40].mxu1 %v8839_v23  ;;  %v1046_v23 = vsel %vm970_vm1, %v1041_v49, %v1045_v0  ;;  %v1964_v37 = vsel %vm970_vm1, %v1959_v8, %v1963_v20  ;;  %v1057_v0 = vor.u32 %v1055_v54, %v1053_v26  ;;  %v2177_v42 = vrot.slane %v1972_v63, 1 }
  0x81   : > { %2477 = vmatprep.mubr.bf16.mxu1 %v2166_v11  ;;  %3581 = vmatpush1.bf16.msra.mxu1 %v8294_v55  ;;  %v8916_v21 = vsel %vm1140_vm0, %v2158_v50, %v2159_v36  ;;  %v2170_v36 = vsel %vm1140_vm0, %v2165_v44, %v2169_v19  ;;  %v2173_v43 = vrot.slane %v1964_v37, 1  ;;  %v8949_v44 = vld [vmem:[%s8515_s8 + $0x48] sm:$0xff]   ;;  %v1973_v55 = vshrl.u32 %v8864_v46, 16  ;;  %v8966_v11 = vld [vmem:[%s8515_s8 + $0x50] sm:$0xff]   ;;  %v8310_v50 = vld [vmem:[%s12671_s1 + $0x1c0] sm:$0xff]  }
  0x82   : > { %3582 = vmatprep.subr.bf16.mxu1 %v12674_v1  ;;  %v1977_v56 = vshll.u32 %v8949_v44, 16  ;;  %v1985_v49 = vshll.u32 %v8966_v11, 16  ;;  %v1069_v8 = vrot.slane %v1067_v12, 1  ;;  %v1071_v37 = vshrl.u32 %v8681_v28, 16 }
  0x83   : > { %v2174_v61 = vsel %vm1140_vm0, %v2169_v19, %v2173_v43  ;;  %v1975_v6 = vor.u32 %v1973_v55, %v1971_v52  ;;  %v1981_v19 = vshrl.u32 %v8949_v44, 16  ;;  %v1989_v38 = vshrl.u32 %v8966_v11, 16 }
  0x84   : > { %v1979_v35 = vrot.slane %v1977_v56, 1  ;;  %v1987_v29 = vrot.slane %v1985_v49, 1  ;;  %v1995_v54 = vrot.slane %v1993_v39, 1  ;;  %v1083_v55 = vshll.u32 %v8710_v45, 16 }
  0x85   : > { %3583 = vmatpush1.bf16.msra.mxu1 %v8296_v57  ;;  %v2178_v57 = vsel %vm1140_vm0, %v2173_v43, %v2177_v42  ;;  %v2084_v46 = vrot.slane %v8966_v11, 1 }
  0x86   : > { %1477 = vmatmul.mubr.bf16.gmra.mrb[28].mxu0 %v8603_v51  ;;  %3584 = vmatprep.subr.bf16.mxu1 %v12674_v1  ;;  %v8301_v51 = vld [vmem:[%s12671_s1 + $0x1a8] sm:$0xff]   ;;  %v1980_v48 = vsel %vm970_vm1, %v1975_v6, %v1979_v35  ;;  %v1085_v6 = vrot.slane %v1083_v55, 1 }
  0x87   : > { %1484 = vmatprep.mubr.bf16.mxu0 %v1046_v23  ;;  %v2181_v23 = vrot.slane %v1980_v48, 1  ;;  %v1087_v48 = vshrl.u32 %v8710_v45, 16 }
  0x88   : > { %2478 = vmatmul.mubr.bf16.gmra.mrb[44].mxu1 %v8847_v33  ;;  %v1059_v33 = vshll.u32 %v8656_v10, 16 }
  0x89   : > { %2485 = vmatprep.mubr.bf16.mxu1 %v2170_v36  ;;  %3585 = vmatpush1.bf16.msra.mxu1 %v8299_v34  ;;  %v1983_v34 = vor.u32 %v1981_v19, %v1979_v35  ;;  %v2182_v26 = vsel %vm1140_vm0, %v2177_v42, %v2181_v23  ;;  %v9027_v42 = vld [vmem:[%s8515_s8 + $0x68] sm:$0xff]  }
  0x8a   : > { %3586 = vmatprep.subr.bf16.mxu1 %v12674_v1  ;;  %v1061_v2 = vrot.slane %v1059_v33, 1  ;;  %v9006_v33 = vld [vmem:[%s8515_s8 + $0x60] sm:$0xff]   ;;  %v2009_v19 = vshll.u32 %v9027_v42, 16 }
  0x8b   : > { %v1988_v43 = vsel %vm970_vm1, %v1983_v34, %v1987_v29  ;;  %v2001_v63 = vshll.u32 %v9006_v33, 16  ;;  %v2005_v49 = vshrl.u32 %v9006_v33, 16 }
  0x8c   : > { %v1065_v20 = vor.u32 %v1063_v16, %v1061_v2  ;;  %v2185_v52 = vrot.slane %v1988_v43, 1  ;;  %v1091_v16 = vshll.u32 %v8716_v47, 16 }
  0x8d   : > { %3587 = vmatpush1.bf16.msra.mxu1 %v8301_v51  ;;  %v1073_v51 = vor.u32 %v1071_v37, %v1069_v8  ;;  %v1099_v37 = vshll.u32 %v8746_v4, 16 }
  0x8e   : > { %1485 = vmatmul.mubr.bf16.gmra.mrb[32].mxu0 %v8625_v60  ;;  %3588 = vmatprep.subr.bf16.mxu1 %v12674_v1  ;;  %v8307_v60 = vld [vmem:[%s12671_s1 + $0x1b8] sm:$0xff]   ;;  %v1070_v36 = vsel %vm970_vm1, %v1065_v20, %v1069_v8  ;;  %v8327_v8 = vld [vmem:[%s12671_s1 + $0x1f0] sm:$0xff]   ;;  %v1089_v20 = vor.u32 %v1087_v48, %v1085_v6 }
  0x8f   : > { %1492 = vmatprep.mubr.bf16.mxu0 %v1054_v53  ;;  %v1991_v53 = vor.u32 %v1989_v38, %v1987_v29  ;;  %v9053_v29 = vld [vmem:[%s8515_s8 + $0x70] sm:$0xff]   ;;  %v2013_v38 = vshrl.u32 %v9027_v42, 16 }
  0x90   : > { %2486 = vmatmul.mubr.bf16.gmra.mrb[48].mxu1 %v8868_v14  ;;  %v1062_v14 = vsel %vm970_vm1, %v1057_v0, %v1061_v2  ;;  %v8322_v0 = vld [vmem:[%s12671_s1 + $0x1e0] sm:$0xff]   ;;  %v2186_v2 = vsel %vm1140_vm0, %v2181_v23, %v2185_v52  ;;  %v2017_v39 = vshll.u32 %v9053_v29, 16 }
  0x91   : > { %2493 = vmatprep.mubr.bf16.mxu1 %v2174_v61  ;;  %3589 = vmatpush1.bf16.msra.mxu1 %v8305_v58  ;;  %v1997_v58 = vshrl.u32 %v8986_v27, 16  ;;  %v1996_v61 = vsel %vm970_vm1, %v1991_v53, %v1995_v54 }
  0x92   : > { %3590 = vmatprep.subr.bf16.mxu1 %v12674_v1 }
  0x93   : > { %v1999_v12 = vor.u32 %v1997_v58, %v1995_v54  ;;  %v2019_v54 = vrot.slane %v2017_v39, 1  ;;  %v2092_v39 = vrot.slane %v9053_v29, 1 }
  0x95   : > { %3591 = vmatpush1.bf16.msra.mxu1 %v8307_v60  ;;  %v2189_v60 = vrot.slane %v1996_v61, 1 }
  0x96   : > { %1493 = vmatmul.mubr.bf16.gmra.mrb[36].mxu0 %v8630_v62  ;;  %3592 = vmatprep.subr.bf16.mxu1 %v12674_v1  ;;  %v8312_v62 = vld [vmem:[%s12671_s1 + $0x1c8] sm:$0xff]  }
  0x97   : > { %1500 = vmatprep.mubr.bf16.mxu0 %v1062_v14  ;;  %v2003_v14 = vrot.slane %v2001_v63, 1  ;;  %v2190_v45 = vsel %vm1140_vm0, %v2185_v52, %v2189_v60  ;;  %v9073_v52 = vld [vmem:[%s8515_s8 + $0x78] sm:$0xff]   ;;  %v8436_v63 = vld [vmem:[%s8515_s8 + $0x70] sm:$0xff]  }
  0x98   : > { %2494 = vmatmul.mubr.bf16.gmra.mrb[52].mxu1 %v8881_v3  ;;  %v1075_v3 = vshll.u32 %v8687_v30, 16  ;;  %v2025_v61 = vshll.u32 %v9073_v52, 16 }
  0x99   : > { %2501 = vmatprep.mubr.bf16.mxu1 %v2178_v57  ;;  %3593 = vmatpush1.bf16.msra.mxu1 %v8310_v50  ;;  %v2004_v57 = vsel %vm970_vm1, %v1999_v12, %v2003_v14  ;;  %v2007_v34 = vor.u32 %v2005_v49, %v2003_v14  ;;  %v1115_v14 = vshll.u32 %v8772_v31, 16  ;;  %v2029_v49 = vshrl.u32 %v9073_v52, 16 }
  0x9a   : > { %3594 = vmatprep.subr.bf16.mxu1 %v12674_v1  ;;  %v1077_v40 = vrot.slane %v1075_v3, 1  ;;  %v2193_v23 = vrot.slane %v2004_v57, 1 }
  0x9c   : > { %v1078_v56 = vsel %vm970_vm1, %v1073_v51, %v1077_v40 }
  0x9d   : > { %3595 = vmatpush1.bf16.msra.mxu1 %v8312_v62  ;;  %v2011_v62 = vrot.slane %v2009_v19, 1  ;;  %v8438_v19 = vld [vmem:[%s8515_s8 + $0x78] sm:$0xff]  }
  0x9e   : > { %1501 = vmatmul.mubr.bf16.gmra.mrb[40].mxu0 %v8651_v7  ;;  %3596 = vmatprep.subr.bf16.mxu1 %v12674_v1  ;;  %v8319_v7 = vld [vmem:[%s12671_s1 + $0x1d8] sm:$0xff]  }
  0x9f   : > { %1508 = vmatprep.mubr.bf16.mxu0 %v1070_v36  ;;  %v1095_v36 = vshrl.u32 %v8716_v47, 16  ;;  %v2012_v43 = vsel %vm970_vm1, %v2007_v34, %v2011_v62  ;;  %v2086_v47 = vrot.slane %v8986_v27, 1  ;;  %v2021_v27 = vshrl.u32 %v9053_v29, 16 }
  0xa0   : > { %2502 = vmatmul.mubr.bf16.gmra.mrb[56].mxu1 %v8893_v15  ;;  %v1079_v15 = vshrl.u32 %v8687_v30, 16  ;;  %v2082_v30 = vrot.slane %v8949_v44, 1  ;;  %v2197_v53 = vrot.slane %v2012_v43, 1  ;;  %v2094_v29 = vrot.slane %v9073_v52, 1 }
  0xa1   : > { %2509 = vmatprep.mubr.bf16.mxu1 %v2182_v26  ;;  %3597 = vmatpush1.bf16.msra.mxu1 %v8315_v41  ;;  %v8435_v41 = vld [vmem:[%s8515_s8 + $0x68] sm:$0xff]   ;;  %v2194_v26 = vsel %vm1140_vm0, %v2189_v60, %v2193_v23  ;;  %v9079_v58 = vsel %vm1140_vm0, %v2084_v46, %v2086_v47  ;;  %v2027_v60 = vrot.slane %v2025_v61, 1  ;;  %v2023_v12 = vor.u32 %v2021_v27, %v2019_v54 }
  0xa2   : > { %3598 = vmatprep.subr.bf16.mxu1 %v12674_v1  ;;  %v1081_v35 = vor.u32 %v1079_v15, %v1077_v40  ;;  %v9040_v50 = vsel %vm1140_vm0, %v2080_v59, %v2082_v30  ;;  %v1093_v59 = vrot.slane %v1091_v16, 1  ;;  %v9063_v3 = vsel %vm1140_vm0, %v2082_v30, %v2084_v46  ;;  %v9104_v46 = vld [vmem:[%s8515_s8 + $0x88] sm:$0xff]  }
  0xa3   : > { %v1101_v40 = vrot.slane %v1099_v37, 1  ;;  %v1107_v15 = vshll.u32 %v8749_v5, 16  ;;  %v2088_v30 = vrot.slane %v9006_v33, 1  ;;  %v2090_v16 = vrot.slane %v9027_v42, 1  ;;  %v8334_v61 = vld [vmem:[%s12671_s1 + $0x208] sm:$0xff]  }
  0xa4   : > { %v1086_v44 = vsel %vm970_vm1, %v1081_v35, %v1085_v6  ;;  %v1094_v11 = vsel %vm970_vm1, %v1089_v20, %v1093_v59  ;;  %v1097_v51 = vor.u32 %v1095_v36, %v1093_v59  ;;  %v9089_v6 = vld [vmem:[%s8515_s8 + $0x80] sm:$0xff]   ;;  %v2028_v31 = vsel %vm970_vm1, %v2023_v12, %v2027_v60 }
  0xa5   : > { %3599 = vmatpush1.bf16.msra.mxu1 %v8319_v7  ;;  %v2015_v7 = vor.u32 %v2013_v38, %v2011_v62  ;;  %v1109_v5 = vrot.slane %v1107_v15, 1  ;;  %v9096_v48 = vsel %vm1140_vm0, %v2086_v47, %v2088_v30  ;;  %v2033_v57 = vshll.u32 %v9089_v6, 16  ;;  %v8439_v36 = vld [vmem:[%s8515_s8 + $0x80] sm:$0xff]   ;;  %v9132_v15 = vld [vmem:[%s8515_s8 + $0x98] ss:$0 sps:$4 sm:$0x33]  }
  0xa6   : > { %1509 = vmatmul.mubr.bf16.gmra.mrb[44].mxu0 %v8656_v10  ;;  %3600 = vmatprep.subr.bf16.mxu1 %v12674_v1  ;;  %v8324_v10 = vld [vmem:[%s12671_s1 + $0x1e8] sm:$0xff]   ;;  %v1102_v55 = vsel %vm970_vm1, %v1097_v51, %v1101_v40  ;;  %v2205_v59 = vrot.slane %v2028_v31, 1  ;;  %v2037_v34 = vshrl.u32 %v9089_v6, 16  ;;  %v9122_v51 = vsel %vm1140_vm0, %v2090_v16, %v2092_v39 }
  0xa7   : > { %1516 = vmatprep.mubr.bf16.mxu0 %v1078_v56  ;;  %v1103_v56 = vshrl.u32 %v8746_v4, 16  ;;  %v2035_v20 = vrot.slane %v2033_v57, 1  ;;  %v9180_v57 = vld [vmem:[%s8515_s8 + $0x20] sm:$0xff]   ;;  %v8340_v31 = vld [vmem:[%s12671_s1 + $0x228] sm:$0xff]  }
  0xa8   : > { %2510 = vmatmul.mubr.bf16.gmra.mrb[60].mxu1 %v8899_v17 }
  0xa9   : > { %2517 = vmatprep.mubr.bf16.mxu1 %v2186_v2  ;;  %3601 = vmatpush1.bf16.msra.mxu1 %v8322_v0  ;;  %v2198_v0 = vsel %vm1140_vm0, %v2193_v23, %v2197_v53  ;;  %v2020_v2 = vsel %vm970_vm1, %v2015_v7, %v2019_v54  ;;  %v1105_v4 = vor.u32 %v1103_v56, %v1101_v40  ;;  %v2045_v7 = vshrl.u32 %v9104_v46, 16 }
  0xaa   : > { %3602 = vmatprep.subr.bf16.mxu1 %v12674_v1  ;;  %v2201_v35 = vrot.slane %v2020_v2, 1  ;;  %v2031_v23 = vor.u32 %v2029_v49, %v2027_v60  ;;  %v2039_v47 = vor.u32 %v2037_v34, %v2035_v20  ;;  %v2057_v2 = vshll.u32 %v9132_v15, 16  ;;  %v9154_v60 = vld [vmem:[%s8515_s8 + $0x14] sm:$0xf] }
  0xab   : > { %v2061_v49 = vshrl.u32 %v9132_v15, 16  ;;  %v2191_v34 = vrot.slane %v9079_v58, 1 }
  0xac   : > { %v2206_v37 = vsel %vm1140_vm0, %v2201_v35, %v2205_v59  ;;  %v2036_v38 = vsel %vm970_vm1, %v2031_v23, %v2035_v20 }
  0xad   : > { %3603 = vmatpush1.bf16.msra.mxu1 %v8324_v10  ;;  %v1110_v10 = vsel %vm970_vm1, %v1105_v4, %v1109_v5 }
  0xae   : > { %1517 = vmatmul.mubr.bf16.gmra.mrb[48].mxu0 %v8681_v28  ;;  %3604 = vmatprep.subr.bf16.mxu1 %v12674_v1  ;;  %v8329_v28 = vld [vmem:[%s12671_s1 + $0x1f8] sm:$0xff]  }
  0xaf   : > { %1524 = vmatprep.mubr.bf16.mxu0 %v1086_v44  ;;  %v8437_v44 = vld [vmem:[%s8515_s8 + $0x88] sm:$0xff]  }
  0xb0   : > { %2518 = vmatmul.mubr.bf16.gmra.mrb[64].mxu1 %v9040_v50  ;;  %v1111_v33 = vshrl.u32 %v8437_v44, 16 }
  0xb1   : > { %2525 = vmatprep.mubr.bf16.mxu1 %v2190_v45  ;;  %3605 = vmatpush1.bf16.msra.mxu1 %v8327_v8  ;;  %v2202_v8 = vsel %vm1140_vm0, %v2197_v53, %v2201_v35  ;;  %v1117_v45 = vrot.slane %v1115_v14, 1  ;;  %v2891_v35 = vld [vmem:[%s8515_s8 + $0x10] sm:$0xc] }
  0xb2   : > { %3606 = vmatprep.subr.bf16.mxu1 %v12674_v1  ;;  %v1113_v42 = vor.u32 %v1111_v33, %v1109_v5  ;;  %v2059_v5 = vrot.slane %v2057_v2, 1  ;;  %v9230_v2 = vld [vmem:[%s8515_s8 + $0x30] sm:$0xff]  }
  0xb4   : > { %v1118_v62 = vsel %vm970_vm1, %v1113_v42, %v1117_v45 }
  0xb5   : > { %3607 = vmatpush1.bf16.msra.mxu1 %v8329_v28  ;;  %v9109_v28 = vsel %vm1140_vm0, %v2088_v30, %v2090_v16  ;;  %v2096_v30 = vrot.slane %v9089_v6, 1  ;;  %v9170_v16 = vld [vmem:[%s8515_s8 + $0x18] sm:$0xff]  }
  0xb6   : > { %1525 = vmatmul.mubr.bf16.gmra.mrb[52].mxu0 %v8435_v41  ;;  %v9119_v41 = vld [vmem:[%s8515_s8 + $0x90] sm:$0xff]   ;;  %v3038_v20 = vshrl.u32 %v9170_v16, 16 }
  0xb7   : > { %1532 = vmatprep.mubr.bf16.mxu0 %v1094_v11  ;;  %v2041_v11 = vshll.u32 %v9104_v46, 16  ;;  %v2049_v40 = vshll.u32 %v9119_v41, 16  ;;  %v9160_v12 = vsel %vm1140_vm0, %v2094_v29, %v2096_v30 }
  0xb8   : > { %2526 = vmatmul.mubr.bf16.gmra.mrb[68].mxu1 %v9063_v3 }
  0xb9   : > { %2533 = vmatprep.mubr.bf16.mxu1 %v2194_v26  ;;  %v2209_v26 = vrot.slane %v2036_v38, 1  ;;  %v2043_v43 = vrot.slane %v2041_v11, 1  ;;  %v2051_v56 = vrot.slane %v2049_v40, 1  ;;  %v2195_v40 = vrot.slane %v9096_v48, 1 }
  0xbb   : > { %v2210_v53 = vsel %vm1140_vm0, %v2205_v59, %v2209_v26  ;;  %v2044_v54 = vsel %vm970_vm1, %v2039_v47, %v2043_v43  ;;  %v2047_v27 = vor.u32 %v2045_v7, %v2043_v43  ;;  %v2063_v59 = vor.u32 %v2061_v49, %v2059_v5  ;;  %v8343_v43 = vld [vmem:[%s12671_s1 + $0x238] sm:$0xff]  }
  0xbc   : > { %v8328_v47 = vld [vmem:[%s8515_s8 + $0x98] ss:$0 sps:$4 sm:$0x11]   ;;  %v3046_v7 = vshrl.u32 %v9180_v57, 16 }
  0xbd   : > { %v2052_v52 = vsel %vm970_vm1, %v2047_v27, %v2051_v56  ;;  %v2227_v11 = vrot.slane %v2063_v59, 1  ;;  %v9248_v49 = vld [vmem:[%s8515_s8 + $0x38] sm:$0xff]   ;;  %v3062_v59 = vshrl.u32 %v9230_v2, 16 }
  0xbe   : > { %1533 = vmatmul.mubr.bf16.gmra.mrb[56].mxu0 %v8436_v63  ;;  %v9138_v63 = vsel %vm1140_vm0, %v2092_v39, %v2094_v29 }
  0xbf   : > { %1540 = vmatprep.mubr.bf16.mxu0 %v1102_v55  ;;  %v2213_v55 = vrot.slane %v2044_v54, 1 }
  0xc0   : > { %2534 = vmatmul.mubr.bf16.gmra.mrb[72].mxu1 %v9079_v58 }
  0xc1   : > { %2541 = vmatprep.mubr.bf16.mxu1 %v2198_v0  ;;  %v2053_v0 = vshrl.u32 %v9119_v41, 16 }
  0xc3   : > { %v2055_v4 = vor.u32 %v2053_v0, %v2051_v56  ;;  %v2199_v56 = vrot.slane %v9109_v28, 1 }
  0xc5   : > { %v2060_v14 = vsel %vm970_vm1, %v2055_v4, %v2059_v5 }
  0xc6   : > { %1541 = vmatmul.mubr.bf16.gmra.mrb[60].mxu0 %v8438_v19  ;;  %v2221_v33 = vrot.slane %v2060_v14, 1  ;;  %v3268_v14 = vrot.slane %v9170_v16, 2 }
  0xc7   : > { %1548 = vmatprep.mubr.bf16.mxu0 %v1110_v10  ;;  %v9167_v10 = vcombine.low %v2891_v35, %v9154_v60  ;;  %v3058_v35 = vshll.u32 %v9230_v2, 16 }
  0xc8   : > { %2542 = vmatmul.mubr.bf16.gmra.mrb[76].mxu1 %v9096_v48  ;;  %v2225_v48 = vrot.slane %v8328_v47, 1 }
  0xc9   : > { %2549 = vmatprep.mubr.bf16.mxu1 %v2202_v8  ;;  %v3029_v19 = vshll.u32 %v9167_v10, 16  ;;  %v3034_v8 = vshll.u32 %v9170_v16, 16  ;;  %v3027_v17 = vshrl.u32 %v9167_v10, 16 }
  0xcb   : > { %v3036_v23 = vrot.slane %v3034_v8, 1 }
  0xcd   : > { %v3040_v38 = vor.u32 %v3038_v20, %v3036_v23  ;;  %v3066_v20 = vshll.u32 %v9248_v49, 16 }
  0xce   : > { %1549 = vmatmul.mubr.bf16.gmra.mrb[64].mxu0 %v8439_v36 }
  0xcf   : > { %1556 = vmatprep.mubr.bf16.mxu0 %v1118_v62  ;;  %v3042_v62 = vshll.u32 %v9180_v57, 16 }
  0xd0   : > { %2550 = vmatmul.mubr.bf16.gmra.mrb[80].mxu1 %v9109_v28 }
  0xd1   : > { %2557 = vmatprep.mubr.bf16.mxu1 %v2206_v37  ;;  %v3044_v39 = vrot.slane %v3042_v62, 1 }
  0xd3   : > { %v3045_v29 = vsel %vm970_vm1, %v3040_v38, %v3044_v39 }
  0xd6   : > { %1557 = vmatmul.mubr.bf16.gmra.mrb[68].mxu0 %v8437_v44  ;;  %v2183_v44 = vrot.slane %v9040_v50, 1 }
  0xd7   : > { %7897 = vmatprep.mubr.bf16.mxu0 %v8916_v21  ;;  %v2214_v21 = vsel %vm1140_vm0, %v2209_v26, %v2213_v55  ;;  %v9209_v26 = vld [vmem:[%s8515_s8 + $0x28] sm:$0xff]  }
  0xd8   : > { %2558 = vmatmul.mubr.bf16.gmra.mrb[84].mxu1 %v9122_v51  ;;  %v2184_v50 = vsel %vm1140_vm0, %v2179_v24, %v2183_v44  ;;  %v3031_v24 = vrot.slane %v3029_v19, 1  ;;  %v3054_v5 = vshrl.u32 %v9209_v26, 16 }
  0xd9   : > { %2565 = vmatprep.mubr.bf16.mxu1 %v2210_v53  ;;  %v2228_v53 = vsel %vm1140_vm0, %v2221_v33, %v2227_v11 }
  0xda   : > { %v3032_v37 = vor.u32 %v3031_v24, %v3027_v17  ;;  %v3276_v24 = vrot.slane %v9180_v57, 2 }
  0xdc   : > { %v3037_v54 = vsel %vm970_vm1, %v3032_v37, %v3036_v23  ;;  %v2102_v23 = vrot.slane %v9132_v15, 1  ;;  %v9271_v37 = vld [vmem:[%s8515_s8 + $0x40] sm:$0xff]  }
  0xdd   : > { %v3270_v27 = vrot.slane %v3037_v54, 2 }
  0xde   : > { %7898 = vmatmul.mubr.bf16.vlgmr.msra.gmra.mrb[72].mxu0 %v8885_v9  ;;  %v8336_v9 = vld [vmem:[%s12671_s1 + $0x210] sm:$0xff]  }
  0xdf   : > { %7901 = vmatprep.mubr.bf16.mxu0 %v8904_v13  ;;  %7934 = vmatpush3.bf16.msra.mxu0 %v8932_v25  ;;  %v2217_v13 = vrot.slane %v2052_v52, 1  ;;  %v8337_v25 = vld [vmem:[%s12671_s1 + $0x218] sm:$0xff]   ;;  %v3048_v52 = vor.u32 %v3046_v7, %v3044_v39  ;;  %v3074_v7 = vshll.u32 %v9271_v37, 16 }
  0xe0   : > { %2566 = vmatmul.mubr.bf16.gmra.mrb[88].mxu1 %v9138_v63  ;;  %7935 = vmatprep.subr.bf16.mxu0 %v8334_v61 }
  0xe1   : > { %2573 = vmatprep.mubr.bf16.mxu1 %v2214_v21  ;;  %v2218_v6 = vsel %vm1140_vm0, %v2213_v55, %v2217_v13  ;;  %v2222_v42 = vsel %vm1140_vm0, %v2217_v13, %v2221_v33  ;;  %v3050_v55 = vshll.u32 %v9209_v26, 16  ;;  %v2196_v21 = vsel %vm1140_vm0, %v2191_v34, %v2195_v40 }
  0xe2   : > { %v2203_v13 = vrot.slane %v9122_v51, 1  ;;  %v3060_v33 = vrot.slane %v3058_v35, 1  ;;  %v2229_v35 = vrot.slane %v2102_v23, 1 }
  0xe3   : > { %7936 = vmatpush3.bf16.msra.mxu0 %v8334_v61  ;;  %v3271_v61 = vrot.slane %v3045_v29, 2  ;;  %v3052_v0 = vrot.slane %v3050_v55, 1  ;;  %v3070_v29 = vshrl.u32 %v9248_v49, 16 }
  0xe4   : > { %7937 = vmatprep.subr.bf16.mxu0 %v8336_v9  ;;  %v2204_v51 = vsel %vm1140_vm0, %v2199_v56, %v2203_v13  ;;  %v3064_v11 = vor.u32 %v3062_v59, %v3060_v33 }
  0xe5   : > { %v3053_v4 = vsel %vm970_vm1, %v3048_v52, %v3052_v0  ;;  %v3076_v52 = vrot.slane %v3074_v7, 1 }
  0xe6   : > { %7902 = vmatmul.mubr.bf16.gmra.mrb[76].mxu0 %v8912_v18  ;;  %v8339_v18 = vld [vmem:[%s12671_s1 + $0x220] sm:$0xff]  }
  0xe7   : > { %7905 = vmatprep.mubr.bf16.mxu0 %v8919_v22  ;;  %7938 = vmatpush3.bf16.msra.mxu0 %v8336_v9  ;;  %v2098_v22 = vrot.slane %v9104_v46, 1  ;;  %v2187_v46 = vrot.slane %v9063_v3, 1  ;;  %v9205_v3 = vrot.slane %v9119_v41, 1  ;;  %v2200_v9 = vsel %vm1140_vm0, %v2195_v40, %v2199_v56 }
  0xe8   : > { %2574 = vmatmul.mubr.bf16.gmra.mrb[92].mxu1 %v9160_v12  ;;  %7939 = vmatprep.subr.bf16.mxu0 %v8337_v25  ;;  %v3181_v56 = vrot.slane %v9170_v16, 1 }
  0xe9   : > { %2581 = vmatprep.mubr.bf16.mxu1 %v2218_v6  ;;  %v9191_v45 = vsel %vm1140_vm0, %v2096_v30, %v2098_v22  ;;  %v2188_v36 = vsel %vm1140_vm0, %v2183_v44, %v2187_v46  ;;  %v2192_v58 = vsel %vm1140_vm0, %v2187_v46, %v2191_v34  ;;  %v9217_v41 = vsel %vm1140_vm0, %v2098_v22, %v9205_v3  ;;  %v2929_v34 = vld [vmem:[%s8515_s8 + $0x10] sm:$0x8] }
  0xea   : > { %v2226_v28 = vsel %vm1140_vm0, %v9205_v3, %v2225_v48  ;;  %v3272_v30 = vsel %vm3266_vm2, %v3270_v27, %v3271_v61  ;;  %v3267_v6 = vrot.slane %v9167_v10, 2  ;;  %v3278_v44 = vrot.slane %v3053_v4, 2 }
  0xeb   : > { %7940 = vmatpush3.bf16.msra.mxu0 %v8337_v25  ;;  %v2207_v25 = vrot.slane %v9138_v63, 1  ;;  %v3056_v22 = vor.u32 %v3054_v5, %v3052_v0  ;;  %v2211_v46 = vrot.slane %v9160_v12, 1  ;;  %v2215_v17 = vrot.slane %v9191_v45, 1  ;;  %v9296_v0 = vld [vmem:[%s8515_s8 + $0x48] sm:$0xff]  }
  0xec   : > { %7941 = vmatprep.subr.bf16.mxu0 %v8339_v18  ;;  %v3269_v10 = vsel %vm3266_vm2, %v3267_v6, %v3268_v14  ;;  %v2103_v15 = vsel %vm1140_vm0, %v9205_v3, %v2102_v23  ;;  %v3183_v48 = vrot.slane %v9180_v57, 1  ;;  %v3078_v6 = vshrl.u32 %v9271_v37, 16 }
  0xed   : > { %v2208_v8 = vsel %vm1140_vm0, %v2203_v13, %v2207_v25  ;;  %v2212_v12 = vsel %vm1140_vm0, %v2207_v25, %v2211_v46  ;;  %v2223_v55 = vrot.slane %v2103_v15, 1 }
  0xee   : > { %7906 = vmatmul.mubr.bf16.gmra.mrb[80].mxu0 %v8927_v32  ;;  %v8342_v32 = vld [vmem:[%s12671_s1 + $0x230] sm:$0xff]   ;;  %v3184_v57 = vsel %vm1140_vm0, %v3181_v56, %v3183_v48 }
  0xef   : > { %7909 = vmatprep.mubr.bf16.mxu0 %v2184_v50  ;;  %7942 = vmatpush3.bf16.msra.mxu0 %v8339_v18 }
  0xf0   : > { %2582 = vmatmul.mubr.bf16.gmra.mrb[96].mxu1 %v9191_v45  ;;  %7943 = vmatprep.subr.bf16.mxu0 %v8340_v31  ;;  %v2216_v45 = vsel %vm1140_vm0, %v2211_v46, %v2215_v17  ;;  %v2230_v46 = vsel %vm1140_vm0, %v2223_v55, %v2229_v35 }
  0xf1   : > { %2589 = vmatprep.mubr.bf16.mxu1 %v2222_v42  ;;  %v3061_v42 = vsel %vm970_vm1, %v3056_v22, %v3060_v33  ;;  %v3185_v22 = vrot.slane %v9209_v26, 1  ;;  %v3288_v33 = vrot.slane %v9230_v2, 2 }
  0xf2   : > { %v3284_v62 = vrot.slane %v3061_v42, 2  ;;  %v3080_v42 = vor.u32 %v3078_v6, %v3076_v52 }
  0xf3   : > { %7944 = vmatpush3.bf16.msra.mxu0 %v8340_v31  ;;  %v3279_v31 = vsel %vm3266_vm2, %v3271_v61, %v3278_v44 }
  0xf4   : > { %7945 = vmatprep.subr.bf16.mxu0 %v8342_v32  ;;  %v3285_v40 = vsel %vm3266_vm2, %v3278_v44, %v3284_v62 }
  0xf6   : > { %7910 = vmatmul.mubr.bf16.gmra.mrb[84].mxu0 %v2188_v36  ;;  %v3068_v36 = vrot.slane %v3066_v20, 1  ;;  %v9319_v20 = vld [vmem:[%s8515_s8 + $0x50] sm:$0xff]  }
  0xf7   : > { %7913 = vmatprep.mubr.bf16.mxu0 %v2192_v58  ;;  %7946 = vmatpush3.bf16.msra.mxu0 %v8342_v32  ;;  %v3277_v58 = vsel %vm3266_vm2, %v3268_v14, %v3276_v24  ;;  %v3082_v14 = vshll.u32 %v9296_v0, 16  ;;  %v3094_v6 = vshrl.u32 %v9319_v20, 16 }
  0xf8   : > { %2590 = vmatmul.mubr.bf16.gmra.mrb[100].mxu1 %v9217_v41  ;;  %7947 = vmatprep.subr.bf16.mxu0 %v8343_v43  ;;  %v3069_v54 = vsel %vm970_vm1, %v3064_v11, %v3068_v36 }
  0xf9   : > { %2597 = vmatprep.mubr.bf16.mxu1 %v2228_v53  ;;  %v2219_v53 = vrot.slane %v9217_v41, 1  ;;  %v3290_v27 = vrot.slane %v3069_v54, 2  ;;  %v3084_v59 = vrot.slane %v3082_v14, 1  ;;  %v3191_v54 = vrot.slane %v9271_v37, 1 }
  0xfb   : > { %7948 = vmatpush3.bf16.msra.mxu0 %v8343_v43  ;;  %v7430_v43 = vcombine.low %v2929_v34, %v9154_v60  ;;  %v3282_v60 = vrot.slane %v9209_v26, 2  ;;  %v2220_v61 = vsel %vm1140_vm0, %v2215_v17, %v2219_v53  ;;  %v3291_v5 = vsel %vm3266_vm2, %v3284_v62, %v3290_v27 }
  0xfc   : > { %4882 = vmatprep.subr.bf16.mxu0 %v12674_v1  ;;  %v3186_v26 = vsel %vm1140_vm0, %v3183_v48, %v3185_v22 }
  0xfd   : > { %v3180_v3 = vrot.slane %v7430_v43, 1  ;;  %v3283_v13 = vsel %vm3266_vm2, %v3276_v24, %v3282_v60  ;;  %v3289_v62 = vsel %vm3266_vm2, %v3282_v60, %v3288_v33  ;;  %v3280_v11 = vrot.slane %v3186_v26, 2 }
  0xfe   : > { %7914 = vmatmul.mubr.bf16.gmra.mrb[88].mxu0 %v2196_v21  ;;  %v3072_v21 = vor.u32 %v3070_v29, %v3068_v36  ;;  %v9333_v36 = vsel %vm970_vm1, %v3080_v42, %v3084_v59  ;;  %v3189_v43 = vrot.slane %v9248_v49, 1 }
  0xff   : > { %7917 = vmatprep.mubr.bf16.mxu0 %v2200_v9  ;;  %v3182_v16 = vsel %vm1140_vm0, %v3180_v3, %v3181_v56 }
 0x100   : > { %2598 = vmatmul.mubr.bf16.gmra.mrb[104].mxu1 %v2226_v28  ;;  %v2224_v28 = vsel %vm1140_vm0, %v2219_v53, %v2223_v55  ;;  %v3077_v25 = vsel %vm970_vm1, %v3072_v21, %v3076_v52  ;;  %v3273_v44 = vrot.slane %v3182_v16, 2  ;;  %v3294_v53 = vrot.slane %v9248_v49, 2 }
 0x101   : > { %3608 = vmatprep.mubr.bf16.mxu1 %v3272_v30  ;;  %v3302_v55 = vrot.slane %v9333_v36, 2 }
 0x102   : > { %v9244_v18 = vpop.f32.mrb[0].mxu1  ;;  %v3295_v16 = vsel %vm3266_vm2, %v3288_v33, %v3294_v53  ;;  %v3300_v33 = vrot.slane %v9271_v37, 2 }
 0x103   : > { %v9250_v19 = vpop.f32.mrb[1].mxu1 }
 0x104   : > { %v9253_v63 = vpop.f32.mrb[2].mxu1 }
 0x105   : > { %v9256_v50 = vpop.f32.mrb[3].mxu1 }
 0x106   : > { %7918 = vmatmul.mubr.bf16.gmra.mrb[92].mxu0 %v2204_v51  ;;  %v3274_v51 = vrot.slane %v3184_v57, 2  ;;  %v3192_v57 = vsel %vm1140_vm0, %v3189_v43, %v3191_v54 }
 0x107   : > { %7921 = vmatprep.mubr.bf16.mxu0 %v2208_v8  ;;  %v3187_v8 = vrot.slane %v9230_v2, 1 }
 0x108   : > { %3609 = vmatmul.mubr.bf16.vlgmr.msra.gmra.mrb[108].mxu1 %v3269_v10  ;;  %v3296_v10 = vrot.slane %v3077_v25, 2  ;;  %v3275_v24 = vsel %vm3266_vm2, %v3273_v44, %v3274_v51  ;;  %v3281_v56 = vsel %vm3266_vm2, %v3274_v51, %v3280_v11  ;;  %v3298_v44 = vrot.slane %v3192_v57, 2 }
 0x109   : > { %3616 = vmatprep.mubr.bf16.mxu1 %v3279_v31  ;;  %v3188_v2 = vsel %vm1140_vm0, %v3185_v22, %v3187_v8  ;;  %v3193_v51 = vrot.slane %v9296_v0, 1 }
 0x10a   : > { %v9267_v32 = vpop.f32.mrb[4].mxu1  ;;  %v3286_v15 = vrot.slane %v3188_v2, 2  ;;  %v3303_v35 = vsel %vm3266_vm2, %v3296_v10, %v3302_v55 }
 0x10b   : > { %v9273_v38 = vpop.f32.mrb[5].mxu1 }
 0x10c   : > { %v9276_v39 = vpop.f32.mrb[6].mxu1 }
 0x10d   : > { %v9282_v47 = vpop.f32.mrb[7].mxu1 }
 0x10e   : > { %7922 = vmatmul.mubr.bf16.gmra.mrb[96].mxu0 %v2212_v12  ;;  %v3297_v12 = vsel %vm3266_vm2, %v3290_v27, %v3296_v10 }
 0x10f   : > { %7925 = vmatprep.mubr.bf16.mxu0 %v2216_v45  ;;  %v3086_v45 = vshrl.u32 %v9296_v0, 16 }
 0x110   : > { %3617 = vmatmul.mubr.bf16.gmra.mrb[112].mxu1 %v3277_v58  ;;  %v3090_v58 = vshll.u32 %v9319_v20, 16 }
 0x111   : > { %3624 = vmatprep.mubr.bf16.mxu1 %v3285_v40  ;;  %v3088_v48 = vor.u32 %v3086_v45, %v3084_v59  ;;  %v3194_v45 = vsel %vm1140_vm0, %v3191_v54, %v3193_v51 }
 0x112   : > { %v9292_v41 = vpop.f32.mrb[8].mxu1  ;;  %v3092_v27 = vrot.slane %v3090_v58, 1 }
 0x113   : > { %v9298_v9 = vpop.f32.mrb[9].mxu1 }
 0x114   : > { %v9301_v30 = vpop.f32.mrb[10].mxu1  ;;  %v9363_v25 = vsel %vm970_vm1, %v3088_v48, %v3092_v27 }
 0x115   : > { %v9306_v4 = vpop.f32.mrb[11].mxu1  ;;  %v3308_v42 = vrot.slane %v9363_v25, 2 }
 0x116   : > { %7926 = vmatmul.mubr.bf16.gmra.mrb[100].mxu0 %v2220_v61  ;;  %v9348_v61 = vld [vmem:[%s8515_s8 + $0x58] sm:$0xff]  }
 0x117   : > { %7929 = vmatprep.mubr.bf16.mxu0 %v2224_v28  ;;  %v3190_v28 = vsel %vm1140_vm0, %v3187_v8, %v3189_v43  ;;  %v3098_v14 = vshll.u32 %v9348_v61, 16  ;;  %v3195_v8 = vrot.slane %v9319_v20, 1  ;;  %v3301_v43 = vsel %vm3266_vm2, %v3294_v53, %v3300_v33 }
 0x118   : > { %3625 = vmatmul.mubr.bf16.gmra.mrb[116].mxu1 %v3283_v13  ;;  %v3197_v53 = vrot.slane %v9348_v61, 1 }
 0x119   : > { %3632 = vmatprep.mubr.bf16.mxu1 %v3291_v5  ;;  %v3100_v2 = vrot.slane %v3098_v14, 1 }
 0x11a   : > { %v9315_v31 = vpop.f32.mrb[12].mxu1 }
 0x11b   : > { %v9321_v17 = vpop.f32.mrb[13].mxu1 }
 0x11c   : > { %v9325_v23 = vpop.f32.mrb[14].mxu1 }
 0x11d   : > { %v9329_v34 = vpop.f32.mrb[15].mxu1 }
 0x11e   : > { %7930 = vmatmul.mubr.bf16.gmra.mrb[104].mxu0 %v2230_v46 }
 0x11f   : > { %7949 = vmatprep.mubr.bf16.mxu0 %v3275_v24 }
 0x120   : > { %3633 = vmatmul.mubr.bf16.gmra.mrb[120].mxu1 %v3289_v62  ;;  %v3096_v62 = vor.u32 %v3094_v6, %v3092_v27 }
 0x121   : > { %v1422_v40 = vpop.f32.mrb[0].mxu0  ;;  %3640 = vmatprep.mubr.bf16.mxu1 %v3297_v12  ;;  %v9378_v12 = vld [vmem:[%s8515_s8 + $0x60] sm:$0xff]  }
 0x122   : > { %v9341_v29 = vadd.f32 %v9250_v19, %v1422_v40  ;;  %v1424_v7 = vpop.f32.mrb[1].mxu0  ;;  %v3287_v19 = vsel %vm3266_vm2, %v3280_v11, %v3286_v15  ;;  %v3106_v54 = vshll.u32 %v9378_v12, 16 }
 0x123   : > { %v9344_v60 = vpop.f32.mrb[16].mxu1  ;;  %v1425_v3 = vpop.f32.mrb[2].mxu0  ;;  %v3309_v7 = vsel %vm3266_vm2, %v3302_v55, %v3308_v42  ;;  %v3199_v55 = vrot.slane %v9378_v12, 1 }
 0x124   : > { %v1603_v21 = vadd.f32 %v9256_v50, %v1425_v3  ;;  %v9351_v49 = vpop.f32.mrb[17].mxu1  ;;  %v1427_v52 = vpop.f32.mrb[3].mxu0  ;;  %v3292_v50 = vrot.slane %v3190_v28, 2  ;;  %v9395_v3 = vsel %vm970_vm1, %v3096_v62, %v3100_v2  ;;  %v3108_v25 = vrot.slane %v3106_v54, 1 }
 0x125   : > { %v9355_v13 = vpop.f32.mrb[18].mxu1  ;;  %v3314_v28 = vrot.slane %v9395_v3, 2 }
 0x126   : > { %1743 = vst [vmem:[#allocation2 + $0x20] sm:$0xff] %v1603_v21  ;;  %v9359_v5 = vpop.f32.mrb[19].mxu1  ;;  %7950 = vmatmul.mubr.bf16.vlgmr.msra.gmra.mrb[108].mxu0 %v3281_v56  ;;  %v3293_v26 = vsel %vm3266_vm2, %v3286_v15, %v3292_v50  ;;  %v3196_v15 = vsel %vm1140_vm0, %v3193_v51, %v3195_v8  ;;  %v3102_v56 = vshrl.u32 %v9348_v61, 16  ;;  %v3306_v21 = vrot.slane %v9296_v0, 2 }
 0x127   : > { %7953 = vmatprep.mubr.bf16.mxu0 %v3287_v19  ;;  %v3310_v48 = vrot.slane %v3196_v15, 2  ;;  %v3198_v51 = vsel %vm1140_vm0, %v3195_v8, %v3197_v53  ;;  %v3110_v8 = vshrl.u32 %v9378_v12, 16  ;;  %v3312_v15 = vrot.slane %v9319_v20, 2 }
 0x128   : > { %3641 = vmatmul.mubr.bf16.gmra.mrb[124].mxu1 %v3295_v16 }
 0x129   : > { %v1430_v22 = vpop.f32.mrb[4].mxu0  ;;  %3648 = vmatprep.mubr.bf16.mxu1 %v3303_v35 }
 0x12a   : > { %v9371_v10 = vadd.f32 %v9244_v18, %v1430_v22  ;;  %v1432_v46 = vpop.f32.mrb[5].mxu0  ;;  %v3299_v18 = vsel %vm3266_vm2, %v3292_v50, %v3298_v44  ;;  %v3104_v50 = vor.u32 %v3102_v56, %v3100_v2  ;;  %v9417_v22 = vld [vmem:[%s8515_s8 + $0x68] sm:$0xff]   ;;  %v3316_v2 = vrot.slane %v3198_v51, 2 }
 0x12b   : > { %v9374_v59 = vpop.f32.mrb[20].mxu1  ;;  %v1433_v24 = vpop.f32.mrb[6].mxu0  ;;  %v3313_v51 = vsel %vm3266_vm2, %v3306_v21, %v3312_v15 }
 0x12c   : > { %v9381_v11 = vadd.f32 %v9253_v63, %v1433_v24  ;;  %v9383_v37 = vpop.f32.mrb[21].mxu1  ;;  %v1435_v36 = vpop.f32.mrb[7].mxu0  ;;  %v3304_v63 = vrot.slane %v3194_v45, 2  ;;  %v3307_v24 = vsel %vm3266_vm2, %v3300_v33, %v3306_v21  ;;  %v3201_v45 = vrot.slane %v9417_v22, 1 }
 0x12d   : > { %v9387_v58 = vpop.f32.mrb[22].mxu1  ;;  %v9430_v36 = vsel %vm970_vm1, %v3104_v50, %v3108_v25 }
 0x12e   : > { %v9391_v40 = vpop.f32.mrb[23].mxu1  ;;  %7954 = vmatmul.mubr.bf16.gmra.mrb[112].mxu0 %v3293_v26  ;;  %v3305_v35 = vsel %vm3266_vm2, %v3298_v44, %v3304_v63  ;;  %v3200_v44 = vsel %vm1140_vm0, %v3197_v53, %v3199_v55  ;;  %v9424_v26 = vld [vmem:[%s8515_s8 + $0x70] sm:$0xff]   ;;  %v3320_v3 = vrot.slane %v9430_v36, 2  ;;  %v3317_v53 = vsel %vm3266_vm2, %v3310_v48, %v3316_v2 }
 0x12f   : > { %7957 = vmatprep.mubr.bf16.mxu0 %v3299_v18  ;;  %v3114_v18 = vshll.u32 %v9417_v22, 16  ;;  %v3322_v33 = vrot.slane %v3200_v44, 2  ;;  %v3202_v50 = vsel %vm1140_vm0, %v3199_v55, %v3201_v45  ;;  %v3118_v55 = vshrl.u32 %v9417_v22, 16 }
 0x130   : > { %3649 = vmatmul.mubr.bf16.gmra.mrb[128].mxu1 %v3301_v43  ;;  %v3328_v44 = vrot.slane %v3202_v50, 2 }
 0x131   : > { %v1438_v27 = vpop.f32.mrb[8].mxu0  ;;  %3656 = vmatprep.mubr.bf16.mxu1 %v3309_v7 }
 0x132   : > { %v9403_v52 = vadd.f32 %v9273_v38, %v1438_v27  ;;  %v1440_v19 = vpop.f32.mrb[9].mxu0  ;;  %v3311_v38 = vsel %vm3266_vm2, %v3304_v63, %v3310_v48  ;;  %v3112_v27 = vor.u32 %v3110_v8, %v3108_v25  ;;  %v9459_v25 = vld [vmem:[%s8515_s8 + $0x80] sm:$0xff]  }
 0x133   : > { %v9406_v16 = vpop.f32.mrb[24].mxu1  ;;  %v1441_v57 = vpop.f32.mrb[10].mxu0  ;;  %v3116_v19 = vrot.slane %v3114_v18, 1  ;;  %v3318_v18 = vrot.slane %v9348_v61, 2 }
 0x134   : > { %12764 = vst [vmem:[#allocation3_spill] sm:$0xff] %v9403_v52  ;;  %v9410_v6 = vadd.f32 %v9282_v47, %v1441_v57  ;;  %v9412_v0 = vpop.f32.mrb[25].mxu1  ;;  %v1443_v14 = vpop.f32.mrb[11].mxu0  ;;  %v3315_v47 = vsel %vm3266_vm2, %v3308_v42, %v3314_v28  ;;  %v3203_v42 = vrot.slane %v9424_v26, 1 }
 0x135   : > { %v9419_v46 = vpop.f32.mrb[26].mxu1  ;;  %v9452_v14 = vld [vmem:[%s8515_s8 + $0x78] sm:$0xff]  }
 0x136   : > { %12765 = vst [vmem:[#allocation4_spill] sm:$0xff] %v9410_v6  ;;  %v9426_v62 = vpop.f32.mrb[27].mxu1  ;;  %7958 = vmatmul.mubr.bf16.gmra.mrb[116].mxu0 %v3305_v35  ;;  %v3204_v48 = vsel %vm1140_vm0, %v3201_v45, %v3203_v42  ;;  %v3205_v36 = vrot.slane %v9452_v14, 1 }
 0x137   : > { %7961 = vmatprep.mubr.bf16.mxu0 %v3311_v38  ;;  %v3334_v21 = vrot.slane %v3204_v48, 2 }
 0x138   : > { %3657 = vmatmul.mubr.bf16.gmra.mrb[132].mxu1 %v3307_v24  ;;  %v3206_v48 = vsel %vm1140_vm0, %v3203_v42, %v3205_v36 }
 0x139   : > { %v1446_v43 = vpop.f32.mrb[12].mxu0  ;;  %3664 = vmatprep.mubr.bf16.mxu1 %v3315_v47  ;;  %v9465_v47 = vsel %vm970_vm1, %v3112_v27, %v3116_v19  ;;  %v3329_v27 = vsel %vm3266_vm2, %v3322_v33, %v3328_v44  ;;  %v3340_v42 = vrot.slane %v3206_v48, 2 }
 0x13a   : > { %v9438_v7 = vadd.f32 %v9267_v32, %v1446_v43  ;;  %v1448_v63 = vpop.f32.mrb[13].mxu0  ;;  %v3323_v32 = vsel %vm3266_vm2, %v3316_v2, %v3322_v33  ;;  %v3122_v2 = vshll.u32 %v9424_v26, 16 }
 0x13b   : > { %v9441_v56 = vpop.f32.mrb[28].mxu1  ;;  %v1449_v54 = vpop.f32.mrb[14].mxu0  ;;  %v3326_v63 = vrot.slane %v9465_v47, 2 }
 0x13c   : > { %v9445_v57 = vadd.f32 %v9276_v39, %v1449_v54  ;;  %v9447_v20 = vpop.f32.mrb[29].mxu1  ;;  %v1451_v35 = vpop.f32.mrb[15].mxu0  ;;  %v3321_v39 = vsel %vm3266_vm2, %v3314_v28, %v3320_v3  ;;  %v3207_v28 = vrot.slane %v9459_v25, 1 }
 0x13d   : > { %v9454_v38 = vpop.f32.mrb[30].mxu1  ;;  %v3120_v35 = vor.u32 %v3118_v55, %v3116_v19  ;;  %v9494_v19 = vld [vmem:[%s8515_s8 + $0x90] sm:$0xff]  }
 0x13e   : > { %12766 = vst [vmem:[#allocation5_spill] sm:$0xff] %v9445_v57  ;;  %v9461_v24 = vpop.f32.mrb[31].mxu1  ;;  %7962 = vmatmul.mubr.bf16.gmra.mrb[120].mxu0 %v3317_v53  ;;  %v3208_v33 = vsel %vm1140_vm0, %v3205_v36, %v3207_v28 }
 0x13f   : > { %7965 = vmatprep.mubr.bf16.mxu0 %v3323_v32  ;;  %v3124_v32 = vrot.slane %v3122_v2, 1  ;;  %v3126_v2 = vshrl.u32 %v9424_v26, 16 }
 0x140   : > { %3665 = vmatmul.mubr.bf16.gmra.mrb[136].mxu1 %v3313_v51 }
 0x141   : > { %v1454_v8 = vpop.f32.mrb[16].mxu0  ;;  %3672 = vmatprep.mubr.bf16.mxu1 %v3321_v39  ;;  %v9487_v39 = vld [vmem:[%s8515_s8 + $0x88] sm:$0xff]   ;;  %v3128_v1 = vor.u32 %v3126_v2, %v3124_v32 }
 0x142   : > { %v9473_v45 = vadd.f32 %v9298_v9, %v1454_v8  ;;  %v1456_v43 = vpop.f32.mrb[17].mxu0  ;;  %v3335_v9 = vsel %vm3266_vm2, %v3328_v44, %v3334_v21  ;;  %v3319_v8 = vsel %vm3266_vm2, %v3312_v15, %v3318_v18  ;;  %v9500_v44 = vsel %vm970_vm1, %v3120_v35, %v3124_v32 }
 0x143   : > { %v9476_v54 = vpop.f32.mrb[32].mxu1  ;;  %v1457_v53 = vpop.f32.mrb[18].mxu0  ;;  %v3130_v43 = vshll.u32 %v9452_v14, 16  ;;  %v3346_v15 = vrot.slane %v3208_v33, 2  ;;  %v3209_v36 = vrot.slane %v9487_v39, 1  ;;  %v3341_v33 = vsel %vm3266_vm2, %v3334_v21, %v3340_v42 }
 0x144   : > { %12767 = vst [vmem:[#allocation6_spill] sm:$0xff] %v9473_v45  ;;  %v9480_v50 = vadd.f32 %v9306_v4, %v1457_v53  ;;  %v9482_v61 = vpop.f32.mrb[33].mxu1  ;;  %v1459_v51 = vpop.f32.mrb[19].mxu0  ;;  %v3327_v4 = vsel %vm3266_vm2, %v3320_v3, %v3326_v63  ;;  %v3211_v3 = vrot.slane %v9494_v19, 1 }
 0x145   : > { %v9489_v47 = vpop.f32.mrb[34].mxu1  ;;  %v3347_v6 = vsel %vm3266_vm2, %v3340_v42, %v3346_v15  ;;  %v9527_v21 = vld [vmem:[%s8515_s8 + $0xa0] ss:$0 sps:$4 sm:$0x77]   ;;  %v3134_v42 = vshrl.u32 %v9452_v14, 16 }
 0x146   : > { %12768 = vst [vmem:[#allocation7_spill] sm:$0xff] %v9480_v50  ;;  %v9496_v55 = vpop.f32.mrb[35].mxu1  ;;  %7966 = vmatmul.mubr.bf16.gmra.mrb[124].mxu0 %v3329_v27  ;;  %v3324_v27 = vrot.slane %v9378_v12, 2  ;;  %v3132_v50 = vrot.slane %v3130_v43, 1 }
 0x147   : > { %7969 = vmatprep.mubr.bf16.mxu0 %v3335_v9  ;;  %v3332_v9 = vrot.slane %v9500_v44, 2 }
 0x148   : > { %3673 = vmatmul.mubr.bf16.gmra.mrb[140].mxu1 %v3319_v8  ;;  %v3325_v44 = vsel %vm3266_vm2, %v3318_v18, %v3324_v27 }
 0x149   : > { %v1462_v53 = vpop.f32.mrb[20].mxu0  ;;  %3680 = vmatprep.mubr.bf16.mxu1 %v3327_v4 }
 0x14a   : > { %v9508_v51 = vadd.f32 %v9292_v41, %v1462_v53  ;;  %v1464_v35 = vpop.f32.mrb[21].mxu0  ;;  %v3210_v41 = vsel %vm1140_vm0, %v3207_v28, %v3209_v36  ;;  %v9520_v53 = vld [vmem:[%s8515_s8 + $0x98] sm:$0xff]   ;;  %v3138_v28 = vshll.u32 %v9459_v25, 16 }
 0x14b   : > { %v9511_v48 = vpop.f32.mrb[36].mxu1  ;;  %v1465_v8 = vpop.f32.mrb[22].mxu0  ;;  %v3352_v2 = vrot.slane %v3210_v41, 2  ;;  %v3213_v18 = vrot.slane %v9520_v53, 1 }
 0x14c   : > { %12769 = vst [vmem:[#allocation8_spill] sm:$0xff] %v9508_v51  ;;  %v9515_v4 = vadd.f32 %v9301_v30, %v1465_v8  ;;  %v2465_v12 = vpop.f32.mrb[37].mxu1  ;;  %v1467_v45 = vpop.f32.mrb[23].mxu0  ;;  %v3212_v51 = vsel %vm1140_vm0, %v3209_v36, %v3211_v3  ;;  %v3333_v30 = vsel %vm3266_vm2, %v3326_v63, %v3332_v9  ;;  %v3330_v36 = vrot.slane %v9417_v22, 2 }
 0x14d   : > { %v9522_v35 = vpop.f32.mrb[38].mxu1  ;;  %v3133_v45 = vsel %vm970_vm1, %v3128_v1, %v3132_v50  ;;  %v3358_v43 = vrot.slane %v3212_v51, 2  ;;  %v3215_v12 = vrot.slane %v9527_v21, 1  ;;  %v3140_v41 = vrot.slane %v3138_v28, 1 }
 0x14e   : > { %12770 = vst [vmem:[#allocation9_spill] sm:$0xff] %v9515_v4  ;;  %v2468_v32 = vpop.f32.mrb[39].mxu1  ;;  %7970 = vmatmul.mubr.bf16.gmra.mrb[128].mxu0 %v3341_v33  ;;  %v3136_v4 = vor.u32 %v3134_v42, %v3132_v50  ;;  %v3353_v51 = vsel %vm3266_vm2, %v3346_v15, %v3352_v2  ;;  %v3214_v52 = vsel %vm1140_vm0, %v3211_v3, %v3213_v18 }
 0x14f   : > { %7973 = vmatprep.mubr.bf16.mxu0 %v3347_v6  ;;  %v3338_v6 = vrot.slane %v3133_v45, 2  ;;  %v3359_v22 = vsel %vm3266_vm2, %v3352_v2, %v3358_v43  ;;  %v3331_v45 = vsel %vm3266_vm2, %v3324_v27, %v3330_v36  ;;  %v3364_v42 = vrot.slane %v3214_v52, 2 }
 0x150   : > { %3681 = vmatmul.mubr.bf16.gmra.mrb[144].mxu1 %v3325_v44  ;;  %v3141_v15 = vsel %vm970_vm1, %v3136_v4, %v3140_v41  ;;  %v3336_v27 = vrot.slane %v9424_v26, 2 }
 0x151   : > { %v1470_v8 = vpop.f32.mrb[24].mxu0  ;;  %3688 = vmatprep.mubr.bf16.mxu1 %v3333_v30  ;;  %v3339_v50 = vsel %vm3266_vm2, %v3332_v9, %v3338_v6  ;;  %v3344_v9 = vrot.slane %v3141_v15, 2 }
 0x152   : > { %v9537_v63 = vadd.f32 %v9321_v17, %v1470_v8  ;;  %v1472_v1 = vpop.f32.mrb[25].mxu0  ;;  %v3216_v8 = vsel %vm1140_vm0, %v3213_v18, %v3215_v12 }
 0x153   : > { %v9539_v33 = vpop.f32.mrb[40].mxu1  ;;  %v1473_v32 = vpop.f32.mrb[26].mxu0  ;;  %v3370_v3 = vrot.slane %v3216_v8, 2  ;;  %v3345_v15 = vsel %vm3266_vm2, %v3338_v6, %v3344_v9 }
 0x154   : > { %v9543_v44 = vadd.f32 %v9329_v34, %v1473_v32  ;;  %v2473_v30 = vpop.f32.mrb[41].mxu1  ;;  %v1475_v57 = vpop.f32.mrb[27].mxu0  ;;  %v3142_v34 = vshrl.u32 %v9459_v25, 16 }
 0x155   : > { %v9547_v17 = vpop.f32.mrb[42].mxu1  ;;  %v3146_v57 = vshll.u32 %v9487_v39, 16  ;;  %v3371_v8 = vsel %vm3266_vm2, %v3364_v42, %v3370_v3 }
 0x156   : > { %v2476_v1 = vpop.f32.mrb[43].mxu1  ;;  %7974 = vmatmul.mubr.bf16.gmra.mrb[132].mxu0 %v3353_v51  ;;  %v3144_v51 = vor.u32 %v3142_v34, %v3140_v41  ;;  %v3150_v34 = vshrl.u32 %v9487_v39, 16 }
 0x157   : > { %7977 = vmatprep.mubr.bf16.mxu0 %v3359_v22  ;;  %v3148_v30 = vrot.slane %v3146_v57, 1  ;;  %v3365_v1 = vsel %vm3266_vm2, %v3358_v43, %v3364_v42  ;;  %v3154_v43 = vshll.u32 %v9494_v19, 16  ;;  %v3342_v42 = vrot.slane %v9452_v14, 2 }
 0x158   : > { %3689 = vmatmul.mubr.bf16.gmra.mrb[148].mxu1 %v3331_v45 }
 0x159   : > { %v1478_v28 = vpop.f32.mrb[28].mxu0  ;;  %3696 = vmatprep.mubr.bf16.mxu1 %v3339_v50  ;;  %v3149_v41 = vsel %vm970_vm1, %v3144_v51, %v3148_v30  ;;  %v3152_v51 = vor.u32 %v3150_v34, %v3148_v30  ;;  %v3343_v14 = vsel %vm3266_vm2, %v3336_v27, %v3342_v42  ;;  %v3158_v30 = vshrl.u32 %v9494_v19, 16 }
 0x15a   : > { %v9557_v2 = vadd.f32 %v9315_v31, %v1478_v28  ;;  %v1480_v18 = vpop.f32.mrb[29].mxu0  ;;  %v3337_v31 = vsel %vm3266_vm2, %v3330_v36, %v3336_v27 }
 0x15b   : > { %v9559_v32 = vpop.f32.mrb[44].mxu1  ;;  %v1481_v4 = vpop.f32.mrb[30].mxu0  ;;  %v3350_v18 = vrot.slane %v3149_v41, 2  ;;  %v3162_v41 = vshll.u32 %v9520_v53, 16 }
 0x15c   : > { %v9563_v52 = vadd.f32 %v9325_v23, %v1481_v4  ;;  %v2481_v22 = vpop.f32.mrb[45].mxu1  ;;  %v1483_v45 = vpop.f32.mrb[31].mxu0  ;;  %v3376_v23 = vrot.slane %v3215_v12, 2 }
 0x15d   : > { %v9566_v26 = vpop.f32.mrb[46].mxu1 }
 0x15e   : > { %v2484_v50 = vpop.f32.mrb[47].mxu1  ;;  %7978 = vmatmul.mubr.bf16.gmra.mrb[136].mxu0 %v3365_v1  ;;  %v3156_v1 = vrot.slane %v3154_v43, 1  ;;  %v3377_v22 = vsel %vm3266_vm2, %v3370_v3, %v3376_v23 }
 0x15f   : > { %7981 = vmatprep.mubr.bf16.mxu0 %v3371_v8  ;;  %v3351_v50 = vsel %vm3266_vm2, %v3344_v9, %v3350_v18 }
 0x160   : > { %3697 = vmatmul.mubr.bf16.gmra.mrb[152].mxu1 %v3337_v31 }
 0x161   : > { %v1486_v57 = vpop.f32.mrb[32].mxu0  ;;  %3704 = vmatprep.mubr.bf16.mxu1 %v3345_v15  ;;  %v3157_v15 = vsel %vm970_vm1, %v3152_v51, %v3156_v1 }
 0x162   : > { %v9575_v28 = vadd.f32 %v9351_v49, %v1486_v57  ;;  %v1488_v36 = vpop.f32.mrb[33].mxu0  ;;  %v3356_v27 = vrot.slane %v3157_v15, 2  ;;  %v3160_v57 = vor.u32 %v3158_v30, %v3156_v1 }
 0x163   : > { %v9577_v6 = vpop.f32.mrb[48].mxu1  ;;  %v1489_v4 = vpop.f32.mrb[34].mxu0  ;;  %v3164_v36 = vrot.slane %v3162_v41, 1 }
 0x164   : > { %v9581_v45 = vadd.f32 %v9359_v5, %v1489_v4  ;;  %v2489_v12 = vpop.f32.mrb[49].mxu1  ;;  %v1491_v8 = vpop.f32.mrb[35].mxu0  ;;  %v3348_v5 = vrot.slane %v9459_v25, 2 }
 0x165   : > { %v9583_v31 = vpop.f32.mrb[50].mxu1 }
 0x166   : > { %v2492_v49 = vpop.f32.mrb[51].mxu1  ;;  %7982 = vmatmul.mubr.bf16.gmra.mrb[140].mxu0 %v3377_v22  ;;  %v3349_v8 = vsel %vm3266_vm2, %v3342_v42, %v3348_v5 }
 0x167   : > { %v3166_v49 = vshrl.u32 %v9520_v53, 16 }
 0x168   : > { %3705 = vmatmul.mubr.bf16.gmra.mrb[156].mxu1 %v3343_v14  ;;  %v3165_v14 = vsel %vm970_vm1, %v3160_v57, %v3164_v36 }
 0x169   : > { %v1494_v3 = vpop.f32.mrb[36].mxu0  ;;  %3712 = vmatprep.mubr.bf16.mxu1 %v3351_v50  ;;  %v3170_v50 = vshll.u32 %v9527_v21, 16  ;;  %v3362_v41 = vrot.slane %v3165_v14, 2 }
 0x16a   : > { %v9592_v34 = vadd.f32 %v9344_v60, %v1494_v3  ;;  %v1496_v43 = vpop.f32.mrb[37].mxu0  ;;  %v3357_v60 = vsel %vm3266_vm2, %v3350_v18, %v3356_v27  ;;  %v3168_v18 = vor.u32 %v3166_v49, %v3164_v36  ;;  %v3360_v36 = vrot.slane %v9494_v19, 2 }
 0x16b   : > { %v9594_v23 = vpop.f32.mrb[52].mxu1  ;;  %v1497_v9 = vpop.f32.mrb[38].mxu0  ;;  %v3172_v43 = vrot.slane %v3170_v50, 1  ;;  %v3174_v50 = vshrl.u32 %v9527_v21, 16  ;;  %v3366_v21 = vrot.slane %v9520_v53, 2 }
 0x16c   : > { %v9597_v4 = vadd.f32 %v9355_v13, %v1497_v9  ;;  %v2497_v51 = vpop.f32.mrb[53].mxu1  ;;  %v1499_v22 = vpop.f32.mrb[39].mxu0  ;;  %v3354_v13 = vrot.slane %v9487_v39, 2 }
 0x16d   : > { %v9599_v12 = vpop.f32.mrb[54].mxu1 }
 0x16e   : > { %v2500_v25 = vpop.f32.mrb[55].mxu1 }
 0x16f   : > { %v3173_v25 = vsel %vm970_vm1, %v3168_v18, %v3172_v43 }
 0x170   : > { %3713 = vmatmul.mubr.bf16.gmra.mrb[160].mxu1 %v3349_v8  ;;  %v3355_v8 = vsel %vm3266_vm2, %v3348_v5, %v3354_v13  ;;  %v3368_v49 = vrot.slane %v3173_v25, 2 }
 0x171   : > { %v1502_v1 = vpop.f32.mrb[40].mxu0  ;;  %3720 = vmatprep.mubr.bf16.mxu1 %v3357_v60 }
 0x172   : > { %v9608_v15 = vadd.f32 %v9383_v37, %v1502_v1  ;;  %v1504_v30 = vpop.f32.mrb[41].mxu0  ;;  %v3363_v37 = vsel %vm3266_vm2, %v3356_v27, %v3362_v41 }
 0x173   : > { %v9610_v42 = vpop.f32.mrb[56].mxu1  ;;  %v1505_v3 = vpop.f32.mrb[42].mxu0 }
 0x174   : > { %v9613_v9 = vadd.f32 %v9391_v40, %v1505_v3  ;;  %v2505_v57 = vpop.f32.mrb[57].mxu1  ;;  %v1507_v51 = vpop.f32.mrb[43].mxu0 }
 0x175   : > { %v9615_v22 = vpop.f32.mrb[58].mxu1  ;;  %v3361_v57 = vsel %vm3266_vm2, %v3354_v13, %v3360_v36  ;;  %v3176_v51 = vor.u32 %v3174_v50, %v3172_v43  ;;  %v3367_v43 = vsel %vm3266_vm2, %v3360_v36, %v3366_v21  ;;  %v8358_v50 = vld [vmem:[%s8515_s8 + $0xa0] ss:$0 sps:$4 sm:$0x33]  }
 0x176   : > { %v2508_v39 = vpop.f32.mrb[59].mxu1 }
 0x178   : > { %3721 = vmatmul.mubr.bf16.gmra.mrb[164].mxu1 %v3355_v8 }
 0x179   : > { %v1510_v60 = vpop.f32.mrb[44].mxu0  ;;  %3728 = vmatprep.mubr.bf16.mxu1 %v3363_v37  ;;  %v3374_v37 = vrot.slane %v3176_v51, 2 }
 0x17a   : > { %v9622_v14 = vadd.f32 %v9374_v59, %v1510_v60  ;;  %v1512_v40 = vpop.f32.mrb[45].mxu0  ;;  %v3369_v59 = vsel %vm3266_vm2, %v3362_v41, %v3368_v49 }
 0x17b   : > { %v9625_v1 = vpop.f32.mrb[60].mxu1  ;;  %v1513_v5 = vpop.f32.mrb[46].mxu0  ;;  %v3375_v53 = vsel %vm3266_vm2, %v3368_v49, %v3374_v37 }
 0x17c   : > { %v9628_v30 = vadd.f32 %v9387_v58, %v1513_v5  ;;  %v2513_v27 = vpop.f32.mrb[61].mxu1  ;;  %v1515_v3 = vpop.f32.mrb[47].mxu0 }
 0x17d   : > { %v9630_v18 = vpop.f32.mrb[62].mxu1  ;;  %v3372_v3 = vrot.slane %v8358_v50, 2 }
 0x17e   : > { %v2516_v19 = vpop.f32.mrb[63].mxu1 }
 0x17f   : > { %v3373_v49 = vsel %vm3266_vm2, %v3366_v21, %v3372_v3 }
 0x180   : > { %3729 = vmatmul.mubr.bf16.gmra.mrb[168].mxu1 %v3361_v57 }
 0x181   : > { %v1518_v8 = vpop.f32.mrb[48].mxu0  ;;  %3736 = vmatprep.mubr.bf16.mxu1 %v3369_v59 }
 0x182   : > { %v9636_v39 = vadd.f32 %v9412_v0, %v1518_v8  ;;  %v1520_v58 = vpop.f32.mrb[49].mxu0 }
 0x183   : > { %v9638_v25 = vpop.f32.mrb[64].mxu1  ;;  %v1521_v60 = vpop.f32.mrb[50].mxu0 }
 0x184   : > { %v9641_v13 = vadd.f32 %v9426_v62, %v1521_v60  ;;  %v2521_v40 = vpop.f32.mrb[65].mxu1  ;;  %v1523_v41 = vpop.f32.mrb[51].mxu0 }
 0x185   : > { %v9643_v5 = vpop.f32.mrb[66].mxu1 }
 0x186   : > { %v2524_v27 = vpop.f32.mrb[67].mxu1 }
 0x188   : > { %3737 = vmatmul.mubr.bf16.gmra.mrb[172].mxu1 %v3367_v43 }
 0x189   : > { %v1526_v0 = vpop.f32.mrb[52].mxu0  ;;  %3744 = vmatprep.mubr.bf16.mxu1 %v3375_v53 }
 0x18a   : > { %v9649_v57 = vadd.f32 %v9406_v16, %v1526_v0  ;;  %v1528_v19 = vpop.f32.mrb[53].mxu0 }
 0x18b   : > { %v9651_v62 = vpop.f32.mrb[68].mxu1  ;;  %v1529_v59 = vpop.f32.mrb[54].mxu0 }
 0x18c   : > { %v9654_v51 = vadd.f32 %v9419_v46, %v1529_v59  ;;  %v2529_v8 = vpop.f32.mrb[69].mxu1  ;;  %v1531_v36 = vpop.f32.mrb[55].mxu0 }
 0x18d   : > { %v9656_v58 = vpop.f32.mrb[70].mxu1 }
 0x18e   : > { %v2532_v37 = vpop.f32.mrb[71].mxu1 }
 0x190   : > { %3745 = vmatmul.mubr.bf16.gmra.mrb[176].mxu1 %v3373_v49 }
 0x191   : > { %v1534_v60 = vpop.f32.mrb[56].mxu0 }
 0x192   : > { %v9660_v40 = vadd.f32 %v9447_v20, %v1534_v60  ;;  %v1536_v16 = vpop.f32.mrb[57].mxu0 }
 0x193   : > { %v9662_v41 = vpop.f32.mrb[72].mxu1  ;;  %v1537_v43 = vpop.f32.mrb[58].mxu0 }
 0x194   : > { %12771 = vst [vmem:[#allocation10_spill] sm:$0xff] %v9660_v40  ;;  %v9665_v50 = vadd.f32 %v9461_v24, %v1537_v43  ;;  %v2537_v46 = vpop.f32.mrb[73].mxu1  ;;  %v1539_v27 = vpop.f32.mrb[59].mxu0 }
 0x195   : > { %v9667_v53 = vpop.f32.mrb[74].mxu1 }
 0x196   : > { %12772 = vst [vmem:[#allocation11_spill] sm:$0xff] %v9665_v50  ;;  %v2540_v0 = vpop.f32.mrb[75].mxu1 }
 0x199   : > { %v1542_v19 = vpop.f32.mrb[60].mxu0 }
 0x19a   : > { %v9670_v21 = vadd.f32 %v9441_v56, %v1542_v19  ;;  %v1544_v3 = vpop.f32.mrb[61].mxu0 }
 0x19b   : > { %v9672_v59 = vpop.f32.mrb[76].mxu1  ;;  %v1545_v20 = vpop.f32.mrb[62].mxu0 }
 0x19c   : > { %v9675_v8 = vadd.f32 %v9454_v38, %v1545_v20  ;;  %v2545_v36 = vpop.f32.mrb[77].mxu1  ;;  %v1547_v49 = vpop.f32.mrb[63].mxu0  ;;  %v172_v20 = vlaneseq }
 0x19d   : > { %v9677_v24 = vpop.f32.mrb[78].mxu1 }
 0x19e   : > { %12773 = vst [vmem:[#allocation12_spill] sm:$0xff] %v9675_v8  ;;  %v2548_v37 = vpop.f32.mrb[79].mxu1 }
 0x1a1   : > { %v1550_v60 = vpop.f32.mrb[64].mxu0 }
 0x1a2   : > { %v9680_v16 = vadd.f32 %v9482_v61, %v1550_v60  ;;  %v1552_v43 = vpop.f32.mrb[65].mxu0 }
 0x1a3   : > { %v9682_v46 = vpop.f32.mrb[80].mxu1  ;;  %v1553_v56 = vpop.f32.mrb[66].mxu0 }
 0x1a4   : > { %12774 = vst [vmem:[#allocation13_spill] sm:$0xff] %v9680_v16  ;;  %v9685_v27 = vadd.f32 %v9496_v55, %v1553_v56  ;;  %v2553_v0 = vpop.f32.mrb[81].mxu1  ;;  %v1555_v19 = vpop.f32.mrb[67].mxu0  ;;  %v9697_v56 = vshrl.u32 %v172_v20, 7 }
 0x1a5   : > { %v9687_v38 = vpop.f32.mrb[82].mxu1 }
 0x1a6   : > { %12775 = vst [vmem:[#allocation14_spill] sm:$0xff] %v9685_v27  ;;  %v2556_v3 = vpop.f32.mrb[83].mxu1 }
 0x1a7   : > { %v175_v3 = vadd.s32 16, %v9697_v56 }
 0x1a9   : > { %v1558_v36 = vpop.f32.mrb[68].mxu0 }
 0x1aa   : > { %v9690_v49 = vadd.f32 %v9476_v54, %v1558_v36  ;;  %v1560_v37 = vpop.f32.mrb[69].mxu0 }
 0x1ab   : > { %v9692_v61 = vpop.f32.mrb[84].mxu1  ;;  %v1561_v60 = vpop.f32.mrb[70].mxu0 }
 0x1ac   : > { %12776 = vst [vmem:[#allocation15_spill] sm:$0xff] %v9690_v49  ;;  %v9695_v43 = vadd.f32 %v9489_v47, %v1561_v60  ;;  %v2561_v16 = vpop.f32.mrb[85].mxu1  ;;  %v1563_v55 = vpop.f32.mrb[71].mxu0 }
 0x1ad   : > { %v9699_v0 = vpop.f32.mrb[86].mxu1 }
 0x1ae   : > { %12777 = vst [vmem:[#allocation16_spill] sm:$0xff] %v9695_v43  ;;  %v2564_v19 = vpop.f32.mrb[87].mxu1 }
 0x1af   : > { %v9710_v55 = vmul.u32.u64.low 3817748708, %v175_v3  ;;  %v9711_v19 = vmul.u32.u64.high 3817748708, %v175_v3, %v9710_v55 }
 0x1b1   : > { %v7899_v27 = vpop.f32.mrb[72].mxu0 }
 0x1b2   : > { %v2649_v54 = vadd.f32 %v7899_v27, %v9539_v33  ;;  %v2640_v36 = vpop.f32.mrb[73].mxu0 }
 0x1b3   : > { %v9703_v37 = vpop.f32.mrb[88].mxu1  ;;  %v2641_v49 = vadd.f32 %v2640_v36, %v9511_v48  ;;  %v7900_v50 = vpop.f32.mrb[74].mxu0  ;;  %v9722_v48 = vadd.s32 24, %v9697_v56  ;;  %v9732_v36 = vadd.s32 8, %v9697_v56 }
 0x1b4   : > { %v9707_v47 = vadd.f32 %v2649_v54, %v9371_v10  ;;  %v2569_v16 = vpop.f32.mrb[89].mxu1  ;;  %v2652_v20 = vadd.f32 %v7900_v50, %v9547_v17  ;;  %v2643_v60 = vpop.f32.mrb[75].mxu0  ;;  %v9728_v17 = vmul.u32.u64.low 3817748708, %v9697_v56  ;;  %v9729_v50 = vmul.u32.u64.high 3817748708, %v9697_v56, %v9728_v17 }
 0x1b5   : > { %v9714_v43 = vadd.f32 %v2641_v49, %v9341_v29  ;;  %v9716_v33 = vpop.f32.mrb[90].mxu1  ;;  %v9719_v27 = vadd.f32 %v2643_v60, %v9522_v35  ;;  %v9735_v49 = vmul.u32.u64.low 3817748708, %v9722_v48  ;;  %v9736_v16 = vmul.u32.u64.high 3817748708, %v9722_v48, %v9735_v49 }
 0x1b6   : > { %12778 = vst [vmem:[#allocation17_spill] sm:$0xff] %v9707_v47  ;;  %v9725_v10 = vadd.f32 %v2652_v20, %v9381_v11  ;;  %v2572_v54 = vpop.f32.mrb[91].mxu1  ;;  %v237_v49 = vshrl.u32 %v9711_v19, 4 }
 0x1b7   : > { %12779 = vst [vmem:[#allocation18_spill] sm:$0xff] %v9714_v43  ;;  %12780 = vst [vmem:[#allocation19_spill] sm:$0xff] %v9719_v27 }
 0x1b8   : > { %12781 = vst [vmem:[#allocation20_spill] sm:$0xff] %v9725_v10  ;;  %v9743_v54 = vmul.u32.u64.low 3817748708, %v9732_v36  ;;  %v9744_v10 = vmul.u32.u64.high 3817748708, %v9732_v36, %v9743_v54  ;;  %v238_v19 = vmul.u32 18, %v237_v49  ;;  %v12790_v49 = vld [vmem:[#allocation8_spill] sm:$0xff] }
 0x1b9   : > { %v7903_v29 = vpop.f32.mrb[76].mxu0 }
 0x1ba   : > { %v2665_v35 = vadd.f32 %v7903_v29, %v9577_v6  ;;  %v2656_v60 = vpop.f32.mrb[77].mxu0  ;;  %v12783_v6 = vld [vmem:[#allocation3_spill] sm:$0xff] }
 0x1bb   : > { %v9739_v55 = vpop.f32.mrb[92].mxu1  ;;  %v2657_v11 = vadd.f32 %v2656_v60, %v9559_v32  ;;  %v7904_v20 = vpop.f32.mrb[78].mxu0  ;;  %v12786_v60 = vld [vmem:[#allocation5_spill] sm:$0xff] }
 0x1bc   : > { %v9747_v17 = vadd.f32 %v2665_v35, %v9438_v7  ;;  %v2577_v43 = vpop.f32.mrb[93].mxu1  ;;  %v2668_v27 = vadd.f32 %v7904_v20, %v9583_v31  ;;  %v2659_v47 = vpop.f32.mrb[79].mxu0  ;;  %v215_v7 = vshrl.u32 %v9729_v50, 4  ;;  %v12788_v31 = vld [vmem:[#allocation4_spill] sm:$0xff] }
 0x1bd   : > { %v9752_v29 = vadd.f32 %v2657_v11, %v12783_v6  ;;  %v9754_v8 = vpop.f32.mrb[94].mxu1  ;;  %v2660_v32 = vadd.f32 %v2659_v47, %v9566_v26  ;;  %v9762_v43 = vadd.s32 48, %v9697_v56  ;;  %v248_v11 = vshrl.u32 %v9736_v16, 4 }
 0x1be   : > { %12782 = vst [vmem:[#allocation21_spill] sm:$0xff] %v9747_v17  ;;  %12785 = vst [vmem:[#allocation22_spill] sm:$0xff] %v9754_v8  ;;  %v9758_v40 = vadd.f32 %v2668_v27, %v12786_v60  ;;  %v2580_v54 = vpop.f32.mrb[95].mxu1  ;;  %v9769_v6 = vadd.s32 32, %v9697_v56  ;;  %v216_v27 = vmul.u32 18, %v215_v7  ;;  %v9783_v17 = vsub.s32 %v175_v3, %v238_v19  ;;  %v12792_v7 = vld [vmem:[#allocation6_spill] sm:$0xff] }
 0x1bf   : > { %12784 = vst [vmem:[#allocation3_spill] sm:$0xff] %v9752_v29  ;;  %v9765_v35 = vadd.f32 %v2660_v32, %v12788_v31  ;;  %v9773_v60 = vmul.u32.u64.low 3817748708, %v9762_v43  ;;  %v9774_v50 = vmul.u32.u64.high 3817748708, %v9762_v43, %v9773_v60  ;;  %v249_v19 = vmul.u32 18, %v248_v11 }
 0x1c0   : > { %12787 = vst [vmem:[#allocation5_spill] sm:$0xff] %v9758_v40  ;;  %v9800_v3 = vsub.s32 %v9697_v56, %v216_v27  ;;  %vm607_vm3 = vcmp.ne.s32.totalorder %v9783_v17, 0  ;;  %vm643_vm4 = vcmp.lt.s32.totalorder %v9783_v17, 0 }
 0x1c1   : > { %12789 = vst [vmem:[#allocation4_spill] sm:$0xff] %v9765_v35  ;;  %v7907_v20 = vpop.f32.mrb[80].mxu0  ;;  %vm9848_vm7 = vmand %vm643_vm4, %vm607_vm3 }
 0x1c2   : > { %v2681_v26 = vadd.f32 %v7907_v20, %v9610_v42  ;;  %v2672_v47 = vpop.f32.mrb[81].mxu0  ;;  %v226_v42 = vshrl.u32 %v9744_v10, 4  ;;  %v12796_v10 = vld [vmem:[#allocation7_spill] sm:$0xff]  ;;  %vm605_vm5 = vcmp.ne.s32.totalorder %v9800_v3, 0  ;;  %vm641_vm6 = vcmp.lt.s32.totalorder %v9800_v3, 0 }
 0x1c3   : > { %v9776_v54 = vpop.f32.mrb[96].mxu1  ;;  %v2673_v32 = vadd.f32 %v2672_v47, %v9594_v23  ;;  %v7908_v31 = vpop.f32.mrb[82].mxu0  ;;  %v9793_v23 = vmul.u32.u64.low 3817748708, %v9769_v6  ;;  %v9794_v47 = vmul.u32.u64.high 3817748708, %v9769_v6, %v9793_v23  ;;  %vm9863_vm8 = vmand %vm641_vm6, %vm605_vm5 }
 0x1c4   : > { %v9780_v35 = vadd.f32 %v2681_v26, %v12790_v49  ;;  %v2585_v16 = vpop.f32.mrb[97].mxu1  ;;  %v2684_v40 = vadd.f32 %v7908_v31, %v9615_v22  ;;  %v2675_v29 = vpop.f32.mrb[83].mxu0  ;;  %v12794_v26 = vld [vmem:[#allocation9_spill] sm:$0xff]  ;;  %v227_v27 = vmul.u32 18, %v226_v42 }
 0x1c5   : > { %v9787_v20 = vadd.f32 %v2673_v32, %v12792_v7  ;;  %v9789_v60 = vpop.f32.mrb[98].mxu1  ;;  %v2676_v8 = vadd.f32 %v2675_v29, %v9599_v12  ;;  %v9806_v32 = vadd.s32 56, %v9697_v56  ;;  %v9809_v12 = vadd.s32 40, %v9697_v56 }
 0x1c6   : > { %12791 = vst [vmem:[#allocation8_spill] sm:$0xff] %v9780_v35  ;;  %v9797_v49 = vadd.f32 %v2684_v40, %v12794_v26  ;;  %v2588_v22 = vpop.f32.mrb[99].mxu1  ;;  %v9814_v40 = vadd.s32 18, %v9783_v17  ;;  %v281_v7 = vshrl.u32 %v9774_v50, 4 }
 0x1c7   : > { %12793 = vst [vmem:[#allocation6_spill] sm:$0xff] %v9787_v20  ;;  %v9803_v31 = vadd.f32 %v2676_v8, %v12796_v10  ;;  %v9819_v8 = vsub.s32 %v9722_v48, %v249_v19  ;;  %v9827_v10 = vmul.u32.u64.low 3817748708, %v9806_v32  ;;  %v9828_v42 = vmul.u32.u64.high 3817748708, %v9806_v32, %v9827_v10 }
 0x1c8   : > { %12795 = vst [vmem:[#allocation9_spill] sm:$0xff] %v9797_v49  ;;  %v9868_v10 = vadd.s32 80, %v9697_v56 }
 0x1c9   : > { %12797 = vst [vmem:[#allocation7_spill] sm:$0xff] %v9803_v31  ;;  %v7911_v29 = vpop.f32.mrb[84].mxu0  ;;  %v9835_v50 = vmul.u32.u64.low 3817748708, %v9809_v12  ;;  %v9836_v31 = vmul.u32.u64.high 3817748708, %v9809_v12, %v9835_v50  ;;  %vm608_vm9 = vcmp.ne.s32.totalorder %v9819_v8, 0  ;;  %vm644_vm10 = vcmp.lt.s32.totalorder %v9819_v8, 0 }
 0x1ca   : > { %v2697_v11 = vadd.f32 %v7911_v29, %v9638_v25  ;;  %v2688_v16 = vpop.f32.mrb[85].mxu0  ;;  %vm9893_vm11 = vmand %vm644_vm10, %vm608_vm9 }
 0x1cb   : > { %v9822_v23 = vpop.f32.mrb[100].mxu1  ;;  %v2689_v26 = vadd.f32 %v2688_v16, %v9625_v1  ;;  %v7912_v22 = vpop.f32.mrb[86].mxu0  ;;  %v270_v35 = vshrl.u32 %v9836_v31, 4 }
 0x1cc   : > { %v9831_v25 = vadd.f32 %v2697_v11, %v9557_v2  ;;  %v2593_v29 = vpop.f32.mrb[101].mxu1  ;;  %v2700_v48 = vadd.f32 %v7912_v22, %v9643_v5  ;;  %v2691_v19 = vpop.f32.mrb[87].mxu0  ;;  %v9853_v5 = vadd.s32 18, %v9800_v3  ;;  %v259_v11 = vshrl.u32 %v9794_v47, 4  ;;  %v12852_v2 = vld [vmem:[#allocation16_spill] sm:$0xff] }
 0x1cd   : > { %v9839_v1 = vadd.f32 %v2689_v26, %v9537_v63  ;;  %v9841_v16 = vpop.f32.mrb[102].mxu1  ;;  %v2692_v49 = vadd.f32 %v2691_v19, %v9630_v18  ;;  %v282_v22 = vmul.u32 18, %v281_v7 }
 0x1ce   : > { %12798 = vst [vmem:[#allocation23_spill] sm:$0xff] %v9831_v25  ;;  %v9857_v63 = vadd.f32 %v2700_v48, %v9563_v52  ;;  %v2596_v26 = vpop.f32.mrb[103].mxu1  ;;  %v9876_v52 = vadd.s32 64, %v9697_v56  ;;  %v260_v19 = vmul.u32 18, %v259_v11  ;;  %v292_v11 = vshrl.u32 %v9828_v42, 4 }
 0x1cf   : > { %12799 = vst [vmem:[#allocation24_spill] sm:$0xff] %v9839_v1  ;;  %v9871_v29 = vadd.f32 %v2692_v49, %v9543_v44  ;;  %v9887_v44 = vadd.s32 18, %v9819_v8  ;;  %v9890_v49 = vsub.s32 %v9732_v36, %v227_v27  ;;  %v9898_v47 = vsub.s32 %v9762_v43, %v282_v22 }
 0x1d0   : > { %12802 = vst [vmem:[#allocation25_spill] sm:$0xff] %v9857_v63 }
 0x1d1   : > { %12805 = vst [vmem:[#allocation26_spill] sm:$0xff] %v9871_v29  ;;  %v7915_v48 = vpop.f32.mrb[88].mxu0  ;;  %12808 = vst [vmem:[#allocation27_spill] sm:$0xff] %v9898_v47  ;;  %v9901_v29 = vmul.u32.u64.low 3817748708, %v9868_v10  ;;  %v9902_v7 = vmul.u32.u64.high 3817748708, %v9868_v10, %v9901_v29  ;;  %vm606_vm12 = vcmp.ne.s32.totalorder %v9890_v49, 0 }
 0x1d2   : > { %v2713_v50 = vadd.f32 %v7915_v48, %v9662_v41  ;;  %v2704_v26 = vpop.f32.mrb[89].mxu0  ;;  %v9909_v41 = vmul.u32.u64.low 3817748708, %v9876_v52  ;;  %v9910_v48 = vmul.u32.u64.high 3817748708, %v9876_v52, %v9909_v41  ;;  %v9916_v29 = vadd.s32 88, %v9697_v56 }
 0x1d3   : > { %v9904_v25 = vpop.f32.mrb[104].mxu1  ;;  %v2705_v36 = vadd.f32 %v2704_v26, %v9651_v62  ;;  %v7916_v27 = vpop.f32.mrb[90].mxu0  ;;  %vm642_vm13 = vcmp.lt.s32.totalorder %v9890_v49, 0  ;;  %vm611_vm14 = vcmp.ne.s32.totalorder %v9898_v47, 0  ;;  %vm647_vm15 = vcmp.lt.s32.totalorder %v9898_v47, 0 }
 0x1d4   : > { %v2837_v1 = vadd.f32 %v2713_v50, %v9592_v34  ;;  %v2601_v20 = vpop.f32.mrb[105].mxu1  ;;  %v2716_v43 = vadd.f32 %v7916_v27, %v9667_v53  ;;  %v2707_v22 = vpop.f32.mrb[91].mxu0  ;;  %v9929_v53 = vsub.s32 %v9769_v6, %v260_v19  ;;  %v9941_v50 = vadd.s32 18, %v9890_v49  ;;  %vm9972_vm2 = vmand %vm642_vm13, %vm606_vm12 }
 0x1d5   : > { %v9919_v62 = vadd.f32 %v2705_v36, %v9575_v28  ;;  %v9921_v26 = vpop.f32.mrb[106].mxu1  ;;  %v2708_v42 = vadd.f32 %v2707_v22, %v9656_v58  ;;  %v9935_v28 = vadd.s32 72, %v9697_v56  ;;  %v293_v6 = vmul.u32 18, %v292_v11  ;;  %vm9989_vm3 = vmand %vm647_vm15, %vm611_vm14 }
 0x1d6   : > { %2873 = vst [vmem:[#allocation2 + $0xa8] sm:$0xff] %v2837_v1  ;;  %v2838_v20 = vadd.f32 %v2716_v43, %v9597_v4  ;;  %v2604_v31 = vpop.f32.mrb[107].mxu1  ;;  %v271_v4 = vmul.u32 18, %v270_v35  ;;  %v9946_v1 = vmul.u32.u64.low 3817748708, %v9916_v29  ;;  %v9947_v19 = vmul.u32.u64.high 3817748708, %v9916_v29, %v9946_v1 }
 0x1d7   : > { %12809 = vst [vmem:[#allocation28_spill] sm:$0xff] %v9919_v62  ;;  %v9938_v58 = vadd.f32 %v2708_v42, %v9581_v45  ;;  %v9950_v27 = vadd.s32 18, %v9898_v47  ;;  %vm609_vm0 = vcmp.ne.s32.totalorder %v9929_v53, 0  ;;  %vm645_vm1 = vcmp.lt.s32.totalorder %v9929_v53, 0 }
 0x1d8   : > { %2874 = vst [vmem:[#allocation2 + $0xb0] sm:$0xff] %v2838_v20  ;;  %v9955_v45 = vadd.s32 112, %v9697_v56  ;;  %v9959_v35 = vmul.u32.u64.low 3817748708, %v9935_v28  ;;  %v9960_v43 = vmul.u32.u64.high 3817748708, %v9935_v28, %v9959_v35  ;;  %v9963_v22 = vadd.s32 96, %v9697_v56  ;;  %vm10005_vm4 = vmand %vm645_vm1, %vm609_vm0 }
 0x1d9   : > { %12810 = vst [vmem:[#allocation29_spill] sm:$0xff] %v9938_v58  ;;  %v7919_v36 = vpop.f32.mrb[92].mxu0  ;;  %12811 = vst [vmem:[#allocation30_spill] sm:$0xff] %v9950_v27  ;;  %v325_v35 = vshrl.u32 %v9902_v7, 4  ;;  %v12816_v62 = vmov 0  ;;  %v10277_v1 = vadd.s32 160, %v9697_v56 }
 0x1da   : > { %v2729_v11 = vadd.f32 %v7919_v36, %v9682_v46  ;;  %v2720_v41 = vpop.f32.mrb[93].mxu0  ;;  %v9977_v46 = vadd.s32 18, %v9929_v53  ;;  %v9980_v36 = vsub.s32 %v9806_v32, %v293_v6  ;;  %v12817_v62 = vsel %vm9989_vm3, 4294967295, %v12816_v62 }
 0x1db   : > { %v2721_v42 = vadd.f32 %v2720_v41, %v9672_v59  ;;  %v9966_v20 = vpop.f32.mrb[108].mxu1  ;;  %v7920_v31 = vpop.f32.mrb[94].mxu0  ;;  %12818 = vst [vmem:[#allocation33_spill] sm:$0xff] %v12817_v62  ;;  %v303_v32 = vshrl.u32 %v9910_v48, 4 }
 0x1dc   : > { %12812 = vst [vmem:[#allocation31_spill] sm:$0xff] %v9966_v20  ;;  %12815 = vst [vmem:[#allocation32_spill] sm:$0xff] %v9980_v36  ;;  %v2841_v59 = vadd.f32 %v2729_v11, %v9622_v14  ;;  %v2732_v41 = vadd.f32 %v7920_v31, %v9687_v38  ;;  %v3612_v34 = vpop.f32.mrb[109].mxu1  ;;  %v2723_v58 = vpop.f32.mrb[95].mxu0  ;;  %v9994_v20 = vsub.s32 %v9809_v12, %v271_v4  ;;  %v326_v31 = vmul.u32 18, %v325_v35 }
 0x1dd   : > { %v2839_v7 = vadd.f32 %v2721_v42, %v9608_v15  ;;  %v2724_v14 = vadd.f32 %v2723_v58, %v9677_v24  ;;  %v9999_v38 = vpop.f32.mrb[110].mxu1  ;;  %v10010_v6 = vmul.u32.u64.low 3817748708, %v9955_v45  ;;  %v10011_v12 = vmul.u32.u64.high 3817748708, %v9955_v45, %v10010_v6 }
 0x1de   : > { %2877 = vst [vmem:[#allocation2 + $0xc8] sm:$0xff] %v2841_v59  ;;  %v2842_v48 = vadd.f32 %v2732_v41, %v9628_v30  ;;  %v3615_v15 = vpop.f32.mrb[111].mxu1  ;;  %v10019_v58 = vmul.u32.u64.low 3817748708, %v9963_v22  ;;  %v10020_v4 = vmul.u32.u64.high 3817748708, %v9963_v22, %v10019_v58  ;;  %v10028_v30 = vadd.s32 120, %v9697_v56 }
 0x1df   : > { %2875 = vst [vmem:[#allocation2 + $0xb8] sm:$0xff] %v2839_v7  ;;  %v2840_v11 = vadd.f32 %v2724_v14, %v9613_v9  ;;  %vm612_vm5 = vcmp.ne.s32.totalorder %v9980_v36, 0  ;;  %v304_v41 = vmul.u32 18, %v303_v32  ;;  %v336_v9 = vshrl.u32 %v9947_v19, 4 }
 0x1e0   : > { %2878 = vst [vmem:[#allocation2 + $0xd0] sm:$0xff] %v2842_v48  ;;  %vm648_vm6 = vcmp.lt.s32.totalorder %v9980_v36, 0  ;;  %v10038_v35 = vadd.s32 18, %v9980_v36  ;;  %vm610_vm9 = vcmp.ne.s32.totalorder %v9994_v20, 0  ;;  %v10042_v14 = vadd.s32 104, %v9697_v56 }
 0x1e1   : > { %2876 = vst [vmem:[#allocation2 + $0xc0] sm:$0xff] %v2840_v11  ;;  %v7923_v7 = vpop.f32.mrb[96].mxu0  ;;  %vm646_vm10 = vcmp.lt.s32.totalorder %v9994_v20, 0  ;;  %v10047_v32 = vadd.s32 18, %v9994_v20  ;;  %v314_v19 = vshrl.u32 %v9960_v43, 4  ;;  %v10054_v42 = vsub.s32 %v9868_v10, %v326_v31  ;;  %vm10073_vm12 = vmand %vm648_vm6, %vm612_vm5 }
 0x1e2   : > { %12821 = vst [vmem:[#allocation34_spill] sm:$0xff] %v10038_v35  ;;  %v2745_v6 = vadd.f32 %v7923_v7, %v9703_v37  ;;  %v2736_v48 = vpop.f32.mrb[97].mxu0  ;;  %v10057_v59 = vmul.u32.u64.low 3817748708, %v10028_v30  ;;  %v10058_v24 = vmul.u32.u64.high 3817748708, %v10028_v30, %v10057_v59  ;;  %v10063_v43 = vsub.s32 %v9876_v52, %v304_v41  ;;  %vm10086_vm13 = vmand %vm646_vm10, %vm610_vm9 }
 0x1e3   : > { %v2737_v15 = vadd.f32 %v2736_v48, %v9692_v61  ;;  %v10051_v58 = vpop.f32.mrb[112].mxu1  ;;  %v7924_v11 = vpop.f32.mrb[98].mxu0  ;;  %v337_v61 = vmul.u32 18, %v336_v9  ;;  %v369_v31 = vshrl.u32 %v10011_v12, 4  ;;  %v347_v59 = vshrl.u32 %v10020_v4, 4  ;;  %v12831_v9 = vld [vmem:[#allocation10_spill] sm:$0xff] }
 0x1e4   : > { %v2845_v37 = vadd.f32 %v2745_v6, %v9649_v57  ;;  %v2748_v7 = vadd.f32 %v7924_v11, %v9716_v33  ;;  %v3620_v47 = vpop.f32.mrb[113].mxu1  ;;  %v2739_v27 = vpop.f32.mrb[99].mxu0  ;;  %vm615_vm14 = vcmp.ne.s32.totalorder %v10054_v42, 0  ;;  %vm651_vm15 = vcmp.lt.s32.totalorder %v10054_v42, 0 }
 0x1e5   : > { %v2843_v48 = vadd.f32 %v2737_v15, %v9636_v39  ;;  %v2740_v62 = vadd.f32 %v2739_v27, %v9699_v0  ;;  %v10067_v10 = vpop.f32.mrb[114].mxu1  ;;  %v10078_v33 = vmul.u32.u64.low 3817748708, %v10042_v14  ;;  %v10079_v47 = vmul.u32.u64.high 3817748708, %v10042_v14, %v10078_v33  ;;  %vm10125_vm5 = vmand %vm651_vm15, %vm615_vm14 }
 0x1e6   : > { %2881 = vst [vmem:[#allocation2 + $0xe8] sm:$0xff] %v2845_v37  ;;  %v2846_v52 = vadd.f32 %v2748_v7, %v9654_v51  ;;  %v3623_v39 = vpop.f32.mrb[115].mxu1  ;;  %v315_v27 = vmul.u32 18, %v314_v19  ;;  %v10096_v51 = vadd.s32 128, %v9697_v56  ;;  %vm613_vm0 = vcmp.ne.s32.totalorder %v10063_v43, 0 }
 0x1e7   : > { %2879 = vst [vmem:[#allocation2 + $0xd8] sm:$0xff] %v2843_v48  ;;  %v2844_v41 = vadd.f32 %v2740_v62, %v9641_v13  ;;  %vm649_vm1 = vcmp.lt.s32.totalorder %v10063_v43, 0  ;;  %v10105_v12 = vadd.s32 136, %v9697_v56  ;;  %v10112_v4 = vadd.s32 18, %v10054_v42 }
 0x1e8   : > { %2882 = vst [vmem:[#allocation2 + $0xf0] sm:$0xff] %v2846_v52  ;;  %v10115_v6 = vadd.s32 18, %v10063_v43  ;;  %v10118_v19 = vsub.s32 %v9916_v29, %v337_v61  ;;  %v12826_v37 = vmov 0  ;;  %v10130_v7 = vsub.s32 %v9935_v28, %v315_v27  ;;  %vm10139_vm6 = vmand %vm649_vm1, %vm613_vm0 }
 0x1e9   : > { %2880 = vst [vmem:[#allocation2 + $0xe0] sm:$0xff] %v2844_v41  ;;  %v7927_v13 = vpop.f32.mrb[100].mxu0  ;;  %v12827_v37 = vsel %vm10125_vm5, 4294967295, %v12826_v37  ;;  %v370_v48 = vmul.u32 18, %v369_v31  ;;  %v348_v33 = vmul.u32 18, %v347_v59  ;;  %v380_v39 = vshrl.u32 %v10058_v24, 4 }
 0x1ea   : > { %v2761_v15 = vadd.f32 %v7927_v13, %v9776_v54  ;;  %v2752_v11 = vpop.f32.mrb[101].mxu0  ;;  %v12829_v54 = vmov 0  ;;  %v10145_v28 = vmul.u32.u64.low 3817748708, %v10096_v51  ;;  %v10146_v27 = vmul.u32.u64.high 3817748708, %v10096_v51, %v10145_v28 }
 0x1eb   : > { %v2753_v52 = vadd.f32 %v2752_v11, %v9739_v55  ;;  %v10133_v29 = vpop.f32.mrb[116].mxu1  ;;  %v7928_v61 = vpop.f32.mrb[102].mxu0  ;;  %v12830_v54 = vsel %vm10139_vm6, 4294967295, %v12829_v54  ;;  %v10151_v13 = vmul.u32.u64.low 3817748708, %v10105_v12  ;;  %v10152_v11 = vmul.u32.u64.high 3817748708, %v10105_v12, %v10151_v13 }
 0x1ec   : > { %12828 = vst [vmem:[#allocation35_spill] sm:$0xff] %v10133_v29  ;;  %v2849_v31 = vadd.f32 %v2761_v15, %v9670_v21  ;;  %v2764_v55 = vadd.f32 %v7928_v61, %v9789_v60  ;;  %v3628_v59 = vpop.f32.mrb[117].mxu1  ;;  %v2755_v41 = vpop.f32.mrb[103].mxu0  ;;  %v12832_v29 = vld [vmem:[#allocation22_spill] sm:$0xff]  ;;  %v358_v24 = vshrl.u32 %v10079_v47, 4  ;;  %v10160_v28 = vadd.s32 144, %v9697_v56 }
 0x1ed   : > { %v2847_v62 = vadd.f32 %v2753_v52, %v12831_v9  ;;  %v2756_v36 = vadd.f32 %v2755_v41, %v12832_v29  ;;  %v10156_v35 = vpop.f32.mrb[118].mxu1  ;;  %v12833_v21 = vld [vmem:[#allocation12_spill] sm:$0xff]  ;;  %v10172_v52 = vsub.s32 %v9955_v45, %v370_v48  ;;  %v12835_v47 = vld [vmem:[#allocation11_spill] sm:$0xff]  ;;  %vm616_vm9 = vcmp.ne.s32.totalorder %v10118_v19, 0  ;;  %v12886_v9 = vld [vmem:[#allocation30_spill] sm:$0xff] }
 0x1ee   : > { %2885 = vst [vmem:[#allocation2 + $0x108] sm:$0xff] %v2849_v31  ;;  %v2850_v60 = vadd.f32 %v2764_v55, %v12833_v21  ;;  %v3631_v15 = vpop.f32.mrb[119].mxu1  ;;  %vm652_vm10 = vcmp.lt.s32.totalorder %v10118_v19, 0  ;;  %v10178_v31 = vsub.s32 %v9963_v22, %v348_v33  ;;  %v10181_v55 = vadd.s32 18, %v10118_v19 }
 0x1ef   : > { %12834 = vst [vmem:[#allocation10_spill] sm:$0xff] %v10172_v52  ;;  %2883 = vst [vmem:[#allocation2 + $0xf8] sm:$0xff] %v2847_v62  ;;  %v2848_v29 = vadd.f32 %v2756_v36, %v12835_v47  ;;  %vm614_vm14 = vcmp.ne.s32.totalorder %v10130_v7, 0  ;;  %v381_v45 = vmul.u32 18, %v380_v39  ;;  %v10186_v36 = vadd.s32 18, %v10130_v7  ;;  %v12837_v15 = vld [vmem:[#allocation15_spill] sm:$0xff] }
 0x1f0   : > { %2886 = vst [vmem:[#allocation2 + $0x110] sm:$0xff] %v2850_v60  ;;  %v359_v48 = vmul.u32 18, %v358_v24  ;;  %v10189_v59 = vmul.u32.u64.low 3817748708, %v10160_v28  ;;  %v10190_v41 = vmul.u32.u64.high 3817748708, %v10160_v28, %v10189_v59  ;;  %v10196_v13 = vadd.s32 152, %v9697_v56  ;;  %vm10221_vm15 = vmand %vm652_vm10, %vm616_vm9 }
 0x1f1   : > { %2884 = vst [vmem:[#allocation2 + $0x100] sm:$0xff] %v2848_v29  ;;  %v7931_v62 = vpop.f32.mrb[104].mxu0  ;;  %v10202_v24 = vadd.s32 18, %v10172_v52  ;;  %v402_v18 = vshrl.u32 %v10152_v11, 4  ;;  %vm12849_vm9 = vcmp.lt.s32.totalorder %v10130_v7, 0  ;;  %v12853_v11 = vsel %vm9972_vm2, %v9941_v50, %v9890_v49  ;;  %v12862_v49 = vld [vmem:[#allocation14_spill] sm:$0xff] }
 0x1f2   : > { %v2777_v22 = vadd.f32 %v7931_v62, %v9904_v25  ;;  %v2768_v33 = vpop.f32.mrb[105].mxu0  ;;  %v391_v25 = vshrl.u32 %v10146_v27, 4  ;;  %v12842_v27 = vmov 0  ;;  %vm10246_vm10 = vmand %vm12849_vm9, %vm614_vm14  ;;  %vm12857_vm14 = vcmp.ne.s32.totalorder %v10172_v52, 0 }
 0x1f3   : > { %v2769_v39 = vadd.f32 %v2768_v33, %v9822_v23  ;;  %v10199_v21 = vpop.f32.mrb[120].mxu1  ;;  %v7932_v60 = vpop.f32.mrb[106].mxu0  ;;  %12836 = vst [vmem:[#allocation22_spill] sm:$0xff] %v10202_v24  ;;  %v12838_v23 = vsel %vm9863_vm8, %v9853_v5, %v9800_v3  ;;  %v12839_v33 = vmov 0  ;;  %v12843_v27 = vsel %vm10221_vm15, 4294967295, %v12842_v27 }
 0x1f4   : > { %v2853_v47 = vadd.f32 %v2777_v22, %v12837_v15  ;;  %v2780_v29 = vadd.f32 %v7932_v60, %v9921_v26  ;;  %v3636_v62 = vpop.f32.mrb[121].mxu1  ;;  %v2771_v59 = vpop.f32.mrb[107].mxu0  ;;  %vm10213_vm1 = vcmp.lt.s32.totalorder %v12838_v23, 16  ;;  %v10226_v26 = vsub.s32 %v10028_v30, %v381_v45  ;;  %v12844_v22 = vld [vmem:[#allocation13_spill] sm:$0xff] }
 0x1f5   : > { %v12840_v33 = vsel %vm10213_vm1, 4294967295, %v12839_v33  ;;  %v2851_v60 = vadd.f32 %v2769_v39, %v12844_v22  ;;  %v2772_v3 = vadd.f32 %v2771_v59, %v9841_v16  ;;  %v10231_v5 = vpop.f32.mrb[122].mxu1  ;;  %v12845_v15 = vsel %vm9848_vm7, %v9814_v40, %v9783_v17 }
 0x1f6   : > { %12841 = vst [vmem:[#allocation12_spill] sm:$0xff] %v12840_v33  ;;  %vm10238_vm8 = vcmp.lt.s32.totalorder %v12845_v15, 16  ;;  %v12846_v62 = vmov 0  ;;  %v12850_v30 = vmov 0  ;;  %v10252_v16 = vsub.s32 %v10042_v14, %v359_v48  ;;  %2889 = vst [vmem:[#allocation2 + $0x128] sm:$0xff] %v2853_v47  ;;  %v3639_v40 = vpop.f32.mrb[123].mxu1 }
 0x1f7   : > { %v12847_v62 = vsel %vm10238_vm8, 4294967295, %v12846_v62  ;;  %v12851_v30 = vsel %vm10246_vm10, 4294967295, %v12850_v30  ;;  %v2854_v17 = vadd.f32 %v2780_v29, %v12852_v2  ;;  %vm10260_vm7 = vcmp.lt.s32.totalorder %v12853_v11, 16  ;;  %2887 = vst [vmem:[#allocation2 + $0x118] sm:$0xff] %v2851_v60 }
 0x1f8   : > { %12848 = vst [vmem:[#allocation11_spill] sm:$0xff] %v12847_v62  ;;  %v12854_v45 = vmov 0  ;;  %vm12858_vm9 = vcmp.lt.s32.totalorder %v10172_v52, 0  ;;  %v12859_v14 = vmov 0  ;;  %v2852_v50 = vadd.f32 %v2772_v3, %v12862_v49  ;;  %v12887_v52 = vld [vmem:[#allocation27_spill] sm:$0xff] }
 0x1f9   : > { %v12855_v45 = vsel %vm10260_vm7, 4294967295, %v12854_v45  ;;  %vm10268_vm0 = vmand %vm12858_vm9, %vm12857_vm14  ;;  %v10273_v48 = vmul.u32.u64.low 3817748708, %v10196_v13  ;;  %v10274_v39 = vmul.u32.u64.high 3817748708, %v10196_v13, %v10273_v48  ;;  %v10285_v29 = vadd.s32 18, %v10178_v31  ;;  %2890 = vst [vmem:[#allocation2 + $0x130] sm:$0xff] %v2854_v17  ;;  %v7951_v63 = vpop.f32.mrb[108].mxu0 }
 0x1fa   : > { %12856 = vst [vmem:[#allocation15_spill] sm:$0xff] %v12855_v45  ;;  %v12860_v14 = vsel %vm10268_vm0, 4294967295, %v12859_v14  ;;  %v392_v59 = vmul.u32 18, %v391_v25  ;;  %v12863_v23 = vsel %vm9893_vm11, %v9887_v44, %v9819_v8  ;;  %v12864_v22 = vmov 0  ;;  %2888 = vst [vmem:[#allocation2 + $0x120] sm:$0xff] %v2852_v50  ;;  %v3787_v2 = vpop.f32.mrb[109].mxu0 }
 0x1fb   : > { %12861 = vst [vmem:[#allocation13_spill] sm:$0xff] %v12860_v14  ;;  %vm10292_vm2 = vcmp.lt.s32.totalorder %v12863_v23, 16  ;;  %vm12867_vm14 = vcmp.ne.s32.totalorder %v10178_v31, 0  ;;  %vm12868_vm9 = vcmp.lt.s32.totalorder %v10178_v31, 0  ;;  %vm620_vm5 = vcmp.ne.s32.totalorder %v10226_v26, 0  ;;  %v10325_v11 = vpop.f32.mrb[124].mxu1 }
 0x1fc   : > { %v12865_v22 = vsel %vm10292_vm2, 4294967295, %v12864_v22  ;;  %vm10304_vm15 = vmand %vm12868_vm9, %vm12867_vm14  ;;  %vm656_vm11 = vcmp.lt.s32.totalorder %v10226_v26, 0  ;;  %v403_v8 = vmul.u32 18, %v402_v18  ;;  %vm618_vm10 = vcmp.ne.s32.totalorder %v10252_v16, 0  ;;  %v12871_v48 = vld [vmem:[#allocation31_spill] sm:$0xff]  ;;  %v7952_v50 = vpop.f32.mrb[110].mxu0 }
 0x1fd   : > { %12866 = vst [vmem:[#allocation16_spill] sm:$0xff] %v12865_v22  ;;  %vm654_vm6 = vcmp.lt.s32.totalorder %v10252_v16, 0  ;;  %v413_v3 = vshrl.u32 %v10190_v41, 4  ;;  %v3796_v15 = vadd.f32 %v7951_v63, %v10051_v58  ;;  %v10319_v17 = vadd.s32 18, %v10226_v26  ;;  %vm10336_vm14 = vmand %vm656_vm11, %vm620_vm5  ;;  %v3644_v41 = vpop.f32.mrb[125].mxu1  ;;  %v3790_v60 = vpop.f32.mrb[111].mxu0 }
 0x1fe   : > { %v10322_v18 = vmul.u32.u64.low 3817748708, %v10277_v1  ;;  %v10323_v40 = vmul.u32.u64.high 3817748708, %v10277_v1, %v10322_v18  ;;  %v3788_v49 = vadd.f32 %v3787_v2, %v12871_v48  ;;  %v10341_v23 = vadd.s32 18, %v10252_v16  ;;  %v8360_v2 = vld [vmem:[%s12672_s2] sm:$0xff]   ;;  %vm10366_vm9 = vmand %vm654_vm6, %vm618_vm10  ;;  %v12892_v14 = vld [vmem:[#allocation20_spill] sm:$0xff] }
 0x1ff   : > { %v10344_v63 = vsub.s32 %v10096_v51, %v392_v59  ;;  %v2784_v18 = vld [vmem:[#allocation2 + $0x20] sm:$0xff]  ;;  %v3799_v47 = vadd.f32 %v7952_v50, %v10067_v10  ;;  %v12876_v61 = vsel %vm10005_vm4, %v9977_v46, %v9929_v53  ;;  %v12877_v51 = vmov 0  ;;  %v12883_v46 = vld [vmem:[#allocation18_spill] sm:$0xff]  ;;  %v10380_v50 = vpop.f32.mrb[126].mxu1  ;;  %4883 = vmatpush1.bf16.msra.mxu0 %v8360_v2  ;;  %v12900_v2 = vld [vmem:[#allocation32_spill] sm:$0xff] }
 0x200   : > { %v12874_v48 = vld [vmem:[#allocation17_spill] sm:$0xff]  ;;  %vm10358_vm5 = vcmp.lt.s32.totalorder %v12876_v61, 16  ;;  %v10371_v10 = vsub.s32 %v10105_v12, %v403_v8  ;;  %v10374_v34 = vadd.s32 168, %v9697_v56  ;;  %v10378_v61 = vadd.f32 %v3788_v49, %v12883_v46  ;;  %v3647_v49 = vpop.f32.mrb[127].mxu1  ;;  %v12905_v45 = vld [vmem:[#allocation35_spill] sm:$0xff] }
 0x201   : > { %v10350_v44 = vadd.f32 %v3796_v15, %v12874_v48  ;;  %v12878_v51 = vsel %vm10358_vm5, 4294967295, %v12877_v51  ;;  %v12882_v15 = vld [vmem:[#allocation19_spill] sm:$0xff]  ;;  %v3791_v41 = vadd.f32 %v3790_v60, %v9999_v38  ;;  %v12888_v24 = vsel %vm9989_vm3, %v12886_v9, %v12887_v52  ;;  %v7955_v48 = vpop.f32.mrb[112].mxu0 }
 0x202   : > { %12879 = vst [vmem:[#allocation31_spill] sm:$0xff] %v12878_v51  ;;  %v2820_v53 = vadd.f32 %v2784_v18, %v12882_v15  ;;  %12884 = vst [vmem:[#allocation17_spill] sm:$0xff] %v10378_v61  ;;  %vm10388_vm4 = vcmp.lt.s32.totalorder %v12888_v24, 16  ;;  %v12889_v12 = vmov 0  ;;  %v414_v8 = vmul.u32 18, %v413_v3  ;;  %v12899_v3 = vld [vmem:[#allocation34_spill] sm:$0xff] }
 0x203   : > { %12875 = vst [vmem:[#allocation14_spill] sm:$0xff] %v10350_v44  ;;  %v12890_v12 = vsel %vm10388_vm4, 4294967295, %v12889_v12  ;;  %v10393_v18 = vadd.f32 %v3799_v47, %v12892_v14  ;;  %v12893_v38 = vsel %vm10086_vm13, %v10047_v32, %v9994_v20  ;;  %v12894_v60 = vmov 0  ;;  %v3803_v9 = vpop.f32.mrb[113].mxu0  ;;  %v3650_v33 = vpop.f32.mrb[128].mxu1 }
 0x204   : > { %12891 = vst [vmem:[#allocation19_spill] sm:$0xff] %v12890_v12  ;;  %vm10400_vm6 = vcmp.lt.s32.totalorder %v12893_v38, 16  ;;  %v424_v52 = vshrl.u32 %v10274_v39, 4  ;;  %v10410_v24 = vadd.s32 176, %v9697_v56  ;;  %v12897_v14 = vmov 0   ;;  %v8361_v39 = vld [vmem:[%s12672_s2 + $0x8] sm:$0xff]  }
 0x205   : > { %v12895_v60 = vsel %vm10400_vm6, 4294967295, %v12894_v60  ;;  %4884 = vmatprep.subr.bf16.mxu0 %v12897_v14  ;;  %v4146_v20 = vsel %vm10213_vm1, %v10378_v61, 0.0  ;;  %v10416_v32 = vadd.f32 %v3791_v41, %v2820_v53  ;;  %v4148_v47 = vsel %vm10238_vm8, %v10350_v44, 0.0 }
 0x206   : > { %12896 = vst [vmem:[#allocation18_spill] sm:$0xff] %v12895_v60  ;;  %v12901_v15 = vsel %vm10073_vm12, %v12899_v3, %v12900_v2  ;;  %v12902_v53 = vmov 0  ;;  %vm657_vm10 = vcmp.lt.s32.totalorder %v10344_v63, 0  ;;  %v10440_v46 = vadd.s32 18, %v10344_v63  ;;  %4885 = vmatpush1.bf16.msra.mxu0 %v8361_v39  ;;  %v12906_v39 = vld [vmem:[#allocation21_spill] sm:$0xff]  ;;  %v8382_v60 = vld [vmem:[%s12672_s2 + $0x78] sm:$0xff]  }
 0x207   : > { %12898 = vst [vmem:[#allocation33_spill] sm:$0xff] %v10416_v32  ;;  %vm10434_vm13 = vcmp.lt.s32.totalorder %v12901_v15, 16  ;;  %v4147_v41 = vsel %vm10260_vm7, %v10416_v32, 0.0  ;;  %v10448_v57 = vadd.s32 18, %v10371_v10  ;;  %v10451_v49 = vsub.s32 %v10160_v28, %v414_v8  ;;  %4886 = vmatprep.subr.bf16.mxu0 %v12897_v14  ;;  %v7956_v32 = vpop.f32.mrb[114].mxu0  ;;  %v8362_v8 = vld [vmem:[%s12672_s2 + $0x10] sm:$0xff]  }
 0x208   : > { %v12903_v53 = vsel %vm10434_vm13, 4294967295, %v12902_v53  ;;  %v4224_v38 = vmul.f32 %v4146_v20, %v4146_v20  ;;  %v4182_v3 = vadd.f32 %v4147_v41, %v4146_v20  ;;  %v4225_v2 = vmul.f32 %v4147_v41, %v4147_v41  ;;  %v3806_v22 = vpop.f32.mrb[115].mxu0 }
 0x209   : > { %12904 = vst [vmem:[#allocation30_spill] sm:$0xff] %v12903_v53  ;;  %v3812_v15 = vadd.f32 %v7955_v48, %v10199_v21  ;;  %v4226_v0 = vmul.f32 %v4148_v47, %v4148_v47  ;;  %v4149_v62 = vsel %vm10292_vm2, %v10393_v18, 0.0  ;;  %v3804_v44 = vadd.f32 %v3803_v9, %v12905_v45  ;;  %v3652_v48 = vpop.f32.mrb[129].mxu1 }
 0x20a   : > { %v10459_v28 = vmul.u32 18, %v424_v52  ;;  %v4183_v20 = vadd.f32 %v4182_v3, %v4148_v47  ;;  %v4260_v21 = vadd.f32 %v4225_v2, %v4224_v38  ;;  %v3815_v61 = vadd.f32 %v7956_v32, %v10231_v5  ;;  %v12915_v47 = vld [vmem:[#allocation3_spill] sm:$0xff]  ;;  %v3653_v32 = vpop.f32.mrb[130].mxu1  ;;  %4887 = vmatpush1.bf16.msra.mxu0 %v8362_v8  ;;  %v8370_v52 = vld [vmem:[%s12672_s2 + $0x40] sm:$0xff]  }
 0x20b   : > { %v10465_v41 = vadd.f32 %v3812_v15, %v12906_v39  ;;  %vm12907_vm12 = vnez %v12830_v54  ;;  %v12909_v9 = vmov 0  ;;  %vm12912_vm11 = vcmp.ne.s32.totalorder %v10344_v63, 0  ;;  %v12921_v39 = vld [vmem:[#allocation5_spill] sm:$0xff]  ;;  %4888 = vmatprep.subr.bf16.mxu0 %v12897_v14 }
 0x20c   : > { %v12908_v45 = vsel %vm12907_vm12, %v10115_v6, %v10063_v43  ;;  %vm10481_vm2 = vmand %vm657_vm10, %vm12912_vm11  ;;  %v10486_v5 = vadd.f32 %v3804_v44, %v12915_v47  ;;  %v3807_v54 = vadd.f32 %v3806_v22, %v10156_v35  ;;  %vm12916_vm12 = vnez %v12827_v37  ;;  %v3655_v35 = vpop.f32.mrb[131].mxu1  ;;  %v7959_v47 = vpop.f32.mrb[116].mxu0 }
 0x20d   : > { %vm10473_vm3 = vcmp.lt.s32.totalorder %v12908_v45, 16  ;;  %v12917_v43 = vsel %vm12916_vm12, %v10112_v4, %v10054_v42  ;;  %v12918_v6 = vmov 0  ;;  %v4227_v2 = vmul.f32 %v4149_v62, %v4149_v62  ;;  %v3819_v35 = vpop.f32.mrb[117].mxu0 }
 0x20e   : > { %v12910_v9 = vsel %vm10473_vm3, 4294967295, %v12909_v9  ;;  %vm10494_vm8 = vcmp.lt.s32.totalorder %v12917_v43, 16  ;;  %v10499_v38 = vmul.u32.u64.low 3817748708, %v10374_v34  ;;  %v10500_v3 = vmul.u32.u64.high 3817748708, %v10374_v34, %v10499_v38  ;;  %v12942_v43 = vld [vmem:[#allocation6_spill] sm:$0xff] }
 0x20f   : > { %12911 = vst [vmem:[#allocation27_spill] sm:$0xff] %v12910_v9  ;;  %v12919_v6 = vsel %vm10494_vm8, 4294967295, %v12918_v6  ;;  %v4261_v44 = vadd.f32 %v4260_v21, %v4226_v0  ;;  %v4184_v15 = vadd.f32 %v4183_v20, %v4149_v62  ;;  %v10503_v48 = vadd.f32 %v3815_v61, %v12921_v39  ;;  %v8364_v61 = vld [vmem:[%s12672_s2 + $0x18] sm:$0xff]  }
 0x210   : > { %12920 = vst [vmem:[#allocation20_spill] sm:$0xff] %v12919_v6  ;;  %vm12922_vm10 = vnez %v12851_v30  ;;  %v12924_v4 = vmov 0  ;;  %vm12927_vm12 = vcmp.ne.s32.totalorder %v10371_v10, 0  ;;  %vm12928_vm1 = vcmp.lt.s32.totalorder %v10371_v10, 0  ;;  %v12931_v30 = vld [vmem:[#allocation4_spill] sm:$0xff]  ;;  %4889 = vmatpush1.bf16.msra.mxu0 %v8364_v61 }
 0x211   : > { %v12923_v42 = vsel %vm12922_vm10, %v10186_v36, %v10130_v7  ;;  %vm10518_vm7 = vmand %vm12928_vm1, %vm12927_vm12  ;;  %v4150_v62 = vsel %vm10358_vm5, %v10486_v5, 0.0  ;;  %v10527_v7 = vadd.f32 %v3807_v54, %v12931_v30  ;;  %v435_v22 = vshrl.u32 %v10323_v40, 4  ;;  %4890 = vmatprep.subr.bf16.mxu0 %v12897_v14  ;;  %v7960_v30 = vpop.f32.mrb[118].mxu0 }
 0x212   : > { %vm10510_vm11 = vcmp.lt.s32.totalorder %v12923_v42, 16  ;;  %v4152_v0 = vsel %vm10388_vm4, %v10465_v41, 0.0  ;;  %v4185_v8 = vadd.f32 %v4184_v15, %v4150_v62  ;;  %v4228_v20 = vmul.f32 %v4150_v62, %v4150_v62  ;;  %v3658_v42 = vpop.f32.mrb[132].mxu1 }
 0x213   : > { %v12925_v4 = vsel %vm10510_vm11, 4294967295, %v12924_v4  ;;  %v4262_v21 = vadd.f32 %v4261_v44, %v4227_v2  ;;  %v4151_v45 = vsel %vm10400_vm6, %v10527_v7, 0.0  ;;  %vm12932_vm1 = vnez %v12843_v27 }
 0x214   : > { %12926 = vst [vmem:[#allocation34_spill] sm:$0xff] %v12925_v4  ;;  %v12933_v40 = vsel %vm12932_vm1, %v10181_v55, %v10118_v19  ;;  %v12934_v54 = vmov 0  ;;  %v10557_v38 = vmul.u32.u64.low 3817748708, %v10410_v24  ;;  %v10558_v2 = vmul.u32.u64.high 3817748708, %v10410_v24, %v10557_v38 }
 0x215   : > { %vm10548_vm10 = vcmp.lt.s32.totalorder %v12933_v40, 16  ;;  %v4263_v44 = vadd.f32 %v4262_v21, %v4228_v20  ;;  %v4186_v15 = vadd.f32 %v4185_v8, %v4151_v45  ;;  %v4229_v27 = vmul.f32 %v4151_v45, %v4151_v45  ;;  %v12937_v21 = vld [vmem:[#allocation8_spill] sm:$0xff]  ;;  %v3822_v38 = vpop.f32.mrb[119].mxu0 }
 0x216   : > { %v12935_v54 = vsel %vm10548_vm10, 4294967295, %v12934_v54  ;;  %v3828_v39 = vadd.f32 %v7959_v47, %v3650_v33  ;;  %vm623_vm12 = vcmp.ne.s32.totalorder %v10451_v49, 0  ;;  %v4230_v19 = vmul.f32 %v4152_v0, %v4152_v0  ;;  %v8365_v33 = vld [vmem:[%s12672_s2 + $0x20] sm:$0xff]   ;;  %v3660_v47 = vpop.f32.mrb[133].mxu1 }
 0x217   : > { %12936 = vst [vmem:[#allocation32_spill] sm:$0xff] %v12935_v54  ;;  %v4153_v55 = vsel %vm10434_vm13, %v10503_v48, 0.0  ;;  %v3820_v62 = vadd.f32 %v3819_v35, %v10325_v11  ;;  %v10568_v61 = vadd.s32 184, %v9697_v56  ;;  %v4187_v8 = vadd.f32 %v4186_v15, %v4152_v0  ;;  %v3661_v0 = vpop.f32.mrb[134].mxu1  ;;  %4891 = vmatpush1.bf16.msra.mxu0 %v8365_v33 }
 0x218   : > { %v4264_v20 = vadd.f32 %v4263_v44, %v4229_v27  ;;  %v10574_v45 = vadd.f32 %v3828_v39, %v12937_v21  ;;  %v3831_v40 = vadd.f32 %v7960_v30, %v3653_v32  ;;  %v12938_v11 = vsel %vm10304_vm15, %v10285_v29, %v10178_v31  ;;  %v12943_v30 = vld [vmem:[#allocation9_spill] sm:$0xff]  ;;  %v3663_v31 = vpop.f32.mrb[135].mxu1  ;;  %4892 = vmatprep.subr.bf16.mxu0 %v12897_v14 }
 0x219   : > { %vm10581_vm1 = vcmp.lt.s32.totalorder %v12938_v11, 16  ;;  %v12939_v35 = vmov 0  ;;  %v10586_v36 = vadd.f32 %v3820_v62, %v12942_v43  ;;  %v3823_v44 = vadd.f32 %v3822_v38, %v10380_v50  ;;  %v12944_v43 = vld [vmem:[#allocation7_spill] sm:$0xff]  ;;  %v3666_v31 = vpop.f32.mrb[136].mxu1 }
 0x21a   : > { %v12940_v35 = vsel %vm10581_vm1, 4294967295, %v12939_v35  ;;  %v436_v15 = vmul.u32 18, %v435_v22  ;;  %v446_v27 = vshrl.u32 %v10500_v3, 4  ;;  %v4231_v32 = vmul.f32 %v4153_v55, %v4153_v55 }
 0x21b   : > { %12941 = vst [vmem:[#allocation35_spill] sm:$0xff] %v12940_v35  ;;  %v4265_v39 = vadd.f32 %v4264_v20, %v4230_v19  ;;  %v4188_v25 = vadd.f32 %v4187_v8, %v4153_v55  ;;  %v10591_v21 = vadd.f32 %v3831_v40, %v12943_v30  ;;  %v4154_v29 = vsel %vm10473_vm3, %v10586_v36, 0.0  ;;  %v8366_v55 = vld [vmem:[%s12672_s2 + $0x28] sm:$0xff]  }
 0x21c   : > { %v10598_v62 = vadd.f32 %v3823_v44, %v12944_v43  ;;  %v12945_v50 = vsel %vm10366_vm9, %v10341_v23, %v10252_v16  ;;  %v12946_v3 = vmov 0  ;;  %v4156_v33 = vsel %vm10494_vm8, %v10574_v45, 0.0  ;;  %v7963_v23 = vpop.f32.mrb[120].mxu0  ;;  %4893 = vmatpush1.bf16.msra.mxu0 %v8366_v55 }
 0x21d   : > { %vm10605_vm15 = vcmp.lt.s32.totalorder %v12945_v50, 16  ;;  %v10610_v22 = vmul.u32.u64.low 3817748708, %v10568_v61  ;;  %v10611_v19 = vmul.u32.u64.high 3817748708, %v10568_v61, %v10610_v22  ;;  %v4189_v59 = vadd.f32 %v4188_v25, %v4154_v29  ;;  %4894 = vmatprep.subr.bf16.mxu0 %v12897_v14 }
 0x21e   : > { %v12947_v3 = vsel %vm10605_vm15, 4294967295, %v12946_v3  ;;  %v4232_v8 = vmul.f32 %v4154_v29, %v4154_v29  ;;  %v4266_v20 = vadd.f32 %v4265_v39, %v4231_v32  ;;  %v4155_v16 = vsel %vm10510_vm11, %v10598_v62, 0.0  ;;  %v3835_v32 = vpop.f32.mrb[121].mxu0 }
 0x21f   : > { %12948 = vst [vmem:[#allocation21_spill] sm:$0xff] %v12947_v3  ;;  %v10623_v47 = vadd.s32 18, %v10451_v49  ;;  %v10627_v40 = vsub.s32 %v10196_v13, %v10459_v28  ;;  %v10630_v38 = vadd.s32 192, %v9697_v56  ;;  %v4190_v44 = vadd.f32 %v4189_v59, %v4155_v16  ;;  %v7964_v43 = vpop.f32.mrb[122].mxu0  ;;  %v8367_v28 = vld [vmem:[%s12672_s2 + $0x30] sm:$0xff]   ;;  %v3668_v59 = vpop.f32.mrb[137].mxu1 }
 0x220   : > { %v4267_v11 = vadd.f32 %v4266_v20, %v4232_v8  ;;  %v4233_v25 = vmul.f32 %v4155_v16, %v4155_v16  ;;  %v10633_v39 = vsub.s32 %v10277_v1, %v436_v15  ;;  %v4234_v30 = vmul.f32 %v4156_v33, %v4156_v33  ;;  %v3838_v8 = vpop.f32.mrb[123].mxu0  ;;  %v12951_v16 = vld [vmem:[#allocation10_spill] sm:$0xff]  ;;  %v3669_v4 = vpop.f32.mrb[138].mxu1  ;;  %4895 = vmatpush1.bf16.msra.mxu0 %v8367_v28 }
 0x221   : > { %v3836_v29 = vadd.f32 %v3835_v32, %v3658_v42  ;;  %v447_v50 = vmul.u32 18, %v446_v27  ;;  %v457_v13 = vshrl.u32 %v10558_v2, 4  ;;  %v4157_v22 = vsel %vm10548_vm10, %v10591_v21, 0.0  ;;  %v12950_v42 = vld [vmem:[#allocation22_spill] sm:$0xff]  ;;  %v12956_v32 = vld [vmem:[#allocation24_spill] sm:$0xff]  ;;  %v3671_v59 = vpop.f32.mrb[139].mxu1  ;;  %4896 = vmatprep.subr.bf16.mxu0 %v12897_v14 }
 0x222   : > { %v4191_v55 = vadd.f32 %v4190_v44, %v4156_v33  ;;  %v4268_v1 = vadd.f32 %v4267_v11, %v4233_v25  ;;  %v3844_v15 = vadd.f32 %v7963_v23, %v3666_v31  ;;  %v12952_v27 = vsel %vm10268_vm0, %v12950_v42, %v12951_v16  ;;  %v8359_v44 = vld [vmem:[%s12672_s2 + $0x80] sm:$0xff]   ;;  %v12960_v31 = vld [vmem:[#allocation23_spill] sm:$0xff] }
 0x223   : > { %vm10648_vm9 = vcmp.lt.s32.totalorder %v12952_v27, 16  ;;  %v12953_v2 = vmov 0  ;;  %v10653_v6 = vadd.f32 %v3836_v29, %v12956_v32  ;;  %v3839_v54 = vadd.f32 %v3838_v8, %v3661_v0  ;;  %v12961_v27 = vld [vmem:[#allocation26_spill] sm:$0xff]  ;;  %7985 = vmatprep.subr.bf16.mxu1 %v8359_v44 }
 0x224   : > { %v12954_v2 = vsel %vm10648_vm9, 4294967295, %v12953_v2  ;;  %vm12957_vm10 = vcmp.lt.s32.totalorder %v10451_v49, 0  ;;  %v10664_v23 = vmul.u32.u64.low 3817748708, %v10630_v38  ;;  %v10665_v11 = vmul.u32.u64.high 3817748708, %v10630_v38, %v10664_v23  ;;  %7986 = vmatpush3.bf16.msra.mxu1 %v8359_v44 }
 0x225   : > { %12955 = vst [vmem:[#allocation3_spill] sm:$0xff] %v12954_v2  ;;  %vm10659_vm8 = vmand %vm12957_vm10, %vm623_vm12  ;;  %v4269_v25 = vadd.f32 %v4268_v1, %v4234_v30  ;;  %v10671_v0 = vadd.f32 %v3844_v15, %v12960_v31  ;;  %v3847_v29 = vadd.f32 %v7964_v43, %v3669_v4  ;;  %v10674_v8 = vadd.s32 200, %v9697_v56  ;;  %v8369_v4 = vld [vmem:[%s12672_s2 + $0x38] sm:$0xff]   ;;  %v12966_v1 = vld [vmem:[#allocation25_spill] sm:$0xff]  ;;  %v3674_v23 = vpop.f32.mrb[140].mxu1 }
 0x226   : > { %v4235_v20 = vmul.f32 %v4157_v22, %v4157_v22  ;;  %v4158_v42 = vsel %vm10581_vm1, %v10653_v6, 0.0  ;;  %v4192_v16 = vadd.f32 %v4191_v55, %v4157_v22  ;;  %v10681_v32 = vadd.f32 %v3839_v54, %v12961_v27  ;;  %4897 = vmatpush1.bf16.msra.mxu0 %v8369_v4  ;;  %v3676_v59 = vpop.f32.mrb[141].mxu1 }
 0x227   : > { %v767_v30 = vsel %vm10659_vm8, %v10623_v47, %v10451_v49  ;;  %vm624_vm0 = vcmp.ne.s32.totalorder %v10627_v40, 0  ;;  %vm660_vm10 = vcmp.lt.s32.totalorder %v10627_v40, 0  ;;  %v468_v43 = vshrl.u32 %v10611_v19, 4  ;;  %v10705_v47 = vpop.f32.mrb[124].mxu0  ;;  %4898 = vmatprep.subr.bf16.mxu0 %v12897_v14  ;;  %v3677_v27 = vpop.f32.mrb[142].mxu1  ;;  %v8371_v59 = vld [vmem:[%s12672_s2 + $0x48] sm:$0xff]  }
 0x228   : > { %v4236_v28 = vmul.f32 %v4158_v42, %v4158_v42  ;;  %v4270_v54 = vadd.f32 %v4269_v25, %v4235_v20  ;;  %v12962_v22 = vsel %vm10336_vm14, %v10319_v17, %v10226_v26  ;;  %v12963_v55 = vmov 0  ;;  %v3851_v19 = vpop.f32.mrb[125].mxu0 }
 0x229   : > { %vm10698_vm12 = vcmp.lt.s32.totalorder %v12962_v22, 16  ;;  %v10703_v49 = vadd.f32 %v3847_v29, %v12966_v1  ;;  %v10708_v15 = vsub.s32 %v10374_v34, %v447_v50  ;;  %v4159_v58 = vsel %vm10605_vm15, %v10681_v32, 0.0  ;;  %v10727_v44 = vpop.f32.mrb[126].mxu0  ;;  %v12971_v22 = vld [vmem:[#allocation28_spill] sm:$0xff] }
 0x22a   : > { %v12964_v55 = vsel %vm10698_vm12, 4294967295, %v12963_v55  ;;  %v10714_v26 = vadd.s32 18, %v10627_v40  ;;  %v458_v17 = vmul.u32 18, %v457_v13  ;;  %v4193_v33 = vadd.f32 %v4192_v16, %v4158_v42  ;;  %4899 = vmatpush1.bf16.msra.mxu0 %v8370_v52 }
 0x22b   : > { %12965 = vst [vmem:[#allocation5_spill] sm:$0xff] %v12964_v55  ;;  %v12967_v34 = vsel %vm10481_vm2, %v10440_v46, %v10344_v63  ;;  %v12968_v50 = vmov 0  ;;  %v10730_v25 = vmul.u32.u64.low 3817748708, %v10674_v8  ;;  %v10731_v31 = vmul.u32.u64.high 3817748708, %v10674_v8, %v10730_v25  ;;  %v3854_v63 = vpop.f32.mrb[127].mxu0  ;;  %vm10754_vm2 = vmand %vm660_vm10, %vm624_vm0  ;;  %4900 = vmatprep.subr.bf16.mxu0 %v12897_v14 }
 0x22c   : > { %vm10723_vm14 = vcmp.lt.s32.totalorder %v12967_v34, 16  ;;  %v10734_v13 = vadd.s32 208, %v9697_v56  ;;  %v3852_v29 = vadd.f32 %v3851_v19, %v3674_v23  ;;  %v10741_v46 = vadd.s32 18, %v10633_v39  ;;  %v3679_v23 = vpop.f32.mrb[143].mxu1 }
 0x22d   : > { %v12969_v50 = vsel %vm10723_vm14, 4294967295, %v12968_v50  ;;  %v10744_v20 = vadd.s32 216, %v9697_v56  ;;  %v4271_v42 = vadd.f32 %v4270_v54, %v4236_v28  ;;  %v4237_v16 = vmul.f32 %v4159_v58, %v4159_v58 }
 0x22e   : > { %12970 = vst [vmem:[#allocation4_spill] sm:$0xff] %v12969_v50  ;;  %v469_v4 = vmul.u32 18, %v468_v43  ;;  %v10748_v1 = vadd.f32 %v3852_v29, %v12971_v22  ;;  %v3855_v19 = vadd.f32 %v3854_v63, %v3677_v27  ;;  %vm662_vm15 = vcmp.lt.s32.totalorder %v10708_v15, 0  ;;  %v8363_v43 = vld [vmem:[%s12672_s2 + $0x88] sm:$0xff]   ;;  %4901 = vmatpush1.bf16.msra.mxu0 %v8371_v59 }
 0x22f   : > { %v479_v28 = vshrl.u32 %v10665_v11, 4  ;;  %v4194_v54 = vadd.f32 %v4193_v33, %v4159_v58  ;;  %vm12974_vm8 = vcmp.ne.s32.totalorder %v10633_v39, 0  ;;  %vm12975_vm1 = vcmp.lt.s32.totalorder %v10633_v39, 0  ;;  %v12978_v33 = vld [vmem:[#allocation29_spill] sm:$0xff]  ;;  %7987 = vmatprep.subr.bf16.mxu1 %v8363_v43  ;;  %4902 = vmatprep.subr.bf16.mxu0 %v12897_v14 }
 0x230   : > { %vm10768_vm11 = vmand %vm12975_vm1, %vm12974_vm8  ;;  %v10773_v52 = vsub.s32 %v10410_v24, %v458_v17  ;;  %v10776_v11 = vmul.u32.u64.low 3817748708, %v10734_v13  ;;  %v10777_v29 = vmul.u32.u64.high 3817748708, %v10734_v13, %v10776_v11  ;;  %v4160_v58 = vsel %vm10648_vm9, %v10671_v0, 0.0  ;;  %7988 = vmatpush3.bf16.msra.mxu1 %v8363_v43 }
 0x231   : > { %v10786_v63 = vadd.f32 %v3855_v19, %v12978_v33  ;;  %v10789_v27 = vmul.u32.u64.low 3817748708, %v10744_v20  ;;  %v10790_v22 = vmul.u32.u64.high 3817748708, %v10744_v20, %v10789_v27  ;;  %v4272_v24 = vadd.f32 %v4271_v42, %v4237_v16  ;;  %v10805_v19 = vpop.f32.mrb[128].mxu0 }
 0x232   : > { %v12979_v17 = vsel %vm10518_vm7, %v10448_v57, %v10371_v10  ;;  %v12980_v23 = vmov 0  ;;  %vm10801_vm0 = vcmp.lt.s32.totalorder %v767_v30, 16  ;;  %v12983_v11 = vmov 0  ;;  %v10818_v37 = vpop.f32.mrb[129].mxu0 }
 0x233   : > { %vm10797_vm1 = vcmp.lt.s32.totalorder %v12979_v17, 16  ;;  %v12984_v11 = vsel %vm10801_vm0, 4294967295, %v12983_v11  ;;  %v10808_v33 = vadd.s32 18, %v10708_v15  ;;  %v768_v10 = vsel %vm10754_vm2, %v10714_v26, %v10627_v40  ;;  %v8368_v40 = vld [vmem:[%s12672_s2 + $0x90] sm:$0xff]   ;;  %v10835_v34 = vpop.f32.mrb[130].mxu0 }
 0x234   : > { %v12981_v23 = vsel %vm10797_vm1, 4294967295, %v12980_v23  ;;  %12985 = vst [vmem:[#allocation6_spill] sm:$0xff] %v12984_v11  ;;  %v769_v57 = vsel %vm10768_vm11, %v10741_v46, %v10633_v39  ;;  %vm12986_vm7 = vcmp.ne.s32.totalorder %v10708_v15, 0  ;;  %v10829_v42 = vsub.s32 %v10568_v61, %v469_v4  ;;  %v3682_v46 = vpop.f32.mrb[144].mxu1  ;;  %v8372_v61 = vld [vmem:[%s12672_s2 + $0x50] sm:$0xff]   ;;  %v10846_v59 = vpop.f32.mrb[131].mxu0  ;;  %7989 = vmatprep.subr.bf16.mxu1 %v8368_v40 }
 0x235   : > { %12982 = vst [vmem:[#allocation8_spill] sm:$0xff] %v12981_v23  ;;  %vm10824_vm10 = vmand %vm662_vm15, %vm12986_vm7  ;;  %v480_v16 = vmul.u32 18, %v479_v28  ;;  %v4238_v39 = vmul.f32 %v4160_v58, %v4160_v58  ;;  %v4195_v26 = vadd.f32 %v4194_v54, %v4160_v58  ;;  %vm627_vm11 = vcmp.ne.s32.totalorder %v10773_v52, 0  ;;  %v3684_v25 = vpop.f32.mrb[145].mxu1  ;;  %7990 = vmatpush3.bf16.msra.mxu1 %v8368_v40  ;;  %4903 = vmatpush1.bf16.msra.mxu0 %v8372_v61  ;;  %v3948_v40 = vld [vmem:[#allocation2 + $0xa8] sm:$0xff]  ;;  %v3949_v23 = vld [vmem:[#allocation2 + $0xb0] sm:$0xff] }
 0x236   : > { %v490_v43 = vshrl.u32 %v10731_v31, 4  ;;  %v4161_v4 = vsel %vm10698_vm12, %v10703_v49, 0.0  ;;  %v3860_v28 = vadd.f32 %v10705_v47, %v3682_v46  ;;  %vm663_vm15 = vcmp.lt.s32.totalorder %v10773_v52, 0  ;;  %v3685_v27 = vpop.f32.mrb[146].mxu1  ;;  %4904 = vmatprep.subr.bf16.mxu0 %v12897_v14  ;;  %v3950_v11 = vld [vmem:[#allocation2 + $0xb8] sm:$0xff] }
 0x237   : > { %v10850_v54 = vadd.s32 224, %v9697_v56  ;;  %v4273_v31 = vadd.f32 %v4272_v24, %v4238_v39  ;;  %vm10852_vm8 = vcmp.lt.s32.totalorder %v768_v10, 16  ;;  %v12989_v58 = vmov 0  ;;  %v3687_v10 = vpop.f32.mrb[147].mxu1 }
 0x238   : > { %v12990_v58 = vsel %vm10852_vm8, 4294967295, %v12989_v58  ;;  %v770_v47 = vsel %vm10824_vm10, %v10808_v33, %v10708_v15  ;;  %v735_v17 = vadd.s32 18, %v10773_v52  ;;  %v4162_v46 = vsel %vm10723_vm14, %v10748_v1, 0.0  ;;  %v8373_v15 = vld [vmem:[%s12672_s2 + $0x98] sm:$0xff]   ;;  %vm10881_vm10 = vmand %vm663_vm15, %vm627_vm11  ;;  %v3690_v55 = vpop.f32.mrb[148].mxu1 }
 0x239   : > { %12991 = vst [vmem:[#allocation9_spill] sm:$0xff] %v12990_v58  ;;  %v3863_v24 = vadd.f32 %v10727_v44, %v3685_v27  ;;  %vm628_vm2 = vcmp.ne.s32.totalorder %v10829_v42, 0  ;;  %v10867_v39 = vsub.s32 %v10630_v38, %v480_v16  ;;  %v4239_v33 = vmul.f32 %v4161_v4, %v4161_v4  ;;  %7991 = vmatprep.subr.bf16.mxu1 %v8373_v15  ;;  %v3952_v58 = vld [vmem:[#allocation2 + $0xc8] sm:$0xff] }
 0x23a   : > { %v4196_v30 = vadd.f32 %v4195_v26, %v4161_v4  ;;  %vm10873_vm7 = vcmp.lt.s32.totalorder %v769_v57, 16  ;;  %v12992_v61 = vmov 0  ;;  %v491_v44 = vmul.u32 18, %v490_v43  ;;  %v8374_v26 = vld [vmem:[%s12672_s2 + $0x58] sm:$0xff]   ;;  %7992 = vmatpush3.bf16.msra.mxu1 %v8373_v15 }
 0x23b   : > { %v12993_v61 = vsel %vm10873_vm7, 4294967295, %v12992_v61  ;;  %v501_v16 = vshrl.u32 %v10777_v29, 4  ;;  %v10889_v4 = vadd.f32 %v3948_v40, %v3860_v28  ;;  %v512_v57 = vshrl.u32 %v10790_v22, 4  ;;  %v10900_v29 = vpop.f32.mrb[132].mxu0  ;;  %4905 = vmatpush1.bf16.msra.mxu0 %v8374_v26  ;;  %v8375_v22 = vld [vmem:[%s12672_s2 + $0x60] sm:$0xff]   ;;  %v8378_v26 = vld [vmem:[%s12672_s2 + $0xa8] sm:$0xff]  }
 0x23c   : > { %12994 = vst [vmem:[#allocation7_spill] sm:$0xff] %v12993_v61  ;;  %v10893_v25 = vmul.u32.u64.low 3817748708, %v10850_v54  ;;  %v10894_v27 = vmul.u32.u64.high 3817748708, %v10850_v54, %v10893_v25  ;;  %v4240_v10 = vmul.f32 %v4162_v46, %v4162_v46  ;;  %v4274_v50 = vadd.f32 %v4273_v31, %v4239_v33  ;;  %v8376_v28 = vld [vmem:[%s12672_s2 + $0xa0] sm:$0xff]   ;;  %v10915_v15 = vpop.f32.mrb[133].mxu0  ;;  %4906 = vmatprep.subr.bf16.mxu0 %v12897_v14 }
 0x23d   : > { %v10898_v43 = vadd.s32 18, %v10829_v42  ;;  %v4163_v31 = vsel %vm10797_vm1, %v10786_v63, 0.0  ;;  %v771_v33 = vsel %vm10881_vm10, %v735_v17, %v10773_v52  ;;  %v10918_v40 = vadd.s32 232, %v9697_v56  ;;  %v10929_v52 = vpop.f32.mrb[134].mxu0  ;;  %7993 = vmatprep.subr.bf16.mxu1 %v8376_v28 }
 0x23e   : > { %v4197_v25 = vadd.f32 %v4196_v30, %v4162_v46  ;;  %vm10924_vm11 = vcmp.lt.s32.totalorder %v770_v47, 16  ;;  %v12997_v2 = vmov 0  ;;  %v10932_v17 = vsub.s32 %v10674_v8, %v491_v44  ;;  %v3692_v30 = vpop.f32.mrb[149].mxu1  ;;  %v10948_v8 = vpop.f32.mrb[135].mxu0  ;;  %7994 = vmatpush3.bf16.msra.mxu1 %v8376_v28 }
 0x23f   : > { %v12998_v2 = vsel %vm10924_vm11, 4294967295, %v12997_v2  ;;  %v502_v38 = vmul.u32 18, %v501_v16  ;;  %v4164_v3 = vsel %vm10801_vm0, %v10889_v4, 0.0  ;;  %v10937_v46 = vadd.f32 %v3949_v23, %v3863_v24  ;;  %v3693_v53 = vpop.f32.mrb[150].mxu1  ;;  %4907 = vmatpush1.bf16.msra.mxu0 %v8375_v22  ;;  %7995 = vmatprep.subr.bf16.mxu1 %v8378_v26  ;;  %v8380_v22 = vld [vmem:[%s12672_s2 + $0xb0] sm:$0xff]   ;;  %v10995_v12 = vpop.f32.mrb[136].mxu0 }
 0x240   : > { %12999 = vst [vmem:[#allocation13_spill] sm:$0xff] %v12998_v2  ;;  %v3868_v47 = vadd.f32 %v10818_v37, %v3690_v55  ;;  %vm13000_vm10 = vcmp.lt.s32.totalorder %v10829_v42, 0  ;;  %v513_v44 = vmul.u32 18, %v512_v57  ;;  %v4275_v16 = vadd.f32 %v4274_v50, %v4240_v10  ;;  %v8377_v37 = vld [vmem:[%s12672_s2 + $0x68] sm:$0xff]   ;;  %v3695_v57 = vpop.f32.mrb[151].mxu1  ;;  %4908 = vmatprep.subr.bf16.mxu0 %v12897_v14  ;;  %v3953_v2 = vld [vmem:[#allocation2 + $0xd0] sm:$0xff] }
 0x241   : > { %vm10944_vm15 = vmand %vm13000_vm10, %vm628_vm2  ;;  %v4241_v9 = vmul.f32 %v4163_v31, %v4163_v31  ;;  %vm10950_vm0 = vcmp.lt.s32.totalorder %v771_v33, 16  ;;  %v13003_v23 = vmov 0  ;;  %v10955_v55 = vadd.s32 18, %v10867_v39 }
 0x242   : > { %v13004_v23 = vsel %vm10950_vm0, 4294967295, %v13003_v23  ;;  %v10960_v24 = vadd.f32 %v3950_v11, %v3868_v47  ;;  %v3871_v50 = vadd.f32 %v10846_v59, %v3693_v53  ;;  %v4198_v28 = vadd.f32 %v4197_v25, %v4163_v31  ;;  %v3951_v11 = vld [vmem:[#allocation2 + $0xc0] sm:$0xff]  ;;  %7996 = vmatpush3.bf16.msra.mxu1 %v8378_v26  ;;  %v8381_v26 = vld [vmem:[%s12672_s2 + $0xb8] sm:$0xff]  }
 0x243   : > { %13005 = vst [vmem:[#allocation22_spill] sm:$0xff] %v13004_v23  ;;  %v10964_v10 = vmul.u32.u64.low 3817748708, %v10918_v40  ;;  %v10965_v33 = vmul.u32.u64.high 3817748708, %v10918_v40, %v10964_v10  ;;  %v4242_v30 = vmul.f32 %v4164_v3, %v4164_v3  ;;  %vm13007_vm2 = vcmp.ne.s32.totalorder %v10867_v39, 0  ;;  %4909 = vmatpush1.bf16.msra.mxu0 %v8377_v37  ;;  %7997 = vmatprep.subr.bf16.mxu1 %v8380_v22  ;;  %v3954_v23 = vld [vmem:[#allocation2 + $0xd8] sm:$0xff] }
 0x244   : > { %13006 = vst [vmem:[#allocation10_spill] sm:$0xff] %v10960_v24  ;;  %vm13008_vm10 = vcmp.lt.s32.totalorder %v10867_v39, 0  ;;  %v10984_v59 = vsub.s32 %v10734_v13, %v502_v38  ;;  %v4165_v31 = vsel %vm10852_vm8, %v10937_v46, 0.0  ;;  %vm630_vm14 = vcmp.ne.s32.totalorder %v10932_v17, 0  ;;  %v8379_v38 = vld [vmem:[%s12672_s2 + $0x70] sm:$0xff]   ;;  %4910 = vmatprep.subr.bf16.mxu0 %v12897_v14 }
 0x245   : > { %vm10979_vm1 = vmand %vm13008_vm10, %vm13007_vm2  ;;  %v10991_v25 = vsub.s32 %v10744_v20, %v513_v44  ;;  %v523_v47 = vshrl.u32 %v10894_v27, 4  ;;  %v4276_v57 = vadd.f32 %v4275_v16, %v4241_v9  ;;  %v4199_v10 = vadd.f32 %v4198_v28, %v4164_v3  ;;  %v11013_v44 = vpop.f32.mrb[137].mxu0 }
 0x246   : > { %v10998_v13 = vadd.s32 240, %v9697_v56  ;;  %v4166_v20 = vsel %vm10873_vm7, %v10960_v24, 0.0  ;;  %v11006_v9 = vadd.f32 %v3951_v11, %v3871_v50  ;;  %v773_v3 = vsel %vm10979_vm1, %v10955_v55, %v10867_v39  ;;  %v3698_v50 = vpop.f32.mrb[152].mxu1  ;;  %v11021_v28 = vpop.f32.mrb[138].mxu0  ;;  %7998 = vmatpush3.bf16.msra.mxu1 %v8380_v22  ;;  %v11056_v22 = vld [vmem:[%s12672_s2 + $0x140] sm:$0xff]  }
 0x247   : > { %v738_v27 = vadd.s32 18, %v10932_v17  ;;  %v4277_v16 = vadd.f32 %v4276_v57, %v4242_v30  ;;  %v4243_v37 = vmul.f32 %v4165_v31, %v4165_v31  ;;  %vm631_vm10 = vcmp.ne.s32.totalorder %v10984_v59, 0  ;;  %v3700_v55 = vpop.f32.mrb[153].mxu1  ;;  %v11034_v53 = vpop.f32.mrb[139].mxu0  ;;  %4911 = vmatpush1.bf16.msra.mxu0 %v8379_v38  ;;  %7999 = vmatprep.subr.bf16.mxu1 %v8381_v26  ;;  %13014 = vst [vmem:[#allocation24_spill] sm:$0xff] %v11056_v22 }
 0x248   : > { %vm667_vm2 = vcmp.lt.s32.totalorder %v10984_v59, 0  ;;  %v3876_v39 = vadd.f32 %v10805_v19, %v3698_v50  ;;  %vm13011_vm1 = vcmp.lt.s32.totalorder %v10932_v17, 0  ;;  %vm632_vm8 = vcmp.ne.s32.totalorder %v10991_v25, 0  ;;  %v3701_v19 = vpop.f32.mrb[154].mxu1  ;;  %4912 = vmatprep.subr.bf16.mxu0 %v12897_v14 }
 0x249   : > { %vm11028_vm7 = vmand %vm13011_vm1, %vm630_vm14  ;;  %vm668_vm12 = vcmp.lt.s32.totalorder %v10991_v25, 0  ;;  %v524_v30 = vmul.u32 18, %v523_v47  ;;  %v4200_v57 = vadd.f32 %v4199_v10, %v4165_v31  ;;  %v4244_v61 = vmul.f32 %v4166_v20, %v4166_v20  ;;  %v3703_v10 = vpop.f32.mrb[155].mxu1 }
 0x24a   : > { %v11037_v50 = vmul.u32.u64.low 3817748708, %v10998_v13  ;;  %v11038_v55 = vmul.u32.u64.high 3817748708, %v10998_v13, %v11037_v50  ;;  %v4167_v47 = vsel %vm10924_vm11, %v11006_v9, 0.0  ;;  %v11046_v51 = vadd.f32 %v3952_v58, %v3876_v39  ;;  %vm11071_vm14 = vmand %vm667_vm2, %vm631_vm10  ;;  %8000 = vmatpush3.bf16.msra.mxu1 %v8381_v26 }
 0x24b   : > { %v3879_v31 = vadd.f32 %v10835_v34, %v3701_v19  ;;  %v11050_v24 = vadd.s32 248, %v9697_v56  ;;  %v4278_v38 = vadd.f32 %v4277_v16, %v4243_v37  ;;  %v4201_v50 = vadd.f32 %v4200_v57, %v4166_v20  ;;  %vm11092_vm2 = vmand %vm668_vm12, %vm632_vm8  ;;  %4913 = vmatpush1.bf16.msra.mxu0 %v8382_v60  ;;  %5627 = vmatprep.subr.bf16.mxu1 %v12897_v14 }
 0x24c   : > { %v774_v58 = vsel %vm11028_vm7, %v738_v27, %v10932_v17  ;;  %v739_v34 = vadd.s32 18, %v10984_v59  ;;  %v4168_v39 = vsel %vm10950_vm0, %v11046_v51, 0.0  ;;  %v11076_v20 = vadd.s32 18, %v10991_v25  ;;  %8037 = vmatprep.subr.bf16.mxu0 %v11056_v22 }
 0x24d   : > { %v11065_v19 = vadd.f32 %v3953_v2, %v3879_v31  ;;  %v534_v17 = vshrl.u32 %v10965_v33, 4  ;;  %v4279_v27 = vadd.f32 %v4278_v38, %v4244_v61  ;;  %v4245_v37 = vmul.f32 %v4167_v47, %v4167_v47  ;;  %v11099_v33 = vpop.f32.mrb[140].mxu0 }
 0x24e   : > { %v13017_v2 = vsel %vm10944_vm15, %v10898_v43, %v10829_v42  ;;  %v13018_v11 = vmov 0  ;;  %v11097_v61 = vsub.s32 %v10850_v54, %v524_v30  ;;  %vm11101_vm15 = vcmp.lt.s32.totalorder %v773_v3, 16  ;;  %v11113_v10 = vpop.f32.mrb[141].mxu0  ;;  %v3706_v3 = vpop.f32.mrb[156].mxu1 }
 0x24f   : > { %vm11084_vm7 = vcmp.lt.s32.totalorder %v13017_v2, 16  ;;  %v13023_v35 = vmov 0  ;;  %vm11105_vm10 = vcmp.lt.s32.totalorder %v774_v58, 16  ;;  %v13026_v42 = vmov 0  ;;  %v11123_v38 = vpop.f32.mrb[142].mxu0 }
 0x250   : > { %v13019_v11 = vsel %vm11084_vm7, 4294967295, %v13018_v11  ;;  %v13024_v35 = vsel %vm11101_vm15, 4294967295, %v13023_v35  ;;  %v13027_v42 = vsel %vm11105_vm10, 4294967295, %v13026_v42  ;;  %v4202_v60 = vadd.f32 %v4201_v50, %v4167_v47  ;;  %v11133_v16 = vpop.f32.mrb[143].mxu0 }
 0x251   : > { %13020 = vst [vmem:[#allocation23_spill] sm:$0xff] %v13019_v11  ;;  %13025 = vst [vmem:[#allocation26_spill] sm:$0xff] %v13024_v35  ;;  %v11110_v43 = vmul.u32.u64.low 3817748708, %v11050_v24  ;;  %v11111_v31 = vmul.u32.u64.high 3817748708, %v11050_v24, %v11110_v43  ;;  %v4246_v54 = vmul.f32 %v4168_v39, %v4168_v39  ;;  %v775_v26 = vsel %vm11071_vm14, %v739_v34, %v10984_v59 }
 0x252   : > { %13028 = vst [vmem:[#allocation25_spill] sm:$0xff] %v13027_v42  ;;  %v11121_v30 = vadd.s32 256, %v9697_v56  ;;  %v4169_v58 = vsel %vm11084_vm7, %v11065_v19, 0.0  ;;  %v3884_v2 = vadd.f32 %v10915_v15, %v3706_v3  ;;  %v3708_v43 = vpop.f32.mrb[157].mxu1  ;;  %v776_v47 = vsel %vm11092_vm2, %v11076_v20, %v10991_v25 }
 0x253   : > { %v535_v50 = vmul.u32 18, %v534_v17  ;;  %v4280_v59 = vadd.f32 %v4279_v27, %v4245_v37  ;;  %v4203_v34 = vadd.f32 %v4202_v60, %v4168_v39  ;;  %v3709_v14 = vpop.f32.mrb[158].mxu1  ;;  %vm633_vm12 = vcmp.ne.s32.totalorder %v11097_v61, 0  ;;  %v3955_v27 = vld [vmem:[#allocation2 + $0xe0] sm:$0xff] }
 0x254   : > { %v11137_v11 = vadd.s32 264, %v9697_v56  ;;  %v11139_v22 = vadd.f32 %v3954_v23, %v3884_v2  ;;  %v3887_v15 = vadd.f32 %v10948_v8, %v3709_v14  ;;  %v3711_v3 = vpop.f32.mrb[159].mxu1  ;;  %vm669_vm8 = vcmp.lt.s32.totalorder %v11097_v61, 0 }
 0x255   : > { %v545_v25 = vshrl.u32 %v11038_v55, 4  ;;  %v4281_v20 = vadd.f32 %v4280_v59, %v4246_v54  ;;  %v4247_v17 = vmul.f32 %v4169_v58, %v4169_v58  ;;  %v741_v14 = vadd.s32 18, %v11097_v61  ;;  %vm11159_vm1 = vmand %vm669_vm8, %vm633_vm12 }
 0x256   : > { %v11145_v39 = vmul.u32.u64.low 3817748708, %v11121_v30  ;;  %v11146_v37 = vmul.u32.u64.high 3817748708, %v11121_v30, %v11145_v39  ;;  %v4170_v57 = vsel %vm11101_vm15, %v11139_v22, 0.0  ;;  %v11151_v23 = vadd.f32 %v3955_v27, %v3887_v15 }
 0x257   : > { %v11155_v8 = vsub.s32 %v10918_v40, %v535_v50  ;;  %v4204_v60 = vadd.f32 %v4203_v34, %v4169_v58  ;;  %v4248_v55 = vmul.f32 %v4170_v57, %v4170_v57  ;;  %v556_v15 = vshrl.u32 %v11111_v31, 4  ;;  %v3714_v34 = vpop.f32.mrb[160].mxu1 }
 0x258   : > { %v11164_v2 = vmul.u32.u64.low 3817748708, %v11137_v11  ;;  %v11165_v43 = vmul.u32.u64.high 3817748708, %v11137_v11, %v11164_v2  ;;  %v4171_v59 = vsel %vm11105_vm10, %v11151_v23, 0.0  ;;  %v4282_v40 = vadd.f32 %v4281_v20, %v4247_v17  ;;  %v3716_v39 = vpop.f32.mrb[161].mxu1  ;;  %v3956_v17 = vld [vmem:[#allocation2 + $0xe8] sm:$0xff] }
 0x259   : > { %v4205_v50 = vadd.f32 %v4204_v60, %v4170_v57  ;;  %vm11171_vm14 = vcmp.lt.s32.totalorder %v775_v26, 16  ;;  %v13031_v58 = vmov 0  ;;  %v546_v3 = vmul.u32 18, %v545_v25  ;;  %v3717_v57 = vpop.f32.mrb[162].mxu1 }
 0x25a   : > { %v13032_v58 = vsel %vm11171_vm14, 4294967295, %v13031_v58  ;;  %v3892_v27 = vadd.f32 %v10900_v29, %v3714_v34  ;;  %vm11176_vm2 = vcmp.lt.s32.totalorder %v776_v47, 16  ;;  %v13034_v35 = vmov 0  ;;  %v3719_v25 = vpop.f32.mrb[163].mxu1 }
 0x25b   : > { %13033 = vst [vmem:[#allocation28_spill] sm:$0xff] %v13032_v58  ;;  %v13035_v35 = vsel %vm11176_vm2, 4294967295, %v13034_v35  ;;  %v777_v2 = vsel %vm11159_vm1, %v741_v14, %v11097_v61  ;;  %v11184_v31 = vadd.s32 272, %v9697_v56  ;;  %v4283_v26 = vadd.f32 %v4282_v40, %v4248_v55  ;;  %v3957_v14 = vld [vmem:[#allocation2 + $0xf0] sm:$0xff] }
 0x25c   : > { %13036 = vst [vmem:[#allocation29_spill] sm:$0xff] %v13035_v35  ;;  %v4249_v20 = vmul.f32 %v4171_v59, %v4171_v59  ;;  %vm634_vm12 = vcmp.ne.s32.totalorder %v11155_v8, 0  ;;  %vm670_vm8 = vcmp.lt.s32.totalorder %v11155_v8, 0  ;;  %v11188_v29 = vadd.f32 %v3956_v17, %v3892_v27 }
 0x25d   : > { %v3895_v47 = vadd.f32 %v10929_v52, %v3717_v57  ;;  %v557_v60 = vmul.u32 18, %v556_v15  ;;  %v11192_v54 = vadd.s32 280, %v9697_v56  ;;  %v4206_v61 = vadd.f32 %v4205_v50, %v4171_v59  ;;  %vm11210_vm1 = vmand %vm670_vm8, %vm634_vm12 }
 0x25e   : > { %v742_v55 = vadd.s32 18, %v11155_v8  ;;  %v547_v40 = vsub.s32 %v10998_v13, %v546_v3  ;;  %v567_v34 = vshrl.u32 %v11146_v37, 4  ;;  %v4172_v27 = vsel %vm11171_vm14, %v11188_v29, 0.0 }
 0x25f   : > { %v11200_v39 = vadd.f32 %v3957_v14, %v3895_v47  ;;  %v11203_v52 = vmul.u32.u64.low 3817748708, %v11184_v31  ;;  %v11204_v15 = vmul.u32.u64.high 3817748708, %v11184_v31, %v11203_v52  ;;  %v4284_v56 = vadd.f32 %v4283_v26, %v4249_v20 }
 0x260   : > { %v4207_v17 = vadd.f32 %v4206_v61, %v4172_v27  ;;  %v4250_v59 = vmul.f32 %v4172_v27, %v4172_v27  ;;  %v578_v37 = vshrl.u32 %v11165_v43, 4  ;;  %v558_v3 = vsub.s32 %v11050_v24, %v557_v60  ;;  %v3722_v61 = vpop.f32.mrb[164].mxu1  ;;  %v3958_v60 = vld [vmem:[#allocation2 + $0xf8] sm:$0xff] }
 0x261   : > { %v4173_v50 = vsel %vm11176_vm2, %v11200_v39, 0.0  ;;  %v11220_v26 = vmul.u32.u64.low 3817748708, %v11192_v54  ;;  %v11221_v20 = vmul.u32.u64.high 3817748708, %v11192_v54, %v11220_v26  ;;  %v568_v14 = vmul.u32 18, %v567_v34  ;;  %v3724_v52 = vpop.f32.mrb[165].mxu1 }
 0x262   : > { %v4285_v57 = vadd.f32 %v4284_v56, %v4250_v59  ;;  %v4208_v47 = vadd.f32 %v4207_v17, %v4173_v50  ;;  %v4251_v25 = vmul.f32 %v4173_v50, %v4173_v50  ;;  %v3900_v27 = vadd.f32 %v11013_v44, %v3722_v61  ;;  %v3725_v56 = vpop.f32.mrb[166].mxu1 }
 0x263   : > { %v778_v43 = vsel %vm11210_vm1, %v742_v55, %v11155_v8  ;;  %vm635_vm12 = vcmp.ne.s32.totalorder %v547_v40, 0  ;;  %vm671_vm8 = vcmp.lt.s32.totalorder %v547_v40, 0  ;;  %vm11227_vm2 = vcmp.lt.s32.totalorder %v777_v2, 16  ;;  %v3727_v34 = vpop.f32.mrb[167].mxu1  ;;  %v3959_v55 = vld [vmem:[#allocation2 + $0x100] sm:$0xff] }
 0x264   : > { %v4286_v35 = vadd.f32 %v4285_v57, %v4251_v25  ;;  %v13039_v24 = vmov 0  ;;  %v743_v17 = vadd.s32 18, %v547_v40  ;;  %v579_v59 = vmul.u32 18, %v578_v37  ;;  %vm11240_vm1 = vmand %vm671_vm8, %vm635_vm12 }
 0x265   : > { %v13040_v24 = vsel %vm11227_vm2, 4294967295, %v13039_v24  ;;  %v11231_v50 = vadd.f32 %v3958_v60, %v3900_v27  ;;  %v3903_v44 = vadd.f32 %v11034_v53, %v3725_v56  ;;  %vm636_vm14 = vcmp.ne.s32.totalorder %v558_v3, 0 }
 0x266   : > { %13041 = vst [vmem:[#allocation36_spill] sm:$0xff] %v13040_v24  ;;  %vm672_vm10 = vcmp.lt.s32.totalorder %v558_v3, 0  ;;  %vm11234_vm15 = vcmp.lt.s32.totalorder %v778_v43, 16  ;;  %v13042_v8 = vmov 0  ;;  %v569_v13 = vsub.s32 %v11121_v30, %v568_v14 }
 0x267   : > { %v13043_v8 = vsel %vm11234_vm15, 4294967295, %v13042_v8  ;;  %v4174_v53 = vsel %vm11227_vm2, %v11231_v50, 0.0  ;;  %v11248_v37 = vadd.f32 %v3959_v55, %v3903_v44  ;;  %v744_v26 = vadd.s32 18, %v558_v3  ;;  %vm11251_vm7 = vmand %vm672_vm10, %vm636_vm14 }
 0x268   : > { %13044 = vst [vmem:[#allocation37_spill] sm:$0xff] %v13043_v8  ;;  %v589_v57 = vshrl.u32 %v11204_v15, 4  ;;  %v4209_v25 = vadd.f32 %v4208_v47, %v4174_v53  ;;  %v4252_v61 = vmul.f32 %v4174_v53, %v4174_v53  ;;  %v580_v52 = vsub.s32 %v11137_v11, %v579_v59  ;;  %v3730_v47 = vpop.f32.mrb[168].mxu1 }
 0x269   : > { %v4175_v30 = vsel %vm11234_vm15, %v11248_v37, 0.0  ;;  %v779_v14 = vsel %vm11240_vm1, %v743_v17, %v547_v40  ;;  %v600_v43 = vshrl.u32 %v11221_v20, 4  ;;  %v3908_v44 = vadd.f32 %v10995_v12, %v3730_v47  ;;  %v3732_v34 = vpop.f32.mrb[169].mxu1  ;;  %v3960_v40 = vld [vmem:[#allocation2 + $0x108] sm:$0xff] }
 0x26a   : > { %v4287_v60 = vadd.f32 %v4286_v35, %v4252_v61  ;;  %v4210_v56 = vadd.f32 %v4209_v25, %v4175_v30  ;;  %v4253_v15 = vmul.f32 %v4175_v30, %v4175_v30  ;;  %v780_v11 = vsel %vm11251_vm7, %v744_v26, %v558_v3  ;;  %v3733_v20 = vpop.f32.mrb[170].mxu1  ;;  %v3961_v26 = vld [vmem:[#allocation2 + $0x110] sm:$0xff] }
 0x26b   : > { %vm673_vm10 = vcmp.lt.s32.totalorder %v569_v13, 0  ;;  %v590_v59 = vmul.u32 18, %v589_v57  ;;  %vm11265_vm14 = vcmp.lt.s32.totalorder %v779_v14, 16  ;;  %v13049_v53 = vmov 0  ;;  %v3735_v12 = vpop.f32.mrb[171].mxu1 }
 0x26c   : > { %v4288_v55 = vadd.f32 %v4287_v60, %v4253_v15  ;;  %v13050_v53 = vsel %vm11265_vm14, 4294967295, %v13049_v53  ;;  %v745_v35 = vadd.s32 18, %v569_v13  ;;  %vm638_vm8 = vcmp.ne.s32.totalorder %v580_v52, 0 }
 0x26d   : > { %13051 = vst [vmem:[#allocation38_spill] sm:$0xff] %v13050_v53  ;;  %v11269_v17 = vadd.f32 %v3960_v40, %v3908_v44  ;;  %v3911_v2 = vadd.f32 %v11021_v28, %v3733_v20  ;;  %vm674_vm1 = vcmp.lt.s32.totalorder %v580_v52, 0  ;;  %v601_v25 = vmul.u32 18, %v600_v43 }
 0x26e   : > { %vm11272_vm12 = vcmp.lt.s32.totalorder %v780_v11, 16  ;;  %v13052_v3 = vmov 0  ;;  %vm13055_vm7 = vcmp.ne.s32.totalorder %v569_v13, 0  ;;  %v746_v28 = vadd.s32 18, %v580_v52  ;;  %vm11289_vm2 = vmand %vm674_vm1, %vm638_vm8 }
 0x26f   : > { %v13053_v3 = vsel %vm11272_vm12, 4294967295, %v13052_v3  ;;  %vm11278_vm15 = vmand %vm673_vm10, %vm13055_vm7  ;;  %v4176_v61 = vsel %vm11265_vm14, %v11269_v17, 0.0  ;;  %v11285_v27 = vadd.f32 %v3961_v26, %v3911_v2  ;;  %v591_v30 = vsub.s32 %v11184_v31, %v590_v59  ;;  %v3738_v31 = vpop.f32.mrb[172].mxu1 }
 0x270   : > { %13054 = vst [vmem:[#allocation39_spill] sm:$0xff] %v13053_v3  ;;  %v4211_v14 = vadd.f32 %v4210_v56, %v4176_v61  ;;  %v4254_v43 = vmul.f32 %v4176_v61, %v4176_v61  ;;  %v781_v47 = vsel %vm11278_vm15, %v745_v35, %v569_v13  ;;  %v602_v44 = vsub.s32 %v11192_v54, %v601_v25  ;;  %v3740_v59 = vpop.f32.mrb[173].mxu1  ;;  %v3962_v13 = vld [vmem:[#allocation2 + $0x118] sm:$0xff] }
 0x271   : > { %v4177_v15 = vsel %vm11272_vm12, %v11285_v27, 0.0  ;;  %v3916_v56 = vadd.f32 %v11113_v10, %v3738_v31  ;;  %v782_v20 = vsel %vm11289_vm2, %v746_v28, %v580_v52  ;;  %vm639_vm10 = vcmp.ne.s32.totalorder %v591_v30, 0  ;;  %v3741_v35 = vpop.f32.mrb[174].mxu1  ;;  %v3963_v52 = vld [vmem:[#allocation2 + $0x120] sm:$0xff] }
 0x272   : > { %v4289_v34 = vadd.f32 %v4288_v55, %v4254_v43  ;;  %v4212_v11 = vadd.f32 %v4211_v14, %v4177_v15  ;;  %v4255_v40 = vmul.f32 %v4177_v15, %v4177_v15  ;;  %vm675_vm8 = vcmp.lt.s32.totalorder %v591_v30, 0  ;;  %v3743_v26 = vpop.f32.mrb[175].mxu1 }
 0x273   : > { %vm11302_vm1 = vcmp.lt.s32.totalorder %v781_v47, 16  ;;  %v13060_v12 = vmov 0  ;;  %v747_v54 = vadd.s32 18, %v591_v30  ;;  %v11306_v55 = vadd.f32 %v3962_v13, %v3916_v56  ;;  %vm11313_vm2 = vmand %vm675_vm8, %vm639_vm10  ;;  %v3746_v56 = vpop.f32.mrb[176].mxu1 }
 0x274   : > { %v4290_v2 = vadd.f32 %v4289_v34, %v4255_v40  ;;  %v13061_v12 = vsel %vm11302_vm1, 4294967295, %v13060_v12  ;;  %v3919_v25 = vadd.f32 %v11133_v16, %v3741_v35  ;;  %vm640_vm15 = vcmp.ne.s32.totalorder %v602_v44, 0 }
 0x275   : > { %13062 = vst [vmem:[#allocation40_spill] sm:$0xff] %v13061_v12  ;;  %vm676_vm7 = vcmp.lt.s32.totalorder %v602_v44, 0  ;;  %vm11309_vm12 = vcmp.lt.s32.totalorder %v782_v20, 16  ;;  %v13063_v10 = vmov 0  ;;  %v4178_v61 = vsel %vm11302_vm1, %v11306_v55, 0.0  ;;  %v3748_v20 = vpop.f32.mrb[177].mxu1 }
 0x276   : > { %v13064_v10 = vsel %vm11309_vm12, 4294967295, %v13063_v10  ;;  %v11320_v28 = vadd.f32 %v3963_v52, %v3919_v25  ;;  %v748_v14 = vadd.s32 18, %v602_v44  ;;  %v4213_v16 = vadd.f32 %v4212_v11, %v4178_v61  ;;  %vm11322_vm14 = vmand %vm676_vm7, %vm640_vm15  ;;  %v3964_v25 = vld [vmem:[#allocation2 + $0x128] sm:$0xff]  ;;  %v3749_v26 = vpop.f32.mrb[178].mxu1 }
 0x277   : > { %13065 = vst [vmem:[#allocation41_spill] sm:$0xff] %v13064_v10  ;;  %v4256_v43 = vmul.f32 %v4178_v61, %v4178_v61  ;;  %v783_v47 = vsel %vm11313_vm2, %v747_v54, %v591_v30  ;;  %v3924_v59 = vadd.f32 %v11099_v33, %v3746_v56  ;;  %v13070_v35 = vmov 0  ;;  %v3965_v33 = vld [vmem:[#allocation2 + $0x130] sm:$0xff] }
 0x278   : > { %v4179_v15 = vsel %vm11309_vm12, %v11320_v28, 0.0  ;;  %v784_v11 = vsel %vm11322_vm14, %v748_v14, %v602_v44  ;;  %vm11334_vm10 = vcmp.lt.s32.totalorder %v783_v47, 16  ;;  %v3927_v30 = vadd.f32 %v11123_v38, %v3749_v26 }
 0x279   : > { %v4291_v34 = vadd.f32 %v4290_v2, %v4256_v43  ;;  %v4214_v40 = vadd.f32 %v4213_v16, %v4179_v15  ;;  %v4257_v31 = vmul.f32 %v4179_v15, %v4179_v15  ;;  %v13071_v35 = vsel %vm11334_vm10, 4294967295, %v13070_v35  ;;  %v3751_v2 = vpop.f32.mrb[179].mxu1 }
 0x27a   : > { %13072 = vst [vmem:[#allocation42_spill] sm:$0xff] %v13071_v35  ;;  %v11338_v52 = vadd.f32 %v3964_v25, %v3924_v59  ;;  %vm11341_vm8 = vcmp.lt.s32.totalorder %v784_v11, 16  ;;  %v13073_v54 = vmov 0  ;;  %v11348_v57 = vadd.f32 %v3965_v33, %v3927_v30 }
 0x27b   : > { %v4292_v13 = vadd.f32 %v4291_v34, %v4257_v31  ;;  %v13074_v54 = vsel %vm11341_vm8, 4294967295, %v13073_v54 }
 0x27c   : > { %13075 = vst [vmem:[#allocation43_spill] sm:$0xff] %v13074_v54  ;;  %v4180_v44 = vsel %vm11334_vm10, %v11338_v52, 0.0  ;;  %v4181_v16 = vsel %vm11341_vm8, %v11348_v57, 0.0 }
 0x27d   : > { %v4215_v61 = vadd.f32 %v4214_v40, %v4180_v44  ;;  %v4258_v14 = vmul.f32 %v4180_v44, %v4180_v44  ;;  %v4259_v60 = vmul.f32 %v4181_v16, %v4181_v16 }
 0x27f   : > { %v4293_v43 = vadd.f32 %v4292_v13, %v4258_v14  ;;  %v4216_v38 = vadd.f32 %v4215_v61, %v4181_v16 }
 0x281   : > { %v4217_v15 = vrot.slane %v4216_v38, 4  ;;  %v4294_v47 = vadd.f32 %v4293_v43, %v4259_v60 }
 0x283   : > { %v4218_v34 = vadd.f32 %v4217_v15, %v4216_v38  ;;  %v4295_v31 = vrot.slane %v4294_v47, 4 }
 0x285   : > { %v4219_v56 = vrot.slane %v4218_v34, 2  ;;  %v4296_v59 = vadd.f32 %v4295_v31, %v4294_v47 }
 0x287   : > { %v4220_v20 = vadd.f32 %v4219_v56, %v4218_v34  ;;  %v4297_v11 = vrot.slane %v4296_v59, 2 }
 0x289   : > { %v4221_v25 = vrot.slane %v4220_v20, 1  ;;  %v4298_v26 = vadd.f32 %v4297_v11, %v4296_v59  ;;  %v8449_v11 = vmov 0.0  }
 0x28a   : > { %4451 = vst [vmem:[#allocation2 + $0x149] sm:$0x3] %v8449_v11 }
 0x28b   : > { %v4222_v30 = vadd.f32 %v4221_v25, %v4220_v20  ;;  %v4299_v40 = vrot.slane %v4298_v26, 1  ;;  %v13076_v25 = vld [vmem:[#allocation17_spill] sm:$0xff] }
 0x28d   : > { %v11353_v2 = vmul.f32 0.00390625, %v4222_v30  ;;  %v4300_v33 = vadd.f32 %v4299_v40, %v4298_v26  ;;  %v13077_v30 = vld [vmem:[#allocation33_spill] sm:$0xff] }
 0x28f   : > { %v4301_v44 = vmul.f32 0.00390625, %v4300_v33  ;;  %v4302_v13 = vmul.f32 %v11353_v2, %v11353_v2  ;;  %v4342_v61 = vsub.f32 %v11348_v57, %v11353_v2  ;;  %v4307_v26 = vsub.f32 %v13076_v25, %v11353_v2  ;;  %v13078_v33 = vld [vmem:[#allocation14_spill] sm:$0xff] }
 0x290   : > { %v4308_v40 = vsub.f32 %v13077_v30, %v11353_v2  ;;  %v4314_v11 = vsub.f32 %v10503_v48, %v11353_v2  ;;  %v4315_v25 = vsub.f32 %v10586_v36, %v11353_v2  ;;  %v4316_v30 = vsub.f32 %v10598_v62, %v11353_v2 }
 0x291   : > { %v4303_v14 = vsub.f32 %v4301_v44, %v4302_v13  ;;  %v4309_v44 = vsub.f32 %v13078_v33, %v11353_v2  ;;  %v4310_v13 = vsub.f32 %v10393_v18, %v11353_v2  ;;  %v4317_v18 = vsub.f32 %v10574_v45, %v11353_v2 }
 0x292   : > { %v4321_v48 = vsub.f32 %v10671_v0, %v11353_v2  ;;  %v4322_v36 = vsub.f32 %v10703_v49, %v11353_v2  ;;  %v4323_v62 = vsub.f32 %v10748_v1, %v11353_v2  ;;  %v4324_v45 = vsub.f32 %v10786_v63, %v11353_v2 }
 0x293   : > { %v4304_v16 = vmax.f32 %v4303_v14, 0.0  ;;  %v4311_v14 = vsub.f32 %v10486_v5, %v11353_v2  ;;  %v4318_v5 = vsub.f32 %v10591_v21, %v11353_v2  ;;  %v4325_v21 = vsub.f32 %v10889_v4, %v11353_v2 }
 0x294   : > { %v4328_v0 = vsub.f32 %v11006_v9, %v11353_v2  ;;  %v4329_v49 = vsub.f32 %v11046_v51, %v11353_v2  ;;  %v4330_v1 = vsub.f32 %v11065_v19, %v11353_v2  ;;  %v4331_v63 = vsub.f32 %v11139_v22, %v11353_v2 }
 0x295   : > { %v4305_v43 = vadd.f32 1e-05, %v4304_v16  ;;  %v4312_v16 = vsub.f32 %v10527_v7, %v11353_v2  ;;  %v4319_v7 = vsub.f32 %v10653_v6, %v11353_v2  ;;  %v4326_v6 = vsub.f32 %v10937_v46, %v11353_v2 }
 0x297   : > { %8431 = vrsqrt.f32 %v4305_v43  ;;  %v4313_v43 = vsub.f32 %v10465_v41, %v11353_v2  ;;  %v4320_v41 = vsub.f32 %v10681_v32, %v11353_v2  ;;  %v13079_v32 = vld [vmem:[#allocation10_spill] sm:$0xff] }
 0x298   : > { %v4327_v33 = vsub.f32 %v13079_v32, %v11353_v2 }
 0x2a1   : > { %v8432_v20 = vpop.eup %8431 }
 0x2a2   : > { %v4378_v4 = vmul.f32 %v8432_v20, %v4342_v61  ;;  %v11429_v59 = vmul.f32 %v8432_v20, %v4307_v26  ;;  %v11431_v46 = vmul.f32 %v8432_v20, %v4308_v40  ;;  %v4345_v56 = vmul.f32 %v8432_v20, %v4309_v44 }
 0x2a3   : > { %v11433_v32 = vmul.f32 %v8432_v20, %v4310_v13  ;;  %v4347_v31 = vmul.f32 %v8432_v20, %v4311_v14  ;;  %v11435_v57 = vmul.f32 %v8432_v20, %v4312_v16  ;;  %v4349_v9 = vmul.f32 %v8432_v20, %v4313_v43 }
 0x2a4   : > { %v4414_v34 = vmax.f32 %v4378_v4, 0.0  ;;  %v4350_v51 = vmul.f32 %v8432_v20, %v4314_v11  ;;  %v4351_v47 = vmul.f32 %v8432_v20, %v4315_v25  ;;  %v4352_v15 = vmul.f32 %v8432_v20, %v4316_v30 }
 0x2a5   : > { %v4353_v19 = vmul.f32 %v8432_v20, %v4317_v18  ;;  %v4354_v60 = vmul.f32 %v8432_v20, %v4318_v5  ;;  %v4355_v38 = vmul.f32 %v8432_v20, %v4319_v7  ;;  %v4356_v22 = vmul.f32 %v8432_v20, %v4320_v41 }
 0x2a6   : > { %4450 = vst [vmem:[#allocation2 + $0x130] sm:$0xff] %v4414_v34  ;;  %v4357_v61 = vmul.f32 %v8432_v20, %v4321_v48  ;;  %v11437_v26 = vmul.f32 %v8432_v20, %v4322_v36  ;;  %v11439_v40 = vmul.f32 %v8432_v20, %v4323_v62  ;;  %v11441_v44 = vmul.f32 %v8432_v20, %v4324_v45 }
 0x2a7   : > { %v11443_v13 = vmul.f32 %v8432_v20, %v4325_v21  ;;  %v11445_v14 = vmul.f32 %v8432_v20, %v4326_v6  ;;  %v11447_v16 = vmul.f32 %v8432_v20, %v4327_v33  ;;  %v11449_v43 = vmul.f32 %v8432_v20, %v4328_v0 }
 0x2a8   : > { %v11451_v11 = vmul.f32 %v8432_v20, %v4329_v49  ;;  %v11453_v25 = vmul.f32 %v8432_v20, %v4330_v1  ;;  %v11455_v34 = vmul.f32 %v8432_v20, %v4331_v63  ;;  %v13080_v30 = vsub.f32 %v11151_v23, %v11353_v2 }
 0x2a9   : > { %v13081_v5 = vsub.f32 %v11188_v29, %v11353_v2  ;;  %v13082_v41 = vsub.f32 %v11200_v39, %v11353_v2  ;;  %v13083_v36 = vsub.f32 %v11231_v50, %v11353_v2  ;;  %v13084_v23 = vsub.f32 %v11248_v37, %v11353_v2 }
 0x2aa   : > { %v11460_v18 = vmul.f32 %v8432_v20, %v13080_v30  ;;  %v13085_v29 = vsub.f32 %v11269_v17, %v11353_v2  ;;  %v13086_v39 = vsub.f32 %v11285_v27, %v11353_v2  ;;  %v13087_v50 = vsub.f32 %v11306_v55, %v11353_v2 }
 0x2ab   : > { %v11465_v7 = vmul.f32 %v8432_v20, %v13081_v5  ;;  %v11470_v48 = vmul.f32 %v8432_v20, %v13082_v41  ;;  %v11475_v62 = vmul.f32 %v8432_v20, %v13083_v36  ;;  %v11480_v45 = vmul.f32 %v8432_v20, %v13084_v23 }
 0x2ac   : > { %v11485_v21 = vmul.f32 %v8432_v20, %v13085_v29  ;;  %v11490_v6 = vmul.f32 %v8432_v20, %v13086_v39  ;;  %v11495_v33 = vmul.f32 %v8432_v20, %v13087_v50  ;;  %v13088_v37 = vsub.f32 %v11320_v28, %v11353_v2 }
 0x2ad   : > { %v13089_v17 = vsub.f32 %v11338_v52, %v11353_v2  ;;  %v4379_v1 = vmax.f32 %v11429_v59, 0.0  ;;  %v4380_v27 = vmax.f32 %v11431_v46, 0.0  ;;  %v4381_v63 = vmax.f32 %v4345_v56, 0.0  ;;  %v4514_v52 = vld [vmem:[#allocation2 + $0x134] sm:$0x1] }
 0x2ae   : > { %v11500_v0 = vmul.f32 %v8432_v20, %v13088_v37  ;;  %v4382_v4 = vmax.f32 %v11433_v32, 0.0  ;;  %v4383_v55 = vmax.f32 %v4347_v31, 0.0  ;;  %v4384_v30 = vmax.f32 %v11435_v57, 0.0  ;;  %4515 = vst [vmem:[#allocation2 + $0x136] sm:$0x1] %v4514_v52 }
 0x2af   : > { %v11505_v49 = vmul.f32 %v8432_v20, %v13089_v17  ;;  %v4385_v5 = vmax.f32 %v4349_v9, 0.0  ;;  %v4386_v41 = vmax.f32 %v4350_v51, 0.0  ;;  %v4387_v28 = vmax.f32 %v4351_v47, 0.0  ;;  %4415 = vst [vmem:[#allocation2 + $0x18] sm:$0xff] %v4379_v1  ;;  %4416 = vst [vmem:[#allocation2 + $0x20] sm:$0xff] %v4380_v27 }
 0x2b0   : > { %v4388_v36 = vmax.f32 %v4352_v15, 0.0  ;;  %v4389_v23 = vmax.f32 %v4353_v19, 0.0  ;;  %4417 = vst [vmem:[#allocation2 + $0x28] sm:$0xff] %v4381_v63  ;;  %v4390_v2 = vmax.f32 %v4354_v60, 0.0  ;;  %v4391_v56 = vmax.f32 %v4355_v38, 0.0  ;;  %4418 = vst [vmem:[#allocation2 + $0x30] sm:$0xff] %v4382_v4 }
 0x2b1   : > { %v4392_v20 = vmax.f32 %v4356_v22, 0.0  ;;  %v4393_v29 = vmax.f32 %v4357_v61, 0.0  ;;  %4419 = vst [vmem:[#allocation2 + $0x38] sm:$0xff] %v4383_v55  ;;  %4420 = vst [vmem:[#allocation2 + $0x40] sm:$0xff] %v4384_v30  ;;  %v4394_v15 = vmax.f32 %v11437_v26, 0.0  ;;  %v4395_v47 = vmax.f32 %v11439_v40, 0.0 }
 0x2b2   : > { %4421 = vst [vmem:[#allocation2 + $0x48] sm:$0xff] %v4385_v5  ;;  %v4396_v31 = vmax.f32 %v11441_v44, 0.0  ;;  %v4397_v60 = vmax.f32 %v11443_v13, 0.0  ;;  %4422 = vst [vmem:[#allocation2 + $0x50] sm:$0xff] %v4386_v41  ;;  %v4398_v38 = vmax.f32 %v11445_v14, 0.0  ;;  %v4399_v9 = vmax.f32 %v11447_v16, 0.0 }
 0x2b3   : > { %4423 = vst [vmem:[#allocation2 + $0x58] sm:$0xff] %v4387_v28  ;;  %4424 = vst [vmem:[#allocation2 + $0x60] sm:$0xff] %v4388_v36  ;;  %v4400_v51 = vmax.f32 %v11449_v43, 0.0  ;;  %v4401_v19 = vmax.f32 %v11451_v11, 0.0  ;;  %v4402_v22 = vmax.f32 %v11453_v25, 0.0  ;;  %v4403_v61 = vmax.f32 %v11455_v34, 0.0 }
 0x2b4   : > { %4425 = vst [vmem:[#allocation2 + $0x68] sm:$0xff] %v4389_v23  ;;  %4426 = vst [vmem:[#allocation2 + $0x70] sm:$0xff] %v4390_v2  ;;  %v4404_v26 = vmax.f32 %v11460_v18, 0.0  ;;  %v4405_v40 = vmax.f32 %v11465_v7, 0.0  ;;  %v4406_v44 = vmax.f32 %v11470_v48, 0.0  ;;  %v4407_v13 = vmax.f32 %v11475_v62, 0.0 }
 0x2b5   : > { %4427 = vst [vmem:[#allocation2 + $0x78] sm:$0xff] %v4391_v56  ;;  %4428 = vst [vmem:[#allocation2 + $0x80] sm:$0xff] %v4392_v20  ;;  %v4408_v14 = vmax.f32 %v11480_v45, 0.0  ;;  %v4409_v16 = vmax.f32 %v11485_v21, 0.0  ;;  %v4410_v43 = vmax.f32 %v11490_v6, 0.0  ;;  %v4411_v11 = vmax.f32 %v11495_v33, 0.0 }
 0x2b6   : > { %4429 = vst [vmem:[#allocation2 + $0x88] sm:$0xff] %v4393_v29  ;;  %4430 = vst [vmem:[#allocation2 + $0x90] sm:$0xff] %v4394_v15  ;;  %v4412_v25 = vmax.f32 %v11500_v0, 0.0  ;;  %v4413_v34 = vmax.f32 %v11505_v49, 0.0  ;;  %v4452_v18 = vld [vmem:[#allocation2 + $0x19] sm:$0x1]  ;;  %v11543_v48 = vpack.c.bf16 %v4380_v27, %v4379_v1 }
 0x2b7   : > { %4431 = vst [vmem:[#allocation2 + $0x98] sm:$0xff] %v4395_v47  ;;  %4432 = vst [vmem:[#allocation2 + $0xa0] sm:$0xff] %v4396_v31  ;;  %v4456_v7 = vld [vmem:[#allocation2 + $0x2b] sm:$0x1]  ;;  %v4454_v21 = vld [vmem:[#allocation2 + $0x26] sm:$0x1] }
 0x2b8   : > { %4433 = vst [vmem:[#allocation2 + $0xa8] sm:$0xff] %v4397_v60  ;;  %4434 = vst [vmem:[#allocation2 + $0xb0] sm:$0xff] %v4398_v38  ;;  %v4458_v62 = vld [vmem:[#allocation2 + $0x38] sm:$0x1]  ;;  %v4460_v39 = vld [vmem:[#allocation2 + $0x3d] sm:$0x1] }
 0x2b9   : > { %4435 = vst [vmem:[#allocation2 + $0xb8] sm:$0xff] %v4399_v9  ;;  %4436 = vst [vmem:[#allocation2 + $0xc0] sm:$0xff] %v4400_v51  ;;  %v4517_v45 = vld [vmem:[#allocation2 + $0x31] sm:$0xff]  ;;  %v4462_v6 = vld [vmem:[#allocation2 + $0x4a] sm:$0x1] }
 0x2ba   : > { %4437 = vst [vmem:[#allocation2 + $0xc8] sm:$0xff] %v4401_v19  ;;  %4438 = vst [vmem:[#allocation2 + $0xd0] sm:$0xff] %v4402_v22  ;;  %v4464_v59 = vld [vmem:[#allocation2 + $0x4f] sm:$0x1]  ;;  %v4466_v46 = vld [vmem:[#allocation2 + $0x5c] sm:$0x1] }
 0x2bb   : > { %4439 = vst [vmem:[#allocation2 + $0xd8] sm:$0xff] %v4403_v61  ;;  %4440 = vst [vmem:[#allocation2 + $0xe0] sm:$0xff] %v4404_v26  ;;  %v4468_v50 = vld [vmem:[#allocation2 + $0x61] sm:$0x1]  ;;  %v4470_v33 = vld [vmem:[#allocation2 + $0x6e] sm:$0x1] }
 0x2bc   : > { %4441 = vst [vmem:[#allocation2 + $0xe8] sm:$0xff] %v4405_v40  ;;  %4442 = vst [vmem:[#allocation2 + $0xf0] sm:$0xff] %v4406_v44  ;;  %v4472_v37 = vld [vmem:[#allocation2 + $0x73] sm:$0x1]  ;;  %v4474_v1 = vld [vmem:[#allocation2 + $0x80] sm:$0x1] }
 0x2bd   : > { %4443 = vst [vmem:[#allocation2 + $0xf8] sm:$0xff] %v4407_v13  ;;  %4444 = vst [vmem:[#allocation2 + $0x100] sm:$0xff] %v4408_v14  ;;  %v4476_v27 = vld [vmem:[#allocation2 + $0x85] sm:$0x1]  ;;  %v4478_v63 = vld [vmem:[#allocation2 + $0x92] sm:$0x1] }
 0x2be   : > { %4445 = vst [vmem:[#allocation2 + $0x108] sm:$0xff] %v4409_v16  ;;  %4446 = vst [vmem:[#allocation2 + $0x110] sm:$0xff] %v4410_v43  ;;  %v4480_v55 = vld [vmem:[#allocation2 + $0x97] sm:$0x1]  ;;  %v4482_v23 = vld [vmem:[#allocation2 + $0xa4] sm:$0x1] }
 0x2bf   : > { %4447 = vst [vmem:[#allocation2 + $0x118] sm:$0xff] %v4411_v11  ;;  %4448 = vst [vmem:[#allocation2 + $0x120] sm:$0xff] %v4412_v25  ;;  %v4639_v15 = vld [vmem:[#allocation2 + $0x1f] sm:$0xff]  ;;  %v4641_v9 = vld [vmem:[#allocation2 + $0x2f] sm:$0xff] }
 0x2c0   : > { %4449 = vst [vmem:[#allocation2 + $0x128] sm:$0xff] %v4413_v34  ;;  %4453 = vst [vmem:[#allocation2 + $0x17] sm:$0x1] %v4452_v18  ;;  %v8384_v47 = vld [vmem:[%s12672_s2 + $0xc0] sm:$0xff]   ;;  %v4484_v51 = vld [vmem:[#allocation2 + $0xa9] sm:$0x1] }
 0x2c1   : > { %4457 = vst [vmem:[#allocation2 + $0x29] sm:$0x1] %v4456_v7  ;;  %4459 = vst [vmem:[#allocation2 + $0x3a] sm:$0x1] %v4458_v62  ;;  %v4585_v38 = vld [vmem:[#allocation2 + $0x1e] sm:$0xff]  ;;  %v8387_v61 = vld [vmem:[%s12672_s2 + $0x148] sm:$0xff]  }
 0x2c2   : > { %4520 = vst [vmem:[#allocation2 + $0xd] sm:$0xff] %v4517_v45  ;;  %4455 = vst [vmem:[#allocation2 + $0x28] sm:$0x1] %v4454_v21  ;;  %v4486_v26 = vld [vmem:[#allocation2 + $0xb6] sm:$0x1]  ;;  %v8385_v44 = vld [vmem:[%s12672_s2 + $0xc8] sm:$0xff]  }
 0x2c3   : > { %4461 = vst [vmem:[#allocation2 + $0x3b] sm:$0x1] %v4460_v39  ;;  %4463 = vst [vmem:[#allocation2 + $0x4c] sm:$0x1] %v4462_v6  ;;  %v4488_v40 = vld [vmem:[#allocation2 + $0xbb] sm:$0x1] }
 0x2c4   : > { %4465 = vst [vmem:[#allocation2 + $0x4d] sm:$0x1] %v4464_v59  ;;  %4467 = vst [vmem:[#allocation2 + $0x5e] sm:$0x1] %v4466_v46  ;;  %v13090_v13 = vld [vmem:[#allocation24_spill] sm:$0xff]  ;;  %v8392_v14 = vld [vmem:[%s12672_s2 + $0x150] sm:$0xff]  }
 0x2c5   : > { %4469 = vst [vmem:[#allocation2 + $0x5f] sm:$0x1] %v4468_v50  ;;  %4471 = vst [vmem:[#allocation2 + $0x70] sm:$0x1] %v4470_v33  ;;  %v4490_v16 = vld [vmem:[#allocation2 + $0xc8] sm:$0x1] }
 0x2c6   : > { %v4523_v0 = vld [vmem:[#allocation2 + $0x11b] sm:$0xff]  ;;  %4473 = vst [vmem:[#allocation2 + $0x71] sm:$0x1] %v4472_v37  ;;  %4475 = vst [vmem:[#allocation2 + $0x82] sm:$0x1] %v4474_v1  ;;  %v13091_v18 = vmov 0  }
 0x2c7   : > { %4526 = vst [vmem:[#allocation2 + $0x13f] sm:$0xff] %v4523_v0  ;;  %4477 = vst [vmem:[#allocation2 + $0x83] sm:$0x1] %v4476_v27  ;;  %v4638_v5 = vld [vmem:[#allocation2 + $0x17] sm:$0xff]  ;;  %v4492_v43 = vld [vmem:[#allocation2 + $0xcd] sm:$0x1] }
 0x2c8   : > { %v4516_v17 = vld [vmem:[#allocation2 + $0x29] sm:$0xff]  ;;  %v4518_v49 = vld [vmem:[#allocation2 + $0x39] sm:$0x3]  ;;  %4479 = vst [vmem:[#allocation2 + $0x94] sm:$0x1] %v4478_v63  ;;  %v11550_v60 = vpack.c.bf16 %v4639_v15, %v4638_v5  ;;  %v4531_v39 = vld [vmem:[#allocation2 + $0x1d] sm:$0xff] }
 0x2c9   : > { %4519 = vst [vmem:[#allocation2 + $0x5] sm:$0xff] %v4516_v17  ;;  %4521 = vst [vmem:[#allocation2 + $0x15] sm:$0x3] %v4518_v49  ;;  %v4640_v41 = vld [vmem:[#allocation2 + $0x27] sm:$0xff]  ;;  %v11548_v31 = vpack.c.bf16 %v4517_v45, %v4516_v17  ;;  %v8386_v62 = vld [vmem:[%s12672_s2 + $0xd0] sm:$0xff]  }
 0x2ca   : > { %4481 = vst [vmem:[#allocation2 + $0x95] sm:$0x1] %v4480_v55  ;;  %4483 = vst [vmem:[#allocation2 + $0xa6] sm:$0x1] %v4482_v23  ;;  %v11552_v22 = vpack.c.bf16 %v4641_v9, %v4640_v41  ;;  %v4642_v25 = vld [vmem:[#allocation2 + $0x37] sm:$0xff]  ;;  %v4586_v34 = vld [vmem:[#allocation2 + $0x26] sm:$0xff] }
 0x2cb   : > { %4485 = vst [vmem:[#allocation2 + $0xa7] sm:$0x1] %v4484_v51  ;;  %4487 = vst [vmem:[#allocation2 + $0xb8] sm:$0x1] %v4486_v26  ;;  %v4644_v7 = vld [vmem:[#allocation2 + $0x47] sm:$0xff]  ;;  %v4643_v6 = vld [vmem:[#allocation2 + $0x3f] sm:$0xff] }
 0x2cc   : > { %4489 = vst [vmem:[#allocation2 + $0xb9] sm:$0x1] %v4488_v40  ;;  %4491 = vst [vmem:[#allocation2 + $0xca] sm:$0x1] %v4490_v16  ;;  %v4494_v45 = vld [vmem:[#allocation2 + $0xda] sm:$0x1]  ;;  %v11571_v50 = vpack.c.bf16 %v4643_v6, %v4642_v25 }
 0x2cd   : > { %4493 = vst [vmem:[#allocation2 + $0xcb] sm:$0x1] %v4492_v43  ;;  %v4496_v21 = vld [vmem:[#allocation2 + $0xdf] sm:$0x1]  ;;  %4495 = vst [vmem:[#allocation2 + $0xdc] sm:$0x1] %v4494_v45 }
 0x2ce   : > { %4497 = vst [vmem:[#allocation2 + $0xdd] sm:$0x1] %v4496_v21  ;;  %v4498_v59 = vld [vmem:[#allocation2 + $0xec] sm:$0x1]  ;;  %v4587_v33 = vld [vmem:[#allocation2 + $0x2e] sm:$0xff]  ;;  %v8398_v1 = vld [vmem:[%s12672_s2 + $0x158] sm:$0xff]  }
 0x2cf   : > { %v4645_v37 = vld [vmem:[#allocation2 + $0x4f] sm:$0xff]  ;;  %4499 = vst [vmem:[#allocation2 + $0xee] sm:$0x1] %v4498_v59  ;;  %v4620_v17 = vpack.c.bf16 %v4587_v33, %v4586_v34  ;;  %v4502_v27 = vld [vmem:[#allocation2 + $0xfe] sm:$0x1]  ;;  %v8403_v23 = vld [vmem:[%s12672_s2 + $0x160] sm:$0xff]  }
 0x2d0   : > { %v4582_v28 = vld [vmem:[#allocation2 + $0x6] sm:$0xff]  ;;  %v4583_v52 = vld [vmem:[#allocation2 + $0xe] sm:$0xff]  ;;  %v4584_v56 = vld [vmem:[#allocation2 + $0x16] sm:$0xff]  ;;  %v11573_v49 = vpack.c.bf16 %v4645_v37, %v4644_v7  ;;  %4503 = vst [vmem:[#allocation2 + $0x100] sm:$0x1] %v4502_v27 }
 0x2d1   : > { %v4636_v36 = vld [vmem:[#allocation2 + $0x7] sm:$0xff]  ;;  %v4637_v2 = vld [vmem:[#allocation2 + $0xf] sm:$0xff]  ;;  %v4618_v20 = vpack.c.bf16 %v4583_v52, %v4582_v28  ;;  %v4619_v19 = vpack.c.bf16 %v4585_v38, %v4584_v56  ;;  %v4504_v63 = vld [vmem:[#allocation2 + $0x103] sm:$0x1] }
 0x2d2   : > { %v4672_v29 = vpack.c.bf16 %v4637_v2, %v4636_v36  ;;  %v4530_v11 = vld [vmem:[#allocation2 + $0x15] sm:$0xff]  ;;  %v4500_v0 = vld [vmem:[#allocation2 + $0xf1] sm:$0x1]  ;;  %4505 = vst [vmem:[#allocation2 + $0x101] sm:$0x1] %v4504_v63  ;;  %v4532_v28 = vld [vmem:[#allocation2 + $0x25] sm:$0xff] }
 0x2d3   : > { %4914 = vmatprep.mubr.bf16.mxu0 %v4618_v20  ;;  %v4565_v46 = vpack.c.bf16 %v4531_v39, %v4530_v11  ;;  %4501 = vst [vmem:[#allocation2 + $0xef] sm:$0x1] %v4500_v0  ;;  %v8388_v55 = vld [vmem:[%s12672_s2 + $0xd8] sm:$0xff]   ;;  %v4506_v5 = vld [vmem:[#allocation2 + $0x110] sm:$0x1]  ;;  %v4648_v51 = vld [vmem:[#allocation2 + $0x67] sm:$0xff] }
 0x2d4   : > { %8001 = vmatprep.mubr.bf16.mxu1 %v4672_v29  ;;  %4915 = vmatmul.mubr.bf16.vlgmr.msra.gmra.mrb[144].mxu0 %v11548_v31  ;;  %v4508_v41 = vld [vmem:[#allocation2 + $0x115] sm:$0x1]  ;;  %v4646_v36 = vld [vmem:[#allocation2 + $0x57] sm:$0xff]  ;;  %4507 = vst [vmem:[#allocation2 + $0x112] sm:$0x1] %v4506_v5  ;;  %v4647_v52 = vld [vmem:[#allocation2 + $0x5f] sm:$0xff] }
 0x2d5   : > { %8002 = vmatmul.mubr.bf16.vlgmr.msra.gmra.mrb[180].mxu1 %v11550_v60  ;;  %4922 = vmatprep.mubr.bf16.mxu0 %v4619_v19  ;;  %4509 = vst [vmem:[#allocation2 + $0x113] sm:$0x1] %v4508_v41  ;;  %v4510_v2 = vld [vmem:[#allocation2 + $0x122] sm:$0x1]  ;;  %v4512_v56 = vld [vmem:[#allocation2 + $0x127] sm:$0x1]  ;;  %v11588_v38 = vpack.c.bf16 %v4647_v52, %v4646_v36 }
 0x2d6   : > { %8005 = vmatprep.mubr.bf16.mxu1 %v11552_v22  ;;  %8038 = vmatpush3.bf16.msra.mxu0 %v13090_v13  ;;  %v4588_v20 = vld [vmem:[#allocation2 + $0x36] sm:$0xff]  ;;  %4511 = vst [vmem:[#allocation2 + $0x124] sm:$0x1] %v4510_v2  ;;  %4513 = vst [vmem:[#allocation2 + $0x125] sm:$0x1] %v4512_v56  ;;  %v4533_v15 = vld [vmem:[#allocation2 + $0x2d] sm:$0xff] }
 0x2d7   : > { %5628 = vmatpush1.bf16.msra.mxu1 %v8384_v47  ;;  %8039 = vmatprep.subr.bf16.mxu0 %v8387_v61  ;;  %v4649_v29 = vld [vmem:[#allocation2 + $0x6f] sm:$0xff]  ;;  %v4566_v47 = vpack.c.bf16 %v4533_v15, %v4532_v28  ;;  %v4589_v9 = vld [vmem:[#allocation2 + $0x3e] sm:$0xff]  ;;  %v4590_v43 = vld [vmem:[#allocation2 + $0x46] sm:$0xff] }
 0x2d8   : > { %5629 = vmatprep.subr.bf16.mxu1 %v13091_v18  ;;  %v8389_v19 = vld [vmem:[%s12672_s2 + $0xe0] sm:$0xff]   ;;  %v11593_v26 = vpack.c.bf16 %v4649_v29, %v4648_v51  ;;  %v8404_v40 = vld [vmem:[%s12672_s2 + $0x168] sm:$0xff]   ;;  %v4534_v13 = vld [vmem:[#allocation2 + $0x35] sm:$0xff] }
 0x2d9   : > { %v8405_v16 = vld [vmem:[%s12672_s2 + $0x170] sm:$0xff]   ;;  %v4535_v25 = vld [vmem:[#allocation2 + $0x3d] sm:$0xff]  ;;  %v4652_v21 = vld [vmem:[#allocation2 + $0x87] sm:$0xff] }
 0x2da   : > { %8040 = vmatpush3.bf16.msra.mxu0 %v8387_v61  ;;  %v4621_v61 = vpack.c.bf16 %v4589_v9, %v4588_v20  ;;  %v4653_v11 = vld [vmem:[#allocation2 + $0x8f] sm:$0xff]  ;;  %v4650_v34 = vld [vmem:[#allocation2 + $0x77] sm:$0xff]  ;;  %v4567_v7 = vpack.c.bf16 %v4535_v25, %v4534_v13  ;;  %v4536_v33 = vld [vmem:[#allocation2 + $0x45] sm:$0xff] }
 0x2db   : > { %5630 = vmatpush1.bf16.msra.mxu1 %v8385_v44  ;;  %8041 = vmatprep.subr.bf16.mxu0 %v8392_v14  ;;  %v8390_v44 = vld [vmem:[%s12672_s2 + $0xe8] sm:$0xff]   ;;  %v8391_v39 = vld [vmem:[%s12672_s2 + $0xf0] sm:$0xff]   ;;  %v11613_v59 = vpack.c.bf16 %v4653_v11, %v4652_v21  ;;  %v4655_v0 = vld [vmem:[#allocation2 + $0x9f] sm:$0xff] }
 0x2dc   : > { %5631 = vmatprep.subr.bf16.mxu1 %v13091_v18  ;;  %4923 = vmatmul.mubr.bf16.gmra.mrb[148].mxu0 %v4565_v46  ;;  %v4591_v45 = vld [vmem:[#allocation2 + $0x4e] sm:$0xff]  ;;  %v8393_v46 = vld [vmem:[%s12672_s2 + $0xf8] sm:$0xff]   ;;  %v8394_v36 = vld [vmem:[%s12672_s2 + $0x100] sm:$0xff]  }
 0x2dd   : > { %8006 = vmatmul.mubr.bf16.gmra.mrb[184].mxu1 %v11571_v50  ;;  %4930 = vmatprep.mubr.bf16.mxu0 %v4620_v17  ;;  %v4622_v6 = vpack.c.bf16 %v4591_v45, %v4590_v43  ;;  %v4537_v37 = vld [vmem:[#allocation2 + $0x4d] sm:$0xff]  ;;  %v4593_v17 = vld [vmem:[#allocation2 + $0x5e] sm:$0xff]  ;;  %v4592_v41 = vld [vmem:[#allocation2 + $0x56] sm:$0xff] }
 0x2de   : > { %8009 = vmatprep.mubr.bf16.mxu1 %v11573_v49  ;;  %8042 = vmatpush3.bf16.msra.mxu0 %v8392_v14  ;;  %v4651_v14 = vld [vmem:[#allocation2 + $0x7f] sm:$0xff]  ;;  %v4654_v63 = vld [vmem:[#allocation2 + $0x97] sm:$0xff]  ;;  %v4657_v28 = vld [vmem:[#allocation2 + $0xaf] sm:$0xff] }
 0x2df   : > { %5632 = vmatpush1.bf16.msra.mxu1 %v8386_v62  ;;  %8043 = vmatprep.subr.bf16.mxu0 %v8398_v1  ;;  %v11608_v62 = vpack.c.bf16 %v4651_v14, %v4650_v34  ;;  %v8406_v27 = vld [vmem:[%s12672_s2 + $0x178] sm:$0xff]   ;;  %v11625_v5 = vpack.c.bf16 %v4655_v0, %v4654_v63  ;;  %v8395_v2 = vld [vmem:[%s12672_s2 + $0x108] sm:$0xff]  }
 0x2e0   : > { %5633 = vmatprep.subr.bf16.mxu1 %v13091_v18  ;;  %v4539_v56 = vld [vmem:[#allocation2 + $0x5d] sm:$0xff]  ;;  %v4595_v29 = vld [vmem:[#allocation2 + $0x6e] sm:$0xff]  ;;  %v4540_v45 = vld [vmem:[#allocation2 + $0x65] sm:$0xff] }
 0x2e1   : > { %v4658_v20 = vld [vmem:[#allocation2 + $0xb7] sm:$0xff]  ;;  %v4660_v15 = vld [vmem:[#allocation2 + $0xc7] sm:$0xff]  ;;  %v4659_v9 = vld [vmem:[#allocation2 + $0xbf] sm:$0xff] }
 0x2e2   : > { %8044 = vmatpush3.bf16.msra.mxu0 %v8398_v1  ;;  %v4656_v1 = vld [vmem:[#allocation2 + $0xa7] sm:$0xff]  ;;  %v4662_v11 = vld [vmem:[#allocation2 + $0xd7] sm:$0xff]  ;;  %v4663_v21 = vld [vmem:[#allocation2 + $0xdf] sm:$0xff] }
 0x2e3   : > { %5634 = vmatpush1.bf16.msra.mxu1 %v8388_v55  ;;  %8045 = vmatprep.subr.bf16.mxu0 %v8403_v23  ;;  %v4568_v55 = vpack.c.bf16 %v4537_v37, %v4536_v33  ;;  %v11630_v52 = vpack.c.bf16 %v4657_v28, %v4656_v1  ;;  %v4541_v43 = vld [vmem:[#allocation2 + $0x6d] sm:$0xff]  ;;  %v4597_v25 = vld [vmem:[#allocation2 + $0x7e] sm:$0xff]  ;;  %v4542_v28 = vld [vmem:[#allocation2 + $0x75] sm:$0xff] }
 0x2e4   : > { %5635 = vmatprep.subr.bf16.mxu1 %v13091_v18  ;;  %4931 = vmatmul.mubr.bf16.gmra.mrb[152].mxu0 %v4566_v47  ;;  %v4538_v47 = vld [vmem:[#allocation2 + $0x55] sm:$0xff]  ;;  %v4664_v34 = vld [vmem:[#allocation2 + $0xe7] sm:$0xff]  ;;  %v4667_v63 = vld [vmem:[#allocation2 + $0xff] sm:$0xff] }
 0x2e5   : > { %8010 = vmatmul.mubr.bf16.gmra.mrb[188].mxu1 %v11588_v38  ;;  %4938 = vmatprep.mubr.bf16.mxu0 %v4621_v61  ;;  %v4569_v51 = vpack.c.bf16 %v4539_v56, %v4538_v47  ;;  %v4594_v61 = vld [vmem:[#allocation2 + $0x66] sm:$0xff]  ;;  %v11667_v1 = vld [vmem:[#allocation2 + $0x113] sm:$0xff] }
 0x2e6   : > { %8013 = vmatprep.mubr.bf16.mxu1 %v11593_v26  ;;  %8046 = vmatpush3.bf16.msra.mxu0 %v8403_v23  ;;  %v4623_v23 = vpack.c.bf16 %v4593_v17, %v4592_v41  ;;  %v4624_v13 = vpack.c.bf16 %v4595_v29, %v4594_v61  ;;  %v8399_v33 = vld [vmem:[%s12672_s2 + $0x120] sm:$0xff]   ;;  %v8400_v17 = vld [vmem:[%s12672_s2 + $0x128] sm:$0xff]   ;;  %4525 = vst [vmem:[#allocation2 + $0x137] sm:$0xff] %v11667_v1  ;;  %v8401_v29 = vld [vmem:[%s12672_s2 + $0x130] sm:$0xff]  }
 0x2e7   : > { %5636 = vmatpush1.bf16.msra.mxu1 %v8389_v19  ;;  %8047 = vmatprep.subr.bf16.mxu0 %v8404_v40  ;;  %v11640_v19 = vpack.c.bf16 %v4659_v9, %v4658_v20  ;;  %v4669_v41 = vld [vmem:[#allocation2 + $0x10f] sm:$0xff]  ;;  %v4598_v56 = vld [vmem:[#allocation2 + $0x86] sm:$0xff]  ;;  %v8402_v9 = vld [vmem:[%s12672_s2 + $0x138] sm:$0xff]  }
 0x2e8   : > { %5637 = vmatprep.subr.bf16.mxu1 %v13091_v18  ;;  %v4668_v20 = vld [vmem:[#allocation2 + $0x107] sm:$0xff]  ;;  %v4671_v61 = vld [vmem:[#allocation2 + $0x11f] sm:$0xff]  ;;  %v4604_v32 = vld [vmem:[#allocation2 + $0xb6] sm:$0xff] }
 0x2e9   : > { %v11676_v47 = vpack.c.bf16 %v4669_v41, %v4668_v20  ;;  %v4549_v41 = vld [vmem:[#allocation2 + $0xad] sm:$0xff]  ;;  %v4550_v20 = vld [vmem:[#allocation2 + $0xb5] sm:$0xff] }
 0x2ea   : > { %8048 = vmatpush3.bf16.msra.mxu0 %v8404_v40  ;;  %v4661_v40 = vld [vmem:[#allocation2 + $0xcf] sm:$0xff] }
 0x2eb   : > { %5638 = vmatpush1.bf16.msra.mxu1 %v8390_v44  ;;  %8049 = vmatprep.subr.bf16.mxu0 %v8405_v16  ;;  %v8396_v44 = vld [vmem:[%s12672_s2 + $0x110] sm:$0xff]   ;;  %v11645_v14 = vpack.c.bf16 %v4661_v40, %v4660_v15  ;;  %v8407_v40 = vld [vmem:[%s12672_s2 + $0x200] sm:$0xff]   ;;  %v5332_v57 = vld [vmem:[#allocation2 + $0x48] sm:$0xff] }
 0x2ec   : > { %5639 = vmatprep.subr.bf16.mxu1 %v13091_v18  ;;  %4939 = vmatmul.mubr.bf16.gmra.mrb[156].mxu0 %v4567_v7  ;;  %v4665_v7 = vld [vmem:[#allocation2 + $0xef] sm:$0xff] }
 0x2ed   : > { %8014 = vmatmul.mubr.bf16.gmra.mrb[192].mxu1 %v11608_v62  ;;  %4946 = vmatprep.mubr.bf16.mxu0 %v4622_v6  ;;  %v11654_v6 = vpack.c.bf16 %v4663_v21, %v4662_v11  ;;  %v11659_v0 = vpack.c.bf16 %v4665_v7, %v4664_v34  ;;  %v4546_v7 = vld [vmem:[#allocation2 + $0x95] sm:$0xff]  ;;  %v5328_v21 = vld [vmem:[#allocation2 + $0x28] sm:$0xff] }
 0x2ee   : > { %8017 = vmatprep.mubr.bf16.mxu1 %v11613_v59  ;;  %8050 = vmatpush3.bf16.msra.mxu0 %v8405_v16  ;;  %v8397_v16 = vld [vmem:[%s12672_s2 + $0x118] sm:$0xff]   ;;  %v6229_v54 = vld [vmem:[#allocation2 + $0x12b] sm:$0xff] }
 0x2ef   : > { %5640 = vmatpush1.bf16.msra.mxu1 %v8391_v39  ;;  %8051 = vmatprep.subr.bf16.mxu0 %v8406_v27  ;;  %v4570_v39 = vpack.c.bf16 %v4541_v43, %v4540_v45  ;;  %v4670_v43 = vld [vmem:[#allocation2 + $0x117] sm:$0xff]  ;;  %v4602_v45 = vld [vmem:[#allocation2 + $0xa6] sm:$0xff] }
 0x2f0   : > { %5641 = vmatprep.subr.bf16.mxu1 %v13091_v18  ;;  %v6231_v10 = vld [vmem:[#allocation2 + $0x13b] sm:$0xff]  ;;  %v6163_v53 = vld [vmem:[#allocation2 + $0xca] sm:$0xff] }
 0x2f2   : > { %8052 = vmatpush3.bf16.msra.mxu0 %v8406_v27  ;;  %v4543_v27 = vld [vmem:[#allocation2 + $0x7d] sm:$0xff] }
 0x2f3   : > { %5642 = vmatpush1.bf16.msra.mxu1 %v8393_v46  ;;  %6444 = vmatprep.subr.bf16.mxu0 %v13091_v18  ;;  %v4596_v46 = vld [vmem:[#allocation2 + $0x76] sm:$0xff] }
 0x2f4   : > { %5643 = vmatprep.subr.bf16.mxu1 %v13091_v18  ;;  %4947 = vmatmul.mubr.bf16.gmra.mrb[160].mxu0 %v4568_v55  ;;  %v4625_v37 = vpack.c.bf16 %v4597_v25, %v4596_v46  ;;  %v4599_v55 = vld [vmem:[#allocation2 + $0x8e] sm:$0xff]  ;;  %v11688_v25 = vpack.c.bf16 %v4671_v61, %v4670_v43  ;;  %v4608_v43 = vld [vmem:[#allocation2 + $0xd6] sm:$0xff] }
 0x2f5   : > { %8018 = vmatmul.mubr.bf16.gmra.mrb[196].mxu1 %v11625_v5  ;;  %4954 = vmatprep.mubr.bf16.mxu0 %v4623_v23  ;;  %v4571_v23 = vpack.c.bf16 %v4543_v27, %v4542_v28  ;;  %v4626_v15 = vpack.c.bf16 %v4599_v55, %v4598_v56  ;;  %v8411_v27 = vld [vmem:[%s12672_s2 + $0x208] sm:$0xff]   ;;  %v8416_v55 = vld [vmem:[%s12672_s2 + $0x210] sm:$0xff]   ;;  %v8421_v56 = vld [vmem:[%s12672_s2 + $0x218] sm:$0xff]  }
 0x2f6   : > { %8021 = vmatprep.mubr.bf16.mxu1 %v11630_v52  ;;  %v5333_v61 = vld [vmem:[#allocation2 + $0x50] sm:$0xff] }
 0x2f7   : > { %5644 = vmatpush1.bf16.msra.mxu1 %v8394_v36  ;;  %v4666_v36 = vld [vmem:[#allocation2 + $0xf7] sm:$0xff] }
 0x2f8   : > { %5645 = vmatprep.subr.bf16.mxu1 %v13091_v18 }
 0x2fb   : > { %5646 = vmatpush1.bf16.msra.mxu1 %v8395_v2  ;;  %v11671_v2 = vpack.c.bf16 %v4667_v63, %v4666_v36  ;;  %v4548_v63 = vld [vmem:[#allocation2 + $0xa5] sm:$0xff] }
 0x2fc   : > { %5647 = vmatprep.subr.bf16.mxu1 %v13091_v18  ;;  %4955 = vmatmul.mubr.bf16.gmra.mrb[164].mxu0 %v4569_v51  ;;  %v4545_v51 = vld [vmem:[#allocation2 + $0x8d] sm:$0xff]  ;;  %v4574_v28 = vpack.c.bf16 %v4549_v41, %v4548_v63  ;;  %v4605_v36 = vld [vmem:[#allocation2 + $0xbe] sm:$0xff] }
 0x2fd   : > { %8022 = vmatmul.mubr.bf16.gmra.mrb[200].mxu1 %v11640_v19  ;;  %4962 = vmatprep.mubr.bf16.mxu0 %v4624_v13  ;;  %v4601_v13 = vld [vmem:[#allocation2 + $0x9e] sm:$0xff]  ;;  %v4610_v63 = vld [vmem:[#allocation2 + $0xe6] sm:$0xff] }
 0x2fe   : > { %8025 = vmatprep.mubr.bf16.mxu1 %v11645_v14  ;;  %v4613_v41 = vld [vmem:[#allocation2 + $0xfe] sm:$0xff] }
 0x2ff   : > { %5648 = vmatpush1.bf16.msra.mxu1 %v8396_v44  ;;  %v4600_v44 = vld [vmem:[#allocation2 + $0x96] sm:$0xff] }
 0x300   : > { %5649 = vmatprep.subr.bf16.mxu1 %v13091_v18  ;;  %v4627_v34 = vpack.c.bf16 %v4601_v13, %v4600_v44  ;;  %v5365_v44 = vpack.c.bf16 %v5333_v61, %v5332_v57  ;;  %v4552_v13 = vld [vmem:[#allocation2 + $0xc5] sm:$0xff]  ;;  %v4615_v57 = vld [vmem:[#allocation2 + $0x10e] sm:$0xff] }
 0x301   : > { %v5340_v61 = vld [vmem:[#allocation2 + $0x88] sm:$0xff] }
 0x303   : > { %5650 = vmatpush1.bf16.msra.mxu1 %v8397_v16  ;;  %v4544_v16 = vld [vmem:[#allocation2 + $0x85] sm:$0xff] }
 0x304   : > { %5651 = vmatprep.subr.bf16.mxu1 %v13091_v18  ;;  %4963 = vmatmul.mubr.bf16.gmra.mrb[168].mxu0 %v4570_v39  ;;  %v4572_v11 = vpack.c.bf16 %v4545_v51, %v4544_v16  ;;  %v4547_v39 = vld [vmem:[#allocation2 + $0x9d] sm:$0xff]  ;;  %v4607_v51 = vld [vmem:[#allocation2 + $0xce] sm:$0xff] }
 0x305   : > { %8026 = vmatmul.mubr.bf16.gmra.mrb[204].mxu1 %v11654_v6  ;;  %4970 = vmatprep.mubr.bf16.mxu0 %v4625_v37  ;;  %v4573_v46 = vpack.c.bf16 %v4547_v39, %v4546_v7  ;;  %v8428_v16 = vld [vmem:[%s12672_s2 + $0x230] sm:$0xff]  }
 0x306   : > { %8029 = vmatprep.mubr.bf16.mxu1 %v11659_v0 }
 0x307   : > { %5652 = vmatpush1.bf16.msra.mxu1 %v8399_v33  ;;  %v4603_v33 = vld [vmem:[#allocation2 + $0xae] sm:$0xff] }
 0x308   : > { %5653 = vmatprep.subr.bf16.mxu1 %v13091_v18  ;;  %v4628_v37 = vpack.c.bf16 %v4603_v33, %v4602_v45  ;;  %v4609_v45 = vld [vmem:[#allocation2 + $0xde] sm:$0xff]  ;;  %v4554_v33 = vld [vmem:[#allocation2 + $0xd5] sm:$0xff] }
 0x309   : > { %v4631_v39 = vpack.c.bf16 %v4609_v45, %v4608_v43 }
 0x30b   : > { %5654 = vmatpush1.bf16.msra.mxu1 %v8400_v17  ;;  %v5363_v17 = vpack.c.bf16 %v4382_v4, %v5328_v21  ;;  %v5330_v4 = vld [vmem:[#allocation2 + $0x38] sm:$0xff]  ;;  %v5335_v21 = vld [vmem:[#allocation2 + $0x60] sm:$0xff] }
 0x30c   : > { %5655 = vmatprep.subr.bf16.mxu1 %v13091_v18  ;;  %4971 = vmatmul.mubr.bf16.gmra.mrb[172].mxu0 %v4571_v23  ;;  %v4629_v23 = vpack.c.bf16 %v4605_v36, %v4604_v32  ;;  %v4556_v36 = vld [vmem:[#allocation2 + $0xe5] sm:$0xff] }
 0x30d   : > { %8030 = vmatmul.mubr.bf16.gmra.mrb[208].mxu1 %v11671_v2  ;;  %4978 = vmatprep.mubr.bf16.mxu0 %v4626_v15  ;;  %v4606_v15 = vld [vmem:[#allocation2 + $0xc6] sm:$0xff] }
 0x30e   : > { %8033 = vmatprep.mubr.bf16.mxu1 %v11676_v47 }
 0x30f   : > { %5656 = vmatpush1.bf16.msra.mxu1 %v8401_v29  ;;  %v8424_v29 = vld [vmem:[%s12672_s2 + $0x220] sm:$0xff]  }
 0x310   : > { %5657 = vmatprep.subr.bf16.mxu1 %v13091_v18 }
 0x313   : > { %5658 = vmatpush1.bf16.msra.mxu1 %v8402_v9 }
 0x314   : > { %8089 = vmatprep.subr.bf16.mxu1 %v8407_v40  ;;  %4979 = vmatmul.mubr.bf16.gmra.mrb[176].mxu0 %v4572_v11  ;;  %v5334_v11 = vld [vmem:[#allocation2 + $0x58] sm:$0xff] }
 0x315   : > { %8034 = vmatmul.mubr.bf16.gmra.mrb[212].mxu1 %v11688_v25  ;;  %4986 = vmatprep.mubr.bf16.mxu0 %v4627_v34  ;;  %v4553_v34 = vld [vmem:[#allocation2 + $0xcd] sm:$0xff] }
 0x316   : > { %5659 = vmatprep.mubr.bf16.mxu1 %v11543_v48  ;;  %v4524_v48 = vld [vmem:[#allocation2 + $0x123] sm:$0x3]  ;;  %v4576_v7 = vpack.c.bf16 %v4553_v34, %v4552_v13  ;;  %v5342_v34 = vld [vmem:[#allocation2 + $0x98] sm:$0xff] }
 0x317   : > { %4527 = vst [vmem:[#allocation2 + $0x147] sm:$0x3] %v4524_v48  ;;  %v4617_v13 = vld [vmem:[#allocation2 + $0x11e] sm:$0xff] }
 0x31c   : > { %4987 = vmatmul.mubr.bf16.gmra.mrb[180].mxu0 %v4573_v46  ;;  %v5366_v46 = vpack.c.bf16 %v5335_v21, %v5334_v11  ;;  %v4616_v11 = vld [vmem:[#allocation2 + $0x116] sm:$0xff] }
 0x31d   : > { %5660 = vmatmul.mubr.bf16.vlgmr.msra.gmra.mrb[216].mxu1 %v11550_v60  ;;  %4994 = vmatprep.mubr.bf16.mxu0 %v4628_v37  ;;  %v5364_v60 = vpack.c.bf16 %v4384_v30, %v5330_v4  ;;  %v4551_v30 = vld [vmem:[#allocation2 + $0xbd] sm:$0xff] }
 0x31e   : > { %5667 = vmatprep.mubr.bf16.mxu1 %v5363_v17  ;;  %8090 = vmatpush3.bf16.msra.mxu1 %v8407_v40  ;;  %v4575_v9 = vpack.c.bf16 %v4551_v30, %v4550_v20  ;;  %v4630_v40 = vpack.c.bf16 %v4607_v51, %v4606_v15  ;;  %v4555_v37 = vld [vmem:[#allocation2 + $0xdd] sm:$0xff]  ;;  %v4611_v17 = vld [vmem:[#allocation2 + $0xee] sm:$0xff]  ;;  %v4614_v51 = vld [vmem:[#allocation2 + $0x106] sm:$0xff] }
 0x31f   : > { %8091 = vmatprep.subr.bf16.mxu1 %v8411_v27  ;;  %v4577_v48 = vpack.c.bf16 %v4555_v37, %v4554_v33  ;;  %v4632_v32 = vpack.c.bf16 %v4611_v17, %v4610_v63  ;;  %v4559_v15 = vld [vmem:[#allocation2 + $0xfd] sm:$0xff]  ;;  %v5341_v30 = vld [vmem:[#allocation2 + $0x90] sm:$0xff] }
 0x320   : > { %v4563_v21 = vld [vmem:[#allocation2 + $0x11d] sm:$0xff] }
 0x321   : > { %v5380_v37 = vld [vmem:[#allocation2 + $0x19] sm:$0xff]  ;;  %v6232_v12 = vld [vmem:[#allocation2 + $0x143] sm:$0xff] }
 0x322   : > { %8092 = vmatpush3.bf16.msra.mxu1 %v8411_v27  ;;  %v5337_v27 = vld [vmem:[#allocation2 + $0x70] sm:$0xff]  ;;  %v5384_v63 = vld [vmem:[#allocation2 + $0x39] sm:$0xff] }
 0x323   : > { %8093 = vmatprep.subr.bf16.mxu1 %v8416_v55 }
 0x324   : > { %4995 = vmatmul.mubr.bf16.gmra.mrb[184].mxu0 %v4574_v28  ;;  %v5339_v28 = vld [vmem:[#allocation2 + $0x80] sm:$0xff] }
 0x325   : > { %5668 = vmatmul.mubr.bf16.gmra.mrb[220].mxu1 %v11552_v22  ;;  %5002 = vmatprep.mubr.bf16.mxu0 %v4629_v23  ;;  %v8426_v22 = vld [vmem:[%s12672_s2 + $0x228] sm:$0xff]  }
 0x326   : > { %5675 = vmatprep.mubr.bf16.mxu1 %v5364_v60  ;;  %8094 = vmatpush3.bf16.msra.mxu1 %v8416_v55  ;;  %v5336_v55 = vld [vmem:[#allocation2 + $0x68] sm:$0xff]  ;;  %v4612_v60 = vld [vmem:[#allocation2 + $0xf6] sm:$0xff] }
 0x327   : > { %8095 = vmatprep.subr.bf16.mxu1 %v8421_v56  ;;  %v5367_v4 = vpack.c.bf16 %v5337_v27, %v5336_v55  ;;  %v4633_v20 = vpack.c.bf16 %v4613_v41, %v4612_v60  ;;  %v5347_v55 = vld [vmem:[#allocation2 + $0xc0] sm:$0xff]  ;;  %v5386_v41 = vld [vmem:[#allocation2 + $0x49] sm:$0xff] }
 0x32a   : > { %8096 = vmatpush3.bf16.msra.mxu1 %v8421_v56  ;;  %v5338_v56 = vld [vmem:[#allocation2 + $0x78] sm:$0xff] }
 0x32b   : > { %8097 = vmatprep.subr.bf16.mxu1 %v8424_v29 }
 0x32c   : > { %5003 = vmatmul.mubr.bf16.gmra.mrb[188].mxu0 %v4575_v9 }
 0x32d   : > { %5676 = vmatmul.mubr.bf16.gmra.mrb[224].mxu1 %v11571_v50  ;;  %5010 = vmatprep.mubr.bf16.mxu0 %v4630_v40  ;;  %v8429_v50 = vld [vmem:[%s12672_s2 + $0x238] sm:$0xff]   ;;  %v4634_v40 = vpack.c.bf16 %v4615_v57, %v4614_v51  ;;  %v5390_v57 = vld [vmem:[#allocation2 + $0x69] sm:$0xff] }
 0x32e   : > { %5683 = vmatprep.mubr.bf16.mxu1 %v5365_v44  ;;  %8098 = vmatpush3.bf16.msra.mxu1 %v8424_v29  ;;  %v5368_v29 = vpack.c.bf16 %v5339_v28, %v5338_v56  ;;  %v5369_v44 = vpack.c.bf16 %v5341_v30, %v5340_v61  ;;  %v5348_v28 = vld [vmem:[#allocation2 + $0xc8] sm:$0xff]  ;;  %v5391_v30 = vld [vmem:[#allocation2 + $0x71] sm:$0xff]  ;;  %v5392_v61 = vld [vmem:[#allocation2 + $0x79] sm:$0xff] }
 0x32f   : > { %8099 = vmatprep.subr.bf16.mxu1 %v8426_v22  ;;  %v5389_v56 = vld [vmem:[#allocation2 + $0x61] sm:$0xff]  ;;  %v11753_v51 = vpack.c.bf16 %v5391_v30, %v5390_v57  ;;  %v5408_v57 = vld [vmem:[#allocation2 + $0xf9] sm:$0xff] }
 0x330   : > { %v5409_v30 = vld [vmem:[#allocation2 + $0x101] sm:$0xff] }
 0x332   : > { %8100 = vmatpush3.bf16.msra.mxu1 %v8426_v22  ;;  %v4561_v22 = vld [vmem:[#allocation2 + $0x10d] sm:$0xff] }
 0x333   : > { %8101 = vmatprep.subr.bf16.mxu1 %v8428_v16 }
 0x334   : > { %5011 = vmatmul.mubr.bf16.gmra.mrb[192].mxu0 %v4576_v7  ;;  %v4635_v7 = vpack.c.bf16 %v4617_v13, %v4616_v11  ;;  %v8414_v13 = vld [vmem:[%s12672_s2 + $0x1a8] sm:$0xff]  }
 0x335   : > { %5684 = vmatmul.mubr.bf16.gmra.mrb[228].mxu1 %v11573_v49  ;;  %5018 = vmatprep.mubr.bf16.mxu0 %v4631_v39  ;;  %v4557_v49 = vld [vmem:[#allocation2 + $0xed] sm:$0xff] }
 0x336   : > { %5691 = vmatprep.mubr.bf16.mxu1 %v5366_v46  ;;  %8102 = vmatpush3.bf16.msra.mxu1 %v8428_v16  ;;  %v4578_v23 = vpack.c.bf16 %v4557_v49, %v4556_v36  ;;  %v5343_v16 = vld [vmem:[#allocation2 + $0xa0] sm:$0xff]  ;;  %v5344_v39 = vld [vmem:[#allocation2 + $0xa8] sm:$0xff]  ;;  %v5345_v46 = vld [vmem:[#allocation2 + $0xb0] sm:$0xff] }
 0x337   : > { %8103 = vmatprep.subr.bf16.mxu1 %v8429_v50  ;;  %v5370_v45 = vpack.c.bf16 %v5343_v16, %v5342_v34  ;;  %v5371_v17 = vpack.c.bf16 %v5345_v46, %v5344_v39  ;;  %v5388_v36 = vld [vmem:[#allocation2 + $0x59] sm:$0xff]  ;;  %v5395_v16 = vld [vmem:[#allocation2 + $0x91] sm:$0xff]  ;;  %v5394_v11 = vld [vmem:[#allocation2 + $0x89] sm:$0xff] }
 0x338   : > { %v11768_v34 = vpack.c.bf16 %v5395_v16, %v5394_v11  ;;  %v8417_v46 = vld [vmem:[%s12672_s2 + $0x1b8] sm:$0xff]   ;;  %v5361_v16 = vld [vmem:[#allocation2 + $0x130] sm:$0xff] }
 0x33a   : > { %8104 = vmatpush3.bf16.msra.mxu1 %v8429_v50  ;;  %v4562_v50 = vld [vmem:[#allocation2 + $0x115] sm:$0xff] }
 0x33b   : > { %v4581_v33 = vpack.c.bf16 %v4563_v21, %v4562_v50  ;;  %v5355_v50 = vld [vmem:[#allocation2 + $0x100] sm:$0xff] }
 0x33c   : > { %5019 = vmatmul.mubr.bf16.gmra.mrb[196].mxu0 %v4577_v48  ;;  %v5346_v48 = vld [vmem:[#allocation2 + $0xb8] sm:$0xff] }
 0x33d   : > { %5692 = vmatmul.mubr.bf16.gmra.mrb[232].mxu1 %v11588_v38  ;;  %5026 = vmatprep.mubr.bf16.mxu0 %v4632_v32  ;;  %v4558_v38 = vld [vmem:[#allocation2 + $0xf5] sm:$0xff]  ;;  %v8408_v32 = vld [vmem:[%s12672_s2 + $0x180] sm:$0xff]  }
 0x33e   : > { %5699 = vmatprep.mubr.bf16.mxu1 %v5367_v4  ;;  %v4579_v9 = vpack.c.bf16 %v4559_v15, %v4558_v38  ;;  %v5372_v4 = vpack.c.bf16 %v5347_v55, %v5346_v48  ;;  %v8412_v15 = vld [vmem:[%s12672_s2 + $0x198] sm:$0xff]   ;;  %v8418_v48 = vld [vmem:[%s12672_s2 + $0x1c0] sm:$0xff]  }
 0x33f   : > { %v5350_v38 = vld [vmem:[#allocation2 + $0xd8] sm:$0xff] }
 0x344   : > { %5027 = vmatmul.mubr.bf16.gmra.mrb[200].mxu0 %v4578_v23  ;;  %v5387_v23 = vld [vmem:[#allocation2 + $0x51] sm:$0xff] }
 0x345   : > { %5700 = vmatmul.mubr.bf16.gmra.mrb[236].mxu1 %v11593_v26  ;;  %5034 = vmatprep.mubr.bf16.mxu0 %v4633_v20  ;;  %v4560_v26 = vld [vmem:[#allocation2 + $0x105] sm:$0xff]  ;;  %v11738_v60 = vpack.c.bf16 %v5387_v23, %v5386_v41  ;;  %v5403_v41 = vld [vmem:[#allocation2 + $0xd1] sm:$0xff] }
 0x346   : > { %5707 = vmatprep.mubr.bf16.mxu1 %v5368_v29  ;;  %v4580_v43 = vpack.c.bf16 %v4561_v22, %v4560_v26  ;;  %v11743_v29 = vpack.c.bf16 %v5389_v56, %v5388_v36  ;;  %v5352_v26 = vld [vmem:[#allocation2 + $0xe8] sm:$0xff]  ;;  %v8420_v23 = vld [vmem:[%s12672_s2 + $0x1d0] sm:$0xff]  }
 0x347   : > { %v5356_v36 = vld [vmem:[#allocation2 + $0x108] sm:$0xff] }
 0x34c   : > { %5035 = vmatmul.mubr.bf16.gmra.mrb[204].mxu0 %v4579_v9  ;;  %v5393_v9 = vld [vmem:[#allocation2 + $0x81] sm:$0xff] }
 0x34d   : > { %5708 = vmatmul.mubr.bf16.gmra.mrb[240].mxu1 %v11608_v62  ;;  %5042 = vmatprep.mubr.bf16.mxu0 %v4634_v40  ;;  %v5381_v62 = vld [vmem:[#allocation2 + $0x21] sm:$0xff]  ;;  %v11758_v22 = vpack.c.bf16 %v5393_v9, %v5392_v61 }
 0x34e   : > { %5715 = vmatprep.mubr.bf16.mxu1 %v5369_v44  ;;  %v5416_v27 = vpack.c.bf16 %v5381_v62, %v5380_v37  ;;  %v8413_v40 = vld [vmem:[%s12672_s2 + $0x1a0] sm:$0xff]   ;;  %v5399_v62 = vld [vmem:[#allocation2 + $0xb1] sm:$0xff]  ;;  %v5398_v37 = vld [vmem:[#allocation2 + $0xa9] sm:$0xff] }
 0x354   : > { %5043 = vmatmul.mubr.bf16.gmra.mrb[208].mxu0 %v4580_v43  ;;  %v5397_v43 = vld [vmem:[#allocation2 + $0xa1] sm:$0xff] }
 0x355   : > { %5716 = vmatmul.mubr.bf16.gmra.mrb[244].mxu1 %v11613_v59  ;;  %5050 = vmatprep.mubr.bf16.mxu0 %v4635_v7  ;;  %v5385_v59 = vld [vmem:[#allocation2 + $0x41] sm:$0xff]  ;;  %v5396_v7 = vld [vmem:[#allocation2 + $0x99] sm:$0xff] }
 0x356   : > { %5723 = vmatprep.mubr.bf16.mxu1 %v5370_v45  ;;  %v11729_v49 = vpack.c.bf16 %v5385_v59, %v5384_v63  ;;  %v8415_v45 = vld [vmem:[%s12672_s2 + $0x1b0] sm:$0xff]   ;;  %v11773_v39 = vpack.c.bf16 %v5397_v43, %v5396_v7  ;;  %v8419_v59 = vld [vmem:[%s12672_s2 + $0x1c8] sm:$0xff]  }
 0x357   : > { %v5410_v43 = vld [vmem:[#allocation2 + $0x109] sm:$0xff] }
 0x358   : > { %v8427_v7 = vld [vmem:[%s12672_s2 + $0x1f0] sm:$0xff]  }
 0x35c   : > { %5051 = vmatmul.mubr.bf16.gmra.mrb[212].mxu0 %v4581_v33  ;;  %v5400_v33 = vld [vmem:[#allocation2 + $0xb9] sm:$0xff] }
 0x35d   : > { %5724 = vmatmul.mubr.bf16.gmra.mrb[248].mxu1 %v11625_v5  ;;  %8053 = vmatprep.mubr.bf16.mxu0 %v5416_v27  ;;  %v8409_v5 = vld [vmem:[%s12672_s2 + $0x188] sm:$0xff]   ;;  %v5354_v27 = vld [vmem:[#allocation2 + $0xf8] sm:$0xff] }
 0x35e   : > { %5731 = vmatprep.mubr.bf16.mxu1 %v5371_v17  ;;  %v11783_v17 = vpack.c.bf16 %v5399_v62, %v5398_v37  ;;  %v5376_v63 = vpack.c.bf16 %v5355_v50, %v5354_v27  ;;  %v5307_v62 = vld [vmem:[#allocation2 + $0x12f] sm:$0xff] }
 0x35f   : > { %v5415_v50 = vld [vmem:[#allocation2 + $0x131] sm:$0xff] }
 0x360   : > { %v6144_v37 = vld [vmem:[#allocation2 + $0x32] sm:$0xff] }
 0x361   : > { %v6198_v27 = vld [vmem:[#allocation2 + $0x33] sm:$0xff] }
 0x364   : > { %8054 = vmatmul.mubr.bf16.vlgmr.msra.gmra.mrb[216].mxu0 %v11548_v31  ;;  %v8410_v31 = vld [vmem:[%s12672_s2 + $0x190] sm:$0xff]  }
 0x365   : > { %5732 = vmatmul.mubr.bf16.gmra.mrb[252].mxu1 %v11630_v52  ;;  %8057 = vmatprep.mubr.bf16.mxu0 %v11729_v49  ;;  %v5349_v52 = vld [vmem:[#allocation2 + $0xd0] sm:$0xff] }
 0x366   : > { %5739 = vmatprep.mubr.bf16.mxu1 %v5372_v4  ;;  %6445 = vmatpush1.bf16.msra.mxu0 %v8408_v32  ;;  %v5373_v20 = vpack.c.bf16 %v5349_v52, %v5348_v28  ;;  %v5402_v32 = vld [vmem:[#allocation2 + $0xc9] sm:$0xff] }
 0x367   : > { %6446 = vmatprep.subr.bf16.mxu0 %v13091_v18  ;;  %v5357_v4 = vld [vmem:[#allocation2 + $0x110] sm:$0xff]  ;;  %v11798_v28 = vpack.c.bf16 %v5403_v41, %v5402_v32 }
 0x368   : > { %v5377_v52 = vpack.c.bf16 %v5357_v4, %v5356_v36  ;;  %v6199_v36 = vld [vmem:[#allocation2 + $0x3b] sm:$0xff] }
 0x36a   : > { %6447 = vmatpush1.bf16.msra.mxu0 %v8409_v5  ;;  %v5404_v5 = vld [vmem:[#allocation2 + $0xd9] sm:$0xff] }
 0x36b   : > { %6448 = vmatprep.subr.bf16.mxu0 %v13091_v18 }
 0x36c   : > { %8058 = vmatmul.mubr.bf16.gmra.mrb[220].mxu0 %v11738_v60 }
 0x36d   : > { %5740 = vmatmul.mubr.bf16.gmra.mrb[0].mxu1 %v11640_v19  ;;  %8061 = vmatprep.mubr.bf16.mxu0 %v11743_v29  ;;  %v5351_v19 = vld [vmem:[#allocation2 + $0xe0] sm:$0xff] }
 0x36e   : > { %5747 = vmatprep.mubr.bf16.mxu1 %v5373_v20  ;;  %6449 = vmatpush1.bf16.msra.mxu0 %v8410_v31  ;;  %v5374_v44 = vpack.c.bf16 %v5351_v19, %v5350_v38  ;;  %v8422_v31 = vld [vmem:[%s12672_s2 + $0x1d8] sm:$0xff]   ;;  %v5406_v20 = vld [vmem:[#allocation2 + $0xe9] sm:$0xff]  ;;  %v8423_v19 = vld [vmem:[%s12672_s2 + $0x1e0] sm:$0xff]  }
 0x36f   : > { %6450 = vmatprep.subr.bf16.mxu0 %v13091_v18  ;;  %v5407_v38 = vld [vmem:[#allocation2 + $0xf1] sm:$0xff] }
 0x370   : > { %v11813_v9 = vpack.c.bf16 %v5407_v38, %v5406_v20  ;;  %v6200_v20 = vld [vmem:[#allocation2 + $0x43] sm:$0xff]  ;;  %v6090_v38 = vld [vmem:[#allocation2 + $0x31] sm:$0xff] }
 0x372   : > { %6451 = vmatpush1.bf16.msra.mxu0 %v8412_v15  ;;  %v5359_v15 = vld [vmem:[#allocation2 + $0x120] sm:$0xff] }
 0x373   : > { %6452 = vmatprep.subr.bf16.mxu0 %v13091_v18 }
 0x374   : > { %8062 = vmatmul.mubr.bf16.gmra.mrb[224].mxu0 %v11753_v51 }
 0x375   : > { %5748 = vmatmul.mubr.bf16.gmra.mrb[4].mxu1 %v11645_v14  ;;  %8065 = vmatprep.mubr.bf16.mxu0 %v11758_v22  ;;  %v5353_v14 = vld [vmem:[#allocation2 + $0xf0] sm:$0xff] }
 0x376   : > { %5755 = vmatprep.mubr.bf16.mxu1 %v5374_v44  ;;  %6453 = vmatpush1.bf16.msra.mxu0 %v8413_v40  ;;  %v5375_v21 = vpack.c.bf16 %v5353_v14, %v5352_v26  ;;  %v11818_v40 = vpack.c.bf16 %v5409_v30, %v5408_v57  ;;  %v8425_v44 = vld [vmem:[%s12672_s2 + $0x1e8] sm:$0xff]  }
 0x377   : > { %6454 = vmatprep.subr.bf16.mxu0 %v13091_v18  ;;  %v5413_v26 = vld [vmem:[#allocation2 + $0x121] sm:$0xff] }
 0x378   : > { %v5360_v14 = vld [vmem:[#allocation2 + $0x128] sm:$0xff] }
 0x37a   : > { %6455 = vmatpush1.bf16.msra.mxu0 %v8414_v13  ;;  %v5411_v13 = vld [vmem:[#allocation2 + $0x111] sm:$0xff] }
 0x37b   : > { %6456 = vmatprep.subr.bf16.mxu0 %v13091_v18  ;;  %v11828_v11 = vpack.c.bf16 %v5411_v13, %v5410_v43  ;;  %v6146_v13 = vld [vmem:[#allocation2 + $0x42] sm:$0xff] }
 0x37c   : > { %8066 = vmatmul.mubr.bf16.gmra.mrb[228].mxu0 %v11768_v34 }
 0x37d   : > { %5756 = vmatmul.mubr.bf16.gmra.mrb[8].mxu1 %v11654_v6  ;;  %8069 = vmatprep.mubr.bf16.mxu0 %v11773_v39  ;;  %v5401_v6 = vld [vmem:[#allocation2 + $0xc1] sm:$0xff] }
 0x37e   : > { %5763 = vmatprep.mubr.bf16.mxu1 %v5375_v21  ;;  %6457 = vmatpush1.bf16.msra.mxu0 %v8415_v45  ;;  %v11788_v55 = vpack.c.bf16 %v5401_v6, %v5400_v33  ;;  %v5379_v45 = vpack.c.bf16 %v5361_v16, %v5360_v14  ;;  %v6143_v33 = vld [vmem:[#allocation2 + $0x2a] sm:$0xff]  ;;  %v6202_v16 = vld [vmem:[#allocation2 + $0x53] sm:$0xff] }
 0x37f   : > { %6458 = vmatprep.subr.bf16.mxu0 %v13091_v18  ;;  %v5306_v6 = vld [vmem:[#allocation2 + $0x127] sm:$0xff]  ;;  %v6179_v32 = vpack.c.bf16 %v6144_v37, %v6143_v33 }
 0x380   : > { %v6147_v33 = vld [vmem:[#allocation2 + $0x4a] sm:$0xff] }
 0x381   : > { %v6205_v37 = vld [vmem:[#allocation2 + $0x6b] sm:$0xff] }
 0x382   : > { %6459 = vmatpush1.bf16.msra.mxu0 %v8417_v46  ;;  %v8430_v46 = vld [vmem:[%s12672_s2 + $0x1f8] sm:$0xff]  }
 0x383   : > { %6460 = vmatprep.subr.bf16.mxu0 %v13091_v18 }
 0x384   : > { %8070 = vmatmul.mubr.bf16.gmra.mrb[232].mxu0 %v11783_v17 }
 0x385   : > { %5764 = vmatmul.mubr.bf16.gmra.mrb[12].mxu1 %v11659_v0  ;;  %8073 = vmatprep.mubr.bf16.mxu0 %v11788_v55  ;;  %v5405_v0 = vld [vmem:[#allocation2 + $0xe1] sm:$0xff] }
 0x386   : > { %5771 = vmatprep.mubr.bf16.mxu1 %v5376_v63  ;;  %6461 = vmatpush1.bf16.msra.mxu0 %v8418_v48  ;;  %v11803_v56 = vpack.c.bf16 %v5405_v0, %v5404_v5  ;;  %v5414_v48 = vld [vmem:[#allocation2 + $0x129] sm:$0xff] }
 0x387   : > { %6462 = vmatprep.subr.bf16.mxu0 %v13091_v18  ;;  %v11843_v63 = vpack.c.bf16 %v5415_v50, %v5414_v48  ;;  %v6204_v48 = vld [vmem:[#allocation2 + $0x63] sm:$0xff] }
 0x38a   : > { %6463 = vmatpush1.bf16.msra.mxu0 %v8419_v59  ;;  %v6197_v59 = vld [vmem:[#allocation2 + $0x2b] sm:$0xff] }
 0x38b   : > { %6464 = vmatprep.subr.bf16.mxu0 %v13091_v18  ;;  %v6233_v4 = vpack.c.bf16 %v6198_v27, %v6197_v59 }
 0x38c   : > { %8074 = vmatmul.mubr.bf16.gmra.mrb[236].mxu0 %v11798_v28 }
 0x38d   : > { %5772 = vmatmul.mubr.bf16.gmra.mrb[16].mxu1 %v11671_v2  ;;  %8077 = vmatprep.mubr.bf16.mxu0 %v11803_v56  ;;  %v5358_v2 = vld [vmem:[#allocation2 + $0x118] sm:$0xff] }
 0x38e   : > { %5779 = vmatprep.mubr.bf16.mxu1 %v5377_v52  ;;  %6465 = vmatpush1.bf16.msra.mxu0 %v8420_v23  ;;  %v5378_v61 = vpack.c.bf16 %v5359_v15, %v5358_v2  ;;  %v6145_v52 = vld [vmem:[#allocation2 + $0x3a] sm:$0xff] }
 0x38f   : > { %6466 = vmatprep.subr.bf16.mxu0 %v13091_v18  ;;  %v6180_v43 = vpack.c.bf16 %v6146_v13, %v6145_v52  ;;  %v6207_v52 = vld [vmem:[#allocation2 + $0x7b] sm:$0xff] }
 0x392   : > { %6467 = vmatpush1.bf16.msra.mxu0 %v8422_v31  ;;  %v6201_v31 = vld [vmem:[#allocation2 + $0x4b] sm:$0xff] }
 0x393   : > { %6468 = vmatprep.subr.bf16.mxu0 %v13091_v18  ;;  %v6235_v14 = vpack.c.bf16 %v6202_v16, %v6201_v31  ;;  %v6208_v31 = vld [vmem:[#allocation2 + $0x83] sm:$0xff] }
 0x394   : > { %8078 = vmatmul.mubr.bf16.gmra.mrb[240].mxu0 %v11813_v9  ;;  %v6238_v16 = vpack.c.bf16 %v6208_v31, %v6207_v52  ;;  %v6152_v52 = vld [vmem:[#allocation2 + $0x72] sm:$0xff] }
 0x395   : > { %5780 = vmatmul.mubr.bf16.gmra.mrb[20].mxu1 %v11676_v47  ;;  %8081 = vmatprep.mubr.bf16.mxu0 %v11818_v40  ;;  %v5412_v47 = vld [vmem:[#allocation2 + $0x119] sm:$0xff]  ;;  %v6213_v31 = vld [vmem:[#allocation2 + $0xab] sm:$0xff] }
 0x396   : > { %5787 = vmatprep.mubr.bf16.mxu1 %v5378_v61  ;;  %6469 = vmatpush1.bf16.msra.mxu0 %v8423_v19  ;;  %v11833_v21 = vpack.c.bf16 %v5413_v26, %v5412_v47 }
 0x397   : > { %6470 = vmatprep.subr.bf16.mxu0 %v13091_v18 }
 0x39a   : > { %6471 = vmatpush1.bf16.msra.mxu0 %v8425_v44  ;;  %v6234_v44 = vpack.c.bf16 %v6200_v20, %v6199_v36 }
 0x39b   : > { %6472 = vmatprep.subr.bf16.mxu0 %v13091_v18 }
 0x39c   : > { %8082 = vmatmul.mubr.bf16.gmra.mrb[244].mxu0 %v11828_v11 }
 0x39d   : > { %5788 = vmatmul.mubr.bf16.gmra.mrb[24].mxu1 %v11688_v25  ;;  %8085 = vmatprep.mubr.bf16.mxu0 %v11833_v21  ;;  %v5325_v25 = vpack.c.bf16 %v5307_v62, %v5306_v6 }
 0x39e   : > { %5795 = vmatprep.mubr.bf16.mxu1 %v5379_v45  ;;  %6473 = vmatpush1.bf16.msra.mxu0 %v8427_v7  ;;  %v6203_v45 = vld [vmem:[#allocation2 + $0x5b] sm:$0xff] }
 0x39f   : > { %6474 = vmatprep.subr.bf16.mxu0 %v13091_v18  ;;  %v6089_v18 = vld [vmem:[#allocation2 + $0x29] sm:$0xff] }
 0x3a0   : > { %v6125_v61 = vpack.c.bf16 %v6090_v38, %v6089_v18  ;;  %v6206_v18 = vld [vmem:[#allocation2 + $0x73] sm:$0xff] }
 0x3a1   : > { %v6149_v38 = vld [vmem:[#allocation2 + $0x5a] sm:$0xff] }
 0x3a2   : > { %6475 = vmatpush1.bf16.msra.mxu0 %v8430_v46 }
 0x3a4   : > { %8086 = vmatmul.mubr.bf16.gmra.mrb[248].mxu0 %v11843_v63 }
 0x3a5   : > { %5796 = vmatmul.mubr.bf16.gmra.mrb[28].mxu1 %v5325_v25  ;;  %6476 = vmatprep.mubr.bf16.mxu0 %v6179_v32 }
 0x3a6   : > { %8105 = vmatprep.mubr.bf16.mxu1 %v6233_v4  ;;  %v6236_v4 = vpack.c.bf16 %v6204_v48, %v6203_v45 }
 0x3a7   : > { %v4916_v5 = vpop.f32.mrb[144].mxu0 }
 0x3a8   : > { %v8003_v41 = vpop.f32.mrb[180].mxu1  ;;  %v4918_v0 = vpop.f32.mrb[145].mxu0 }
 0x3a9   : > { %v5093_v23 = vpop.f32.mrb[181].mxu1  ;;  %v4919_v57 = vpop.f32.mrb[146].mxu0  ;;  %v6237_v0 = vpack.c.bf16 %v6206_v18, %v6205_v37  ;;  %v6211_v18 = vld [vmem:[#allocation2 + $0x9b] sm:$0xff] }
 0x3aa   : > { %v11846_v15 = vadd.f32 %v5093_v23, %v4916_v5  ;;  %v8004_v30 = vpop.f32.mrb[182].mxu1  ;;  %v4921_v2 = vpop.f32.mrb[147].mxu0  ;;  %v6148_v5 = vld [vmem:[#allocation2 + $0x52] sm:$0xff] }
 0x3ab   : > { %v5096_v19 = vpop.f32.mrb[183].mxu1  ;;  %v6181_v36 = vpack.c.bf16 %v6148_v5, %v6147_v33  ;;  %v6210_v2 = vld [vmem:[#allocation2 + $0x93] sm:$0xff]  ;;  %v6212_v33 = vld [vmem:[#allocation2 + $0xa3] sm:$0xff] }
 0x3ac   : > { %v11848_v26 = vadd.f32 %v5096_v19, %v4919_v57  ;;  %6477 = vmatmul.mubr.bf16.vlgmr.msra.gmra.mrb[252].mxu0 %v6125_v61 }
 0x3ad   : > { %8106 = vmatmul.mubr.bf16.vlgmr.msra.gmra.mrb[32].mxu1 %v6234_v44  ;;  %6484 = vmatprep.mubr.bf16.mxu0 %v6180_v43  ;;  %v6150_v43 = vld [vmem:[#allocation2 + $0x62] sm:$0xff] }
 0x3ae   : > { %8109 = vmatprep.mubr.bf16.mxu1 %v6235_v14  ;;  %v6209_v14 = vld [vmem:[#allocation2 + $0x8b] sm:$0xff] }
 0x3af   : > { %v4924_v47 = vpop.f32.mrb[148].mxu0  ;;  %v6239_v45 = vpack.c.bf16 %v6210_v2, %v6209_v14  ;;  %v6217_v14 = vld [vmem:[#allocation2 + $0xcb] sm:$0xff] }
 0x3b0   : > { %v8007_v7 = vpop.f32.mrb[184].mxu1  ;;  %v11850_v46 = vadd.f32 %v8003_v41, %v4924_v47  ;;  %v4926_v62 = vpop.f32.mrb[149].mxu0  ;;  %v6182_v47 = vpack.c.bf16 %v6150_v43, %v6149_v38  ;;  %v6154_v43 = vld [vmem:[#allocation2 + $0x82] sm:$0xff] }
 0x3b1   : > { %v5109_v50 = vpop.f32.mrb[185].mxu1  ;;  %v4927_v27 = vpop.f32.mrb[150].mxu0 }
 0x3b2   : > { %v8008_v6 = vpop.f32.mrb[186].mxu1  ;;  %v11852_v25 = vadd.f32 %v8004_v30, %v4927_v27  ;;  %v4929_v59 = vpop.f32.mrb[151].mxu0 }
 0x3b3   : > { %v5112_v32 = vpop.f32.mrb[187].mxu1  ;;  %v6151_v59 = vld [vmem:[#allocation2 + $0x6a] sm:$0xff] }
 0x3b4   : > { %6485 = vmatmul.mubr.bf16.gmra.mrb[0].mxu0 %v11729_v49 }
 0x3b5   : > { %8110 = vmatmul.mubr.bf16.gmra.mrb[36].mxu1 %v6236_v4  ;;  %6492 = vmatprep.mubr.bf16.mxu0 %v6181_v36 }
 0x3b6   : > { %8113 = vmatprep.mubr.bf16.mxu1 %v6237_v0 }
 0x3b7   : > { %v4932_v41 = vpop.f32.mrb[152].mxu0 }
 0x3b8   : > { %v11855_v23 = vpop.f32.mrb[188].mxu1  ;;  %v11857_v20 = vadd.f32 %v5109_v50, %v4932_v41  ;;  %v4934_v57 = vpop.f32.mrb[153].mxu0  ;;  %v6240_v41 = vpack.c.bf16 %v6212_v33, %v6211_v18 }
 0x3b9   : > { %v5125_v30 = vpop.f32.mrb[189].mxu1  ;;  %v4935_v19 = vpop.f32.mrb[154].mxu0  ;;  %v6183_v57 = vpack.c.bf16 %v6152_v52, %v6151_v59  ;;  %v6219_v52 = vld [vmem:[#allocation2 + $0xdb] sm:$0xff] }
 0x3ba   : > { %v11859_v61 = vpop.f32.mrb[190].mxu1  ;;  %v11861_v44 = vadd.f32 %v5112_v32, %v4935_v19  ;;  %v4937_v49 = vpop.f32.mrb[155].mxu0  ;;  %v6214_v32 = vld [vmem:[#allocation2 + $0xb3] sm:$0xff]  ;;  %v6216_v19 = vld [vmem:[#allocation2 + $0xc3] sm:$0xff] }
 0x3bb   : > { %v5128_v13 = vpop.f32.mrb[191].mxu1 }
 0x3bc   : > { %6493 = vmatmul.mubr.bf16.gmra.mrb[4].mxu0 %v11738_v60 }
 0x3bd   : > { %8114 = vmatmul.mubr.bf16.gmra.mrb[40].mxu1 %v6238_v16  ;;  %6500 = vmatprep.mubr.bf16.mxu0 %v6182_v47 }
 0x3be   : > { %8117 = vmatprep.mubr.bf16.mxu1 %v6239_v45 }
 0x3bf   : > { %v4940_v62 = vpop.f32.mrb[156].mxu0 }
 0x3c0   : > { %v11864_v50 = vpop.f32.mrb[192].mxu1  ;;  %v11866_v37 = vadd.f32 %v8007_v7, %v4940_v62  ;;  %v4942_v27 = vpop.f32.mrb[157].mxu0  ;;  %v6241_v7 = vpack.c.bf16 %v6214_v32, %v6213_v31  ;;  %v6215_v62 = vld [vmem:[#allocation2 + $0xbb] sm:$0xff] }
 0x3c1   : > { %v11868_v48 = vpop.f32.mrb[193].mxu1  ;;  %v4943_v4 = vpop.f32.mrb[158].mxu0  ;;  %v6242_v59 = vpack.c.bf16 %v6216_v19, %v6215_v62  ;;  %v6153_v32 = vld [vmem:[#allocation2 + $0x7a] sm:$0xff] }
 0x3c2   : > { %v11870_v5 = vpop.f32.mrb[194].mxu1  ;;  %v11872_v36 = vadd.f32 %v8008_v6, %v4943_v4  ;;  %v4945_v60 = vpop.f32.mrb[159].mxu0  ;;  %v6218_v4 = vld [vmem:[#allocation2 + $0xd3] sm:$0xff]  ;;  %v6184_v18 = vpack.c.bf16 %v6154_v43, %v6153_v32  ;;  %v6220_v43 = vld [vmem:[#allocation2 + $0xe3] sm:$0xff] }
 0x3c3   : > { %v11874_v0 = vpop.f32.mrb[195].mxu1  ;;  %v6244_v62 = vpack.c.bf16 %v6220_v43, %v6219_v52  ;;  %v6158_v52 = vld [vmem:[#allocation2 + $0xa2] sm:$0xff] }
 0x3c4   : > { %6501 = vmatmul.mubr.bf16.gmra.mrb[8].mxu0 %v11743_v29 }
 0x3c5   : > { %8118 = vmatmul.mubr.bf16.gmra.mrb[44].mxu1 %v6240_v41  ;;  %6508 = vmatprep.mubr.bf16.mxu0 %v6183_v57 }
 0x3c6   : > { %8121 = vmatprep.mubr.bf16.mxu1 %v6241_v7  ;;  %v6156_v7 = vld [vmem:[#allocation2 + $0x92] sm:$0xff] }
 0x3c7   : > { %v4948_v38 = vpop.f32.mrb[160].mxu0 }
 0x3c8   : > { %v11877_v2 = vpop.f32.mrb[196].mxu1  ;;  %v11879_v49 = vadd.f32 %v5125_v30, %v4948_v38  ;;  %v4950_v6 = vpop.f32.mrb[161].mxu0  ;;  %v6243_v30 = vpack.c.bf16 %v6218_v4, %v6217_v14  ;;  %v6221_v38 = vld [vmem:[#allocation2 + $0xeb] sm:$0xff] }
 0x3c9   : > { %v11881_v16 = vpop.f32.mrb[197].mxu1  ;;  %v4951_v47 = vpop.f32.mrb[162].mxu0 }
 0x3ca   : > { %v11883_v45 = vpop.f32.mrb[198].mxu1  ;;  %v11885_v33 = vadd.f32 %v5128_v13, %v4951_v47  ;;  %v4953_v29 = vpop.f32.mrb[163].mxu0 }
 0x3cb   : > { %v11887_v27 = vpop.f32.mrb[199].mxu1  ;;  %v6155_v29 = vld [vmem:[#allocation2 + $0x8a] sm:$0xff] }
 0x3cc   : > { %6509 = vmatmul.mubr.bf16.gmra.mrb[12].mxu0 %v11753_v51 }
 0x3cd   : > { %8122 = vmatmul.mubr.bf16.gmra.mrb[48].mxu1 %v6242_v59  ;;  %6516 = vmatprep.mubr.bf16.mxu0 %v6184_v18  ;;  %v6222_v59 = vld [vmem:[#allocation2 + $0xf3] sm:$0xff] }
 0x3ce   : > { %8125 = vmatprep.mubr.bf16.mxu1 %v6243_v30  ;;  %v6245_v32 = vpack.c.bf16 %v6222_v59, %v6221_v38  ;;  %v6223_v30 = vld [vmem:[#allocation2 + $0xfb] sm:$0xff]  ;;  %v6224_v38 = vld [vmem:[#allocation2 + $0x103] sm:$0xff] }
 0x3cf   : > { %v4956_v60 = vpop.f32.mrb[164].mxu0  ;;  %v6157_v59 = vld [vmem:[#allocation2 + $0x9a] sm:$0xff] }
 0x3d0   : > { %v11890_v41 = vpop.f32.mrb[200].mxu1  ;;  %v11893_v13 = vadd.f32 %v11855_v23, %v4956_v60  ;;  %v4958_v31 = vpop.f32.mrb[165].mxu0  ;;  %v6185_v23 = vpack.c.bf16 %v6156_v7, %v6155_v29  ;;  %v6246_v29 = vpack.c.bf16 %v6224_v38, %v6223_v30  ;;  %v6160_v30 = vld [vmem:[#allocation2 + $0xb2] sm:$0xff] }
 0x3d1   : > { %v11895_v57 = vpop.f32.mrb[201].mxu1  ;;  %v4959_v19 = vpop.f32.mrb[166].mxu0  ;;  %v6230_v38 = vld [vmem:[#allocation2 + $0x133] sm:$0xff] }
 0x3d2   : > { %v11897_v6 = vpop.f32.mrb[202].mxu1  ;;  %v11900_v51 = vadd.f32 %v11859_v61, %v4959_v19  ;;  %v4961_v14 = vpop.f32.mrb[167].mxu0  ;;  %v6225_v19 = vld [vmem:[#allocation2 + $0x10b] sm:$0xff] }
 0x3d3   : > { %v11902_v47 = vpop.f32.mrb[203].mxu1 }
 0x3d4   : > { %6517 = vmatmul.mubr.bf16.gmra.mrb[16].mxu0 %v11758_v22 }
 0x3d5   : > { %8126 = vmatmul.mubr.bf16.gmra.mrb[52].mxu1 %v6244_v62  ;;  %6524 = vmatprep.mubr.bf16.mxu0 %v6185_v23  ;;  %v6186_v23 = vpack.c.bf16 %v6158_v52, %v6157_v59 }
 0x3d6   : > { %8129 = vmatprep.mubr.bf16.mxu1 %v6245_v32 }
 0x3d7   : > { %v4964_v4 = vpop.f32.mrb[168].mxu0 }
 0x3d8   : > { %v11905_v18 = vpop.f32.mrb[204].mxu1  ;;  %v11908_v61 = vadd.f32 %v11868_v48, %v4964_v4  ;;  %v4966_v60 = vpop.f32.mrb[169].mxu0  ;;  %v6247_v48 = vpack.c.bf16 %v11667_v1, %v6225_v19  ;;  %v6227_v1 = vld [vmem:[#allocation2 + $0x11b] sm:$0xff] }
 0x3d9   : > { %v11910_v31 = vpop.f32.mrb[205].mxu1  ;;  %v4967_v43 = vpop.f32.mrb[170].mxu0  ;;  %v6228_v60 = vld [vmem:[#allocation2 + $0x123] sm:$0xff] }
 0x3da   : > { %v11912_v7 = vpop.f32.mrb[206].mxu1  ;;  %v11915_v22 = vadd.f32 %v11874_v0, %v4967_v43  ;;  %v4969_v14 = vpop.f32.mrb[171].mxu0 }
 0x3db   : > { %v11917_v62 = vpop.f32.mrb[207].mxu1 }
 0x3dc   : > { %6525 = vmatmul.mubr.bf16.gmra.mrb[20].mxu0 %v11768_v34 }
 0x3dd   : > { %8130 = vmatmul.mubr.bf16.gmra.mrb[56].mxu1 %v6246_v29  ;;  %6532 = vmatprep.mubr.bf16.mxu0 %v6186_v23  ;;  %v6248_v23 = vpack.c.bf16 %v6228_v60, %v6227_v1  ;;  %v6161_v60 = vld [vmem:[#allocation2 + $0xba] sm:$0xff]  ;;  %v6162_v1 = vld [vmem:[#allocation2 + $0xc2] sm:$0xff] }
 0x3de   : > { %8133 = vmatprep.mubr.bf16.mxu1 %v6247_v48  ;;  %v6159_v48 = vld [vmem:[#allocation2 + $0xaa] sm:$0xff] }
 0x3df   : > { %v4972_v32 = vpop.f32.mrb[172].mxu0 }
 0x3e0   : > { %v11921_v4 = vpop.f32.mrb[208].mxu1  ;;  %v11924_v0 = vadd.f32 %v11864_v50, %v4972_v32  ;;  %v4974_v43 = vpop.f32.mrb[173].mxu0  ;;  %v6187_v50 = vpack.c.bf16 %v6160_v30, %v6159_v48  ;;  %v6249_v32 = vpack.c.bf16 %v6230_v38, %v6229_v54  ;;  %v6250_v48 = vpack.c.bf16 %v6232_v12, %v6231_v10 }
 0x3e1   : > { %v11926_v14 = vpop.f32.mrb[209].mxu1  ;;  %v4975_v52 = vpop.f32.mrb[174].mxu0 }
 0x3e2   : > { %v11928_v59 = vpop.f32.mrb[210].mxu1  ;;  %v11931_v34 = vadd.f32 %v11870_v5, %v4975_v52  ;;  %v4977_v19 = vpop.f32.mrb[175].mxu0 }
 0x3e3   : > { %v11933_v29 = vpop.f32.mrb[211].mxu1 }
 0x3e4   : > { %6533 = vmatmul.mubr.bf16.gmra.mrb[24].mxu0 %v11773_v39 }
 0x3e5   : > { %8134 = vmatmul.mubr.bf16.gmra.mrb[60].mxu1 %v6248_v23  ;;  %6540 = vmatprep.mubr.bf16.mxu0 %v6187_v50  ;;  %v6188_v50 = vpack.c.bf16 %v6162_v1, %v6161_v60 }
 0x3e6   : > { %8137 = vmatprep.mubr.bf16.mxu1 %v6249_v32 }
 0x3e7   : > { %v4980_v43 = vpop.f32.mrb[176].mxu0 }
 0x3e8   : > { %v11936_v35 = vpop.f32.mrb[212].mxu1  ;;  %v11939_v5 = vadd.f32 %v11881_v16, %v4980_v43  ;;  %v4982_v52 = vpop.f32.mrb[177].mxu0 }
 0x3e9   : > { %v11941_v19 = vpop.f32.mrb[213].mxu1  ;;  %v4983_v30 = vpop.f32.mrb[178].mxu0 }
 0x3ea   : > { %v11943_v54 = vpop.f32.mrb[214].mxu1  ;;  %v11946_v39 = vadd.f32 %v11887_v27, %v4983_v30  ;;  %v4985_v38 = vpop.f32.mrb[179].mxu0 }
 0x3eb   : > { %v11948_v23 = vpop.f32.mrb[215].mxu1 }
 0x3ec   : > { %6541 = vmatmul.mubr.bf16.gmra.mrb[28].mxu0 %v11783_v17  ;;  %v6164_v17 = vld [vmem:[#allocation2 + $0xd2] sm:$0xff] }
 0x3ed   : > { %8138 = vmatmul.mubr.bf16.gmra.mrb[64].mxu1 %v6250_v48  ;;  %6548 = vmatprep.mubr.bf16.mxu0 %v6188_v50  ;;  %v6189_v60 = vpack.c.bf16 %v6164_v17, %v6163_v53 }
 0x3ef   : > { %v4988_v16 = vpop.f32.mrb[180].mxu0 }
 0x3f0   : > { %v11951_v32 = vpop.f32.mrb[216].mxu1  ;;  %v11954_v43 = vadd.f32 %v11877_v2, %v4988_v16  ;;  %v4990_v52 = vpop.f32.mrb[181].mxu0  ;;  %v6165_v16 = vld [vmem:[#allocation2 + $0xda] sm:$0xff] }
 0x3f1   : > { %v5663_v3 = vpop.f32.mrb[217].mxu1  ;;  %v4991_v27 = vpop.f32.mrb[182].mxu0 }
 0x3f2   : > { %v11956_v30 = vpop.f32.mrb[218].mxu1  ;;  %v11959_v38 = vadd.f32 %v11883_v45, %v4991_v27  ;;  %v4993_v12 = vpop.f32.mrb[183].mxu0 }
 0x3f3   : > { %v5666_v10 = vpop.f32.mrb[219].mxu1  ;;  %v6166_v12 = vld [vmem:[#allocation2 + $0xe2] sm:$0xff] }
 0x3f4   : > { %6549 = vmatmul.mubr.bf16.gmra.mrb[32].mxu0 %v11788_v55  ;;  %v6190_v55 = vpack.c.bf16 %v6166_v12, %v6165_v16 }
 0x3f5   : > { %6556 = vmatprep.mubr.bf16.mxu0 %v6189_v60 }
 0x3f7   : > { %v4996_v1 = vpop.f32.mrb[184].mxu0 }
 0x3f8   : > { %v11962_v48 = vpop.f32.mrb[220].mxu1  ;;  %v11965_v2 = vadd.f32 %v11895_v57, %v4996_v1  ;;  %v4998_v3 = vpop.f32.mrb[185].mxu0 }
 0x3f9   : > { %v5671_v50 = vpop.f32.mrb[221].mxu1  ;;  %v4999_v52 = vpop.f32.mrb[186].mxu0  ;;  %v6167_v3 = vld [vmem:[#allocation2 + $0xea] sm:$0xff] }
 0x3fa   : > { %v11967_v8 = vpop.f32.mrb[222].mxu1  ;;  %v11970_v45 = vadd.f32 %v11902_v47, %v4999_v52  ;;  %v5001_v27 = vpop.f32.mrb[187].mxu0 }
 0x3fb   : > { %v5674_v53 = vpop.f32.mrb[223].mxu1  ;;  %v6168_v27 = vld [vmem:[#allocation2 + $0xf2] sm:$0xff] }
 0x3fc   : > { %6557 = vmatmul.mubr.bf16.gmra.mrb[36].mxu0 %v11798_v28  ;;  %v6191_v28 = vpack.c.bf16 %v6168_v27, %v6167_v3 }
 0x3fd   : > { %6564 = vmatprep.mubr.bf16.mxu0 %v6190_v55 }
 0x3ff   : > { %v5004_v10 = vpop.f32.mrb[188].mxu0 }
 0x400   : > { %v11973_v17 = vpop.f32.mrb[224].mxu1  ;;  %v11976_v57 = vadd.f32 %v11890_v41, %v5004_v10  ;;  %v5006_v60 = vpop.f32.mrb[189].mxu0 }
 0x401   : > { %v5679_v1 = vpop.f32.mrb[225].mxu1  ;;  %v5007_v50 = vpop.f32.mrb[190].mxu0  ;;  %v6169_v60 = vld [vmem:[#allocation2 + $0xfa] sm:$0xff] }
 0x402   : > { %v11978_v24 = vpop.f32.mrb[226].mxu1  ;;  %v11981_v47 = vadd.f32 %v11897_v6, %v5007_v50  ;;  %v5009_v52 = vpop.f32.mrb[191].mxu0 }
 0x403   : > { %v5682_v16 = vpop.f32.mrb[227].mxu1  ;;  %v6170_v52 = vld [vmem:[#allocation2 + $0x102] sm:$0xff] }
 0x404   : > { %6565 = vmatmul.mubr.bf16.gmra.mrb[40].mxu0 %v11803_v56  ;;  %v6192_v56 = vpack.c.bf16 %v6170_v52, %v6169_v60 }
 0x405   : > { %6572 = vmatprep.mubr.bf16.mxu0 %v6191_v28 }
 0x407   : > { %v5012_v53 = vpop.f32.mrb[192].mxu0 }
 0x408   : > { %v11984_v12 = vpop.f32.mrb[228].mxu1  ;;  %v11987_v41 = vadd.f32 %v11910_v31, %v5012_v53  ;;  %v5014_v55 = vpop.f32.mrb[193].mxu0 }
 0x409   : > { %v5687_v10 = vpop.f32.mrb[229].mxu1  ;;  %v5015_v1 = vpop.f32.mrb[194].mxu0  ;;  %v6172_v55 = vld [vmem:[#allocation2 + $0x112] sm:$0xff] }
 0x40a   : > { %v11989_v58 = vpop.f32.mrb[230].mxu1  ;;  %v11992_v6 = vadd.f32 %v11917_v62, %v5015_v1  ;;  %v5017_v50 = vpop.f32.mrb[195].mxu0 }
 0x40b   : > { %v5690_v3 = vpop.f32.mrb[231].mxu1  ;;  %v6171_v50 = vld [vmem:[#allocation2 + $0x10a] sm:$0xff] }
 0x40c   : > { %13092 = vst [vmem:[#allocation17_spill] sm:$0xff] %v11992_v6  ;;  %6573 = vmatmul.mubr.bf16.gmra.mrb[44].mxu0 %v11813_v9  ;;  %v6193_v9 = vpack.c.bf16 %v6172_v55, %v6171_v50 }
 0x40d   : > { %6580 = vmatprep.mubr.bf16.mxu0 %v6192_v56 }
 0x40f   : > { %v5020_v16 = vpop.f32.mrb[196].mxu0 }
 0x410   : > { %v11995_v27 = vpop.f32.mrb[232].mxu1  ;;  %v11998_v31 = vadd.f32 %v11905_v18, %v5020_v16  ;;  %v5022_v28 = vpop.f32.mrb[197].mxu0 }
 0x411   : > { %v5695_v53 = vpop.f32.mrb[233].mxu1  ;;  %v5023_v10 = vpop.f32.mrb[198].mxu0  ;;  %v6174_v28 = vld [vmem:[#allocation2 + $0x122] sm:$0xff] }
 0x412   : > { %v12000_v42 = vpop.f32.mrb[234].mxu1  ;;  %v12003_v62 = vadd.f32 %v11912_v7, %v5023_v10  ;;  %v5025_v1 = vpop.f32.mrb[199].mxu0 }
 0x413   : > { %v5698_v60 = vpop.f32.mrb[235].mxu1  ;;  %v6173_v1 = vld [vmem:[#allocation2 + $0x11a] sm:$0xff] }
 0x414   : > { %6581 = vmatmul.mubr.bf16.gmra.mrb[48].mxu0 %v11818_v40  ;;  %v6194_v40 = vpack.c.bf16 %v6174_v28, %v6173_v1 }
 0x415   : > { %6588 = vmatprep.mubr.bf16.mxu0 %v6193_v9 }
 0x417   : > { %v5028_v3 = vpop.f32.mrb[200].mxu0 }
 0x418   : > { %v12006_v52 = vpop.f32.mrb[236].mxu1  ;;  %v12009_v18 = vadd.f32 %v11926_v14, %v5028_v3  ;;  %v5030_v56 = vpop.f32.mrb[201].mxu0 }
 0x419   : > { %v5703_v16 = vpop.f32.mrb[237].mxu1  ;;  %v5031_v53 = vpop.f32.mrb[202].mxu0  ;;  %v6176_v56 = vld [vmem:[#allocation2 + $0x132] sm:$0xff] }
 0x41a   : > { %13093 = vst [vmem:[#allocation33_spill] sm:$0xff] %v12009_v18  ;;  %v12011_v6 = vpop.f32.mrb[238].mxu1  ;;  %v12014_v7 = vadd.f32 %v11933_v29, %v5031_v53  ;;  %v5033_v10 = vpop.f32.mrb[203].mxu0 }
 0x41b   : > { %v5706_v55 = vpop.f32.mrb[239].mxu1  ;;  %v6175_v10 = vld [vmem:[#allocation2 + $0x12a] sm:$0xff] }
 0x41c   : > { %13094 = vst [vmem:[#allocation14_spill] sm:$0xff] %v12014_v7  ;;  %6589 = vmatmul.mubr.bf16.gmra.mrb[52].mxu0 %v11828_v11  ;;  %v6195_v11 = vpack.c.bf16 %v6176_v56, %v6175_v10 }
 0x41d   : > { %6596 = vmatprep.mubr.bf16.mxu0 %v6194_v40 }
 0x41f   : > { %v5036_v60 = vpop.f32.mrb[204].mxu0 }
 0x420   : > { %v12017_v50 = vpop.f32.mrb[240].mxu1  ;;  %v12020_v14 = vadd.f32 %v11921_v4, %v5036_v60  ;;  %v5038_v9 = vpop.f32.mrb[205].mxu0 }
 0x421   : > { %v5711_v3 = vpop.f32.mrb[241].mxu1  ;;  %v5039_v16 = vpop.f32.mrb[206].mxu0  ;;  %v6177_v9 = vld [vmem:[#allocation2 + $0x13a] sm:$0xff] }
 0x422   : > { %v12022_v18 = vpop.f32.mrb[242].mxu1  ;;  %v12025_v29 = vadd.f32 %v11928_v59, %v5039_v16  ;;  %v5041_v53 = vpop.f32.mrb[207].mxu0  ;;  %v6178_v3 = vld [vmem:[#allocation2 + $0x142] sm:$0xff] }
 0x423   : > { %v5714_v28 = vpop.f32.mrb[243].mxu1 }
 0x424   : > { %13095 = vst [vmem:[#allocation10_spill] sm:$0xff] %v12025_v29  ;;  %6597 = vmatmul.mubr.bf16.gmra.mrb[56].mxu0 %v11833_v21  ;;  %v6196_v21 = vpack.c.bf16 %v6178_v3, %v6177_v9 }
 0x425   : > { %6604 = vmatprep.mubr.bf16.mxu0 %v6195_v11  ;;  %v6124_v11 = vld [vmem:[#allocation2 + $0x141] sm:$0xff] }
 0x427   : > { %v5044_v55 = vpop.f32.mrb[208].mxu0 }
 0x428   : > { %v12028_v1 = vpop.f32.mrb[244].mxu1  ;;  %v12031_v4 = vadd.f32 %v11941_v19, %v5044_v55  ;;  %v5046_v40 = vpop.f32.mrb[209].mxu0  ;;  %v6123_v19 = vld [vmem:[#allocation2 + $0x139] sm:$0xff] }
 0x429   : > { %v5719_v60 = vpop.f32.mrb[245].mxu1  ;;  %v5047_v7 = vpop.f32.mrb[210].mxu0 }
 0x42a   : > { %13096 = vst [vmem:[#allocation24_spill] sm:$0xff] %v12031_v4  ;;  %v12033_v59 = vpop.f32.mrb[246].mxu1  ;;  %v12036_v16 = vadd.f32 %v11948_v23, %v5047_v7  ;;  %v5049_v56 = vpop.f32.mrb[211].mxu0 }
 0x42b   : > { %v5722_v53 = vpop.f32.mrb[247].mxu1 }
 0x42c   : > { %13097 = vst [vmem:[#allocation44_spill] sm:$0xff] %v12036_v16  ;;  %6605 = vmatmul.mubr.bf16.gmra.mrb[60].mxu0 %v11843_v63  ;;  %v6142_v63 = vpack.c.bf16 %v6124_v11, %v6123_v19 }
 0x42d   : > { %6612 = vmatprep.mubr.bf16.mxu0 %v6196_v21 }
 0x42f   : > { %v5052_v28 = vpop.f32.mrb[212].mxu0 }
 0x430   : > { %v12039_v10 = vpop.f32.mrb[248].mxu1  ;;  %v12042_v55 = vadd.f32 %v11936_v35, %v5052_v28  ;;  %v5054_v40 = vpop.f32.mrb[213].mxu0 }
 0x431   : > { %v5727_v60 = vpop.f32.mrb[249].mxu1  ;;  %v5055_v4 = vpop.f32.mrb[214].mxu0 }
 0x432   : > { %v12044_v29 = vpop.f32.mrb[250].mxu1  ;;  %v12047_v23 = vadd.f32 %v11943_v54, %v5055_v4  ;;  %v5057_v7 = vpop.f32.mrb[215].mxu0 }
 0x433   : > { %v5730_v9 = vpop.f32.mrb[251].mxu1 }
 0x434   : > { %6613 = vmatmul.mubr.bf16.gmra.mrb[64].mxu0 %v6142_v63 }
 0x437   : > { %v8055_v56 = vpop.f32.mrb[216].mxu0 }
 0x438   : > { %v12049_v3 = vpop.f32.mrb[252].mxu1  ;;  %v5847_v53 = vadd.f32 %v8055_v56, %v11962_v48  ;;  %v5838_v35 = vpop.f32.mrb[217].mxu0 }
 0x439   : > { %v5735_v21 = vpop.f32.mrb[253].mxu1  ;;  %v5839_v28 = vadd.f32 %v5838_v35, %v11951_v32  ;;  %v8056_v60 = vpop.f32.mrb[218].mxu0 }
 0x43a   : > { %v12053_v40 = vpop.f32.mrb[254].mxu1  ;;  %v12056_v16 = vadd.f32 %v5847_v53, %v11850_v46  ;;  %v5850_v54 = vadd.f32 %v8056_v60, %v11967_v8  ;;  %v5841_v19 = vpop.f32.mrb[219].mxu0 }
 0x43b   : > { %v5738_v4 = vpop.f32.mrb[255].mxu1  ;;  %v12060_v11 = vadd.f32 %v5839_v28, %v11846_v15  ;;  %v5842_v7 = vadd.f32 %v5841_v19, %v11956_v30 }
 0x43c   : > { %v12064_v48 = vadd.f32 %v5850_v54, %v11852_v25 }
 0x43d   : > { %v12067_v32 = vadd.f32 %v5842_v7, %v11848_v26 }
 0x43f   : > { %v8059_v63 = vpop.f32.mrb[220].mxu0 }
 0x440   : > { %v12069_v9 = vpop.f32.mrb[0].mxu1  ;;  %v5863_v46 = vadd.f32 %v8059_v63, %v11984_v12  ;;  %v5854_v8 = vpop.f32.mrb[221].mxu0 }
 0x441   : > { %v5743_v56 = vpop.f32.mrb[1].mxu1  ;;  %v5855_v53 = vadd.f32 %v5854_v8, %v11973_v17  ;;  %v8060_v15 = vpop.f32.mrb[222].mxu0 }
 0x442   : > { %v12073_v21 = vpop.f32.mrb[2].mxu1  ;;  %v12076_v30 = vadd.f32 %v5863_v46, %v11866_v37  ;;  %v5866_v25 = vadd.f32 %v8060_v15, %v11989_v58  ;;  %v5857_v26 = vpop.f32.mrb[223].mxu0 }
 0x443   : > { %v5746_v35 = vpop.f32.mrb[3].mxu1  ;;  %v12080_v28 = vadd.f32 %v5855_v53, %v11857_v20  ;;  %v5858_v60 = vadd.f32 %v5857_v26, %v11978_v24 }
 0x444   : > { %v12084_v12 = vadd.f32 %v5866_v25, %v11872_v36 }
 0x445   : > { %v12087_v17 = vadd.f32 %v5858_v60, %v11861_v44 }
 0x447   : > { %v8063_v4 = vpop.f32.mrb[224].mxu0 }
 0x448   : > { %v5749_v54 = vpop.f32.mrb[4].mxu1  ;;  %v5879_v37 = vadd.f32 %v8063_v4, %v12006_v52  ;;  %v5870_v7 = vpop.f32.mrb[225].mxu0 }
 0x449   : > { %v5751_v19 = vpop.f32.mrb[5].mxu1  ;;  %v5871_v58 = vadd.f32 %v5870_v7, %v11995_v27  ;;  %v8064_v46 = vpop.f32.mrb[226].mxu0 }
 0x44a   : > { %v5752_v63 = vpop.f32.mrb[6].mxu1  ;;  %v12092_v20 = vadd.f32 %v5879_v37, %v11893_v13  ;;  %v5882_v24 = vadd.f32 %v8064_v46, %v12011_v6  ;;  %v5873_v56 = vpop.f32.mrb[227].mxu0 }
 0x44b   : > { %v5754_v36 = vpop.f32.mrb[7].mxu1  ;;  %v12096_v44 = vadd.f32 %v5871_v58, %v11879_v49  ;;  %v5874_v8 = vadd.f32 %v5873_v56, %v12000_v42 }
 0x44c   : > { %v12100_v52 = vadd.f32 %v5882_v24, %v11900_v51 }
 0x44d   : > { %v12103_v53 = vadd.f32 %v5874_v8, %v11885_v33 }
 0x44f   : > { %v8067_v15 = vpop.f32.mrb[228].mxu0 }
 0x450   : > { %v5757_v27 = vpop.f32.mrb[8].mxu1  ;;  %v5895_v13 = vadd.f32 %v8067_v15, %v12028_v1  ;;  %v5886_v35 = vpop.f32.mrb[229].mxu0 }
 0x451   : > { %v5759_v25 = vpop.f32.mrb[9].mxu1  ;;  %v5887_v6 = vadd.f32 %v5886_v35, %v12017_v50  ;;  %v8068_v60 = vpop.f32.mrb[230].mxu0 }
 0x452   : > { %v5760_v26 = vpop.f32.mrb[10].mxu1  ;;  %v12108_v49 = vadd.f32 %v5895_v13, %v11924_v0  ;;  %v5898_v42 = vadd.f32 %v8068_v60, %v12033_v59  ;;  %v5889_v4 = vpop.f32.mrb[231].mxu0 }
 0x453   : > { %v5762_v51 = vpop.f32.mrb[11].mxu1  ;;  %v12112_v33 = vadd.f32 %v5887_v6, %v11908_v61  ;;  %v5890_v37 = vadd.f32 %v5889_v4, %v12022_v18 }
 0x454   : > { %v12116_v1 = vadd.f32 %v5898_v42, %v11931_v34 }
 0x455   : > { %v12119_v19 = vadd.f32 %v5890_v37, %v11915_v22 }
 0x457   : > { %v8071_v7 = vpop.f32.mrb[232].mxu0 }
 0x458   : > { %v5765_v50 = vpop.f32.mrb[12].mxu1  ;;  %v5911_v0 = vadd.f32 %v8071_v7, %v12049_v3  ;;  %v5902_v46 = vpop.f32.mrb[233].mxu0 }
 0x459   : > { %v5767_v58 = vpop.f32.mrb[13].mxu1  ;;  %v5903_v59 = vadd.f32 %v5902_v46, %v12039_v10  ;;  %v8072_v36 = vpop.f32.mrb[234].mxu0 }
 0x45a   : > { %v5768_v24 = vpop.f32.mrb[14].mxu1  ;;  %v12124_v61 = vadd.f32 %v5911_v0, %v11954_v43  ;;  %v5914_v18 = vadd.f32 %v8072_v36, %v12053_v40  ;;  %v5905_v56 = vpop.f32.mrb[235].mxu0 }
 0x45b   : > { %v5770_v34 = vpop.f32.mrb[15].mxu1  ;;  %v12128_v22 = vadd.f32 %v5903_v59, %v11939_v5  ;;  %v5906_v8 = vadd.f32 %v5905_v56, %v12044_v29 }
 0x45c   : > { %v12132_v3 = vadd.f32 %v5914_v18, %v11959_v38  ;;  %v13098_v34 = vld [vmem:[#allocation17_spill] sm:$0xff] }
 0x45d   : > { %v12135_v15 = vadd.f32 %v5906_v8, %v11946_v39 }
 0x45f   : > { %v8075_v13 = vpop.f32.mrb[236].mxu0 }
 0x460   : > { %v5773_v10 = vpop.f32.mrb[16].mxu1  ;;  %v5927_v25 = vadd.f32 %v8075_v13, %v5749_v54  ;;  %v5918_v35 = vpop.f32.mrb[237].mxu0 }
 0x461   : > { %v5775_v43 = vpop.f32.mrb[17].mxu1  ;;  %v5919_v40 = vadd.f32 %v5918_v35, %v12069_v9  ;;  %v8076_v60 = vpop.f32.mrb[238].mxu0 }
 0x462   : > { %v5776_v6 = vpop.f32.mrb[18].mxu1  ;;  %v12139_v5 = vadd.f32 %v5927_v25, %v11976_v57  ;;  %v5930_v42 = vadd.f32 %v8076_v60, %v5752_v63  ;;  %v5921_v51 = vpop.f32.mrb[239].mxu0  ;;  %v13099_v60 = vld [vmem:[#allocation33_spill] sm:$0xff] }
 0x463   : > { %v5778_v29 = vpop.f32.mrb[19].mxu1  ;;  %v12142_v38 = vadd.f32 %v5919_v40, %v11965_v2  ;;  %v5922_v39 = vadd.f32 %v5921_v51, %v12073_v21 }
 0x464   : > { %v12146_v4 = vadd.f32 %v5930_v42, %v11981_v47  ;;  %v13100_v29 = vld [vmem:[#allocation10_spill] sm:$0xff] }
 0x465   : > { %v12149_v54 = vadd.f32 %v5922_v39, %v11970_v45  ;;  %v13101_v39 = vld [vmem:[#allocation14_spill] sm:$0xff] }
 0x467   : > { %v8079_v37 = vpop.f32.mrb[240].mxu0 }
 0x468   : > { %v5781_v9 = vpop.f32.mrb[20].mxu1  ;;  %v5943_v7 = vadd.f32 %v8079_v37, %v5765_v50  ;;  %v5934_v57 = vpop.f32.mrb[241].mxu0 }
 0x469   : > { %v5783_v0 = vpop.f32.mrb[21].mxu1  ;;  %v5935_v58 = vadd.f32 %v5934_v57, %v5757_v27  ;;  %v8080_v46 = vpop.f32.mrb[242].mxu0 }
 0x46a   : > { %v5784_v63 = vpop.f32.mrb[22].mxu1  ;;  %v12152_v59 = vadd.f32 %v5943_v7, %v11998_v31  ;;  %v5946_v2 = vadd.f32 %v8080_v46, %v5768_v24  ;;  %v5937_v21 = vpop.f32.mrb[243].mxu0 }
 0x46b   : > { %v5786_v36 = vpop.f32.mrb[23].mxu1  ;;  %v12155_v47 = vadd.f32 %v5935_v58, %v11987_v41  ;;  %v5938_v18 = vadd.f32 %v5937_v21, %v5760_v26  ;;  %v13102_v21 = vld [vmem:[#allocation24_spill] sm:$0xff] }
 0x46c   : > { %v12158_v45 = vadd.f32 %v5946_v2, %v12003_v62 }
 0x46d   : > { %v12161_v50 = vadd.f32 %v5938_v18, %v13098_v34 }
 0x46f   : > { %v8083_v27 = vpop.f32.mrb[244].mxu0 }
 0x470   : > { %v5789_v56 = vpop.f32.mrb[24].mxu1  ;;  %v5959_v8 = vadd.f32 %v8083_v27, %v5781_v9  ;;  %v5950_v25 = vpop.f32.mrb[245].mxu0 }
 0x471   : > { %v5791_v13 = vpop.f32.mrb[25].mxu1  ;;  %v5951_v31 = vadd.f32 %v5950_v25, %v5773_v10  ;;  %v8084_v24 = vpop.f32.mrb[246].mxu0 }
 0x472   : > { %v5792_v43 = vpop.f32.mrb[26].mxu1  ;;  %v12164_v35 = vadd.f32 %v5959_v8, %v12020_v14  ;;  %v5962_v41 = vadd.f32 %v8084_v24, %v5784_v63  ;;  %v5953_v26 = vpop.f32.mrb[247].mxu0  ;;  %v13103_v8 = vld [vmem:[#allocation44_spill] sm:$0xff] }
 0x473   : > { %v5794_v40 = vpop.f32.mrb[27].mxu1  ;;  %v12167_v62 = vadd.f32 %v5951_v31, %v13099_v60  ;;  %v5954_v42 = vadd.f32 %v5953_v26, %v5776_v6 }
 0x474   : > { %v12170_v51 = vadd.f32 %v5962_v41, %v13100_v29 }
 0x475   : > { %v12173_v9 = vadd.f32 %v5954_v42, %v13101_v39 }
 0x477   : > { %v8087_v10 = vpop.f32.mrb[248].mxu0 }
 0x478   : > { %v5797_v37 = vpop.f32.mrb[28].mxu1  ;;  %v5966_v57 = vpop.f32.mrb[249].mxu0 }
 0x479   : > { %v5975_v7 = vadd.f32 %v8087_v10, %v5797_v37  ;;  %v5799_v0 = vpop.f32.mrb[29].mxu1  ;;  %v5967_v14 = vadd.f32 %v5966_v57, %v5789_v56  ;;  %v8088_v63 = vpop.f32.mrb[250].mxu0 }
 0x47a   : > { %v5800_v58 = vpop.f32.mrb[30].mxu1  ;;  %v5969_v6 = vpop.f32.mrb[251].mxu0 }
 0x47b   : > { %v12176_v46 = vadd.f32 %v5975_v7, %v12042_v55  ;;  %v5978_v2 = vadd.f32 %v8088_v63, %v5800_v58  ;;  %v5802_v36 = vpop.f32.mrb[31].mxu1  ;;  %v12179_v18 = vadd.f32 %v5967_v14, %v13102_v21  ;;  %v5970_v34 = vadd.f32 %v5969_v6, %v5792_v43 }
 0x47d   : > { %v12182_v27 = vadd.f32 %v5978_v2, %v12047_v23  ;;  %v12185_v13 = vadd.f32 %v5970_v34, %v13103_v8 }
 0x47f   : > { %v6478_v25 = vpop.f32.mrb[252].mxu0 }
 0x480   : > { %v8107_v56 = vpop.f32.mrb[32].mxu1  ;;  %v6480_v31 = vpop.f32.mrb[253].mxu0 }
 0x481   : > { %v6655_v24 = vpop.f32.mrb[33].mxu1  ;;  %v6481_v55 = vpop.f32.mrb[254].mxu0 }
 0x482   : > { %v6656_v41 = vadd.f32 %v6655_v24, %v6478_v25  ;;  %v8108_v40 = vpop.f32.mrb[34].mxu1  ;;  %v6483_v26 = vpop.f32.mrb[255].mxu0 }
 0x483   : > { %v6658_v60 = vpop.f32.mrb[35].mxu1 }
 0x484   : > { %v12188_v42 = vadd.f32 %v6656_v41, %v12060_v11  ;;  %v6659_v29 = vadd.f32 %v6658_v60, %v6481_v55 }
 0x486   : > { %13104 = vst [vmem:[#allocation17_spill] sm:$0xff] %v12188_v42  ;;  %v12191_v43 = vadd.f32 %v6659_v29, %v12067_v32 }
 0x487   : > { %v6486_v23 = vpop.f32.mrb[0].mxu0 }
 0x488   : > { %13105 = vst [vmem:[#allocation33_spill] sm:$0xff] %v12191_v43  ;;  %v8111_v39 = vpop.f32.mrb[36].mxu1  ;;  %v6664_v37 = vadd.f32 %v8107_v56, %v6486_v23  ;;  %v6488_v10 = vpop.f32.mrb[1].mxu0 }
 0x489   : > { %v6671_v7 = vpop.f32.mrb[37].mxu1  ;;  %v6489_v0 = vpop.f32.mrb[2].mxu0 }
 0x48a   : > { %v8112_v57 = vpop.f32.mrb[38].mxu1  ;;  %v12194_v14 = vadd.f32 %v6664_v37, %v12056_v16  ;;  %v6667_v58 = vadd.f32 %v8108_v40, %v6489_v0  ;;  %v6491_v63 = vpop.f32.mrb[3].mxu0  ;;  %v13109_v0 = vld [vmem:[#allocation15_spill] sm:$0xff] }
 0x48b   : > { %v6674_v2 = vpop.f32.mrb[39].mxu1  ;;  %vm13110_vm14 = vnez %v13109_v0 }
 0x48c   : > { %13106 = vst [vmem:[#allocation10_spill] sm:$0xff] %v12194_v14  ;;  %v12197_v11 = vadd.f32 %v6667_v58, %v12064_v48 }
 0x48e   : > { %13107 = vst [vmem:[#allocation14_spill] sm:$0xff] %v12197_v11 }
 0x48f   : > { %v6494_v36 = vpop.f32.mrb[4].mxu0 }
 0x490   : > { %v8115_v6 = vpop.f32.mrb[40].mxu1  ;;  %v6672_v32 = vadd.f32 %v6671_v7, %v6494_v36  ;;  %v6496_v21 = vpop.f32.mrb[5].mxu0 }
 0x491   : > { %v6687_v34 = vpop.f32.mrb[41].mxu1  ;;  %v6497_v8 = vpop.f32.mrb[6].mxu0 }
 0x492   : > { %v8116_v25 = vpop.f32.mrb[42].mxu1  ;;  %v12200_v56 = vadd.f32 %v6672_v32, %v12080_v28  ;;  %v6675_v31 = vadd.f32 %v6674_v2, %v6497_v8  ;;  %v6499_v24 = vpop.f32.mrb[7].mxu0  ;;  %v13113_v2 = vld [vmem:[#allocation11_spill] sm:$0xff] }
 0x493   : > { %v6690_v16 = vpop.f32.mrb[43].mxu1  ;;  %vm13114_vm7 = vnez %v13113_v2 }
 0x494   : > { %v12203_v41 = vadd.f32 %v6675_v31, %v12087_v17  ;;  %v6943_v17 = vsel %vm13110_vm14, %v12191_v43, 0.0 }
 0x495   : > { %v7021_v36 = vmul.f32 %v6943_v17, %v6943_v17 }
 0x497   : > { %v6502_v55 = vpop.f32.mrb[8].mxu0 }
 0x498   : > { %v12205_v40 = vpop.f32.mrb[44].mxu1  ;;  %v6680_v48 = vadd.f32 %v8111_v39, %v6502_v55  ;;  %v6504_v26 = vpop.f32.mrb[9].mxu0  ;;  %v13111_v39 = vld [vmem:[#allocation12_spill] sm:$0xff] }
 0x499   : > { %v6703_v60 = vpop.f32.mrb[45].mxu1  ;;  %v6505_v29 = vpop.f32.mrb[10].mxu0  ;;  %vm13112_vm15 = vnez %v13111_v39 }
 0x49a   : > { %v12207_v23 = vpop.f32.mrb[46].mxu1  ;;  %v12210_v37 = vadd.f32 %v6680_v48, %v12076_v30  ;;  %v6683_v28 = vadd.f32 %v8112_v57, %v6505_v29  ;;  %v6507_v10 = vpop.f32.mrb[11].mxu0  ;;  %v6942_v63 = vsel %vm13112_vm15, %v12188_v42, 0.0  ;;  %v6944_v30 = vsel %vm13114_vm7, %v12194_v14, 0.0  ;;  %v13115_v29 = vld [vmem:[#allocation16_spill] sm:$0xff] }
 0x49b   : > { %v12212_v7 = vpop.f32.mrb[47].mxu1  ;;  %v7020_v24 = vmul.f32 %v6942_v63, %v6942_v63  ;;  %v6978_v55 = vadd.f32 %v6943_v17, %v6942_v63  ;;  %vm13116_vm2 = vnez %v13115_v29  ;;  %v6946_v17 = vsel %vm10358_vm5, %v12200_v56, 0.0 }
 0x49c   : > { %13108 = vst [vmem:[#allocation24_spill] sm:$0xff] %v12210_v37  ;;  %v12218_v58 = vadd.f32 %v6683_v28, %v12084_v12  ;;  %v7022_v12 = vmul.f32 %v6944_v30, %v6944_v30  ;;  %v6945_v28 = vsel %vm13116_vm2, %v12197_v11, 0.0  ;;  %v7024_v11 = vmul.f32 %v6946_v17, %v6946_v17 }
 0x49d   : > { %v7023_v43 = vmul.f32 %v6945_v28, %v6945_v28 }
 0x49f   : > { %v6510_v57 = vpop.f32.mrb[12].mxu0 }
 0x4a0   : > { %v12226_v32 = vpop.f32.mrb[48].mxu1  ;;  %v6688_v21 = vadd.f32 %v6687_v34, %v6510_v57  ;;  %v6512_v8 = vpop.f32.mrb[13].mxu0  ;;  %v7056_v34 = vadd.f32 %v7021_v36, %v7020_v24  ;;  %v6979_v57 = vadd.f32 %v6978_v55, %v6944_v30 }
 0x4a1   : > { %v12228_v31 = vpop.f32.mrb[49].mxu1  ;;  %v6513_v48 = vpop.f32.mrb[14].mxu0 }
 0x4a2   : > { %v12230_v26 = vpop.f32.mrb[50].mxu1  ;;  %v12236_v10 = vadd.f32 %v6688_v21, %v12096_v44  ;;  %v6691_v0 = vadd.f32 %v6690_v16, %v6513_v48  ;;  %v6515_v39 = vpop.f32.mrb[15].mxu0  ;;  %v7057_v14 = vadd.f32 %v7056_v34, %v7022_v12  ;;  %v6980_v29 = vadd.f32 %v6979_v57, %v6945_v28 }
 0x4a3   : > { %v12238_v2 = vpop.f32.mrb[51].mxu1  ;;  %v6947_v21 = vsel %vm10400_vm6, %v12203_v41, 0.0  ;;  %v6948_v28 = vsel %vm10388_vm4, %v12210_v37, 0.0 }
 0x4a4   : > { %13117 = vst [vmem:[#allocation44_spill] sm:$0xff] %v12236_v10  ;;  %v12244_v63 = vadd.f32 %v6691_v0, %v12103_v53  ;;  %v7058_v55 = vadd.f32 %v7057_v14, %v7023_v43  ;;  %v6981_v48 = vadd.f32 %v6980_v29, %v6946_v17  ;;  %v7026_v14 = vmul.f32 %v6948_v28, %v6948_v28 }
 0x4a5   : > { %v6949_v29 = vsel %vm10434_vm13, %v12218_v58, 0.0 }
 0x4a6   : > { %13119 = vst [vmem:[#allocation15_spill] sm:$0xff] %v12244_v63  ;;  %v6982_v43 = vadd.f32 %v6981_v48, %v6947_v21 }
 0x4a7   : > { %v6518_v42 = vpop.f32.mrb[16].mxu0 }
 0x4a8   : > { %v12246_v44 = vpop.f32.mrb[52].mxu1  ;;  %v6696_v36 = vadd.f32 %v8115_v6, %v6518_v42  ;;  %v6520_v30 = vpop.f32.mrb[17].mxu0  ;;  %v7059_v42 = vadd.f32 %v7058_v55, %v7024_v11  ;;  %v7025_v6 = vmul.f32 %v6947_v21, %v6947_v21  ;;  %v6983_v12 = vadd.f32 %v6982_v43, %v6948_v28 }
 0x4a9   : > { %v12251_v24 = vpop.f32.mrb[53].mxu1  ;;  %v6521_v39 = vpop.f32.mrb[18].mxu0  ;;  %v7027_v21 = vmul.f32 %v6949_v29, %v6949_v29 }
 0x4aa   : > { %v12253_v53 = vpop.f32.mrb[54].mxu1  ;;  %v12259_v0 = vadd.f32 %v6696_v36, %v12092_v20  ;;  %v6699_v34 = vadd.f32 %v8116_v25, %v6521_v39  ;;  %v6523_v57 = vpop.f32.mrb[19].mxu0  ;;  %v7060_v30 = vadd.f32 %v7059_v42, %v7025_v6  ;;  %v6950_v36 = vsel %vm10473_vm3, %v12236_v10, 0.0 }
 0x4ab   : > { %v12261_v8 = vpop.f32.mrb[55].mxu1  ;;  %v6984_v43 = vadd.f32 %v6983_v12, %v6949_v29  ;;  %v7028_v17 = vmul.f32 %v6950_v36, %v6950_v36 }
 0x4ac   : > { %13122 = vst [vmem:[#allocation12_spill] sm:$0xff] %v12259_v0  ;;  %v12264_v16 = vadd.f32 %v6699_v34, %v12100_v52  ;;  %v7061_v52 = vadd.f32 %v7060_v30, %v7026_v14 }
 0x4ad   : > { %v6985_v25 = vadd.f32 %v6984_v43, %v6950_v36  ;;  %v13130_v36 = vld [vmem:[#allocation32_spill] sm:$0xff] }
 0x4ae   : > { %13123 = vst [vmem:[#allocation11_spill] sm:$0xff] %v12264_v16  ;;  %v7062_v30 = vadd.f32 %v7061_v52, %v7027_v21  ;;  %vm13131_vm6 = vnez %v13130_v36 }
 0x4af   : > { %v6526_v37 = vpop.f32.mrb[20].mxu0  ;;  %v6953_v52 = vsel %vm13131_vm6, %v12264_v16, 0.0 }
 0x4b0   : > { %v12269_v20 = vpop.f32.mrb[56].mxu1  ;;  %v6704_v11 = vadd.f32 %v6703_v60, %v6526_v37  ;;  %v6528_v55 = vpop.f32.mrb[21].mxu0  ;;  %v13126_v60 = vld [vmem:[#allocation34_spill] sm:$0xff]  ;;  %v7031_v36 = vmul.f32 %v6953_v52, %v6953_v52 }
 0x4b1   : > { %v12274_v39 = vpop.f32.mrb[57].mxu1  ;;  %v6529_v48 = vpop.f32.mrb[22].mxu0  ;;  %vm13127_vm5 = vnez %v13126_v60  ;;  %v13128_v55 = vld [vmem:[#allocation20_spill] sm:$0xff] }
 0x4b2   : > { %v12276_v34 = vpop.f32.mrb[58].mxu1  ;;  %v12279_v57 = vadd.f32 %v6704_v11, %v12112_v33  ;;  %v6707_v28 = vadd.f32 %v12212_v7, %v6529_v48  ;;  %v6531_v42 = vpop.f32.mrb[23].mxu0  ;;  %v6951_v37 = vsel %vm13127_vm5, %v12244_v63, 0.0  ;;  %vm13129_vm4 = vnez %v13128_v55 }
 0x4b3   : > { %v12282_v6 = vpop.f32.mrb[59].mxu1  ;;  %v6952_v33 = vsel %vm13129_vm4, %v12259_v0, 0.0  ;;  %v7063_v11 = vadd.f32 %v7062_v30, %v7028_v17  ;;  %v7029_v7 = vmul.f32 %v6951_v37, %v6951_v37  ;;  %v6986_v60 = vadd.f32 %v6985_v25, %v6951_v37  ;;  %v13133_v37 = vld [vmem:[#allocation35_spill] sm:$0xff] }
 0x4b4   : > { %v12288_v14 = vadd.f32 %v6707_v28, %v12119_v19  ;;  %v7030_v63 = vmul.f32 %v6952_v33, %v6952_v33  ;;  %vm13134_vm3 = vnez %v13133_v37 }
 0x4b5   : > { %v6987_v55 = vadd.f32 %v6986_v60, %v6952_v33  ;;  %v6954_v25 = vsel %vm13134_vm3, %v12279_v57, 0.0 }
 0x4b6   : > { %v7032_v0 = vmul.f32 %v6954_v25, %v6954_v25 }
 0x4b7   : > { %v6534_v48 = vpop.f32.mrb[24].mxu0  ;;  %v6988_v16 = vadd.f32 %v6987_v55, %v6953_v52 }
 0x4b8   : > { %v12293_v42 = vpop.f32.mrb[60].mxu1  ;;  %v6712_v29 = vadd.f32 %v12205_v40, %v6534_v48  ;;  %v6536_v12 = vpop.f32.mrb[25].mxu0  ;;  %v7064_v40 = vadd.f32 %v7063_v11, %v7029_v7 }
 0x4b9   : > { %v12296_v10 = vpop.f32.mrb[61].mxu1  ;;  %v6537_v19 = vpop.f32.mrb[26].mxu0 }
 0x4ba   : > { %v12298_v28 = vpop.f32.mrb[62].mxu1  ;;  %v12304_v21 = vadd.f32 %v6712_v29, %v12108_v49  ;;  %v6715_v43 = vadd.f32 %v12207_v23, %v6537_v19  ;;  %v6539_v17 = vpop.f32.mrb[27].mxu0  ;;  %v7065_v12 = vadd.f32 %v7064_v40, %v7030_v63  ;;  %v13135_v23 = vld [vmem:[#allocation21_spill] sm:$0xff] }
 0x4bb   : > { %v12307_v30 = vpop.f32.mrb[63].mxu1  ;;  %vm13136_vm13 = vnez %v13135_v23  ;;  %v6989_v17 = vadd.f32 %v6988_v16, %v6954_v25 }
 0x4bc   : > { %13132 = vst [vmem:[#allocation16_spill] sm:$0xff] %v12304_v21  ;;  %v12313_v48 = vadd.f32 %v6715_v43, %v12116_v1  ;;  %v6955_v19 = vsel %vm13136_vm13, %v12288_v14, 0.0  ;;  %v7066_v60 = vadd.f32 %v7065_v12, %v7031_v36  ;;  %v6956_v52 = vsel %vm10648_vm9, %v12304_v21, 0.0  ;;  %v13138_v36 = vld [vmem:[#allocation5_spill] sm:$0xff] }
 0x4bd   : > { %v6990_v16 = vadd.f32 %v6989_v17, %v6955_v19  ;;  %v7034_v25 = vmul.f32 %v6956_v52, %v6956_v52  ;;  %vm13139_vm14 = vnez %v13138_v36 }
 0x4bf   : > { %v6542_v49 = vpop.f32.mrb[28].mxu0  ;;  %v6991_v21 = vadd.f32 %v6990_v16, %v6956_v52  ;;  %v13142_v52 = vld [vmem:[#allocation8_spill] sm:$0xff] }
 0x4c0   : > { %v12315_v29 = vpop.f32.mrb[64].mxu1  ;;  %v6720_v33 = vadd.f32 %v12228_v31, %v6542_v49  ;;  %v6544_v11 = vpop.f32.mrb[29].mxu0  ;;  %v7067_v31 = vadd.f32 %v7066_v60, %v7032_v0  ;;  %v7033_v49 = vmul.f32 %v6955_v19, %v6955_v19  ;;  %vm13143_vm15 = vnez %v13142_v52 }
 0x4c1   : > { %v12321_v7 = vpop.f32.mrb[65].mxu1  ;;  %v6545_v1 = vpop.f32.mrb[30].mxu0  ;;  %v6957_v11 = vsel %vm13139_vm14, %v12313_v48, 0.0 }
 0x4c2   : > { %v12323_v43 = vpop.f32.mrb[66].mxu1  ;;  %v12329_v40 = vadd.f32 %v6720_v33, %v12128_v22  ;;  %v6723_v55 = vadd.f32 %v12238_v2, %v6545_v1  ;;  %v6547_v37 = vpop.f32.mrb[31].mxu0  ;;  %v7068_v63 = vadd.f32 %v7067_v31, %v7033_v49  ;;  %v13140_v33 = vld [vmem:[#allocation4_spill] sm:$0xff]  ;;  %v6992_v36 = vadd.f32 %v6991_v21, %v6957_v11 }
 0x4c3   : > { %v12332_v23 = vpop.f32.mrb[67].mxu1  ;;  %vm13141_vm9 = vnez %v13140_v33  ;;  %v7035_v37 = vmul.f32 %v6957_v11, %v6957_v11 }
 0x4c4   : > { %v12335_v12 = vadd.f32 %v6723_v55, %v12135_v15  ;;  %v6958_v2 = vsel %vm13141_vm9, %v12329_v40, 0.0  ;;  %v7069_v60 = vadd.f32 %v7068_v63, %v7034_v25  ;;  %v13144_v25 = vld [vmem:[#allocation6_spill] sm:$0xff] }
 0x4c5   : > { %v7036_v31 = vmul.f32 %v6958_v2, %v6958_v2  ;;  %vm13145_vm7 = vnez %v13144_v25 }
 0x4c6   : > { %v6959_v49 = vsel %vm13143_vm15, %v12335_v12, 0.0 }
 0x4c7   : > { %v6550_v22 = vpop.f32.mrb[32].mxu0  ;;  %v7037_v33 = vmul.f32 %v6959_v49, %v6959_v49 }
 0x4c8   : > { %v6728_v1 = vadd.f32 %v12226_v32, %v6550_v22  ;;  %v6552_v0 = vpop.f32.mrb[33].mxu0  ;;  %v7070_v32 = vadd.f32 %v7069_v60, %v7035_v37  ;;  %v6993_v22 = vadd.f32 %v6992_v36, %v6958_v2 }
 0x4c9   : > { %v6553_v15 = vpop.f32.mrb[34].mxu0 }
 0x4ca   : > { %v12345_v19 = vadd.f32 %v6728_v1, %v12124_v61  ;;  %v6731_v17 = vadd.f32 %v12230_v26, %v6553_v15  ;;  %v6555_v55 = vpop.f32.mrb[35].mxu0  ;;  %v7071_v61 = vadd.f32 %v7070_v32, %v7036_v31  ;;  %v6994_v11 = vadd.f32 %v6993_v22, %v6959_v49  ;;  %v13148_v31 = vld [vmem:[#allocation7_spill] sm:$0xff] }
 0x4cb   : > { %v13146_v55 = vld [vmem:[#allocation9_spill] sm:$0xff]  ;;  %vm13149_vm5 = vnez %v13148_v31 }
 0x4cc   : > { %v12352_v16 = vadd.f32 %v6731_v17, %v12132_v3  ;;  %v6960_v63 = vsel %vm13145_vm7, %v12345_v19, 0.0  ;;  %vm13147_vm2 = vnez %v13146_v55  ;;  %v7072_v17 = vadd.f32 %v7071_v61, %v7037_v33 }
 0x4cd   : > { %v7038_v0 = vmul.f32 %v6960_v63, %v6960_v63  ;;  %v6995_v36 = vadd.f32 %v6994_v11, %v6960_v63 }
 0x4ce   : > { %v6961_v3 = vsel %vm13147_vm2, %v12352_v16, 0.0 }
 0x4cf   : > { %v6558_v1 = vpop.f32.mrb[36].mxu0  ;;  %v7073_v49 = vadd.f32 %v7072_v17, %v7038_v0  ;;  %v7039_v32 = vmul.f32 %v6961_v3, %v6961_v3  ;;  %v6996_v22 = vadd.f32 %v6995_v36, %v6961_v3  ;;  %v13152_v36 = vld [vmem:[#allocation23_spill] sm:$0xff] }
 0x4d0   : > { %v6736_v26 = vadd.f32 %v12251_v24, %v6558_v1  ;;  %v6560_v21 = vpop.f32.mrb[37].mxu0 }
 0x4d1   : > { %v6561_v15 = vpop.f32.mrb[38].mxu0  ;;  %v7074_v63 = vadd.f32 %v7073_v49, %v7039_v32 }
 0x4d2   : > { %v12362_v60 = vadd.f32 %v6736_v26, %v12142_v38  ;;  %v6739_v2 = vadd.f32 %v12261_v8, %v6561_v15  ;;  %v6563_v37 = vpop.f32.mrb[39].mxu0 }
 0x4d4   : > { %v6962_v24 = vsel %vm13149_vm5, %v12362_v60, 0.0  ;;  %v12369_v52 = vadd.f32 %v6739_v2, %v12149_v54 }
 0x4d5   : > { %v7040_v25 = vmul.f32 %v6962_v24, %v6962_v24  ;;  %v6997_v33 = vadd.f32 %v6996_v22, %v6962_v24 }
 0x4d6   : > { %v6963_v26 = vsel %vm10924_vm11, %v12369_v52, 0.0  ;;  %vm13153_vm11 = vnez %v13152_v36 }
 0x4d7   : > { %v6566_v1 = vpop.f32.mrb[40].mxu0  ;;  %v7075_v15 = vadd.f32 %v7074_v63, %v7040_v25  ;;  %v7041_v55 = vmul.f32 %v6963_v26, %v6963_v26  ;;  %v13154_v63 = vld [vmem:[#allocation26_spill] sm:$0xff] }
 0x4d8   : > { %v6744_v8 = vadd.f32 %v12246_v44, %v6566_v1  ;;  %v6568_v61 = vpop.f32.mrb[41].mxu0  ;;  %v6998_v44 = vadd.f32 %v6997_v33, %v6963_v26 }
 0x4d9   : > { %v6569_v21 = vpop.f32.mrb[42].mxu0 }
 0x4da   : > { %v12376_v11 = vadd.f32 %v6744_v8, %v12139_v5  ;;  %v6747_v54 = vadd.f32 %v12253_v53, %v6569_v21  ;;  %v6571_v0 = vpop.f32.mrb[43].mxu0  ;;  %v7076_v5 = vadd.f32 %v7075_v15, %v7041_v55 }
 0x4db   : > { %v13156_v0 = vld [vmem:[#allocation25_spill] sm:$0xff] }
 0x4dc   : > { %v6964_v2 = vsel %vm10950_vm0, %v12376_v11, 0.0  ;;  %v12383_v37 = vadd.f32 %v6747_v54, %v12146_v4  ;;  %vm13155_vm0 = vnez %v13154_v63  ;;  %vm13157_vm4 = vnez %v13156_v0  ;;  %v13162_v0 = vld [vmem:[#allocation36_spill] sm:$0xff] }
 0x4dd   : > { %v7042_v17 = vmul.f32 %v6964_v2, %v6964_v2  ;;  %v6999_v24 = vadd.f32 %v6998_v44, %v6964_v2  ;;  %vm13163_vm13 = vnez %v13162_v0 }
 0x4de   : > { %v6965_v31 = vsel %vm13153_vm11, %v12383_v37, 0.0 }
 0x4df   : > { %v6574_v49 = vpop.f32.mrb[44].mxu0  ;;  %v7077_v22 = vadd.f32 %v7076_v5, %v7042_v17  ;;  %v7043_v25 = vmul.f32 %v6965_v31, %v6965_v31  ;;  %v7000_v8 = vadd.f32 %v6999_v24, %v6965_v31 }
 0x4e0   : > { %v6752_v53 = vadd.f32 %v12274_v39, %v6574_v49  ;;  %v6576_v32 = vpop.f32.mrb[45].mxu0  ;;  %v13158_v49 = vld [vmem:[#allocation28_spill] sm:$0xff] }
 0x4e1   : > { %v6577_v1 = vpop.f32.mrb[46].mxu0  ;;  %v7078_v54 = vadd.f32 %v7077_v22, %v7043_v25  ;;  %vm13159_vm6 = vnez %v13158_v49 }
 0x4e2   : > { %v12390_v38 = vadd.f32 %v6752_v53, %v12155_v47  ;;  %v6755_v4 = vadd.f32 %v12282_v6, %v6577_v1  ;;  %v6579_v26 = vpop.f32.mrb[47].mxu0 }
 0x4e4   : > { %v12394_v61 = vadd.f32 %v6755_v4, %v12161_v50  ;;  %v6966_v33 = vsel %vm13155_vm0, %v12390_v38, 0.0 }
 0x4e5   : > { %v7001_v21 = vadd.f32 %v7000_v8, %v6966_v33  ;;  %v7044_v39 = vmul.f32 %v6966_v33, %v6966_v33 }
 0x4e6   : > { %v6967_v15 = vsel %vm13157_vm4, %v12394_v61, 0.0 }
 0x4e7   : > { %v6582_v47 = vpop.f32.mrb[48].mxu0  ;;  %v7002_v55 = vadd.f32 %v7001_v21, %v6967_v15  ;;  %v7045_v3 = vmul.f32 %v6967_v15, %v6967_v15  ;;  %v7079_v6 = vadd.f32 %v7078_v54, %v7044_v39 }
 0x4e8   : > { %v6760_v2 = vadd.f32 %v12269_v20, %v6582_v47  ;;  %v6584_v44 = vpop.f32.mrb[49].mxu0  ;;  %v13160_v20 = vld [vmem:[#allocation29_spill] sm:$0xff] }
 0x4e9   : > { %v6585_v50 = vpop.f32.mrb[50].mxu0  ;;  %v7080_v17 = vadd.f32 %v7079_v6, %v7045_v3  ;;  %vm13161_vm3 = vnez %v13160_v20 }
 0x4ea   : > { %v12404_v36 = vadd.f32 %v6760_v2, %v12152_v59  ;;  %v6763_v31 = vadd.f32 %v12276_v34, %v6585_v50  ;;  %v6587_v5 = vpop.f32.mrb[51].mxu0 }
 0x4ec   : > { %v12408_v24 = vadd.f32 %v6763_v31, %v12158_v45  ;;  %v6968_v53 = vsel %vm13159_vm6, %v12404_v36, 0.0 }
 0x4ed   : > { %v7003_v32 = vadd.f32 %v7002_v55, %v6968_v53  ;;  %v7046_v22 = vmul.f32 %v6968_v53, %v6968_v53 }
 0x4ee   : > { %v6969_v25 = vsel %vm13161_vm3, %v12408_v24, 0.0 }
 0x4ef   : > { %v6590_v1 = vpop.f32.mrb[52].mxu0  ;;  %v7004_v4 = vadd.f32 %v7003_v32, %v6969_v25  ;;  %v7047_v59 = vmul.f32 %v6969_v25, %v6969_v25  ;;  %v7081_v26 = vadd.f32 %v7080_v17, %v7046_v22  ;;  %v13166_v32 = vld [vmem:[#allocation38_spill] sm:$0xff] }
 0x4f0   : > { %v6768_v34 = vadd.f32 %v12296_v10, %v6590_v1  ;;  %v6592_v8 = vpop.f32.mrb[53].mxu0  ;;  %v13164_v10 = vld [vmem:[#allocation37_spill] sm:$0xff]  ;;  %vm13167_vm9 = vnez %v13166_v32 }
 0x4f1   : > { %v6593_v63 = vpop.f32.mrb[54].mxu0  ;;  %v7082_v45 = vadd.f32 %v7081_v26, %v7047_v59  ;;  %vm13165_vm14 = vnez %v13164_v10 }
 0x4f2   : > { %v12418_v33 = vadd.f32 %v6768_v34, %v12167_v62  ;;  %v6771_v21 = vadd.f32 %v12307_v30, %v6593_v63  ;;  %v6595_v39 = vpop.f32.mrb[55].mxu0 }
 0x4f4   : > { %v12422_v54 = vadd.f32 %v6771_v21, %v12173_v9  ;;  %v6970_v15 = vsel %vm13163_vm13, %v12418_v33, 0.0 }
 0x4f5   : > { %v7005_v47 = vadd.f32 %v7004_v4, %v6970_v15  ;;  %v7048_v55 = vmul.f32 %v6970_v15, %v6970_v15 }
 0x4f6   : > { %v6971_v3 = vsel %vm13165_vm14, %v12422_v54, 0.0 }
 0x4f7   : > { %v6598_v6 = vpop.f32.mrb[56].mxu0  ;;  %v7006_v2 = vadd.f32 %v7005_v47, %v6971_v3  ;;  %v7049_v62 = vmul.f32 %v6971_v3, %v6971_v3  ;;  %v7083_v44 = vadd.f32 %v7082_v45, %v7048_v55 }
 0x4f8   : > { %v6776_v30 = vadd.f32 %v12293_v42, %v6598_v6  ;;  %v6600_v50 = vpop.f32.mrb[57].mxu0  ;;  %v13168_v42 = vld [vmem:[#allocation39_spill] sm:$0xff] }
 0x4f9   : > { %v6601_v17 = vpop.f32.mrb[58].mxu0  ;;  %v7084_v9 = vadd.f32 %v7083_v44, %v7049_v62  ;;  %vm13169_vm15 = vnez %v13168_v42 }
 0x4fa   : > { %v12432_v31 = vadd.f32 %v6776_v30, %v12164_v35  ;;  %v6779_v5 = vadd.f32 %v12298_v28, %v6601_v17  ;;  %v6603_v49 = vpop.f32.mrb[59].mxu0 }
 0x4fc   : > { %v12436_v53 = vadd.f32 %v6779_v5, %v12170_v51  ;;  %v6972_v22 = vsel %vm13167_vm9, %v12432_v31, 0.0 }
 0x4fd   : > { %v7007_v20 = vadd.f32 %v7006_v2, %v6972_v22  ;;  %v7050_v25 = vmul.f32 %v6972_v22, %v6972_v22 }
 0x4fe   : > { %v6973_v1 = vsel %vm13169_vm15, %v12436_v53, 0.0 }
 0x4ff   : > { %v6606_v4 = vpop.f32.mrb[60].mxu0  ;;  %v7008_v59 = vadd.f32 %v7007_v20, %v6973_v1  ;;  %v7051_v35 = vmul.f32 %v6973_v1, %v6973_v1  ;;  %v7085_v26 = vadd.f32 %v7084_v9, %v7050_v25 }
 0x500   : > { %v6784_v28 = vadd.f32 %v12321_v7, %v6606_v4  ;;  %v6608_v34 = vpop.f32.mrb[61].mxu0 }
 0x501   : > { %v6609_v8 = vpop.f32.mrb[62].mxu0  ;;  %v7086_v51 = vadd.f32 %v7085_v26, %v7051_v35 }
 0x502   : > { %v12446_v63 = vadd.f32 %v6784_v28, %v12179_v18  ;;  %v6787_v45 = vadd.f32 %v12332_v23, %v6609_v8  ;;  %v6611_v21 = vpop.f32.mrb[63].mxu0 }
 0x504   : > { %v12450_v39 = vadd.f32 %v6787_v45, %v12185_v13  ;;  %v6974_v15 = vsel %vm11302_vm1, %v12446_v63, 0.0 }
 0x505   : > { %v7009_v47 = vadd.f32 %v7008_v59, %v6974_v15  ;;  %v7052_v55 = vmul.f32 %v6974_v15, %v6974_v15 }
 0x506   : > { %v6975_v10 = vsel %vm11309_vm12, %v12450_v39, 0.0 }
 0x507   : > { %v6614_v3 = vpop.f32.mrb[64].mxu0  ;;  %v7010_v6 = vadd.f32 %v7009_v47, %v6975_v10  ;;  %v7053_v18 = vmul.f32 %v6975_v10, %v6975_v10  ;;  %v7087_v2 = vadd.f32 %v7086_v51, %v7052_v55 }
 0x508   : > { %v6792_v23 = vadd.f32 %v12315_v29, %v6614_v3  ;;  %v6616_v62 = vpop.f32.mrb[65].mxu0 }
 0x509   : > { %v6617_v44 = vpop.f32.mrb[66].mxu0  ;;  %v7088_v13 = vadd.f32 %v7087_v2, %v7053_v18 }
 0x50a   : > { %v12460_v30 = vadd.f32 %v6792_v23, %v12176_v46  ;;  %v6795_v50 = vadd.f32 %v12323_v43, %v6617_v44  ;;  %v6619_v17 = vpop.f32.mrb[67].mxu0 }
 0x50c   : > { %v12464_v9 = vadd.f32 %v6795_v50, %v12182_v27  ;;  %v6976_v49 = vsel %vm11334_vm10, %v12460_v30, 0.0 }
 0x50d   : > { %v7011_v32 = vadd.f32 %v7010_v6, %v6976_v49  ;;  %v7054_v22 = vmul.f32 %v6976_v49, %v6976_v49 }
 0x50e   : > { %v6977_v20 = vsel %vm11341_vm8, %v12464_v9, 0.0 }
 0x50f   : > { %v7012_v25 = vadd.f32 %v7011_v32, %v6977_v20  ;;  %v7055_v42 = vmul.f32 %v6977_v20, %v6977_v20  ;;  %v7089_v46 = vadd.f32 %v7088_v13, %v7054_v22  ;;  %v13174_v22 = vld [vmem:[#allocation17_spill] sm:$0xff] }
 0x510   : > { %v13175_v20 = vld [vmem:[#allocation33_spill] sm:$0xff] }
 0x511   : > { %v7013_v1 = vrot.slane %v7012_v25, 4  ;;  %v7090_v4 = vadd.f32 %v7089_v46, %v7055_v42  ;;  %v13176_v42 = vld [vmem:[#allocation10_spill] sm:$0xff] }
 0x513   : > { %v7014_v43 = vadd.f32 %v7013_v1, %v7012_v25  ;;  %v7091_v59 = vrot.slane %v7090_v4, 4  ;;  %v13177_v1 = vld [vmem:[#allocation14_spill] sm:$0xff] }
 0x515   : > { %v7015_v35 = vrot.slane %v7014_v43, 2  ;;  %v7092_v27 = vadd.f32 %v7091_v59, %v7090_v4 }
 0x517   : > { %v7016_v26 = vadd.f32 %v7015_v35, %v7014_v43  ;;  %v7093_v28 = vrot.slane %v7092_v27, 2  ;;  %v13178_v35 = vld [vmem:[#allocation24_spill] sm:$0xff] }
 0x519   : > { %v7017_v34 = vrot.slane %v7016_v26, 1  ;;  %v7094_v8 = vadd.f32 %v7093_v28, %v7092_v27  ;;  %v13179_v28 = vld [vmem:[#allocation44_spill] sm:$0xff] }
 0x51b   : > { %v7018_v51 = vadd.f32 %v7017_v34, %v7016_v26  ;;  %v7095_v45 = vrot.slane %v7094_v8, 1 }
 0x51d   : > { %v12472_v21 = vmul.f32 0.00390625, %v7018_v51  ;;  %v7096_v0 = vadd.f32 %v7095_v45, %v7094_v8  ;;  %v13180_v8 = vld [vmem:[#allocation15_spill] sm:$0xff]  ;;  %v13181_v45 = vld [vmem:[#allocation12_spill] sm:$0xff] }
 0x51f   : > { %v7097_v15 = vmul.f32 0.00390625, %v7096_v0  ;;  %v7098_v47 = vmul.f32 %v12472_v21, %v12472_v21  ;;  %v7126_v3 = vsub.f32 %v12383_v37, %v12472_v21  ;;  %v7127_v6 = vsub.f32 %v12390_v38, %v12472_v21 }
 0x520   : > { %v7128_v18 = vsub.f32 %v12394_v61, %v12472_v21  ;;  %v7129_v2 = vsub.f32 %v12404_v36, %v12472_v21  ;;  %v7130_v23 = vsub.f32 %v12408_v24, %v12472_v21  ;;  %v7131_v62 = vsub.f32 %v12418_v33, %v12472_v21 }
 0x521   : > { %v7099_v55 = vsub.f32 %v7097_v15, %v7098_v47  ;;  %v7132_v44 = vsub.f32 %v12422_v54, %v12472_v21  ;;  %v7133_v13 = vsub.f32 %v12432_v31, %v12472_v21  ;;  %v7134_v50 = vsub.f32 %v12436_v53, %v12472_v21 }
 0x522   : > { %v7135_v17 = vsub.f32 %v12446_v63, %v12472_v21  ;;  %v7136_v5 = vsub.f32 %v12450_v39, %v12472_v21  ;;  %v7137_v49 = vsub.f32 %v12460_v30, %v12472_v21  ;;  %v7138_v32 = vsub.f32 %v12464_v9, %v12472_v21 }
 0x523   : > { %v7100_v7 = vmax.f32 %v7099_v55, 0.0  ;;  %v7103_v29 = vsub.f32 %v13174_v22, %v12472_v21  ;;  %v7104_v25 = vsub.f32 %v13175_v20, %v12472_v21  ;;  %v7105_v46 = vsub.f32 %v13176_v42, %v12472_v21 }
 0x524   : > { %v7106_v4 = vsub.f32 %v13177_v1, %v12472_v21  ;;  %v7107_v43 = vsub.f32 %v12200_v56, %v12472_v21  ;;  %v7108_v59 = vsub.f32 %v12203_v41, %v12472_v21  ;;  %v7109_v27 = vsub.f32 %v13178_v35, %v12472_v21  ;;  %v13182_v56 = vld [vmem:[#allocation11_spill] sm:$0xff] }
 0x525   : > { %v7101_v10 = vadd.f32 1e-05, %v7100_v7  ;;  %v7110_v26 = vsub.f32 %v12218_v58, %v12472_v21  ;;  %v7111_v34 = vsub.f32 %v13179_v28, %v12472_v21  ;;  %v7112_v51 = vsub.f32 %v13180_v8, %v12472_v21  ;;  %v13183_v58 = vld [vmem:[#allocation16_spill] sm:$0xff] }
 0x526   : > { %v7113_v0 = vsub.f32 %v13181_v45, %v12472_v21  ;;  %v7114_v15 = vsub.f32 %v13182_v56, %v12472_v21  ;;  %v7115_v41 = vsub.f32 %v12279_v57, %v12472_v21  ;;  %v7116_v47 = vsub.f32 %v12288_v14, %v12472_v21 }
 0x527   : > { %8433 = vrsqrt.f32 %v7101_v10  ;;  %v7117_v55 = vsub.f32 %v13183_v58, %v12472_v21  ;;  %v7118_v7 = vsub.f32 %v12313_v48, %v12472_v21  ;;  %v7119_v10 = vsub.f32 %v12329_v40, %v12472_v21 }
 0x528   : > { %v7120_v22 = vsub.f32 %v12335_v12, %v12472_v21  ;;  %v7121_v20 = vsub.f32 %v12345_v19, %v12472_v21  ;;  %v7122_v57 = vsub.f32 %v12352_v16, %v12472_v21  ;;  %v7123_v14 = vsub.f32 %v12362_v60, %v12472_v21 }
 0x529   : > { %v7124_v48 = vsub.f32 %v12369_v52, %v12472_v21  ;;  %v7125_v40 = vsub.f32 %v12376_v11, %v12472_v21 }
 0x531   : > { %v12541_v42 = vpop.eup %8433 }
 0x532   : > { %v7139_v12 = vmul.f32 %v12541_v42, %v7103_v29  ;;  %v7140_v19 = vmul.f32 %v12541_v42, %v7104_v25  ;;  %v7141_v1 = vmul.f32 %v12541_v42, %v7105_v46  ;;  %v7142_v16 = vmul.f32 %v12541_v42, %v7106_v4 }
 0x533   : > { %v7143_v35 = vmul.f32 %v12541_v42, %v7107_v43  ;;  %v7144_v60 = vmul.f32 %v12541_v42, %v7108_v59  ;;  %v7145_v52 = vmul.f32 %v12541_v42, %v7109_v27  ;;  %v7146_v11 = vmul.f32 %v12541_v42, %v7110_v26 }
 0x534   : > { %v7147_v29 = vmul.f32 %v12541_v42, %v7111_v34  ;;  %v7148_v25 = vmul.f32 %v12541_v42, %v7112_v51  ;;  %v7149_v46 = vmul.f32 %v12541_v42, %v7113_v0  ;;  %v7150_v4 = vmul.f32 %v12541_v42, %v7114_v15  ;;  %7175 = vst [vmem:[%s12546_s11] sm:$0xff] %v7139_v12 }
 0x535   : > { %7176 = vst [vmem:[%s12546_s11 + $0x8] sm:$0xff] %v7140_v19  ;;  %7177 = vst [vmem:[%s12546_s11 + $0x10] sm:$0xff] %v7141_v1  ;;  %v7151_v43 = vmul.f32 %v12541_v42, %v7115_v41  ;;  %v7152_v59 = vmul.f32 %v12541_v42, %v7116_v47  ;;  %v7153_v27 = vmul.f32 %v12541_v42, %v7117_v55 }
 0x536   : > { %7178 = vst [vmem:[%s12546_s11 + $0x18] sm:$0xff] %v7142_v16  ;;  %v7154_v26 = vmul.f32 %v12541_v42, %v7118_v7  ;;  %7179 = vst [vmem:[%s12546_s11 + $0x20] sm:$0xff] %v7143_v35  ;;  %v7155_v28 = vmul.f32 %v12541_v42, %v7119_v10  ;;  %v7156_v34 = vmul.f32 %v12541_v42, %v7120_v22 }
 0x537   : > { %7180 = vst [vmem:[%s12546_s11 + $0x28] sm:$0xff] %v7144_v60  ;;  %7181 = vst [vmem:[%s12546_s11 + $0x30] sm:$0xff] %v7145_v52  ;;  %v7157_v8 = vmul.f32 %v12541_v42, %v7121_v20  ;;  %v7158_v51 = vmul.f32 %v12541_v42, %v7122_v57  ;;  %v7159_v45 = vmul.f32 %v12541_v42, %v7123_v14 }
 0x538   : > { %7182 = vst [vmem:[%s12546_s11 + $0x38] sm:$0xff] %v7146_v11  ;;  %7183 = vst [vmem:[%s12546_s11 + $0x40] sm:$0xff] %v7147_v29  ;;  %v7160_v0 = vmul.f32 %v12541_v42, %v7124_v48  ;;  %v7161_v56 = vmul.f32 %v12541_v42, %v7125_v40  ;;  %v7162_v15 = vmul.f32 %v12541_v42, %v7126_v3 }
 0x539   : > { %7184 = vst [vmem:[%s12546_s11 + $0x48] sm:$0xff] %v7148_v25  ;;  %7185 = vst [vmem:[%s12546_s11 + $0x50] sm:$0xff] %v7149_v46  ;;  %v7163_v41 = vmul.f32 %v12541_v42, %v7127_v6  ;;  %v7164_v37 = vmul.f32 %v12541_v42, %v7128_v18  ;;  %v7165_v3 = vmul.f32 %v12541_v42, %v7129_v2 }
 0x53a   : > { %7186 = vst [vmem:[%s12546_s11 + $0x58] sm:$0xff] %v7150_v4  ;;  %7187 = vst [vmem:[%s12546_s11 + $0x60] sm:$0xff] %v7151_v43  ;;  %v7166_v47 = vmul.f32 %v12541_v42, %v7130_v23  ;;  %v7167_v38 = vmul.f32 %v12541_v42, %v7131_v62  ;;  %v7168_v61 = vmul.f32 %v12541_v42, %v7132_v44 }
 0x53b   : > { %7188 = vst [vmem:[%s12546_s11 + $0x68] sm:$0xff] %v7152_v59  ;;  %7189 = vst [vmem:[%s12546_s11 + $0x70] sm:$0xff] %v7153_v27  ;;  %v7169_v36 = vmul.f32 %v12541_v42, %v7133_v13  ;;  %v7170_v24 = vmul.f32 %v12541_v42, %v7134_v50  ;;  %v7171_v33 = vmul.f32 %v12541_v42, %v7135_v17 }
 0x53c   : > { %7190 = vst [vmem:[%s12546_s11 + $0x78] sm:$0xff] %v7154_v26  ;;  %7191 = vst [vmem:[%s12546_s11 + $0x80] sm:$0xff] %v7155_v28  ;;  %v7172_v54 = vmul.f32 %v12541_v42, %v7136_v5  ;;  %v7173_v31 = vmul.f32 %v12541_v42, %v7137_v49  ;;  %v7174_v53 = vmul.f32 %v12541_v42, %v7138_v32 }
 0x53d   : > { %7192 = vst [vmem:[%s12546_s11 + $0x88] sm:$0xff] %v7156_v34  ;;  %7193 = vst [vmem:[%s12546_s11 + $0x90] sm:$0xff] %v7157_v8 }
 0x53e   : > { %7194 = vst [vmem:[%s12546_s11 + $0x98] sm:$0xff] %v7158_v51  ;;  %7195 = vst [vmem:[%s12546_s11 + $0xa0] sm:$0xff] %v7159_v45 }
 0x53f   : > { %7196 = vst [vmem:[%s12546_s11 + $0xa8] sm:$0xff] %v7160_v0  ;;  %7197 = vst [vmem:[%s12546_s11 + $0xb0] sm:$0xff] %v7161_v56 }
 0x540   : > { %7198 = vst [vmem:[%s12546_s11 + $0xb8] sm:$0xff] %v7162_v15  ;;  %7199 = vst [vmem:[%s12546_s11 + $0xc0] sm:$0xff] %v7163_v41 }
 0x541   : > { %7200 = vst [vmem:[%s12546_s11 + $0xc8] sm:$0xff] %v7164_v37  ;;  %7201 = vst [vmem:[%s12546_s11 + $0xd0] sm:$0xff] %v7165_v3 }
 0x542   : > { %7202 = vst [vmem:[%s12546_s11 + $0xd8] sm:$0xff] %v7166_v47  ;;  %7203 = vst [vmem:[%s12546_s11 + $0xe0] sm:$0xff] %v7167_v38 }
 0x543   : > { %7204 = vst [vmem:[%s12546_s11 + $0xe8] sm:$0xff] %v7168_v61  ;;  %7205 = vst [vmem:[%s12546_s11 + $0xf0] sm:$0xff] %v7169_v36 }
 0x544   : > { %7206 = vst [vmem:[%s12546_s11 + $0xf8] sm:$0xff] %v7170_v24  ;;  %7207 = vst [vmem:[%s12546_s11 + $0x100] sm:$0xff] %v7171_v33 }
 0x545   : > { %7208 = vst [vmem:[%s12546_s11 + $0x108] sm:$0xff] %v7172_v54  ;;  %7209 = vst [vmem:[%s12546_s11 + $0x110] sm:$0xff] %v7173_v31 }
 0x546   : > { %7210 = vst [vmem:[%s12546_s11 + $0x118] sm:$0xff] %v7174_v53 }
 0x547 PF: > { %s13_s12 = sadd.s32 1, %s8446_s12  }
 0x548   : > { %p10_p4 = scmp.ge.s32.totalorder %s13_s12, 4  }
 0x54a   :  { %12 = sbr.rel (!%p10_p4) target bundleno = 1 (0x1), region = 66 }

</bundles_post_ra>
